<compile_context>
chip_gen: v5e
topology: v5e:2x2
jax: 0.10.0
libtpu: 0.0.40
codegen_flags: <defaults>
</compile_context>

<pallas_src>
import functools

import numpy as np

import jax
import jax.numpy as jnp
from jax.experimental import pallas as pl
from jax.experimental.pallas import tpu as pltpu


NUM_CLASSES = 50
PAD_CLASSES = 128           # lane-dense logits block (sliced back to 50 in the wrapper)
PROTO_DIM = 512


# ---------------------------------------------------------------------------
# Row-order bookkeeping (all static, computed once with numpy).
#
# Row orders are chosen so every conv tap is a few contiguous slices:
#   input & conv1 output : rows grouped by (h mod 4) -> [0,4..28, 2,6..30, 1,5..29, 3,7..31]
#   conv2 output         : rows grouped by (h mod 2) -> [0,2..14, 1,3..15]
#   conv3 output         : natural order (any permutation would be folded into fc's weight)
# Correctness never depends on these hand-picked orders: the slice plans below
# are derived mechanically from the order arrays.
# ---------------------------------------------------------------------------
_PI1 = np.concatenate([np.arange(0, 32, 4), np.arange(2, 32, 4),
                       np.arange(1, 32, 4), np.arange(3, 32, 4)])   # conv1 output row order
_PI0 = _PI1                                                          # input row order
_PI2 = np.concatenate([np.arange(0, 16, 2), np.arange(1, 16, 2)])    # conv2 output row order
_PI3 = np.arange(8)                                                  # conv3 output row order


def _tap_plans(in_order, out_order, stride, h_in):
    """Per kh: list of ('slc', start, len) / ('zero', 0, len) sublane segments."""
    inv = np.empty(h_in, np.int64)
    inv[np.asarray(in_order)] = np.arange(h_in)
    plans = []
    for kh in range(3):
        segs = []
        for r in (stride * np.asarray(out_order) + kh - 1):
            if 0 <= r < h_in:
                p = int(inv[r])
                if segs and segs[-1][0] == "slc" and segs[-1][1] + segs[-1][2] == p:
                    segs[-1][2] += 1
                else:
                    segs.append(["slc", p, 1])
            else:
                if segs and segs[-1][0] == "zero":
                    segs[-1][2] += 1
                else:
                    segs.append(["zero", 0, 1])
        plans.append([tuple(s) for s in segs])
    return plans


_CONV1_PLAN = _tap_plans(_PI0, _PI1, 1, 32)   # 32x(32*3)  -> 32x(32*8),  stride 1
_CONV2_PLAN = _tap_plans(_PI1, _PI2, 2, 32)   # 32x(32*8)  -> 16x(16*16), stride 2
_CONV3_PLAN = _tap_plans(_PI2, _PI3, 2, 16)   # 16x(16*16) ->  8x(8*32),  stride 2


# ---------------------------------------------------------------------------
# Fused kernel: whole forward pass for one batch-block per grid step.
# ---------------------------------------------------------------------------
def _conv_layer(a, plan, h_out, m_ref, cb_ref):
    """a: (bb, h_in, Win*Cin) bf16 -> ReLU'd (bb*h_out, Wout*Cout) bf16."""
    bb, _, lanes_in = a.shape
    n_out = m_ref.shape[-1]
    acc = jnp.zeros((bb * h_out, n_out), jnp.float32)
    for kh in range(3):
        pieces = []
        for kind, start, length in plan[kh]:
            if kind == "zero":
                pieces.append(jnp.zeros((bb, length, lanes_in), a.dtype))
            else:
                pieces.append(a[:, start:start + length, :])
        tap = pieces[0] if len(pieces) == 1 else jnp.concatenate(pieces, axis=1)
        acc = acc + jnp.dot(tap.reshape(bb * h_out, lanes_in), m_ref[kh],
                            preferred_element_type=jnp.float32)
    return jnp.maximum(acc + cb_ref[...], 0.0).astype(jnp.bfloat16)


def fused_classifier_kernel(
    x_ref,                          # (bb, 32, 96) bf16   row-permuted (H, W*C) images
    m1_ref, cb1_ref,                # conv1 mixing matrices / lane-tiled bias
    m2_ref, cb2_ref,                # conv2
    m3_ref, cb3_ref,                # conv3
    wfc_ref, bfc_ref,               # fc   weight (8, 256, proto), bias (1, proto)
    w1_ref, b1_ref,                 # fc1
    w2_ref, b2_ref,                 # fc2
    w3_ref, b3_ref,                 # fc3  (128, 128) class-padded
    o_ref,                          # (1, bb, 128) f32 class-padded log-probs
):
    bf16, f32 = jnp.bfloat16, jnp.float32
    bb = x_ref.shape[0]

    a = x_ref[...]                                                       # (bb, 32, 96)
    a = _conv_layer(a, _CONV1_PLAN, 32, m1_ref, cb1_ref).reshape(bb, 32, 256)
    a = _conv_layer(a, _CONV2_PLAN, 16, m2_ref, cb2_ref).reshape(bb, 16, 256)
    a3 = _conv_layer(a, _CONV3_PLAN, 8, m3_ref, cb3_ref).reshape(bb, 8, 256)

    # fc (no relu): 8 accumulated (bb,256)@(256,proto) matmuls; the NCHW
    # flatten permutation is folded into wfc at parameter-preparation time.
    proto = wfc_ref.shape[-1]
    acc = jnp.zeros((bb, proto), f32)
    for hh in range(8):
        acc = acc + jnp.dot(a3[:, hh, :], wfc_ref[hh], preferred_element_type=f32)
    h = acc + bfc_ref[...]

    def dense_relu(hh, w_ref, b_ref):
        y = jnp.dot(hh.astype(bf16), w_ref[...], preferred_element_type=f32)
        return jnp.maximum(y + b_ref[...], 0.0)

    h = dense_relu(h, w1_ref, b1_ref)                                    # (bb, 128)
    h = dense_relu(h, w2_ref, b2_ref)                                    # (bb, 128)
    h = dense_relu(h, w3_ref, b3_ref)                                    # (bb, 128) padded classes

    # Mask padded classes, numerically-stable log_softmax in f32.
    lane = jax.lax.broadcasted_iota(jnp.int32, h.shape, 1)
    h = jnp.where(lane < NUM_CLASSES, h, jnp.float32(-1e30))
    m = jnp.max(h, axis=-1, keepdims=True)
    s = h - m
    lse = jnp.log(jnp.sum(jnp.exp(s), axis=-1, keepdims=True))
    o_ref[0] = (s - lse).astype(o_ref.dtype)


# ---------------------------------------------------------------------------
# Wrapper: one pallas_call for the whole network, B_blk images per grid step.
# ---------------------------------------------------------------------------
def _resident_spec(arr):
    zeros = (0,) * arr.ndim
    return pl.BlockSpec(arr.shape, lambda i: zeros)


def _vmem_limit_bytes():
    # Generation-aware budget: half of physical VMEM (v5e/v6e -> 64 MiB,
    # v7x -> 32 MiB), capped; safe 32 MiB fallback if the query fails.
    try:
        cap = int(pltpu.get_tpu_info().vmem_capacity_bytes)
        return int(min(cap // 2, 96 * 1024 * 1024))
    except Exception:
        return 32 * 1024 * 1024


@functools.partial(jax.jit, static_argnames=("block_b",))
def simple_image_classifier_forward(x_nchw, kp, block_b=8):
    # block_b: images per grid step.  8 gives conv1 matmuls M=256 (MXU-row
    # sized on v6e/v7x); larger blocks (32-128) further amortize the per-step
    # fc-weight streaming for big batches.
    B = x_nchw.shape[0]
    bb = max(1, min(block_b, B))
    n_blk = pl.cdiv(B, bb)
    b_pad = n_blk * bb

    x = x_nchw.astype(jnp.bfloat16)                       # bf16 input DMA
    if b_pad != B:
        x = jnp.concatenate(
            [x, jnp.zeros((b_pad - B,) + x.shape[1:], x.dtype)], axis=0)
    # NCHW -> (B, H, W*C) lane-dense slab with rows pre-permuted to _PI0 so
    # every in-kernel conv tap is a static slice.
    xk = jnp.transpose(x, (0, 2, 3, 1))[:, _PI0].reshape(b_pad, 32, 96)

    weights = [
        kp["m1"], kp["cb1"], kp["m2"], kp["cb2"], kp["m3"], kp["cb3"],
        kp["wfc"], kp["bfc"], kp["w1"], kp["b1"], kp["w2"], kp["b2"],
        kp["w3"], kp["b3"],
    ]

    out = pl.pallas_call(
        fused_classifier_kernel,
        out_shape=jax.ShapeDtypeStruct((n_blk, bb, PAD_CLASSES), jnp.float32),
        grid=(n_blk,),
        in_specs=[pl.BlockSpec((bb, 32, 96), lambda i: (i, 0, 0))]
                 + [_resident_spec(w) for w in weights],
        out_specs=pl.BlockSpec((1, bb, PAD_CLASSES), lambda i: (i, 0, 0)),
        compiler_params=pltpu.CompilerParams(
            dimension_semantics=("parallel",),     # v7x: shard batch blocks over 2 TCs
            vmem_limit_bytes=_vmem_limit_bytes(),
        ),
    )(xk, *weights)
    return out.reshape(b_pad, PAD_CLASSES)[:B, :NUM_CLASSES]


# ---------------------------------------------------------------------------
# Parameter preparation: torch-layout weights -> kernel operands.
# ---------------------------------------------------------------------------
def _mix_matrices(w_oihw, w_in, w_out, stride):
    """M[kh, w*Cin+ci, wo*Cout+co] = conv_w[co, ci, kh, kw] where w == stride*wo + kw - 1."""
    c_out, c_in, _, _ = w_oihw.shape
    m = np.zeros((3, w_in * c_in, w_out * c_out), dtype=np.float32)
    for kh in range(3):
        for kw in range(3):
            for wo in range(w_out):
                w = stride * wo + kw - 1
                if 0 <= w < w_in:
                    m[kh, w * c_in:(w + 1) * c_in,
                      wo * c_out:(wo + 1) * c_out] += w_oihw[:, :, kh, kw].T
    return m


def prepare_kernel_params(tp):
    """tp: PyTorch-layout params (OIHW convs, (out,in) Linears) -> kernel operands."""
    f32, bf16 = jnp.float32, jnp.bfloat16
    kp = {}

    kp["m1"] = jnp.asarray(_mix_matrices(np.asarray(tp["conv1_w"]), 32, 32, 1), bf16)
    kp["cb1"] = jnp.asarray(np.tile(np.asarray(tp["conv1_b"]), 32)[None, :], f32)
    kp["m2"] = jnp.asarray(_mix_matrices(np.asarray(tp["conv2_w"]), 32, 16, 2), bf16)
    kp["cb2"] = jnp.asarray(np.tile(np.asarray(tp["conv2_b"]), 16)[None, :], f32)
    kp["m3"] = jnp.asarray(_mix_matrices(np.asarray(tp["conv3_w"]), 16, 8, 2), bf16)
    kp["cb3"] = jnp.asarray(np.tile(np.asarray(tp["conv3_b"]), 8)[None, :], f32)

    # fc: fold the NCHW flatten (torch idx = c*64 + h*8 + w) into the weight so
    # the kernel consumes the (h, w*32 + c) activation layout directly.
    wfc = np.asarray(tp["fc_w"])                              # (proto, 2048)
    proto = wfc.shape[0]
    wfc3 = wfc.reshape(proto, 32, 8, 8).transpose(2, 3, 1, 0).reshape(8, 8 * 32, proto)
    kp["wfc"] = jnp.asarray(wfc3, bf16)
    kp["bfc"] = jnp.asarray(np.asarray(tp["fc_b"])[None, :], f32)

    kp["w1"] = jnp.asarray(np.asarray(tp["fc1_w"]).T, bf16)
    kp["b1"] = jnp.asarray(np.asarray(tp["fc1_b"])[None, :], f32)
    kp["w2"] = jnp.asarray(np.asarray(tp["fc2_w"]).T, bf16)
    kp["b2"] = jnp.asarray(np.asarray(tp["fc2_b"])[None, :], f32)

    # fc3: pad the class dim 50 -> 128 (zero columns) for lane-dense stores.
    fc3_w = np.asarray(tp["fc3_w"])                           # (50, 128)
    w3 = np.zeros((fc3_w.shape[1], PAD_CLASSES), np.float32)
    w3[:, :NUM_CLASSES] = fc3_w.T
    b3 = np.zeros((1, PAD_CLASSES), np.float32)
    b3[0, :NUM_CLASSES] = np.asarray(tp["fc3_b"])
    kp["w3"] = jnp.asarray(w3, bf16)
    kp["b3"] = jnp.asarray(b3, f32)
    return kp


def make_torch_style_params(key, prototype_dim=PROTO_DIM, num_classes=NUM_CLASSES):
    """Synthetic weights in PyTorch layouts with torch-default-like init."""
    ks = iter(jax.random.split(key, 22))

    def u(k, shape, fan_in):
        bound = 1.0 / float(np.sqrt(fan_in))
        return jax.random.uniform(k, shape, jnp.float32, -bound, bound)

    p = {}
    p["conv1_w"] = u(next(ks), (8, 3, 3, 3), 3 * 9)
    p["conv1_b"] = u(next(ks), (8,), 3 * 9)
    p["conv2_w"] = u(next(ks), (16, 8, 3, 3), 8 * 9)
    p["conv2_b"] = u(next(ks), (16,), 8 * 9)
    p["conv3_w"] = u(next(ks), (32, 16, 3, 3), 16 * 9)
    p["conv3_b"] = u(next(ks), (32,), 16 * 9)
    p["fc_w"] = u(next(ks), (prototype_dim, 32 * 8 * 8), 32 * 8 * 8)
    p["fc_b"] = u(next(ks), (prototype_dim,), 32 * 8 * 8)
    p["fc1_w"] = u(next(ks), (128, prototype_dim), prototype_dim)
    p["fc1_b"] = u(next(ks), (128,), prototype_dim)
    p["fc2_w"] = u(next(ks), (128, 128), 128)
    p["fc2_b"] = u(next(ks), (128,), 128)
    p["fc3_w"] = u(next(ks), (num_classes, 128), 128)
    p["fc3_b"] = u(next(ks), (num_classes,), 128)
    return p


# ---------------------------------------------------------------------------
# Pure-JAX f32 reference (exact torch semantics) for validation.
# ---------------------------------------------------------------------------
def reference_forward(x_nchw, tp):
    x = x_nchw.astype(jnp.float32)

    def conv(x, w, b, stride):
        y = jax.lax.conv_general_dilated(
            x, w, window_strides=(stride, stride), padding=((1, 1), (1, 1)),
            dimension_numbers=("NCHW", "OIHW", "NCHW"))
        return jax.nn.relu(y + b[None, :, None, None])

    x = conv(x, tp["conv1_w"], tp["conv1_b"], 1)
    x = conv(x, tp["conv2_w"], tp["conv2_b"], 2)
    x = conv(x, tp["conv3_w"], tp["conv3_b"], 2)
    x = x.reshape(x.shape[0], -1)
    x = x @ tp["fc_w"].T + tp["fc_b"]
    x = jax.nn.relu(x @ tp["fc1_w"].T + tp["fc1_b"])
    x = jax.nn.relu(x @ tp["fc2_w"].T + tp["fc2_b"])
    x = jax.nn.relu(x @ tp["fc3_w"].T + tp["fc3_b"])
    return jax.nn.log_softmax(x, axis=-1)


# ---------------------------------------------------------------------------
if __name__ == "__main__":
    key = jax.random.PRNGKey(0)
    k_params, k_x = jax.random.split(key)

    torch_params = make_torch_style_params(k_params)
    kernel_params = prepare_kernel_params(torch_params)

    # Main case: batch 16 -> block_b=8 -> grid=(2,) (exercises batch blocking
    # and megacore sharding of the grid).
    B = 16
    x = jax.random.normal(k_x, (B, 3, 32, 32), dtype=jnp.float32)   # NCHW
    out = jax.block_until_ready(simple_image_classifier_forward(x, kernel_params))

    assert out.shape == (B, NUM_CLASSES), out.shape
    row_sums = jnp.sum(jnp.exp(out), axis=1)
    assert jnp.allclose(row_sums, 1.0, atol=1e-3), row_sums

    ref = reference_forward(x, torch_params)
    max_err = float(jnp.max(jnp.abs(out - ref)))
    # bf16 matmul operands with f32 accumulation -> loose tolerance; layout /
    # permutation bugs would produce O(1) errors and fail this check.
    assert max_err < 0.2, ("max |pallas - reference| too large:", max_err)

    # Ragged case: batch 10 -> padded to 16 internally (exercises the batch
    # zero-padding path and the slice-back).
    out10 = jax.block_until_ready(
        simple_image_classifier_forward(x[:10], kernel_params))
    assert out10.shape == (10, NUM_CLASSES), out10.shape
    max_err10 = float(jnp.max(jnp.abs(out10 - ref[:10])))
    assert max_err10 < 0.2, ("ragged-batch max err too large:", max_err10)

    print("KERNEL_OK")
</pallas_src>

<mosaic_0001>
module attributes {stable_mosaic.version = 11 : i64} {
  func.func @fused_classifier_kernel(%arg0: i32, %arg1: memref<8x32x96xbf16, #tpu.memory_space<vmem>>, %arg2: memref<3x96x256xbf16, #tpu.memory_space<vmem>>, %arg3: memref<1x256xf32, #tpu.memory_space<vmem>>, %arg4: memref<3x256x256xbf16, #tpu.memory_space<vmem>>, %arg5: memref<1x256xf32, #tpu.memory_space<vmem>>, %arg6: memref<3x256x256xbf16, #tpu.memory_space<vmem>>, %arg7: memref<1x256xf32, #tpu.memory_space<vmem>>, %arg8: memref<8x256x512xbf16, #tpu.memory_space<vmem>>, %arg9: memref<1x512xf32, #tpu.memory_space<vmem>>, %arg10: memref<512x128xbf16, #tpu.memory_space<vmem>>, %arg11: memref<1x128xf32, #tpu.memory_space<vmem>>, %arg12: memref<128x128xbf16, #tpu.memory_space<vmem>>, %arg13: memref<1x128xf32, #tpu.memory_space<vmem>>, %arg14: memref<128x128xbf16, #tpu.memory_space<vmem>>, %arg15: memref<1x128xf32, #tpu.memory_space<vmem>>, %arg16: memref<1x8x128xf32, #tpu.memory_space<vmem>>) attributes {dimension_semantics = [#tpu.dimension_semantics<parallel>], iteration_bounds = array<i64: 2>, scalar_prefetch = 0 : i64, scratch_operands = 0 : i64, tpu.core_type = #tpu.core_type<tc>, window_params = [{transform_indices = @transform_0, window_bounds = array<i64: 8, 32, 96>}, {pipeline_mode = #tpu.pipeline_mode<synchronous>, transform_indices = @transform_1, window_bounds = array<i64: 3, 96, 256>}, {pipeline_mode = #tpu.pipeline_mode<synchronous>, transform_indices = @transform_2, window_bounds = array<i64: 1, 256>}, {pipeline_mode = #tpu.pipeline_mode<synchronous>, transform_indices = @transform_3, window_bounds = array<i64: 3, 256, 256>}, {pipeline_mode = #tpu.pipeline_mode<synchronous>, transform_indices = @transform_4, window_bounds = array<i64: 1, 256>}, {pipeline_mode = #tpu.pipeline_mode<synchronous>, transform_indices = @transform_5, window_bounds = array<i64: 3, 256, 256>}, {pipeline_mode = #tpu.pipeline_mode<synchronous>, transform_indices = @transform_6, window_bounds = array<i64: 1, 256>}, {pipeline_mode = #tpu.pipeline_mode<synchronous>, transform_indices = @transform_7, window_bounds = array<i64: 8, 256, 512>}, {pipeline_mode = #tpu.pipeline_mode<synchronous>, transform_indices = @transform_8, window_bounds = array<i64: 1, 512>}, {pipeline_mode = #tpu.pipeline_mode<synchronous>, transform_indices = @transform_9, window_bounds = array<i64: 512, 128>}, {pipeline_mode = #tpu.pipeline_mode<synchronous>, transform_indices = @transform_10, window_bounds = array<i64: 1, 128>}, {pipeline_mode = #tpu.pipeline_mode<synchronous>, transform_indices = @transform_11, window_bounds = array<i64: 128, 128>}, {pipeline_mode = #tpu.pipeline_mode<synchronous>, transform_indices = @transform_12, window_bounds = array<i64: 1, 128>}, {pipeline_mode = #tpu.pipeline_mode<synchronous>, transform_indices = @transform_13, window_bounds = array<i64: 128, 128>}, {pipeline_mode = #tpu.pipeline_mode<synchronous>, transform_indices = @transform_14, window_bounds = array<i64: 1, 128>}, {transform_indices = @transform_15, window_bounds = array<i64: 1, 8, 128>}]} {
    %c0 = arith.constant 0 : index
    %c0_0 = arith.constant 0 : index
    %c0_1 = arith.constant 0 : index
    %0 = vector.load %arg1[%c0, %c0_0, %c0_1] : memref<8x32x96xbf16, #tpu.memory_space<vmem>>, vector<8x32x96xbf16>
    %cst = arith.constant 0.000000e+00 : f32
    %1 = vector.broadcast %cst : f32 to vector<256x256xf32>
    %cst_2 = arith.constant 0.000000e+00 : bf16
    %2 = vector.broadcast %cst_2 : bf16 to vector<8x1x96xbf16>
    %3 = vector.extract_strided_slice %0 {offsets = [0, 24, 0], sizes = [8, 7, 96], strides = [1, 1, 1]} : vector<8x32x96xbf16> to vector<8x7x96xbf16>
    %4 = vector.extract_strided_slice %0 {offsets = [0, 16, 0], sizes = [8, 8, 96], strides = [1, 1, 1]} : vector<8x32x96xbf16> to vector<8x8x96xbf16>
    %5 = vector.extract_strided_slice %0 {offsets = [0, 0, 0], sizes = [8, 16, 96], strides = [1, 1, 1]} : vector<8x32x96xbf16> to vector<8x16x96xbf16>
    %6 = tpu.concatenate %2, %3, %4, %5 in 1 : vector<8x1x96xbf16>, vector<8x7x96xbf16>, vector<8x8x96xbf16>, vector<8x16x96xbf16> -> vector<8x32x96xbf16>
    %7 = vector.shape_cast %6 : vector<8x32x96xbf16> to vector<256x96xbf16>
    %c0_3 = arith.constant 0 : index
    %c0_4 = arith.constant 0 : index
    %c0_5 = arith.constant 0 : index
    %8 = vector.load %arg2[%c0_3, %c0_4, %c0_5] : memref<3x96x256xbf16, #tpu.memory_space<vmem>>, vector<1x96x256xbf16>
    %9 = vector.shape_cast %8 : vector<1x96x256xbf16> to vector<96x256xbf16>
    %cst_6 = arith.constant dense<0.000000e+00> : vector<256x256xf32>
    %10 = tpu.matmul %7, %9, %cst_6 {dimension_numbers = #tpu.dot_dimension_numbers<[1], [0], [0], [1], [0, 0, 1, 1], [], []>} : vector<256x96xbf16>, vector<96x256xbf16>, vector<256x256xf32> -> vector<256x256xf32>
    %11 = arith.addf %1, %10 : vector<256x256xf32>
    %12 = vector.shape_cast %0 : vector<8x32x96xbf16> to vector<256x96xbf16>
    %c1 = arith.constant 1 : index
    %c0_7 = arith.constant 0 : index
    %c0_8 = arith.constant 0 : index
    %13 = vector.load %arg2[%c1, %c0_7, %c0_8] : memref<3x96x256xbf16, #tpu.memory_space<vmem>>, vector<1x96x256xbf16>
    %14 = vector.shape_cast %13 : vector<1x96x256xbf16> to vector<96x256xbf16>
    %cst_9 = arith.constant dense<0.000000e+00> : vector<256x256xf32>
    %15 = tpu.matmul %12, %14, %cst_9 {dimension_numbers = #tpu.dot_dimension_numbers<[1], [0], [0], [1], [0, 0, 1, 1], [], []>} : vector<256x96xbf16>, vector<96x256xbf16>, vector<256x256xf32> -> vector<256x256xf32>
    %16 = arith.addf %11, %15 : vector<256x256xf32>
    %17 = vector.extract_strided_slice %0 {offsets = [0, 16, 0], sizes = [8, 16, 96], strides = [1, 1, 1]} : vector<8x32x96xbf16> to vector<8x16x96xbf16>
    %18 = vector.extract_strided_slice %0 {offsets = [0, 8, 0], sizes = [8, 8, 96], strides = [1, 1, 1]} : vector<8x32x96xbf16> to vector<8x8x96xbf16>
    %19 = vector.extract_strided_slice %0 {offsets = [0, 1, 0], sizes = [8, 7, 96], strides = [1, 1, 1]} : vector<8x32x96xbf16> to vector<8x7x96xbf16>
    %cst_10 = arith.constant 0.000000e+00 : bf16
    %20 = vector.broadcast %cst_10 : bf16 to vector<8x1x96xbf16>
    %21 = tpu.concatenate %17, %18, %19, %20 in 1 : vector<8x16x96xbf16>, vector<8x8x96xbf16>, vector<8x7x96xbf16>, vector<8x1x96xbf16> -> vector<8x32x96xbf16>
    %22 = vector.shape_cast %21 : vector<8x32x96xbf16> to vector<256x96xbf16>
    %c2 = arith.constant 2 : index
    %c0_11 = arith.constant 0 : index
    %c0_12 = arith.constant 0 : index
    %23 = vector.load %arg2[%c2, %c0_11, %c0_12] : memref<3x96x256xbf16, #tpu.memory_space<vmem>>, vector<1x96x256xbf16>
    %24 = vector.shape_cast %23 : vector<1x96x256xbf16> to vector<96x256xbf16>
    %cst_13 = arith.constant dense<0.000000e+00> : vector<256x256xf32>
    %25 = tpu.matmul %22, %24, %cst_13 {dimension_numbers = #tpu.dot_dimension_numbers<[1], [0], [0], [1], [0, 0, 1, 1], [], []>} : vector<256x96xbf16>, vector<96x256xbf16>, vector<256x256xf32> -> vector<256x256xf32>
    %26 = arith.addf %16, %25 : vector<256x256xf32>
    %c0_14 = arith.constant 0 : index
    %c0_15 = arith.constant 0 : index
    %27 = vector.load %arg3[%c0_14, %c0_15] : memref<1x256xf32, #tpu.memory_space<vmem>>, vector<1x256xf32>
    %28 = vector.broadcast %27 : vector<1x256xf32> to vector<256x256xf32>
    %29 = arith.addf %26, %28 : vector<256x256xf32>
    %cst_16 = arith.constant 0.000000e+00 : f32
    %30 = vector.broadcast %cst_16 : f32 to vector<256x256xf32>
    %31 = arith.maximumf %29, %30 : vector<256x256xf32>
    %32 = arith.truncf %31 : vector<256x256xf32> to vector<256x256xbf16>
    %33 = vector.shape_cast %32 : vector<256x256xbf16> to vector<8x32x256xbf16>
    %cst_17 = arith.constant 0.000000e+00 : f32
    %34 = vector.broadcast %cst_17 : f32 to vector<128x256xf32>
    %cst_18 = arith.constant 0.000000e+00 : bf16
    %35 = vector.broadcast %cst_18 : bf16 to vector<8x1x256xbf16>
    %36 = vector.extract_strided_slice %33 {offsets = [0, 24, 0], sizes = [8, 7, 256], strides = [1, 1, 1]} : vector<8x32x256xbf16> to vector<8x7x256xbf16>
    %37 = vector.extract_strided_slice %33 {offsets = [0, 16, 0], sizes = [8, 8, 256], strides = [1, 1, 1]} : vector<8x32x256xbf16> to vector<8x8x256xbf16>
    %38 = tpu.concatenate %35, %36, %37 in 1 : vector<8x1x256xbf16>, vector<8x7x256xbf16>, vector<8x8x256xbf16> -> vector<8x16x256xbf16>
    %39 = vector.shape_cast %38 : vector<8x16x256xbf16> to vector<128x256xbf16>
    %c0_19 = arith.constant 0 : index
    %c0_20 = arith.constant 0 : index
    %c0_21 = arith.constant 0 : index
    %40 = vector.load %arg4[%c0_19, %c0_20, %c0_21] : memref<3x256x256xbf16, #tpu.memory_space<vmem>>, vector<1x256x256xbf16>
    %41 = vector.shape_cast %40 : vector<1x256x256xbf16> to vector<256x256xbf16>
    %cst_22 = arith.constant dense<0.000000e+00> : vector<128x256xf32>
    %42 = tpu.matmul %39, %41, %cst_22 {dimension_numbers = #tpu.dot_dimension_numbers<[1], [0], [0], [1], [0, 0, 1, 1], [], []>} : vector<128x256xbf16>, vector<256x256xbf16>, vector<128x256xf32> -> vector<128x256xf32>
    %43 = arith.addf %34, %42 : vector<128x256xf32>
    %44 = vector.extract_strided_slice %33 {offsets = [0, 0, 0], sizes = [8, 16, 256], strides = [1, 1, 1]} : vector<8x32x256xbf16> to vector<8x16x256xbf16>
    %45 = vector.shape_cast %44 : vector<8x16x256xbf16> to vector<128x256xbf16>
    %c1_23 = arith.constant 1 : index
    %c0_24 = arith.constant 0 : index
    %c0_25 = arith.constant 0 : index
    %46 = vector.load %arg4[%c1_23, %c0_24, %c0_25] : memref<3x256x256xbf16, #tpu.memory_space<vmem>>, vector<1x256x256xbf16>
    %47 = vector.shape_cast %46 : vector<1x256x256xbf16> to vector<256x256xbf16>
    %cst_26 = arith.constant dense<0.000000e+00> : vector<128x256xf32>
    %48 = tpu.matmul %45, %47, %cst_26 {dimension_numbers = #tpu.dot_dimension_numbers<[1], [0], [0], [1], [0, 0, 1, 1], [], []>} : vector<128x256xbf16>, vector<256x256xbf16>, vector<128x256xf32> -> vector<128x256xf32>
    %49 = arith.addf %43, %48 : vector<128x256xf32>
    %50 = vector.extract_strided_slice %33 {offsets = [0, 16, 0], sizes = [8, 16, 256], strides = [1, 1, 1]} : vector<8x32x256xbf16> to vector<8x16x256xbf16>
    %51 = vector.shape_cast %50 : vector<8x16x256xbf16> to vector<128x256xbf16>
    %c2_27 = arith.constant 2 : index
    %c0_28 = arith.constant 0 : index
    %c0_29 = arith.constant 0 : index
    %52 = vector.load %arg4[%c2_27, %c0_28, %c0_29] : memref<3x256x256xbf16, #tpu.memory_space<vmem>>, vector<1x256x256xbf16>
    %53 = vector.shape_cast %52 : vector<1x256x256xbf16> to vector<256x256xbf16>
    %cst_30 = arith.constant dense<0.000000e+00> : vector<128x256xf32>
    %54 = tpu.matmul %51, %53, %cst_30 {dimension_numbers = #tpu.dot_dimension_numbers<[1], [0], [0], [1], [0, 0, 1, 1], [], []>} : vector<128x256xbf16>, vector<256x256xbf16>, vector<128x256xf32> -> vector<128x256xf32>
    %55 = arith.addf %49, %54 : vector<128x256xf32>
    %c0_31 = arith.constant 0 : index
    %c0_32 = arith.constant 0 : index
    %56 = vector.load %arg5[%c0_31, %c0_32] : memref<1x256xf32, #tpu.memory_space<vmem>>, vector<1x256xf32>
    %57 = vector.broadcast %56 : vector<1x256xf32> to vector<128x256xf32>
    %58 = arith.addf %55, %57 : vector<128x256xf32>
    %cst_33 = arith.constant 0.000000e+00 : f32
    %59 = vector.broadcast %cst_33 : f32 to vector<128x256xf32>
    %60 = arith.maximumf %58, %59 : vector<128x256xf32>
    %61 = arith.truncf %60 : vector<128x256xf32> to vector<128x256xbf16>
    %62 = vector.shape_cast %61 : vector<128x256xbf16> to vector<8x16x256xbf16>
    %cst_34 = arith.constant 0.000000e+00 : f32
    %63 = vector.broadcast %cst_34 : f32 to vector<64x256xf32>
    %cst_35 = arith.constant 0.000000e+00 : bf16
    %64 = vector.broadcast %cst_35 : bf16 to vector<8x1x256xbf16>
    %65 = vector.extract_strided_slice %62 {offsets = [0, 8, 0], sizes = [8, 7, 256], strides = [1, 1, 1]} : vector<8x16x256xbf16> to vector<8x7x256xbf16>
    %66 = tpu.concatenate %64, %65 in 1 : vector<8x1x256xbf16>, vector<8x7x256xbf16> -> vector<8x8x256xbf16>
    %67 = vector.shape_cast %66 : vector<8x8x256xbf16> to vector<64x256xbf16>
    %c0_36 = arith.constant 0 : index
    %c0_37 = arith.constant 0 : index
    %c0_38 = arith.constant 0 : index
    %68 = vector.load %arg6[%c0_36, %c0_37, %c0_38] : memref<3x256x256xbf16, #tpu.memory_space<vmem>>, vector<1x256x256xbf16>
    %69 = vector.shape_cast %68 : vector<1x256x256xbf16> to vector<256x256xbf16>
    %cst_39 = arith.constant dense<0.000000e+00> : vector<64x256xf32>
    %70 = tpu.matmul %67, %69, %cst_39 {dimension_numbers = #tpu.dot_dimension_numbers<[1], [0], [0], [1], [0, 0, 1, 1], [], []>} : vector<64x256xbf16>, vector<256x256xbf16>, vector<64x256xf32> -> vector<64x256xf32>
    %71 = arith.addf %63, %70 : vector<64x256xf32>
    %72 = vector.extract_strided_slice %62 {offsets = [0, 0, 0], sizes = [8, 8, 256], strides = [1, 1, 1]} : vector<8x16x256xbf16> to vector<8x8x256xbf16>
    %73 = vector.shape_cast %72 : vector<8x8x256xbf16> to vector<64x256xbf16>
    %c1_40 = arith.constant 1 : index
    %c0_41 = arith.constant 0 : index
    %c0_42 = arith.constant 0 : index
    %74 = vector.load %arg6[%c1_40, %c0_41, %c0_42] : memref<3x256x256xbf16, #tpu.memory_space<vmem>>, vector<1x256x256xbf16>
    %75 = vector.shape_cast %74 : vector<1x256x256xbf16> to vector<256x256xbf16>
    %cst_43 = arith.constant dense<0.000000e+00> : vector<64x256xf32>
    %76 = tpu.matmul %73, %75, %cst_43 {dimension_numbers = #tpu.dot_dimension_numbers<[1], [0], [0], [1], [0, 0, 1, 1], [], []>} : vector<64x256xbf16>, vector<256x256xbf16>, vector<64x256xf32> -> vector<64x256xf32>
    %77 = arith.addf %71, %76 : vector<64x256xf32>
    %78 = vector.extract_strided_slice %62 {offsets = [0, 8, 0], sizes = [8, 8, 256], strides = [1, 1, 1]} : vector<8x16x256xbf16> to vector<8x8x256xbf16>
    %79 = vector.shape_cast %78 : vector<8x8x256xbf16> to vector<64x256xbf16>
    %c2_44 = arith.constant 2 : index
    %c0_45 = arith.constant 0 : index
    %c0_46 = arith.constant 0 : index
    %80 = vector.load %arg6[%c2_44, %c0_45, %c0_46] : memref<3x256x256xbf16, #tpu.memory_space<vmem>>, vector<1x256x256xbf16>
    %81 = vector.shape_cast %80 : vector<1x256x256xbf16> to vector<256x256xbf16>
    %cst_47 = arith.constant dense<0.000000e+00> : vector<64x256xf32>
    %82 = tpu.matmul %79, %81, %cst_47 {dimension_numbers = #tpu.dot_dimension_numbers<[1], [0], [0], [1], [0, 0, 1, 1], [], []>} : vector<64x256xbf16>, vector<256x256xbf16>, vector<64x256xf32> -> vector<64x256xf32>
    %83 = arith.addf %77, %82 : vector<64x256xf32>
    %c0_48 = arith.constant 0 : index
    %c0_49 = arith.constant 0 : index
    %84 = vector.load %arg7[%c0_48, %c0_49] : memref<1x256xf32, #tpu.memory_space<vmem>>, vector<1x256xf32>
    %85 = vector.broadcast %84 : vector<1x256xf32> to vector<64x256xf32>
    %86 = arith.addf %83, %85 : vector<64x256xf32>
    %cst_50 = arith.constant 0.000000e+00 : f32
    %87 = vector.broadcast %cst_50 : f32 to vector<64x256xf32>
    %88 = arith.maximumf %86, %87 : vector<64x256xf32>
    %89 = arith.truncf %88 : vector<64x256xf32> to vector<64x256xbf16>
    %90 = vector.shape_cast %89 : vector<64x256xbf16> to vector<8x8x256xbf16>
    %cst_51 = arith.constant 0.000000e+00 : f32
    %91 = vector.broadcast %cst_51 : f32 to vector<8x512xf32>
    %92 = vector.extract_strided_slice %90 {offsets = [0, 0, 0], sizes = [8, 1, 256], strides = [1, 1, 1]} : vector<8x8x256xbf16> to vector<8x1x256xbf16>
    %93 = vector.shape_cast %92 : vector<8x1x256xbf16> to vector<8x256xbf16>
    %c0_52 = arith.constant 0 : index
    %c0_53 = arith.constant 0 : index
    %c0_54 = arith.constant 0 : index
    %94 = vector.load %arg8[%c0_52, %c0_53, %c0_54] : memref<8x256x512xbf16, #tpu.memory_space<vmem>>, vector<1x256x512xbf16>
    %95 = vector.shape_cast %94 : vector<1x256x512xbf16> to vector<256x512xbf16>
    %cst_55 = arith.constant dense<0.000000e+00> : vector<8x512xf32>
    %96 = tpu.matmul %93, %95, %cst_55 {dimension_numbers = #tpu.dot_dimension_numbers<[1], [0], [0], [1], [0, 0, 1, 1], [], []>} : vector<8x256xbf16>, vector<256x512xbf16>, vector<8x512xf32> -> vector<8x512xf32>
    %97 = arith.addf %91, %96 : vector<8x512xf32>
    %98 = vector.extract_strided_slice %90 {offsets = [0, 1, 0], sizes = [8, 1, 256], strides = [1, 1, 1]} : vector<8x8x256xbf16> to vector<8x1x256xbf16>
    %99 = vector.shape_cast %98 : vector<8x1x256xbf16> to vector<8x256xbf16>
    %c1_56 = arith.constant 1 : index
    %c0_57 = arith.constant 0 : index
    %c0_58 = arith.constant 0 : index
    %100 = vector.load %arg8[%c1_56, %c0_57, %c0_58] : memref<8x256x512xbf16, #tpu.memory_space<vmem>>, vector<1x256x512xbf16>
    %101 = vector.shape_cast %100 : vector<1x256x512xbf16> to vector<256x512xbf16>
    %cst_59 = arith.constant dense<0.000000e+00> : vector<8x512xf32>
    %102 = tpu.matmul %99, %101, %cst_59 {dimension_numbers = #tpu.dot_dimension_numbers<[1], [0], [0], [1], [0, 0, 1, 1], [], []>} : vector<8x256xbf16>, vector<256x512xbf16>, vector<8x512xf32> -> vector<8x512xf32>
    %103 = arith.addf %97, %102 : vector<8x512xf32>
    %104 = vector.extract_strided_slice %90 {offsets = [0, 2, 0], sizes = [8, 1, 256], strides = [1, 1, 1]} : vector<8x8x256xbf16> to vector<8x1x256xbf16>
    %105 = vector.shape_cast %104 : vector<8x1x256xbf16> to vector<8x256xbf16>
    %c2_60 = arith.constant 2 : index
    %c0_61 = arith.constant 0 : index
    %c0_62 = arith.constant 0 : index
    %106 = vector.load %arg8[%c2_60, %c0_61, %c0_62] : memref<8x256x512xbf16, #tpu.memory_space<vmem>>, vector<1x256x512xbf16>
    %107 = vector.shape_cast %106 : vector<1x256x512xbf16> to vector<256x512xbf16>
    %cst_63 = arith.constant dense<0.000000e+00> : vector<8x512xf32>
    %108 = tpu.matmul %105, %107, %cst_63 {dimension_numbers = #tpu.dot_dimension_numbers<[1], [0], [0], [1], [0, 0, 1, 1], [], []>} : vector<8x256xbf16>, vector<256x512xbf16>, vector<8x512xf32> -> vector<8x512xf32>
    %109 = arith.addf %103, %108 : vector<8x512xf32>
    %110 = vector.extract_strided_slice %90 {offsets = [0, 3, 0], sizes = [8, 1, 256], strides = [1, 1, 1]} : vector<8x8x256xbf16> to vector<8x1x256xbf16>
    %111 = vector.shape_cast %110 : vector<8x1x256xbf16> to vector<8x256xbf16>
    %c3 = arith.constant 3 : index
    %c0_64 = arith.constant 0 : index
    %c0_65 = arith.constant 0 : index
    %112 = vector.load %arg8[%c3, %c0_64, %c0_65] : memref<8x256x512xbf16, #tpu.memory_space<vmem>>, vector<1x256x512xbf16>
    %113 = vector.shape_cast %112 : vector<1x256x512xbf16> to vector<256x512xbf16>
    %cst_66 = arith.constant dense<0.000000e+00> : vector<8x512xf32>
    %114 = tpu.matmul %111, %113, %cst_66 {dimension_numbers = #tpu.dot_dimension_numbers<[1], [0], [0], [1], [0, 0, 1, 1], [], []>} : vector<8x256xbf16>, vector<256x512xbf16>, vector<8x512xf32> -> vector<8x512xf32>
    %115 = arith.addf %109, %114 : vector<8x512xf32>
    %116 = vector.extract_strided_slice %90 {offsets = [0, 4, 0], sizes = [8, 1, 256], strides = [1, 1, 1]} : vector<8x8x256xbf16> to vector<8x1x256xbf16>
    %117 = vector.shape_cast %116 : vector<8x1x256xbf16> to vector<8x256xbf16>
    %c4 = arith.constant 4 : index
    %c0_67 = arith.constant 0 : index
    %c0_68 = arith.constant 0 : index
    %118 = vector.load %arg8[%c4, %c0_67, %c0_68] : memref<8x256x512xbf16, #tpu.memory_space<vmem>>, vector<1x256x512xbf16>
    %119 = vector.shape_cast %118 : vector<1x256x512xbf16> to vector<256x512xbf16>
    %cst_69 = arith.constant dense<0.000000e+00> : vector<8x512xf32>
    %120 = tpu.matmul %117, %119, %cst_69 {dimension_numbers = #tpu.dot_dimension_numbers<[1], [0], [0], [1], [0, 0, 1, 1], [], []>} : vector<8x256xbf16>, vector<256x512xbf16>, vector<8x512xf32> -> vector<8x512xf32>
    %121 = arith.addf %115, %120 : vector<8x512xf32>
    %122 = vector.extract_strided_slice %90 {offsets = [0, 5, 0], sizes = [8, 1, 256], strides = [1, 1, 1]} : vector<8x8x256xbf16> to vector<8x1x256xbf16>
    %123 = vector.shape_cast %122 : vector<8x1x256xbf16> to vector<8x256xbf16>
    %c5 = arith.constant 5 : index
    %c0_70 = arith.constant 0 : index
    %c0_71 = arith.constant 0 : index
    %124 = vector.load %arg8[%c5, %c0_70, %c0_71] : memref<8x256x512xbf16, #tpu.memory_space<vmem>>, vector<1x256x512xbf16>
    %125 = vector.shape_cast %124 : vector<1x256x512xbf16> to vector<256x512xbf16>
    %cst_72 = arith.constant dense<0.000000e+00> : vector<8x512xf32>
    %126 = tpu.matmul %123, %125, %cst_72 {dimension_numbers = #tpu.dot_dimension_numbers<[1], [0], [0], [1], [0, 0, 1, 1], [], []>} : vector<8x256xbf16>, vector<256x512xbf16>, vector<8x512xf32> -> vector<8x512xf32>
    %127 = arith.addf %121, %126 : vector<8x512xf32>
    %128 = vector.extract_strided_slice %90 {offsets = [0, 6, 0], sizes = [8, 1, 256], strides = [1, 1, 1]} : vector<8x8x256xbf16> to vector<8x1x256xbf16>
    %129 = vector.shape_cast %128 : vector<8x1x256xbf16> to vector<8x256xbf16>
    %c6 = arith.constant 6 : index
    %c0_73 = arith.constant 0 : index
    %c0_74 = arith.constant 0 : index
    %130 = vector.load %arg8[%c6, %c0_73, %c0_74] : memref<8x256x512xbf16, #tpu.memory_space<vmem>>, vector<1x256x512xbf16>
    %131 = vector.shape_cast %130 : vector<1x256x512xbf16> to vector<256x512xbf16>
    %cst_75 = arith.constant dense<0.000000e+00> : vector<8x512xf32>
    %132 = tpu.matmul %129, %131, %cst_75 {dimension_numbers = #tpu.dot_dimension_numbers<[1], [0], [0], [1], [0, 0, 1, 1], [], []>} : vector<8x256xbf16>, vector<256x512xbf16>, vector<8x512xf32> -> vector<8x512xf32>
    %133 = arith.addf %127, %132 : vector<8x512xf32>
    %134 = vector.extract_strided_slice %90 {offsets = [0, 7, 0], sizes = [8, 1, 256], strides = [1, 1, 1]} : vector<8x8x256xbf16> to vector<8x1x256xbf16>
    %135 = vector.shape_cast %134 : vector<8x1x256xbf16> to vector<8x256xbf16>
    %c7 = arith.constant 7 : index
    %c0_76 = arith.constant 0 : index
    %c0_77 = arith.constant 0 : index
    %136 = vector.load %arg8[%c7, %c0_76, %c0_77] : memref<8x256x512xbf16, #tpu.memory_space<vmem>>, vector<1x256x512xbf16>
    %137 = vector.shape_cast %136 : vector<1x256x512xbf16> to vector<256x512xbf16>
    %cst_78 = arith.constant dense<0.000000e+00> : vector<8x512xf32>
    %138 = tpu.matmul %135, %137, %cst_78 {dimension_numbers = #tpu.dot_dimension_numbers<[1], [0], [0], [1], [0, 0, 1, 1], [], []>} : vector<8x256xbf16>, vector<256x512xbf16>, vector<8x512xf32> -> vector<8x512xf32>
    %139 = arith.addf %133, %138 : vector<8x512xf32>
    %c0_79 = arith.constant 0 : index
    %c0_80 = arith.constant 0 : index
    %140 = vector.load %arg9[%c0_79, %c0_80] : memref<1x512xf32, #tpu.memory_space<vmem>>, vector<1x512xf32>
    %141 = vector.broadcast %140 : vector<1x512xf32> to vector<8x512xf32>
    %142 = arith.addf %139, %141 : vector<8x512xf32>
    %143 = arith.truncf %142 : vector<8x512xf32> to vector<8x512xbf16>
    %c0_81 = arith.constant 0 : index
    %c0_82 = arith.constant 0 : index
    %144 = vector.load %arg10[%c0_81, %c0_82] : memref<512x128xbf16, #tpu.memory_space<vmem>>, vector<512x128xbf16>
    %cst_83 = arith.constant dense<0.000000e+00> : vector<8x128xf32>
    %145 = tpu.matmul %143, %144, %cst_83 {dimension_numbers = #tpu.dot_dimension_numbers<[1], [0], [0], [1], [0, 0, 1, 1], [], []>} : vector<8x512xbf16>, vector<512x128xbf16>, vector<8x128xf32> -> vector<8x128xf32>
    %c0_84 = arith.constant 0 : index
    %c0_85 = arith.constant 0 : index
    %146 = vector.load %arg11[%c0_84, %c0_85] : memref<1x128xf32, #tpu.memory_space<vmem>>, vector<1x128xf32>
    %147 = vector.broadcast %146 : vector<1x128xf32> to vector<8x128xf32>
    %148 = arith.addf %145, %147 : vector<8x128xf32>
    %cst_86 = arith.constant 0.000000e+00 : f32
    %149 = vector.broadcast %cst_86 : f32 to vector<8x128xf32>
    %150 = arith.maximumf %148, %149 : vector<8x128xf32>
    %151 = arith.truncf %150 : vector<8x128xf32> to vector<8x128xbf16>
    %c0_87 = arith.constant 0 : index
    %c0_88 = arith.constant 0 : index
    %152 = vector.load %arg12[%c0_87, %c0_88] : memref<128x128xbf16, #tpu.memory_space<vmem>>, vector<128x128xbf16>
    %cst_89 = arith.constant dense<0.000000e+00> : vector<8x128xf32>
    %153 = tpu.matmul %151, %152, %cst_89 {dimension_numbers = #tpu.dot_dimension_numbers<[1], [0], [0], [1], [0, 0, 1, 1], [], []>} : vector<8x128xbf16>, vector<128x128xbf16>, vector<8x128xf32> -> vector<8x128xf32>
    %c0_90 = arith.constant 0 : index
    %c0_91 = arith.constant 0 : index
    %154 = vector.load %arg13[%c0_90, %c0_91] : memref<1x128xf32, #tpu.memory_space<vmem>>, vector<1x128xf32>
    %155 = vector.broadcast %154 : vector<1x128xf32> to vector<8x128xf32>
    %156 = arith.addf %153, %155 : vector<8x128xf32>
    %cst_92 = arith.constant 0.000000e+00 : f32
    %157 = vector.broadcast %cst_92 : f32 to vector<8x128xf32>
    %158 = arith.maximumf %156, %157 : vector<8x128xf32>
    %159 = arith.truncf %158 : vector<8x128xf32> to vector<8x128xbf16>
    %c0_93 = arith.constant 0 : index
    %c0_94 = arith.constant 0 : index
    %160 = vector.load %arg14[%c0_93, %c0_94] : memref<128x128xbf16, #tpu.memory_space<vmem>>, vector<128x128xbf16>
    %cst_95 = arith.constant dense<0.000000e+00> : vector<8x128xf32>
    %161 = tpu.matmul %159, %160, %cst_95 {dimension_numbers = #tpu.dot_dimension_numbers<[1], [0], [0], [1], [0, 0, 1, 1], [], []>} : vector<8x128xbf16>, vector<128x128xbf16>, vector<8x128xf32> -> vector<8x128xf32>
    %c0_96 = arith.constant 0 : index
    %c0_97 = arith.constant 0 : index
    %162 = vector.load %arg15[%c0_96, %c0_97] : memref<1x128xf32, #tpu.memory_space<vmem>>, vector<1x128xf32>
    %163 = vector.broadcast %162 : vector<1x128xf32> to vector<8x128xf32>
    %164 = arith.addf %161, %163 : vector<8x128xf32>
    %cst_98 = arith.constant 0.000000e+00 : f32
    %165 = vector.broadcast %cst_98 : f32 to vector<8x128xf32>
    %166 = arith.maximumf %164, %165 : vector<8x128xf32>
    %167 = tpu.iota {dimensions = array<i32: 1>} : vector<8x128xi32>
    %c50_i32 = arith.constant 50 : i32
    %168 = vector.broadcast %c50_i32 : i32 to vector<8x128xi32>
    %169 = arith.cmpi slt, %167, %168 : vector<8x128xi32>
    %cst_99 = arith.constant -1.000000e+30 : f32
    %170 = vector.broadcast %cst_99 : f32 to vector<8x128xf32>
    %171 = arith.select %169, %166, %170 : vector<8x128xi1>, vector<8x128xf32>
    %cst_100 = arith.constant dense<0xFF800000> : vector<8xf32>
    %172 = vector.multi_reduction <maximumf>, %171, %cst_100 [1] : vector<8x128xf32> to vector<8xf32>
    %173 = vector.shape_cast %172 : vector<8xf32> to vector<8x1xf32>
    %174 = vector.broadcast %173 : vector<8x1xf32> to vector<8x128xf32>
    %175 = arith.subf %171, %174 : vector<8x128xf32>
    %176 = math.exp %175 : vector<8x128xf32>
    %cst_101 = arith.constant dense<0.000000e+00> : vector<8xf32>
    %177 = vector.multi_reduction <add>, %176, %cst_101 [1] : vector<8x128xf32> to vector<8xf32>
    %178 = vector.shape_cast %177 : vector<8xf32> to vector<8x1xf32>
    %179 = math.log %178 : vector<8x1xf32>
    %180 = vector.broadcast %179 : vector<8x1xf32> to vector<8x128xf32>
    %181 = arith.subf %175, %180 : vector<8x128xf32>
    %c0_102 = arith.constant 0 : index
    %c0_103 = arith.constant 0 : index
    %c0_104 = arith.constant 0 : index
    %182 = vector.load %arg16[%c0_102, %c0_103, %c0_104] : memref<1x8x128xf32, #tpu.memory_space<vmem>>, vector<1x8x128xf32>
    %183 = vector.shape_cast %182 : vector<1x8x128xf32> to vector<8x128xf32>
    %184 = vector.shape_cast %181 : vector<8x128xf32> to vector<1x8x128xf32>
    tpu.vector_store %arg16[%c0_102, %c0_103, %c0_104], %184 {strides = array<i32>} : memref<1x8x128xf32, #tpu.memory_space<vmem>>, vector<1x8x128xf32>,
    return
  }
  func.func @transform_0(%arg0: i32) -> (i32, i32, i32) {
    %c0_i32 = arith.constant 0 : i32
    %c0_i32_0 = arith.constant 0 : i32
    %c0_i32_1 = arith.constant 0 : i32
    return %arg0, %c0_i32, %c0_i32_0 : i32, i32, i32
  }
  func.func @transform_1(%arg0: i32) -> (i32, i32, i32) {
    %c0_i32 = arith.constant 0 : i32
    %c0_i32_0 = arith.constant 0 : i32
    %c0_i32_1 = arith.constant 0 : i32
    %c0_i32_2 = arith.constant 0 : i32
    return %c0_i32, %c0_i32_0, %c0_i32_1 : i32, i32, i32
  }
  func.func @transform_2(%arg0: i32) -> (i32, i32) {
    %c0_i32 = arith.constant 0 : i32
    %c0_i32_0 = arith.constant 0 : i32
    %c0_i32_1 = arith.constant 0 : i32
    return %c0_i32, %c0_i32_0 : i32, i32
  }
  func.func @transform_3(%arg0: i32) -> (i32, i32, i32) {
    %c0_i32 = arith.constant 0 : i32
    %c0_i32_0 = arith.constant 0 : i32
    %c0_i32_1 = arith.constant 0 : i32
    %c0_i32_2 = arith.constant 0 : i32
    return %c0_i32, %c0_i32_0, %c0_i32_1 : i32, i32, i32
  }
  func.func @transform_4(%arg0: i32) -> (i32, i32) {
    %c0_i32 = arith.constant 0 : i32
    %c0_i32_0 = arith.constant 0 : i32
    %c0_i32_1 = arith.constant 0 : i32
    return %c0_i32, %c0_i32_0 : i32, i32
  }
  func.func @transform_5(%arg0: i32) -> (i32, i32, i32) {
    %c0_i32 = arith.constant 0 : i32
    %c0_i32_0 = arith.constant 0 : i32
    %c0_i32_1 = arith.constant 0 : i32
    %c0_i32_2 = arith.constant 0 : i32
    return %c0_i32, %c0_i32_0, %c0_i32_1 : i32, i32, i32
  }
  func.func @transform_6(%arg0: i32) -> (i32, i32) {
    %c0_i32 = arith.constant 0 : i32
    %c0_i32_0 = arith.constant 0 : i32
    %c0_i32_1 = arith.constant 0 : i32
    return %c0_i32, %c0_i32_0 : i32, i32
  }
  func.func @transform_7(%arg0: i32) -> (i32, i32, i32) {
    %c0_i32 = arith.constant 0 : i32
    %c0_i32_0 = arith.constant 0 : i32
    %c0_i32_1 = arith.constant 0 : i32
    %c0_i32_2 = arith.constant 0 : i32
    return %c0_i32, %c0_i32_0, %c0_i32_1 : i32, i32, i32
  }
  func.func @transform_8(%arg0: i32) -> (i32, i32) {
    %c0_i32 = arith.constant 0 : i32
    %c0_i32_0 = arith.constant 0 : i32
    %c0_i32_1 = arith.constant 0 : i32
    return %c0_i32, %c0_i32_0 : i32, i32
  }
  func.func @transform_9(%arg0: i32) -> (i32, i32) {
    %c0_i32 = arith.constant 0 : i32
    %c0_i32_0 = arith.constant 0 : i32
    %c0_i32_1 = arith.constant 0 : i32
    return %c0_i32, %c0_i32_0 : i32, i32
  }
  func.func @transform_10(%arg0: i32) -> (i32, i32) {
    %c0_i32 = arith.constant 0 : i32
    %c0_i32_0 = arith.constant 0 : i32
    %c0_i32_1 = arith.constant 0 : i32
    return %c0_i32, %c0_i32_0 : i32, i32
  }
  func.func @transform_11(%arg0: i32) -> (i32, i32) {
    %c0_i32 = arith.constant 0 : i32
    %c0_i32_0 = arith.constant 0 : i32
    %c0_i32_1 = arith.constant 0 : i32
    return %c0_i32, %c0_i32_0 : i32, i32
  }
  func.func @transform_12(%arg0: i32) -> (i32, i32) {
    %c0_i32 = arith.constant 0 : i32
    %c0_i32_0 = arith.constant 0 : i32
    %c0_i32_1 = arith.constant 0 : i32
    return %c0_i32, %c0_i32_0 : i32, i32
  }
  func.func @transform_13(%arg0: i32) -> (i32, i32) {
    %c0_i32 = arith.constant 0 : i32
    %c0_i32_0 = arith.constant 0 : i32
    %c0_i32_1 = arith.constant 0 : i32
    return %c0_i32, %c0_i32_0 : i32, i32
  }
  func.func @transform_14(%arg0: i32) -> (i32, i32) {
    %c0_i32 = arith.constant 0 : i32
    %c0_i32_0 = arith.constant 0 : i32
    %c0_i32_1 = arith.constant 0 : i32
    return %c0_i32, %c0_i32_0 : i32, i32
  }
  func.func @transform_15(%arg0: i32) -> (i32, i32, i32) {
    %c0_i32 = arith.constant 0 : i32
    %c0_i32_0 = arith.constant 0 : i32
    %c0_i32_1 = arith.constant 0 : i32
    return %arg0, %c0_i32, %c0_i32_0 : i32, i32, i32
  }
}

</mosaic_0001>

<bundles_post_ra>
// kernel: simple_image_classifier_forward.1
= control target key start
LH: loop header
LB: loop body
LE: loop exit
PB: predicated region body
PF: predicated region fallthrough
CT: control target
= control target key end

     0   :  { %s21394_s0 = inlined_call_operand.vmem [shape: bf16[16,32,96], index: 0, kind: input, shape index: {}]   ;;  %s21395_s1 = inlined_call_operand.vmem [shape: bf16[3,96,256], index: 1, kind: input, shape index: {}]   ;;  %s21396_s2 = inlined_call_operand.vmem [shape: f32[1,256], index: 2, kind: input, shape index: {}]   ;;  %s21397_s3 = inlined_call_operand.vmem [shape: bf16[3,256,256], index: 3, kind: input, shape index: {}]   ;;  %s21398_s4 = inlined_call_operand.vmem [shape: f32[1,256], index: 4, kind: input, shape index: {}]   ;;  %s21399_s5 = inlined_call_operand.vmem [shape: bf16[3,256,256], index: 5, kind: input, shape index: {}]   ;;  %s21400_s6 = inlined_call_operand.vmem [shape: f32[1,256], index: 6, kind: input, shape index: {}]   ;;  %s21401_s7 = inlined_call_operand.vmem [shape: bf16[8,256,512], index: 7, kind: input, shape index: {}]   ;;  %s21402_s8 = inlined_call_operand.vmem [shape: f32[1,512], index: 8, kind: input, shape index: {}]   ;;  %s21403_s9 = inlined_call_operand.vmem [shape: bf16[512,128], index: 9, kind: input, shape index: {}]   ;;  %s21404_s10 = inlined_call_operand.vmem [shape: f32[1,128], index: 10, kind: input, shape index: {}]   ;;  %s21405_s11 = inlined_call_operand.vmem [shape: bf16[128,128], index: 11, kind: input, shape index: {}]   ;;  %s21406_s12 = inlined_call_operand.vmem [shape: f32[1,128], index: 12, kind: input, shape index: {}]   ;;  %s21407_s13 = inlined_call_operand.vmem [shape: bf16[128,128], index: 13, kind: input, shape index: {}]   ;;  %s21408_s14 = inlined_call_operand.vmem [shape: f32[1,128], index: 14, kind: input, shape index: {}]   ;;  %s21409_s15 = inlined_call_operand.hbm [shape: f32[2,8,128], index: 15, kind: output, shape index: {}]  }
   0x1   :  { %21433 = sst [smem:[#allocation65_spill]] %s21394_s0 }
   0x2   :  { %21434 = sst [smem:[#allocation66_spill]] %s21395_s1 }
   0x3   :  { %20 = vsyncpa [#allocation3], 0 }
   0x4   :  { %22 = vsyncpa [#allocation3 + $0x1], 0  ;;  %s14611_s18 = smov 0   ;;  %s14613_s19 = smov 0  }
   0x5   :  { %s14615_s20 = smov 0   ;;  %s14617_s21 = smov 0  }
   0x6 LB: > { %21435 = sst [smem:[#allocation5_spill]] %s14525_s20  ;;  %s21410_s22 = sadd.s32 4294967295, %s14529_s21   ;;  %s14529_s21 = sphi %s14617_s21, %s21631_s21   ;;  %s14525_s20 = sphi %s14615_s20, %s21633_s20   ;;  %s14521_s19 = sphi %s14613_s19, %s21635_s19   ;;  %s14517_s18 = sphi %s14611_s18, %s21634_s18  }
   0x7   : > { %s9714_s23 = sadd.s32 4294967294, %s14529_s21   ;;  %s14634_s24 = sadd.s32 1, %s14529_s21  }
   0x8   : > { %21436 = sst [smem:[#allocation6_spill]] %s14634_s24  ;;  %s355_s25 = sadd.s32 1, %s14525_s20 }
   0x9   : > { %s352_s26 = ssub.s32 %s14529_s21, %s14634_s24  ;;  %p365_p0 = scmp.ne.s32.totalorder %s14525_s20, %s14521_s19 }
   0xa   : > { %p353_p1 = scmp.eq.s32.totalorder %s352_s26, 0  ;;  %p366_p2 = scmp.eq.s32.totalorder %s21410_s22, 1 }
   0xb   : > { %p371_p3 = scmp.ne.s32.totalorder %s14521_s19, %s14517_s18  ;;  %p372_p4 = scmp.eq.s32.totalorder %s9714_s23, 1 }
   0xc   : > { %s14646_s27 = scalar_select %p353_p1, %s14525_s20, %s355_s25  }
   0xd   : > { %p14648_p5 = por %p366_p2, %p365_p0  ;;  %p14652_p6 = por %p372_p4, %p371_p3 }
   0xe   : > { %21437 = sst [smem:[#allocation7_spill]] %s14646_s27  ;;  %p9717_p7 = scmp.ge.s32.totalorder %s14529_s21, 1 }
   0xf   : > { %s21439_s29 = scalar_select %p14652_p6, 1, 0 }
  0x10   : > { %p442_p8 = scmp.lt.s32.totalorder %s14529_s21, 3 }
  0x11   : > { %21440 = sst [smem:[#allocation8_spill]] %s21439_s29 }
  0x12   : > { %p443_p9 = pnand %p9717_p7, %p442_p8 }
  0x14   : > { %446 = sbr.rel (%p443_p9) target bundleno = 2750 (0xabe), region = 80 }
  0x19   : > { %s21441_s1 = sld [smem:[#allocation66_spill]]  ;;  %s21442_s17 = sadd.s32 4294967295, %s14529_s21   ;;  %vm812_vm0 = vcmask 785408   ;;  %vm683_vm1 = vcmask 1040384   ;;  %vm684_vm2 = vsmask.f32 256 }
  0x1a   : > { %s14795_s23 = sshll.u32 %s21442_s17, 3  ;;  %s21443_s0 = sld [smem:[#allocation65_spill]]  ;;  %vm14828_vm3 = vmand %vm683_vm1, %vm684_vm2  ;;  %vm694_vm4 = vcmask 1043456   ;;  %vm1397_vm5 = vcmask 1047552   ;;  %vm1398_vm6 = vsmask.f32 7424 }
  0x1b   : > { %p492_p10 = scmp.lt.s32.totalorder %s14795_s23, 15  ;;  %vm15182_vm7 = vmand %vm1397_vm5, %vm1398_vm6  ;;  %vm5059_vm8 = vcmask 1041409   ;;  %vm5062_vm9 = vcmask 1042434   ;;  %vm5065_vm10 = vcmask 1043459   ;;  %vm5068_vm11 = vcmask 1044484  }
  0x1c   : > { %vm5071_vm12 = vcmask 1045509   ;;  %vm5074_vm13 = vcmask 1046534   ;;  %vm5077_vm14 = vcmask 1047559  }
  0x1d   : > { %s493_s26 = scalar_select %p492_p10, %s14795_s23, 15 }
  0x1f   : > { %v9776_v0 = vld [vmem:[%s21441_s1 + $0xb0] sm:$0xf]  ;;  %v13614_v1 = vld [vmem:[%s21441_s1 + $0xb4] sm:$0xf0]  ;;  %v13613_v2 = vld [vmem:[%s21441_s1 + $0xb4] sm:$0xf] }
  0x20   : > { %v9777_v3 = vor.u32 %v13614_v1, %v9776_v0  ;;  %v9778_v4 = vld [vmem:[%s21441_s1 + $0xb8] sm:$0xf0]  ;;  %v9856_v5 = vld [vmem:[%s21441_s1 + $0x50] sm:$0xf]  ;;  %v13602_v6 = vld [vmem:[%s21441_s1 + $0x54] sm:$0xf0] }
  0x21   : > { %v9781_v7 = vor.u32 %v13613_v2, %v9778_v4  ;;  %v9857_v8 = vor.u32 %v13602_v6, %v9856_v5  ;;  %v13601_v9 = vld [vmem:[%s21441_s1 + $0x54] sm:$0xf]  ;;  %v9858_v10 = vld [vmem:[%s21441_s1 + $0x58] sm:$0xf0]  ;;  %v9768_v11 = vld [vmem:[%s21441_s1 + $0xa0] sm:$0xf] }
  0x22   : > { %863 = vmatpush.bf16.msra.mxu0 %v9777_v3  ;;  %v9861_v12 = vor.u32 %v13601_v9, %v9858_v10  ;;  %v13612_v13 = vld [vmem:[%s21441_s1 + $0xa4] sm:$0xf0]  ;;  %v13611_v14 = vld [vmem:[%s21441_s1 + $0xa4] sm:$0xf]  ;;  %v9770_v15 = vld [vmem:[%s21441_s1 + $0xa8] sm:$0xf0] }
  0x23   : > { %952 = vmatpush.bf16.msra.mxu1 %v9781_v7  ;;  %1117 = vmatpush.bf16.msra.mxu2 %v9857_v8  ;;  %v9769_v16 = vor.u32 %v13612_v13, %v9768_v11  ;;  %v9773_v17 = vor.u32 %v13611_v14, %v9770_v15  ;;  %v9848_v18 = vld [vmem:[%s21441_s1 + $0x40] sm:$0xf]  ;;  %v13600_v19 = vld [vmem:[%s21441_s1 + $0x44] sm:$0xf0]  ;;  %v13599_v20 = vld [vmem:[%s21441_s1 + $0x44] sm:$0xf] }
  0x24   : > { %1206 = vmatpush.bf16.msra.mxu3 %v9861_v12  ;;  %v9849_v21 = vor.u32 %v13600_v19, %v9848_v18  ;;  %v9850_v22 = vld [vmem:[%s21441_s1 + $0x48] sm:$0xf0]  ;;  %v9760_v23 = vld [vmem:[%s21441_s1 + $0x90] sm:$0xf]  ;;  %v13610_v24 = vld [vmem:[%s21441_s1 + $0x94] sm:$0xf0] }
  0x25   : > { %v9853_v25 = vor.u32 %v13599_v20, %v9850_v22  ;;  %v13609_v26 = vld [vmem:[%s21441_s1 + $0x94] sm:$0xf]  ;;  %v9762_v27 = vld [vmem:[%s21441_s1 + $0x98] sm:$0xf0]  ;;  %v9840_v28 = vld [vmem:[%s21441_s1 + $0x30] sm:$0xf]  ;;  %v9761_v29 = vor.u32 %v13610_v24, %v9760_v23 }
  0x26   : > { %864 = vmatpush.bf16.msra.mxu0 %v9769_v16  ;;  %v13598_v30 = vld [vmem:[%s21441_s1 + $0x34] sm:$0xf0]  ;;  %v13597_v31 = vld [vmem:[%s21441_s1 + $0x34] sm:$0xf]  ;;  %v9842_v32 = vld [vmem:[%s21441_s1 + $0x38] sm:$0xf0]  ;;  %v9765_v33 = vor.u32 %v13609_v26, %v9762_v27 }
  0x27   : > { %953 = vmatpush.bf16.msra.mxu1 %v9773_v17  ;;  %1118 = vmatpush.bf16.msra.mxu2 %v9849_v21  ;;  %v9841_v34 = vor.u32 %v13598_v30, %v9840_v28  ;;  %v9752_v35 = vld [vmem:[%s21441_s1 + $0x80] sm:$0xf]  ;;  %v13608_v36 = vld [vmem:[%s21441_s1 + $0x84] sm:$0xf0]  ;;  %v13607_v37 = vld [vmem:[%s21441_s1 + $0x84] sm:$0xf]  ;;  %v9845_v38 = vor.u32 %v13597_v31, %v9842_v32 }
  0x28   : > { %1207 = vmatpush.bf16.msra.mxu3 %v9853_v25  ;;  %v9754_v39 = vld [vmem:[%s21441_s1 + $0x88] sm:$0xf0]  ;;  %v9832_v40 = vld [vmem:[%s21441_s1 + $0x20] sm:$0xf]  ;;  %v13596_v41 = vld [vmem:[%s21441_s1 + $0x24] sm:$0xf0]  ;;  %v9753_v44 = vor.u32 %v13608_v36, %v9752_v35 }
  0x29   : > { %v13595_v42 = vld [vmem:[%s21441_s1 + $0x24] sm:$0xf]  ;;  %v9834_v43 = vld [vmem:[%s21441_s1 + $0x28] sm:$0xf0]  ;;  %v9757_v45 = vor.u32 %v13607_v37, %v9754_v39  ;;  %v9833_v46 = vor.u32 %v13596_v41, %v9832_v40  ;;  %v9744_v47 = vld [vmem:[%s21441_s1 + $0x70] sm:$0xf] }
  0x2a   : > { %865 = vmatpush.bf16.msra.mxu0 %v9761_v29  ;;  %v13606_v48 = vld [vmem:[%s21441_s1 + $0x74] sm:$0xf0]  ;;  %v13605_v49 = vld [vmem:[%s21441_s1 + $0x74] sm:$0xf]  ;;  %v9837_v50 = vor.u32 %v13595_v42, %v9834_v43  ;;  %v9746_v51 = vld [vmem:[%s21441_s1 + $0x78] sm:$0xf0] }
  0x2b   : > { %954 = vmatpush.bf16.msra.mxu1 %v9765_v33  ;;  %1119 = vmatpush.bf16.msra.mxu2 %v9841_v34  ;;  %v9824_v52 = vld [vmem:[%s21441_s1 + $0x10] sm:$0xf]  ;;  %v13594_v53 = vld [vmem:[%s21441_s1 + $0x14] sm:$0xf0]  ;;  %v13593_v54 = vld [vmem:[%s21441_s1 + $0x14] sm:$0xf]  ;;  %v9745_v57 = vor.u32 %v13606_v48, %v9744_v47  ;;  %v9749_v61 = vor.u32 %v13605_v49, %v9746_v51 }
  0x2c   : > { %1208 = vmatpush.bf16.msra.mxu3 %v9845_v38  ;;  %v9826_v55 = vld [vmem:[%s21441_s1 + $0x18] sm:$0xf0]  ;;  %v9736_v56 = vld [vmem:[%s21441_s1 + $0x60] sm:$0xf]  ;;  %v13604_v58 = vld [vmem:[%s21441_s1 + $0x64] sm:$0xf0]  ;;  %v9825_v62 = vor.u32 %v13594_v53, %v9824_v52 }
  0x2d   : > { %v13603_v59 = vld [vmem:[%s21441_s1 + $0x64] sm:$0xf]  ;;  %v9738_v60 = vld [vmem:[%s21441_s1 + $0x68] sm:$0xf0]  ;;  %v9816_v63 = vld [vmem:[%s21441_s1] sm:$0xf]  ;;  %v9829_v0 = vor.u32 %v13593_v54, %v9826_v55  ;;  %v9737_v4 = vor.u32 %v13604_v58, %v9736_v56 }
  0x2e   : > { %866 = vmatpush.bf16.msra.mxu0 %v9753_v44  ;;  %v13592_v1 = vld [vmem:[%s21441_s1 + $0x4] sm:$0xf0]  ;;  %v13591_v2 = vld [vmem:[%s21441_s1 + $0x4] sm:$0xf]  ;;  %v9818_v3 = vld [vmem:[%s21441_s1 + $0x8] sm:$0xf0]  ;;  %v9741_v5 = vor.u32 %v13603_v59, %v9738_v60 }
  0x2f   : > { %955 = vmatpush.bf16.msra.mxu1 %v9757_v45  ;;  %1120 = vmatpush.bf16.msra.mxu2 %v9833_v46  ;;  %v9817_v6 = vor.u32 %v13592_v1, %v9816_v63  ;;  %v9821_v7 = vor.u32 %v13591_v2, %v9818_v3  ;;  %s13590_s30 = sshll.u32 %s493_s26, 4  ;;  %v13802_v21 = vld [vmem:[%s21399_s5 + $0x274] sm:$0xf0] }
  0x30   : > { %1209 = vmatpush.bf16.msra.mxu3 %v9837_v50  ;;  %s14811_s25 = scalar_lea.vmem %s21443_s0, %s13590_s30  ;;  %s488_s30 = sand.u32 1, %s14521_s19  }
  0x31   : > { %v499_v8 = vld [vmem:[%s14811_s25] sm:$0xf]  ;;  %v14815_v9 = vld [vmem:[%s14811_s25 + $0x4] sm:$0xf]  ;;  %v14818_v10 = vld [vmem:[%s14811_s25 + $0x8] sm:$0xff]   ;;  %s9718_s16 = sshll.u32 %s488_s30, 3  ;;  %s9650_s0 = scalar_lea.hbm %s21409_s15, %s14795_s23 }
  0x32   : > { %867 = vmatpush.bf16.msra.mxu0 %v9745_v57  ;;  %v14820_v11 = vunpack.c.l.b16 %v499_v8  ;;  %v660_v12 = vunpack.c.l.b16 %v14815_v9  ;;  %v14382_v13 = vunpack.c.h.b16 %v14818_v10  ;;  %v14381_v16 = vunpack.c.l.b16 %v14818_v10  ;;  %v14838_v25 = vld [vmem:[%s14811_s25 + $0x18] sm:$0xff]   ;;  %v503_v28 = vld [vmem:[%s14811_s25 + $0x10] sm:$0xf]  ;;  %v14847_v29 = vld [vmem:[%s14811_s25 + $0x14] sm:$0xf]  ;;  %s490_s27 = scalar_lea.vmem [#allocation2], %s9718_s16 }
  0x33   : > { %956 = vmatpush.bf16.msra.mxu1 %v9749_v61  ;;  %1121 = vmatpush.bf16.msra.mxu2 %v9825_v62  ;;  %v14386_v26 = vunpack.c.h.b16 %v14838_v25  ;;  %v14851_v31 = vunpack.c.l.b16 %v503_v28  ;;  %v662_v32 = vunpack.c.l.b16 %v14847_v29  ;;  %v14385_v36 = vunpack.c.l.b16 %v14838_v25  ;;  %v14864_v41 = vld [vmem:[%s14811_s25 + $0x28] sm:$0xff]   ;;  %v507_v44 = vld [vmem:[%s14811_s25 + $0x20] sm:$0xf]  ;;  %v14873_v45 = vld [vmem:[%s14811_s25 + $0x24] sm:$0xf]  ;;  %s9654_s20 = sshll.u32 %s9650_s0, 4  ;;  %s9655_s20 = int_to_ptr.hbm [resolvable:$true] %s9654_s20 }
  0x34   : > { %1210 = vmatpush.bf16.msra.mxu3 %v9829_v0  ;;  %v675_v14 = vpack.c.b16 %v660_v12, %v14820_v11  ;;  %v547_v15 = vpack.c.b16 %v14382_v13, %v14382_v13  ;;  %v635_v20 = vpack.c.b16 %v14381_v16, %v14381_v16  ;;  %v14390_v42 = vunpack.c.h.b16 %v14864_v41  ;;  %v14890_v57 = vld [vmem:[%s14811_s25 + $0x38] sm:$0xff]   ;;  %v511_v60 = vld [vmem:[%s14811_s25 + $0x30] sm:$0xf]  ;;  %v14899_v61 = vld [vmem:[%s14811_s25 + $0x34] sm:$0xf]  ;;  %s9640_s24 = scalar_lea.sflag [#allocation3], %s488_s30 }
  0x35   : > { %v548_v27 = vpack.c.b16 %v14386_v26, %v14386_v26  ;;  %v676_v35 = vpack.c.b16 %v662_v32, %v14851_v31  ;;  %v636_v38 = vpack.c.b16 %v14385_v36, %v14385_v36  ;;  %v14877_v47 = vunpack.c.l.b16 %v507_v44  ;;  %v14916_v12 = vld [vmem:[%s14811_s25 + $0x48] sm:$0xff]   ;;  %v14925_v16 = vld [vmem:[%s14811_s25 + $0x44] sm:$0xf]  ;;  %v13625_v44 = vld [vmem:[%s21441_s1 + $0x114] sm:$0xf]  ;;  %s14481_s29 = sshra.s32 %s9655_s20, 4  ;;  %s14482_s29 = int_to_ptr.hbm [resolvable:$true] %s14481_s29 }
  0x36   : > { %868 = vmatpush.bf16.msra.mxu0 %v9737_v4  ;;  %v556_v17 = vshrl.u32 %v547_v15, 16  ;;  %v559_v18 = vshll.u32 %v547_v15, 16  ;;  %v549_v43 = vpack.c.b16 %v14390_v42, %v14390_v42  ;;  %v664_v48 = vunpack.c.l.b16 %v14873_v45  ;;  %v515_v15 = vld [vmem:[%s14811_s25 + $0x40] sm:$0xf]  ;;  %v9948_v42 = vld [vmem:[%s21441_s1 + $0x110] sm:$0xf]  ;;  %p14488_p0 = scmp.lt.s32.totalorder %s14482_s29, %s21409_s15 }
  0x37   : > { %957 = vmatpush.bf16.msra.mxu1 %v9741_v5  ;;  %1122 = vmatpush.bf16.msra.mxu2 %v9817_v6  ;;  %v563_v30 = vshrl.u32 %v548_v27, 16  ;;  %v566_v34 = vshll.u32 %v548_v27, 16  ;;  %v14389_v52 = vunpack.c.l.b16 %v14864_v41  ;;  %v14394_v58 = vunpack.c.h.b16 %v14890_v57  ;;  %s14483_s26 = scalar_lea.hbm %s14482_s29, 8  ;;  %s14487_s23 = scalar_lea.hbm %s21409_s15, 16 }
  0x38   : > { %1211 = vmatpush.bf16.msra.mxu3 %v9821_v7  ;;  %v558_v19 = vrot.slane %v556_v17, 7  ;;  %v570_v46 = vshrl.u32 %v549_v43, 16  ;;  %v573_v50 = vshll.u32 %v549_v43, 16  ;;  %v677_v51 = vpack.c.b16 %v664_v48, %v14877_v47  ;;  %v13626_v43 = vld [vmem:[%s21441_s1 + $0x114] sm:$0xf0]  ;;  %p14484_p11 = scmp.ne.s32.totalorder %s14482_s29, %s14483_s26  ;;  %p14489_p1 = scmp.lt.s32.totalorder %s14487_s23, %s14483_s26 }
  0x39   : > { %9782 = vmatmul.msk.bf16.vlgmr.msra.gmra.mxu0 %vm812_vm0, %v675_v14  ;;  %v565_v33 = vrot.slane %v563_v30, 7  ;;  %v637_v54 = vpack.c.b16 %v14389_v52, %v14389_v52  ;;  %v550_v59 = vpack.c.b16 %v14394_v58, %v14394_v58  ;;  %v14903_v63 = vunpack.c.l.b16 %v511_v60 }
  0x3a   : > { %9798 = vmatmul.msk.bf16.vlgmr.msra.gmra.mxu1 %vm812_vm0, %v675_v14  ;;  %v561_v22 = vor.u32 %v559_v18, %v558_v19  ;;  %v572_v49 = vrot.slane %v570_v46, 7  ;;  %v666_v0 = vunpack.c.l.b16 %v14899_v61  ;;  %v14393_v4 = vunpack.c.l.b16 %v14890_v57  ;;  %p14485_p12 = pnand %p14484_p11, %p14648_p5  ;;  %p14490_p2 = por %p14489_p1, %p14488_p0 }
  0x3b   : > { %v568_v37 = vor.u32 %v566_v34, %v565_v33  ;;  %v577_v62 = vshrl.u32 %v550_v59, 16  ;;  %v580_v2 = vshll.u32 %v550_v59, 16  ;;  %v14398_v13 = vunpack.c.h.b16 %v14916_v12 }
  0x3c   : > { %v686_v23 = vsel %vm14828_vm3, 0, %v561_v22  ;;  %v575_v53 = vor.u32 %v573_v50, %v572_v49  ;;  %v678_v3 = vpack.c.b16 %v666_v0, %v14903_v63  ;;  %v638_v6 = vpack.c.b16 %v14393_v4, %v14393_v4  ;;  %v9950_v50 = vld [vmem:[%s21441_s1 + $0x118] sm:$0xf0]  ;;  %v14971_v0 = vld [vmem:[%s14811_s25 + $0x54] sm:$0xf]  ;;  %p14486_p13 = pneg %p14485_p12 }
  0x3d   : > { %v697_v24 = vsel %vm694_vm4, %v686_v23, %v635_v20  ;;  %v687_v39 = vsel %vm14828_vm3, 0, %v568_v37  ;;  %v579_v1 = vrot.slane %v577_v62, 7  ;;  %v14929_v18 = vunpack.c.l.b16 %v515_v15  ;;  %v519_v62 = vld [vmem:[%s14811_s25 + $0x50] sm:$0xf] }
  0x3e   : > { %9862 = vmatmul.msk.bf16.vlgmr.msra.gmra.mxu2 %vm812_vm0, %v697_v24  ;;  %9878 = vmatmul.msk.bf16.vlgmr.msra.gmra.mxu3 %vm812_vm0, %v697_v24  ;;  %v700_v40 = vsel %vm694_vm4, %v687_v39, %v636_v38  ;;  %v688_v55 = vsel %vm14828_vm3, 0, %v575_v53  ;;  %v668_v19 = vunpack.c.l.b16 %v14925_v16  ;;  %v14397_v27 = vunpack.c.l.b16 %v14916_v12  ;;  %v14942_v38 = vld [vmem:[%s14811_s25 + $0x58] sm:$0xff]   ;;  %p14491_p3 = pnand %p14490_p2, %p14486_p13 }
  0x3f   : > { %v703_v56 = vsel %vm694_vm4, %v688_v55, %v637_v54  ;;  %v582_v5 = vor.u32 %v580_v2, %v579_v1  ;;  %v9949_v49 = vor.u32 %v13626_v43, %v9948_v42  ;;  %v9953_v52 = vor.u32 %v13625_v44, %v9950_v50 }
  0x40   : > { %v679_v23 = vpack.c.b16 %v668_v19, %v14929_v18  ;;  %v639_v30 = vpack.c.b16 %v14397_v27, %v14397_v27  ;;  %v14975_v2 = vunpack.c.l.b16 %v519_v62  ;;  %v14401_v19 = vunpack.c.l.b16 %v14942_v38 }
  0x41   : > { %v689_v7 = vsel %vm14828_vm3, 0, %v582_v5  ;;  %1507 = vmatpush.bf16.msrb.mxu0 %v9949_v49  ;;  %1596 = vmatpush.bf16.msrb.mxu1 %v9953_v52 }
  0x42   : > { %v706_v8 = vsel %vm694_vm4, %v689_v7, %v638_v6 }
  0x49   : > { %9783 = vmatmul.msk.bf16.gmra.mxu0 %vm812_vm0, %v14818_v10 }
  0x4a   : > { %9799 = vmatmul.msk.bf16.gmra.mxu1 %vm812_vm0, %v14818_v10 }
  0x4e   : > { %9863 = vmatmul.msk.bf16.gmra.mxu2 %vm812_vm0, %v675_v14  ;;  %9879 = vmatmul.msk.bf16.gmra.mxu3 %vm812_vm0, %v675_v14  ;;  %v551_v14 = vpack.c.b16 %v14398_v13, %v14398_v13 }
  0x50   : > { %v584_v17 = vshrl.u32 %v551_v14, 16  ;;  %v587_v22 = vshll.u32 %v551_v14, 16 }
  0x52   : > { %v586_v20 = vrot.slane %v584_v17, 7 }
  0x54   : > { %v589_v28 = vor.u32 %v587_v22, %v586_v20  ;;  %v640_v22 = vpack.c.b16 %v14401_v19, %v14401_v19  ;;  %v9940_v19 = vld [vmem:[%s21441_s1 + $0x100] sm:$0xf] }
  0x56   : > { %v690_v32 = vsel %vm14828_vm3, 0, %v589_v28 }
  0x57   : > { %v709_v33 = vsel %vm694_vm4, %v690_v32, %v639_v30 }
  0x59   : > { %9784 = vmatmul.msk.bf16.gmra.mxu0 %vm812_vm0, %v676_v35 }
  0x5a   : > { %9800 = vmatmul.msk.bf16.gmra.mxu1 %vm812_vm0, %v676_v35 }
  0x5e   : > { %9864 = vmatmul.msk.bf16.gmra.mxu2 %vm812_vm0, %v700_v40  ;;  %9880 = vmatmul.msk.bf16.gmra.mxu3 %vm812_vm0, %v700_v40 }
  0x69   : > { %9785 = vmatmul.msk.bf16.gmra.mxu0 %vm812_vm0, %v14838_v25 }
  0x6a   : > { %9801 = vmatmul.msk.bf16.gmra.mxu1 %vm812_vm0, %v14838_v25 }
  0x6e   : > { %9865 = vmatmul.msk.bf16.gmra.mxu2 %vm812_vm0, %v676_v35  ;;  %9881 = vmatmul.msk.bf16.gmra.mxu3 %vm812_vm0, %v676_v35 }
  0x79   : > { %9786 = vmatmul.msk.bf16.gmra.mxu0 %vm812_vm0, %v677_v51 }
  0x7a   : > { %9802 = vmatmul.msk.bf16.gmra.mxu1 %vm812_vm0, %v677_v51 }
  0x7e   : > { %9866 = vmatmul.msk.bf16.gmra.mxu2 %vm812_vm0, %v703_v56  ;;  %9882 = vmatmul.msk.bf16.gmra.mxu3 %vm812_vm0, %v703_v56 }
  0x89   : > { %9787 = vmatmul.msk.bf16.gmra.mxu0 %vm812_vm0, %v14864_v41 }
  0x8a   : > { %9803 = vmatmul.msk.bf16.gmra.mxu1 %vm812_vm0, %v14864_v41 }
  0x8e   : > { %9867 = vmatmul.msk.bf16.gmra.mxu2 %vm812_vm0, %v677_v51  ;;  %9883 = vmatmul.msk.bf16.gmra.mxu3 %vm812_vm0, %v677_v51  ;;  %v14402_v51 = vunpack.c.h.b16 %v14942_v38 }
  0x90   : > { %v552_v53 = vpack.c.b16 %v14402_v51, %v14402_v51 }
  0x92   : > { %v591_v1 = vshrl.u32 %v552_v53, 16  ;;  %v594_v5 = vshll.u32 %v552_v53, 16 }
  0x94   : > { %v593_v4 = vrot.slane %v591_v1, 7 }
  0x96   : > { %v596_v20 = vor.u32 %v594_v5, %v593_v4 }
  0x99   : > { %9788 = vmatmul.msk.bf16.gmra.mxu0 %vm812_vm0, %v678_v3 }
  0x9a   : > { %9804 = vmatmul.msk.bf16.gmra.mxu1 %vm812_vm0, %v678_v3 }
  0x9e   : > { %9868 = vmatmul.msk.bf16.gmra.mxu2 %vm812_vm0, %v706_v8  ;;  %9884 = vmatmul.msk.bf16.gmra.mxu3 %vm812_vm0, %v706_v8 }
  0xa9   : > { %9789 = vmatmul.msk.bf16.gmra.mxu0 %vm812_vm0, %v14890_v57 }
  0xaa   : > { %9805 = vmatmul.msk.bf16.gmra.mxu1 %vm812_vm0, %v14890_v57 }
  0xae   : > { %9869 = vmatmul.msk.bf16.gmra.mxu2 %vm812_vm0, %v678_v3  ;;  %9885 = vmatmul.msk.bf16.gmra.mxu3 %vm812_vm0, %v678_v3  ;;  %v670_v3 = vunpack.c.l.b16 %v14971_v0 }
  0xb0   : > { %v680_v14 = vpack.c.b16 %v670_v3, %v14975_v2 }
  0xb6   : > { %v870_v24 = vpop.f32.mrf.mxu0 }
  0xb7   : > { %v959_v26 = vpop.f32.mrf.mxu1 }
  0xb9   : > { %9790 = vmatmul.msk.bf16.gmra.mxu0 %vm812_vm0, %v679_v23 }
  0xba   : > { %9806 = vmatmul.msk.bf16.gmra.mxu1 %vm812_vm0, %v679_v23 }
  0xbe   : > { %v872_v34 = vpop.f32.mrf.mxu0  ;;  %9870 = vmatmul.msk.bf16.gmra.mxu2 %vm812_vm0, %v709_v33  ;;  %9886 = vmatmul.msk.bf16.gmra.mxu3 %vm812_vm0, %v709_v33 }
  0xbf   : > { %v961_v35 = vpop.f32.mrf.mxu1 }
  0xc1   : > { %v1124_v36 = vpop.f32.mrf.mxu2  ;;  %v1213_v37 = vpop.f32.mrf.mxu3 }
  0xc2   : > { %v14944_v39 = vadd.f32 %v1124_v36, %v870_v24  ;;  %v14946_v40 = vadd.f32 %v1213_v37, %v959_v26  ;;  %v14996_v36 = vld [vmem:[%s14811_s25 + $0x68] sm:$0xff]  }
  0xc6   : > { %v875_v46 = vpop.f32.mrf.mxu0 }
  0xc7   : > { %v964_v48 = vpop.f32.mrf.mxu1 }
  0xc9   : > { %9791 = vmatmul.msk.bf16.gmra.mxu0 %vm812_vm0, %v14916_v12  ;;  %v1126_v54 = vpop.f32.mrf.mxu2  ;;  %v1215_v55 = vpop.f32.mrf.mxu3 }
  0xca   : > { %9807 = vmatmul.msk.bf16.gmra.mxu1 %vm812_vm0, %v14916_v12  ;;  %v14965_v56 = vadd.f32 %v1126_v54, %v872_v34  ;;  %v14967_v58 = vadd.f32 %v1215_v55, %v961_v35  ;;  %v523_v55 = vld [vmem:[%s14811_s25 + $0x60] sm:$0xf] }
  0xcb   : > { %v15017_v62 = vunpack.c.l.b16 %v523_v55 }
  0xce   : > { %v877_v59 = vpop.f32.mrf.mxu0  ;;  %9871 = vmatmul.msk.bf16.gmra.mxu2 %vm812_vm0, %v679_v23  ;;  %9887 = vmatmul.msk.bf16.gmra.mxu3 %vm812_vm0, %v679_v23  ;;  %v691_v23 = vsel %vm14828_vm3, 0, %v596_v20  ;;  %v13623_v20 = vld [vmem:[%s21441_s1 + $0x104] sm:$0xf] }
  0xcf   : > { %v966_v60 = vpop.f32.mrf.mxu1  ;;  %v712_v30 = vsel %vm694_vm4, %v691_v23, %v640_v22 }
  0xd1   : > { %v1129_v6 = vpop.f32.mrf.mxu2  ;;  %v1218_v7 = vpop.f32.mrf.mxu3 }
  0xd2   : > { %v14978_v8 = vadd.f32 %v1129_v6, %v875_v46  ;;  %v14980_v13 = vadd.f32 %v1218_v7, %v964_v48  ;;  %v14406_v46 = vunpack.c.h.b16 %v14996_v36 }
  0xd4   : > { %v553_v48 = vpack.c.b16 %v14406_v46, %v14406_v46 }
  0xd6   : > { %v880_v15 = vpop.f32.mrf.mxu0  ;;  %v601_v4 = vshll.u32 %v553_v48, 16 }
  0xd7   : > { %v969_v17 = vpop.f32.mrf.mxu1 }
  0xd9   : > { %9792 = vmatmul.msk.bf16.gmra.mxu0 %vm812_vm0, %v680_v14  ;;  %v1131_v24 = vpop.f32.mrf.mxu2  ;;  %v1220_v26 = vpop.f32.mrf.mxu3 }
  0xda   : > { %9808 = vmatmul.msk.bf16.gmra.mxu1 %vm812_vm0, %v680_v14  ;;  %v14988_v27 = vadd.f32 %v1131_v24, %v877_v59  ;;  %v14990_v28 = vadd.f32 %v1220_v26, %v966_v60  ;;  %v15013_v59 = vld [vmem:[%s14811_s25 + $0x64] sm:$0xf]  ;;  %v598_v60 = vshrl.u32 %v553_v48, 16  ;;  %v14405_v24 = vunpack.c.l.b16 %v14996_v36 }
  0xdb   : > { %21446 = vst [vmem:[#allocation9_spill] sm:$0xff] %v15013_v59  ;;  %v672_v1 = vunpack.c.l.b16 %v15013_v59 }
  0xdc   : > { %v600_v3 = vrot.slane %v598_v60, 7  ;;  %v15058_v60 = vld [vmem:[%s14811_s25 + $0x78] sm:$0xff]  }
  0xde   : > { %v882_v32 = vpop.f32.mrf.mxu0  ;;  %9872 = vmatmul.msk.bf16.gmra.mxu2 %vm812_vm0, %v712_v30  ;;  %9888 = vmatmul.msk.bf16.gmra.mxu3 %vm812_vm0, %v712_v30  ;;  %v9942_v30 = vld [vmem:[%s21441_s1 + $0x108] sm:$0xf0] }
  0xdf   : > { %v971_v33 = vpop.f32.mrf.mxu1 }
  0xe1   : > { %v1134_v34 = vpop.f32.mrf.mxu2  ;;  %v1223_v35 = vpop.f32.mrf.mxu3 }
  0xe2   : > { %v14998_v37 = vadd.f32 %v1134_v34, %v880_v15  ;;  %v15000_v42 = vadd.f32 %v1223_v35, %v969_v17  ;;  %v681_v17 = vpack.c.b16 %v672_v1, %v15017_v62  ;;  %v641_v34 = vpack.c.b16 %v14405_v24, %v14405_v24  ;;  %v527_v24 = vld [vmem:[%s14811_s25 + $0x70] sm:$0xf] }
  0xe6   : > { %v885_v43 = vpop.f32.mrf.mxu0 }
  0xe7   : > { %v974_v44 = vpop.f32.mrf.mxu1 }
  0xe9   : > { %9793 = vmatmul.msk.bf16.gmra.mxu0 %vm812_vm0, %v14942_v38  ;;  %v1136_v49 = vpop.f32.mrf.mxu2  ;;  %v1225_v50 = vpop.f32.mrf.mxu3 }
  0xea   : > { %9809 = vmatmul.msk.bf16.gmra.mxu1 %vm812_vm0, %v14942_v38  ;;  %v15007_v51 = vadd.f32 %v1136_v49, %v882_v32  ;;  %v15009_v52 = vadd.f32 %v1225_v50, %v971_v33  ;;  %v603_v32 = vor.u32 %v601_v4, %v600_v3  ;;  %v9945_v33 = vor.u32 %v13623_v20, %v9942_v30 }
  0xeb   : > { %v14410_v4 = vunpack.c.h.b16 %v15058_v60 }
  0xec   : > { %1597 = vmatpush.bf16.msrb.mxu1 %v9945_v33  ;;  %v692_v35 = vsel %vm14828_vm3, 0, %v603_v32  ;;  %v9932_v32 = vld [vmem:[%s21441_s1 + $0xf0] sm:$0xf]  ;;  %v13622_v33 = vld [vmem:[%s21441_s1 + $0xf4] sm:$0xf0] }
  0xed   : > { %v715_v49 = vsel %vm694_vm4, %v692_v35, %v641_v34  ;;  %v13621_v34 = vld [vmem:[%s21441_s1 + $0xf4] sm:$0xf]  ;;  %v9933_v35 = vor.u32 %v13622_v33, %v9932_v32  ;;  %v9924_v32 = vld [vmem:[%s21441_s1 + $0xe0] sm:$0xf]  ;;  %v13620_v33 = vld [vmem:[%s21441_s1 + $0xe4] sm:$0xf0] }
  0xee   : > { %v887_v53 = vpop.f32.mrf.mxu0  ;;  %9873 = vmatmul.msk.bf16.gmra.mxu2 %vm812_vm0, %v680_v14  ;;  %9889 = vmatmul.msk.bf16.gmra.mxu3 %vm812_vm0, %v680_v14  ;;  %v13624_v14 = vld [vmem:[%s21441_s1 + $0x104] sm:$0xf0] }
  0xef   : > { %v976_v54 = vpop.f32.mrf.mxu1  ;;  %v9941_v26 = vor.u32 %v13624_v14, %v9940_v19 }
  0xf1   : > { %v1139_v5 = vpop.f32.mrf.mxu2  ;;  %v1228_v6 = vpop.f32.mrf.mxu3  ;;  %1508 = vmatpush.bf16.msrb.mxu0 %v9941_v26  ;;  %v528_v26 = vld [vmem:[%s14811_s25 + $0x74] sm:$0xf] }
  0xf2   : > { %v15020_v7 = vadd.f32 %v1139_v5, %v885_v43  ;;  %v15022_v15 = vadd.f32 %v1228_v6, %v974_v44  ;;  %v554_v5 = vpack.c.b16 %v14410_v4, %v14410_v4 }
  0xf4   : > { %v605_v30 = vshrl.u32 %v554_v5, 16 }
  0xf5   : > { %1509 = vmatpush.bf16.msrb.mxu0 %v9933_v35 }
  0xf6   : > { %v15034_v22 = vpop.f32.mrf.mxu0 }
  0xf7   : > { %v15036_v23 = vpop.f32.mrf.mxu1 }
  0xf9   : > { %9794 = vmatmul.msk.bf16.gmra.mxu0 %vm812_vm0, %v681_v17  ;;  %v1141_v43 = vpop.f32.mrf.mxu2  ;;  %v1230_v44 = vpop.f32.mrf.mxu3 }
  0xfa   : > { %9810 = vmatmul.msk.bf16.gmra.mxu1 %vm812_vm0, %v681_v17  ;;  %v15046_v46 = vadd.f32 %v1141_v43, %v887_v53  ;;  %v15048_v48 = vadd.f32 %v1230_v44, %v976_v54  ;;  %v9934_v43 = vld [vmem:[%s21441_s1 + $0xf8] sm:$0xf0]  ;;  %v15093_v44 = vunpack.c.l.b16 %v527_v24 }
  0xfb   : > { %v9937_v4 = vor.u32 %v13621_v34, %v9934_v43 }
  0xfd   : > { %1598 = vmatpush.bf16.msrb.mxu1 %v9937_v4  ;;  %v9916_v4 = vld [vmem:[%s21441_s1 + $0xd0] sm:$0xf] }
  0xfe   : > { %v15051_v50 = vpop.f32.mrf.mxu0  ;;  %9874 = vmatmul.msk.bf16.gmra.mxu2 %vm812_vm0, %v715_v49  ;;  %9890 = vmatmul.msk.bf16.gmra.mxu3 %vm812_vm0, %v715_v49  ;;  %v674_v49 = vunpack.c.l.b16 %v528_v26  ;;  %v9925_v26 = vor.u32 %v13620_v33, %v9924_v32  ;;  %v13617_v32 = vld [vmem:[%s21441_s1 + $0xd4] sm:$0xf] }
  0xff   : > { %v15053_v55 = vpop.f32.mrf.mxu1 }
 0x100   : > { %v682_v35 = vpack.c.b16 %v674_v49, %v15093_v44  ;;  %1510 = vmatpush.bf16.msrb.mxu0 %v9925_v26 }
 0x101   : > { %v15060_v1 = vpop.f32.mrf.mxu2  ;;  %v15062_v53 = vpop.f32.mrf.mxu3 }
 0x106   : > { %v895_v54 = vpop.f32.mrf.mxu0 }
 0x107   : > { %v984_v3 = vpop.f32.mrf.mxu1 }
 0x109   : > { %9795 = vmatmul.msk.bf16.gmra.mxu0 %vm812_vm0, %v14996_v36  ;;  %v15069_v6 = vpop.f32.mrf.mxu2  ;;  %v15071_v19 = vpop.f32.mrf.mxu3 }
 0x10a   : > { %9811 = vmatmul.msk.bf16.gmra.mxu1 %vm812_vm0, %v14996_v36  ;;  %21447 = vst [vmem:[#allocation10_spill] sm:$0xff] %v15071_v19  ;;  %v13618_v19 = vld [vmem:[%s21441_s1 + $0xd4] sm:$0xf0] }
 0x10b   : > { %v9917_v49 = vor.u32 %v13618_v19, %v9916_v4  ;;  %v9908_v19 = vld [vmem:[%s21441_s1 + $0xc0] sm:$0xf] }
 0x10d   : > { %1511 = vmatpush.bf16.msrb.mxu0 %v9917_v49 }
 0x10e   : > { %v15073_v14 = vpop.f32.mrf.mxu0  ;;  %9875 = vmatmul.msk.bf16.gmra.mxu2 %vm812_vm0, %v681_v17  ;;  %9891 = vmatmul.msk.bf16.gmra.mxu3 %vm812_vm0, %v681_v17  ;;  %v13619_v17 = vld [vmem:[%s21441_s1 + $0xe4] sm:$0xf] }
 0x10f   : > { %21448 = vst [vmem:[#allocation11_spill] sm:$0xff] %v15073_v14  ;;  %v15075_v20 = vpop.f32.mrf.mxu1  ;;  %v608_v14 = vshll.u32 %v554_v5, 16  ;;  %v9926_v5 = vld [vmem:[%s21441_s1 + $0xe8] sm:$0xf0] }
 0x110   : > { %21449 = vst [vmem:[#allocation12_spill] sm:$0xff] %v15075_v20  ;;  %v607_v20 = vrot.slane %v605_v30, 7  ;;  %v9929_v43 = vor.u32 %v13619_v17, %v9926_v5  ;;  %v9918_v17 = vld [vmem:[%s21441_s1 + $0xd8] sm:$0xf0] }
 0x111   : > { %v1149_v24 = vpop.f32.mrf.mxu2  ;;  %v1238_v59 = vpop.f32.mrf.mxu3 }
 0x112   : > { %v15107_v30 = vadd.f32 %v1149_v24, %v895_v54  ;;  %v15109_v34 = vadd.f32 %v1238_v59, %v984_v3  ;;  %v14409_v59 = vunpack.c.l.b16 %v15058_v60  ;;  %v610_v3 = vor.u32 %v608_v14, %v607_v20  ;;  %1599 = vmatpush.bf16.msrb.mxu1 %v9929_v43  ;;  %v13616_v14 = vld [vmem:[%s21441_s1 + $0xc4] sm:$0xf0]  ;;  %v13615_v20 = vld [vmem:[%s21441_s1 + $0xc4] sm:$0xf]  ;;  %v9910_v43 = vld [vmem:[%s21441_s1 + $0xc8] sm:$0xf0] }
 0x113   : > { %v9921_v24 = vor.u32 %v13617_v32, %v9918_v17  ;;  %v9909_v26 = vor.u32 %v13616_v14, %v9908_v19  ;;  %v9913_v4 = vor.u32 %v13615_v20, %v9910_v43  ;;  %s9652_s1 = sshll.u32 %s490_s27, 4  ;;  %s9653_s1 = int_to_ptr.vmem [resolvable:$true] %s9652_s1 }
 0x114   : > { %v642_v5 = vpack.c.b16 %v14409_v59, %v14409_v59 }
 0x115   : > { %1512 = vmatpush.bf16.msrb.mxu0 %v9909_v26 }
 0x116   : > { %v15121_v33 = vpop.f32.mrf.mxu0  ;;  %1600 = vmatpush.bf16.msrb.mxu1 %v9921_v24 }
 0x117   : > { %21450 = vst [vmem:[#allocation13_spill] sm:$0xff] %v15121_v33  ;;  %v15123_v54 = vpop.f32.mrf.mxu1  ;;  %v693_v33 = vsel %vm14828_vm3, 0, %v610_v3 }
 0x118   : > { %v718_v32 = vsel %vm694_vm4, %v693_v33, %v642_v5  ;;  %v1293_v5 = vpack.c.b16 %v14820_v11, %v14820_v11 }
 0x119   : > { %9796 = vmatmul.msk.bf16.gmra.mxu0 %vm812_vm0, %v682_v35 }
 0x11a   : > { %9812 = vmatmul.msk.bf16.gmra.mxu1 %vm812_vm0, %v682_v35  ;;  %v1302_v20 = vshrl.u32 %v1293_v5, 16  ;;  %v1305_v26 = vshll.u32 %v1293_v5, 16 }
 0x11b   : > { %1601 = vmatpush.bf16.msrb.mxu1 %v9913_v4 }
 0x11c   : > { %v1307_v43 = vrot.slane %v1305_v26, 5 }
 0x11e   : > { %v15146_v59 = vpop.f32.mrf.mxu0  ;;  %9876 = vmatmul.msk.bf16.gmra.mxu2 %vm812_vm0, %v718_v32  ;;  %9892 = vmatmul.msk.bf16.gmra.mxu3 %vm812_vm0, %v718_v32 }
 0x11f   : > { %v15148_v3 = vpop.f32.mrf.mxu1 }
 0x126   : > { %v15152_v49 = vpop.f32.mrf.mxu0 }
 0x127   : > { %v15154_v17 = vpop.f32.mrf.mxu1 }
 0x128   : > { %21451 = vst [vmem:[#allocation14_spill] sm:$0xff] %v15154_v17 }
 0x129   : > { %9797 = vmatmul.msk.bf16.gmra.mxu0 %vm812_vm0, %v15058_v60 }
 0x12a   : > { %9813 = vmatmul.msk.bf16.gmra.mxu1 %vm812_vm0, %v15058_v60  ;;  %v1304_v60 = vrot.slane %v1302_v20, 4 }
 0x12c   : > { %v1308_v32 = vor.u32 %v1307_v43, %v1304_v60 }
 0x12e   : > { %v15160_v33 = vpop.f32.mrf.mxu0  ;;  %9877 = vmatmul.msk.bf16.gmra.mxu2 %vm812_vm0, %v682_v35  ;;  %9893 = vmatmul.msk.bf16.gmra.mxu3 %vm812_vm0, %v682_v35  ;;  %v1367_v11 = vsel %vm694_vm4, %v14815_v9, %v1308_v32  ;;  %v1294_v9 = vpack.c.b16 %v14851_v31, %v14851_v31 }
 0x12f   : > { %21452 = vst [vmem:[#allocation15_spill] sm:$0xff] %v15160_v33  ;;  %v15162_v24 = vpop.f32.mrf.mxu1 }
 0x130   : > { %21453 = vst [vmem:[#allocation16_spill] sm:$0xff] %v15162_v24  ;;  %v1310_v32 = vshrl.u32 %v1294_v9, 16  ;;  %v10044_v24 = vld [vmem:[%s21397_s3 + $0x130] sm:$0xf] }
 0x136   : > { %v15168_v19 = vpop.f32.mrf.mxu0 }
 0x137   : > { %21454 = vst [vmem:[#allocation17_spill] sm:$0xff] %v15168_v19  ;;  %v15170_v14 = vpop.f32.mrf.mxu1 }
 0x138   : > { %21455 = vst [vmem:[#allocation18_spill] sm:$0xff] %v15170_v14 }
 0x139   : > { %9954 = vmatmul.msk.bf16.vlgmr.msrb.gmra.mxu0 %vm812_vm0, %v14818_v10 }
 0x13a   : > { %9970 = vmatmul.msk.bf16.vlgmr.msrb.gmra.mxu1 %vm812_vm0, %v14818_v10  ;;  %v1400_v10 = vsel %vm15182_vm7, %v1367_v11, 0  ;;  %v1312_v11 = vrot.slane %v1310_v32, 4  ;;  %v1295_v32 = vpack.c.b16 %v14877_v47, %v14877_v47  ;;  %v15242_v47 = vpop.f32.mrf.mxu3 }
 0x13e   : > { %v15176_v4 = vpop.f32.mrf.mxu0 }
 0x13f   : > { %21456 = vst [vmem:[#allocation19_spill] sm:$0xff] %v15176_v4  ;;  %v15178_v35 = vpop.f32.mrf.mxu1  ;;  %v10052_v4 = vld [vmem:[%s21397_s3 + $0x140] sm:$0xf] }
 0x140   : > { %21457 = vst [vmem:[#allocation20_spill] sm:$0xff] %v15178_v35 }
 0x146   : > { %v15186_v14 = vpop.f32.mrf.mxu0 }
 0x147   : > { %21460 = vst [vmem:[#allocation21_spill] sm:$0xff] %v15186_v14  ;;  %v15188_v19 = vpop.f32.mrf.mxu1 }
 0x148   : > { %21461 = vst [vmem:[#allocation22_spill] sm:$0xff] %v15188_v19  ;;  %v1313_v19 = vshll.u32 %v1294_v9, 16 }
 0x149   : > { %9955 = vmatmul.msk.bf16.gmra.mxu0 %vm812_vm0, %v1400_v10 }
 0x14a   : > { %9971 = vmatmul.msk.bf16.gmra.mxu1 %vm812_vm0, %v1400_v10  ;;  %v1315_v10 = vrot.slane %v1313_v19, 5 }
 0x14c   : > { %v1316_v14 = vor.u32 %v1315_v10, %v1312_v11  ;;  %v1321_v10 = vshll.u32 %v1295_v32, 16 }
 0x14e   : > { %v15194_v20 = vpop.f32.mrf.mxu0  ;;  %v1371_v31 = vsel %vm694_vm4, %v14847_v29, %v1316_v14  ;;  %v1318_v14 = vshrl.u32 %v1295_v32, 16 }
 0x14f   : > { %21462 = vst [vmem:[#allocation23_spill] sm:$0xff] %v15194_v20  ;;  %v15196_v26 = vpop.f32.mrf.mxu1  ;;  %v1401_v9 = vsel %vm15182_vm7, %v1371_v31, 0 }
 0x150   : > { %21463 = vst [vmem:[#allocation24_spill] sm:$0xff] %v15196_v26  ;;  %v1320_v31 = vrot.slane %v1318_v14, 4 }
 0x156   : > { %v15200_v60 = vpop.f32.mrf.mxu0 }
 0x157   : > { %21464 = vst [vmem:[#allocation25_spill] sm:$0xff] %v15200_v60  ;;  %v15202_v43 = vpop.f32.mrf.mxu1 }
 0x158   : > { %21465 = vst [vmem:[#allocation26_spill] sm:$0xff] %v15202_v43 }
 0x159   : > { %9956 = vmatmul.msk.bf16.gmra.mxu0 %vm812_vm0, %v14838_v25 }
 0x15a   : > { %9972 = vmatmul.msk.bf16.gmra.mxu1 %vm812_vm0, %v14838_v25 }
 0x15e   : > { %v15208_v20 = vpop.f32.mrf.mxu0 }
 0x15f   : > { %21466 = vst [vmem:[#allocation27_spill] sm:$0xff] %v15208_v20  ;;  %v15210_v26 = vpop.f32.mrf.mxu1 }
 0x160   : > { %21467 = vst [vmem:[#allocation28_spill] sm:$0xff] %v15210_v26 }
 0x166   : > { %v15214_v60 = vpop.f32.mrf.mxu0 }
 0x167   : > { %21468 = vst [vmem:[#allocation29_spill] sm:$0xff] %v15214_v60  ;;  %v15216_v43 = vpop.f32.mrf.mxu1 }
 0x168   : > { %21469 = vst [vmem:[#allocation30_spill] sm:$0xff] %v15216_v43  ;;  %v15240_v43 = vpop.f32.mrf.mxu2 }
 0x169   : > { %9957 = vmatmul.msk.bf16.gmra.mxu0 %vm812_vm0, %v1401_v9 }
 0x16a   : > { %9973 = vmatmul.msk.bf16.gmra.mxu1 %vm812_vm0, %v1401_v9  ;;  %v1323_v9 = vrot.slane %v1321_v10, 5  ;;  %v15254_v10 = vpop.f32.mrf.mxu3 }
 0x16e   : > { %v15222_v25 = vpop.f32.mrf.mxu0 }
 0x16f   : > { %21470 = vst [vmem:[#allocation31_spill] sm:$0xff] %v15222_v25  ;;  %v15224_v19 = vpop.f32.mrf.mxu1 }
 0x170   : > { %21471 = vst [vmem:[#allocation32_spill] sm:$0xff] %v15224_v19  ;;  %v15252_v14 = vpop.f32.mrf.mxu2 }
 0x176   : > { %v15228_v11 = vpop.f32.mrf.mxu0 }
 0x177   : > { %21472 = vst [vmem:[#allocation33_spill] sm:$0xff] %v15228_v11  ;;  %v15230_v29 = vpop.f32.mrf.mxu1  ;;  %v1324_v11 = vor.u32 %v1323_v9, %v1320_v31  ;;  %v10140_v9 = vld [vmem:[%s21397_s3 + $0x1f0] sm:$0xf] }
 0x178   : > { %21473 = vst [vmem:[#allocation34_spill] sm:$0xff] %v15230_v29 }
 0x179   : > { %9958 = vmatmul.msk.bf16.gmra.mxu0 %vm812_vm0, %v14864_v41  ;;  %v1375_v32 = vsel %vm694_vm4, %v14873_v45, %v1324_v11  ;;  %v10076_v45 = vld [vmem:[%s21397_s3 + $0x170] sm:$0xf]  ;;  %v13674_v11 = vld [vmem:[%s21397_s3 + $0x174] sm:$0xf0] }
 0x17a   : > { %9974 = vmatmul.msk.bf16.gmra.mxu1 %vm812_vm0, %v14864_v41  ;;  %v1402_v41 = vsel %vm15182_vm7, %v1375_v32, 0  ;;  %v10077_v32 = vor.u32 %v13674_v11, %v10076_v45  ;;  %v13672_v45 = vld [vmem:[%s21397_s3 + $0x164] sm:$0xf0]  ;;  %v10132_v11 = vld [vmem:[%s21397_s3 + $0x1e0] sm:$0xf] }
 0x17c   : > { %2506 = vmatpush.bf16.msrb.mxu2 %v10077_v32 }
 0x17e   : > { %v15236_v25 = vpop.f32.mrf.mxu0 }
 0x17f   : > { %21474 = vst [vmem:[#allocation35_spill] sm:$0xff] %v15236_v25  ;;  %v15238_v19 = vpop.f32.mrf.mxu1  ;;  %v10068_v25 = vld [vmem:[%s21397_s3 + $0x160] sm:$0xf] }
 0x180   : > { %21475 = vst [vmem:[#allocation36_spill] sm:$0xff] %v15238_v19  ;;  %v10069_v20 = vor.u32 %v13672_v45, %v10068_v25  ;;  %v13670_v25 = vld [vmem:[%s21397_s3 + $0x154] sm:$0xf0] }
 0x181   : > { %v13686_v45 = vld [vmem:[%s21397_s3 + $0x1d4] sm:$0xf0] }
 0x182   : > { %2507 = vmatpush.bf16.msrb.mxu2 %v10069_v20 }
 0x186   : > { %v15246_v29 = vpop.f32.mrf.mxu0 }
 0x187   : > { %21476 = vst [vmem:[#allocation37_spill] sm:$0xff] %v15246_v29  ;;  %v15248_v60 = vpop.f32.mrf.mxu1 }
 0x188   : > { %21477 = vst [vmem:[#allocation38_spill] sm:$0xff] %v15248_v60  ;;  %v15278_v60 = vpop.f32.mrf.mxu3 }
 0x189   : > { %9959 = vmatmul.msk.bf16.gmra.mxu0 %vm812_vm0, %v1402_v41 }
 0x18a   : > { %9975 = vmatmul.msk.bf16.gmra.mxu1 %vm812_vm0, %v1402_v41  ;;  %v13690_v41 = vld [vmem:[%s21397_s3 + $0x1f4] sm:$0xf0] }
 0x18b   : > { %v10141_v29 = vor.u32 %v13690_v41, %v10140_v9 }
 0x18d   : > { %2555 = vmatpush.bf16.msrb.mxu3 %v10141_v29  ;;  %v13688_v29 = vld [vmem:[%s21397_s3 + $0x1e4] sm:$0xf0] }
 0x18e   : > { %v15258_v19 = vpop.f32.mrf.mxu0  ;;  %v10133_v41 = vor.u32 %v13688_v29, %v10132_v11 }
 0x18f   : > { %21478 = vst [vmem:[#allocation39_spill] sm:$0xff] %v15258_v19  ;;  %v15260_v31 = vpop.f32.mrf.mxu1  ;;  %v15276_v19 = vpop.f32.mrf.mxu2 }
 0x190   : > { %21479 = vst [vmem:[#allocation40_spill] sm:$0xff] %v15260_v31  ;;  %v1296_v31 = vpack.c.b16 %v14903_v63, %v14903_v63  ;;  %v15314_v35 = vpop.f32.mrf.mxu3 }
 0x191   : > { %2556 = vmatpush.bf16.msrb.mxu3 %v10133_v41  ;;  %21482 = vst [vmem:[#allocation43_spill] sm:$0xff] %v15314_v35 }
 0x192   : > { %v1326_v9 = vshrl.u32 %v1296_v31, 16  ;;  %v1329_v32 = vshll.u32 %v1296_v31, 16  ;;  %v10124_v31 = vld [vmem:[%s21397_s3 + $0x1d0] sm:$0xf] }
 0x193   : > { %v10125_v29 = vor.u32 %v13686_v45, %v10124_v31  ;;  %v13684_v31 = vld [vmem:[%s21397_s3 + $0x1c4] sm:$0xf0] }
 0x194   : > { %v1328_v11 = vrot.slane %v1326_v9, 4 }
 0x195   : > { %2557 = vmatpush.bf16.msrb.mxu3 %v10125_v29 }
 0x196   : > { %v15289_v63 = vpop.f32.mrf.mxu0 }
 0x197   : > { %21480 = vst [vmem:[#allocation41_spill] sm:$0xff] %v15289_v63  ;;  %v15291_v26 = vpop.f32.mrf.mxu1  ;;  %v10060_v63 = vld [vmem:[%s21397_s3 + $0x150] sm:$0xf] }
 0x198   : > { %21481 = vst [vmem:[#allocation42_spill] sm:$0xff] %v15291_v26  ;;  %v10061_v20 = vor.u32 %v13670_v25, %v10060_v63  ;;  %v15312_v26 = vpop.f32.mrf.mxu2  ;;  %v13668_v63 = vld [vmem:[%s21397_s3 + $0x144] sm:$0xf0] }
 0x199   : > { %9960 = vmatmul.msk.bf16.gmra.mxu0 %vm812_vm0, %v14890_v57  ;;  %v10053_v9 = vor.u32 %v13668_v63, %v10052_v4  ;;  %v10108_v4 = vld [vmem:[%s21397_s3 + $0x1b0] sm:$0xf]  ;;  %v13682_v63 = vld [vmem:[%s21397_s3 + $0x1b4] sm:$0xf0] }
 0x19a   : > { %9976 = vmatmul.msk.bf16.gmra.mxu1 %vm812_vm0, %v14890_v57  ;;  %v1331_v57 = vrot.slane %v1329_v32, 5  ;;  %2508 = vmatpush.bf16.msrb.mxu2 %v10061_v20  ;;  %v10116_v32 = vld [vmem:[%s21397_s3 + $0x1c0] sm:$0xf] }
 0x19b   : > { %v10117_v45 = vor.u32 %v13684_v31, %v10116_v32  ;;  %v10036_v32 = vld [vmem:[%s21397_s3 + $0x120] sm:$0xf]  ;;  %v13664_v31 = vld [vmem:[%s21397_s3 + $0x124] sm:$0xf0] }
 0x19c   : > { %v1332_v20 = vor.u32 %v1331_v57, %v1328_v11  ;;  %v10109_v11 = vor.u32 %v13682_v63, %v10108_v4 }
 0x19d   : > { %2558 = vmatpush.bf16.msrb.mxu3 %v10117_v45  ;;  %v13680_v45 = vld [vmem:[%s21397_s3 + $0x1a4] sm:$0xf0] }
 0x19e   : > { %v15322_v41 = vpop.f32.mrf.mxu0  ;;  %2509 = vmatpush.bf16.msrb.mxu2 %v10053_v9  ;;  %v1379_v57 = vsel %vm694_vm4, %v14899_v61, %v1332_v20  ;;  %v10037_v20 = vor.u32 %v13664_v31, %v10036_v32  ;;  %v13678_v32 = vld [vmem:[%s21397_s3 + $0x194] sm:$0xf0] }
 0x19f   : > { %21483 = vst [vmem:[#allocation44_spill] sm:$0xff] %v15322_v41  ;;  %v15324_v25 = vpop.f32.mrf.mxu1  ;;  %v1403_v61 = vsel %vm15182_vm7, %v1379_v57, 0  ;;  %v1747_v41 = vld [vmem:[%s21396_s2] sm:$0x3] }
 0x1a0   : > { %21484 = vst [vmem:[#allocation45_spill] sm:$0xff] %v15324_v25  ;;  %v13666_v25 = vld [vmem:[%s21397_s3 + $0x134] sm:$0xf0]  ;;  %v15364_v4 = vpop.f32.mrf.mxu2 }
 0x1a1   : > { %v10045_v29 = vor.u32 %v13666_v25, %v10044_v24  ;;  %v10100_v24 = vld [vmem:[%s21397_s3 + $0x1a0] sm:$0xf]  ;;  %2559 = vmatpush.bf16.msrb.mxu3 %v10109_v11  ;;  %21487 = vst [vmem:[#allocation48_spill] sm:$0xff] %v15364_v4  ;;  %v10092_v11 = vld [vmem:[%s21397_s3 + $0x190] sm:$0xf] }
 0x1a2   : > { %v10101_v63 = vor.u32 %v13680_v45, %v10100_v24  ;;  %v10093_v31 = vor.u32 %v13678_v32, %v10092_v11  ;;  %v10020_v24 = vld [vmem:[%s21397_s3 + $0x100] sm:$0xf] }
 0x1a3   : > { %2510 = vmatpush.bf16.msrb.mxu2 %v10045_v29  ;;  %v15366_v29 = vpop.f32.mrf.mxu3 }
 0x1a4   : > { %21488 = vst [vmem:[#allocation49_spill] sm:$0xff] %v15366_v29 }
 0x1a5   : > { %2560 = vmatpush.bf16.msrb.mxu3 %v10101_v63  ;;  %v13676_v63 = vld [vmem:[%s21397_s3 + $0x184] sm:$0xf0] }
 0x1a6   : > { %v15355_v25 = vpop.f32.mrf.mxu0 }
 0x1a7   : > { %21485 = vst [vmem:[#allocation46_spill] sm:$0xff] %v15355_v25  ;;  %v15357_v9 = vpop.f32.mrf.mxu1  ;;  %v10028_v25 = vld [vmem:[%s21397_s3 + $0x110] sm:$0xf]  ;;  %2511 = vmatpush.bf16.msrb.mxu2 %v10037_v20  ;;  %v13660_v20 = vld [vmem:[%s21397_s3 + $0x104] sm:$0xf0] }
 0x1a8   : > { %21486 = vst [vmem:[#allocation47_spill] sm:$0xff] %v15357_v9  ;;  %v13662_v9 = vld [vmem:[%s21397_s3 + $0x114] sm:$0xf0] }
 0x1a9   : > { %v10029_v57 = vor.u32 %v13662_v9, %v10028_v25  ;;  %9961 = vmatmul.msk.bf16.gmra.mxu0 %vm812_vm0, %v1403_v61  ;;  %v10084_v25 = vld [vmem:[%s21397_s3 + $0x180] sm:$0xf]  ;;  %2561 = vmatpush.bf16.msrb.mxu3 %v10093_v31  ;;  %v15407_v31 = vperm.slane %v1747_v41, 0 }
 0x1aa   : > { %9977 = vmatmul.msk.bf16.gmra.mxu1 %vm812_vm0, %v1403_v61  ;;  %v10021_v61 = vor.u32 %v13660_v20, %v10020_v24  ;;  %v10085_v11 = vor.u32 %v13676_v63, %v10084_v25  ;;  %v15409_v24 = vperm.slane %v1747_v41, 1 }
 0x1ab   : > { %2512 = vmatpush.bf16.msrb.mxu2 %v10029_v57  ;;  %v15398_v57 = vpop.f32.mrf.mxu2  ;;  %v15400_v32 = vpop.f32.mrf.mxu3 }
 0x1ac   : > { %21491 = vst [vmem:[#allocation52_spill] sm:$0xff] %v15398_v57 }
 0x1ad   : > { %21492 = vst [vmem:[#allocation53_spill] sm:$0xff] %v15400_v32  ;;  %2562 = vmatpush.bf16.msrb.mxu3 %v10085_v11 }
 0x1ae   : > { %v15391_v9 = vpop.f32.mrf.mxu0 }
 0x1af   : > { %21489 = vst [vmem:[#allocation50_spill] sm:$0xff] %v15391_v9  ;;  %v15393_v45 = vpop.f32.mrf.mxu1  ;;  %2513 = vmatpush.bf16.msrb.mxu2 %v10021_v61 }
 0x1b0   : > { %21490 = vst [vmem:[#allocation51_spill] sm:$0xff] %v15393_v45  ;;  %v1297_v45 = vpack.c.b16 %v14929_v18, %v14929_v18 }
 0x1b2   : > { %v1334_v63 = vshrl.u32 %v1297_v45, 16  ;;  %v1337_v32 = vshll.u32 %v1297_v45, 16 }
 0x1b3   : > { %v15419_v18 = vpop.f32.mrf.mxu2  ;;  %v15421_v41 = vpop.f32.mrf.mxu3 }
 0x1b4   : > { %21493 = vst [vmem:[#allocation54_spill] sm:$0xff] %v15419_v18 }
 0x1b6   : > { %v1514_v20 = vpop.f32.mrf.mxu0 }
 0x1b7   : > { %v1603_v9 = vpop.f32.mrf.mxu1  ;;  %v1683_v25 = vadd.f32 %v1514_v20, %v14944_v39  ;;  %v1336_v20 = vrot.slane %v1334_v63, 4 }
 0x1b8   : > { %v1684_v61 = vadd.f32 %v1603_v9, %v14946_v40  ;;  %v1339_v40 = vrot.slane %v1337_v32, 5 }
 0x1b9   : > { %v1753_v57 = vadd.f32 %v15407_v31, %v1683_v25  ;;  %9962 = vmatmul.msk.bf16.gmra.mxu0 %vm812_vm0, %v14916_v12 }
 0x1ba   : > { %v1754_v29 = vadd.f32 %v15409_v24, %v1684_v61  ;;  %9978 = vmatmul.msk.bf16.gmra.mxu1 %vm812_vm0, %v14916_v12  ;;  %v1340_v33 = vor.u32 %v1339_v40, %v1336_v20 }
 0x1bb   : > { %v1817_v11 = vmax.f32 %v1753_v57, 0.0  ;;  %v15431_v32 = vpop.f32.mrf.mxu3 }
 0x1bc   : > { %v1818_v39 = vmax.f32 %v1754_v29, 0.0  ;;  %v1383_v57 = vsel %vm694_vm4, %v14925_v16, %v1340_v33  ;;  %v15429_v29 = vpop.f32.mrf.mxu2 }
 0x1be   : > { %v1881_v9 = vpack.c.bf16 %v1818_v39, %v1817_v11  ;;  %v1516_v45 = vpop.f32.mrf.mxu0 }
 0x1bf   : > { %v1605_v4 = vpop.f32.mrf.mxu1  ;;  %v1685_v25 = vadd.f32 %v1516_v45, %v14965_v56 }
 0x1c0   : > { %v1686_v61 = vadd.f32 %v1605_v4, %v14967_v58  ;;  %v2282_v11 = vunpack.c.l.b16 %v1881_v9  ;;  %v1404_v58 = vsel %vm15182_vm7, %v1383_v57, 0  ;;  %v2283_v45 = vunpack.c.h.b16 %v1881_v9 }
 0x1c1   : > { %v1755_v35 = vadd.f32 %v15407_v31, %v1685_v25 }
 0x1c2   : > { %v1756_v12 = vadd.f32 %v15409_v24, %v1686_v61 }
 0x1c3   : > { %v1819_v17 = vmax.f32 %v1755_v35, 0.0  ;;  %v15449_v57 = vpop.f32.mrf.mxu3 }
 0x1c4   : > { %v1820_v18 = vmax.f32 %v1756_v12, 0.0  ;;  %v15447_v12 = vpop.f32.mrf.mxu2  ;;  %21497 = vst [vmem:[#allocation58_spill] sm:$0xff] %v15449_v57 }
 0x1c5   : > { %21496 = vst [vmem:[#allocation57_spill] sm:$0xff] %v15447_v12 }
 0x1c6   : > { %v1882_v63 = vpack.c.bf16 %v1820_v18, %v1819_v17  ;;  %v1519_v39 = vpop.f32.mrf.mxu0 }
 0x1c7   : > { %v1608_v56 = vpop.f32.mrf.mxu1  ;;  %v1687_v40 = vadd.f32 %v1519_v39, %v14978_v8 }
 0x1c8   : > { %v2284_v4 = vunpack.c.l.b16 %v1882_v63  ;;  %v2285_v20 = vunpack.c.h.b16 %v1882_v63  ;;  %v1688_v35 = vadd.f32 %v1608_v56, %v14980_v13 }
 0x1c9   : > { %v1757_v16 = vadd.f32 %v15407_v31, %v1687_v40  ;;  %9963 = vmatmul.msk.bf16.gmra.mxu0 %vm812_vm0, %v1404_v58 }
 0x1ca   : > { %v1758_v33 = vadd.f32 %v15409_v24, %v1688_v35  ;;  %9979 = vmatmul.msk.bf16.gmra.mxu1 %vm812_vm0, %v1404_v58  ;;  %v15441_v17 = vpack.c.b16 %v2284_v4, %v2282_v11  ;;  %v15443_v18 = vpack.c.b16 %v2285_v20, %v2283_v45  ;;  %v1298_v58 = vpack.c.b16 %v14975_v2, %v14975_v2 }
 0x1cb   : > { %v1821_v25 = vmax.f32 %v1757_v16, 0.0 }
 0x1cc   : > { %21494 = vst [vmem:[#allocation55_spill] sm:$0xff] %v15441_v17  ;;  %v1822_v61 = vmax.f32 %v1758_v33, 0.0  ;;  %2514 = vmatmul.bf16.vlgmr.msrb.gmra.mxu2 %v15441_v17  ;;  %2563 = vmatmul.bf16.vlgmr.msrb.gmra.mxu3 %v15443_v18 }
 0x1cd   : > { %21495 = vst [vmem:[#allocation56_spill] sm:$0xff] %v15443_v18 }
 0x1ce   : > { %v1883_v8 = vpack.c.bf16 %v1822_v61, %v1821_v25  ;;  %v1521_v13 = vpop.f32.mrf.mxu0  ;;  %v1342_v25 = vshrl.u32 %v1298_v58, 16  ;;  %v1345_v61 = vshll.u32 %v1298_v58, 16 }
 0x1cf   : > { %v1610_v9 = vpop.f32.mrf.mxu1  ;;  %v1689_v63 = vadd.f32 %v1521_v13, %v14988_v27 }
 0x1d0   : > { %v1690_v11 = vadd.f32 %v1610_v9, %v14990_v28  ;;  %v2089_v35 = vunpack.c.l.b16 %v1883_v8  ;;  %v2090_v45 = vunpack.c.h.b16 %v1883_v8  ;;  %v15459_v9 = vpop.f32.mrf.mxu2 }
 0x1d1   : > { %v1759_v39 = vadd.f32 %v15407_v31, %v1689_v63  ;;  %21498 = vst [vmem:[#allocation59_spill] sm:$0xff] %v15459_v9  ;;  %v15461_v63 = vpop.f32.mrf.mxu3 }
 0x1d2   : > { %v1760_v56 = vadd.f32 %v15409_v24, %v1690_v11  ;;  %21499 = vst [vmem:[#allocation60_spill] sm:$0xff] %v15461_v63 }
 0x1d3   : > { %v1823_v4 = vmax.f32 %v1759_v39, 0.0 }
 0x1d4   : > { %v1824_v20 = vmax.f32 %v1760_v56, 0.0 }
 0x1d6   : > { %v1884_v40 = vpack.c.bf16 %v1824_v20, %v1823_v4  ;;  %v1524_v16 = vpop.f32.mrf.mxu0 }
 0x1d7   : > { %v1613_v33 = vpop.f32.mrf.mxu1  ;;  %v1691_v28 = vadd.f32 %v1524_v16, %v14998_v37  ;;  %v1344_v37 = vrot.slane %v1342_v25, 4  ;;  %v2105_v25 = vpack.c.b16 %v2089_v35, %v2089_v35 }
 0x1d8   : > { %v1921_v18 = vunpack.c.l.b16 %v1884_v40  ;;  %v1922_v27 = vunpack.c.h.b16 %v1884_v40  ;;  %v1692_v13 = vadd.f32 %v1613_v33, %v15000_v42  ;;  %v1347_v42 = vrot.slane %v1345_v61, 5 }
 0x1d9   : > { %9964 = vmatmul.msk.bf16.gmra.mxu0 %vm812_vm0, %v14942_v38  ;;  %v1761_v8 = vadd.f32 %v15407_v31, %v1691_v28  ;;  %v2106_v61 = vpack.c.b16 %v2090_v45, %v2090_v45 }
 0x1da   : > { %v1937_v2 = vpack.c.b16 %v1921_v18, %v1921_v18  ;;  %v1938_v11 = vpack.c.b16 %v1922_v27, %v1922_v27  ;;  %v15463_v39 = vpack.c.b16 %v1921_v18, %v2089_v35  ;;  %v15465_v56 = vpack.c.b16 %v1922_v27, %v2090_v45  ;;  %9980 = vmatmul.msk.bf16.gmra.mxu1 %vm812_vm0, %v14942_v38 }
 0x1db   : > { %v1762_v58 = vadd.f32 %v15409_v24, %v1692_v13  ;;  %v1825_v40 = vmax.f32 %v1761_v8, 0.0  ;;  %v1348_v9 = vor.u32 %v1347_v42, %v1344_v37 }
 0x1dc   : > { %21500 = vst [vmem:[#allocation61_spill] sm:$0xff] %v15463_v39  ;;  %v1954_v4 = vshrl.u32 %v1937_v2, 16  ;;  %v1961_v20 = vshrl.u32 %v1938_v11, 16  ;;  %v1957_v33 = vshll.u32 %v1937_v2, 16 }
 0x1dd   : > { %21501 = vst [vmem:[#allocation62_spill] sm:$0xff] %v15465_v56  ;;  %v1826_v16 = vmax.f32 %v1762_v58, 0.0  ;;  %v1964_v56 = vshll.u32 %v1938_v11, 16 }
 0x1de   : > { %v1956_v18 = vrot.slane %v1954_v4, 7  ;;  %v1963_v27 = vrot.slane %v1961_v20, 7  ;;  %v1526_v17 = vpop.f32.mrf.mxu0 }
 0x1df   : > { %v1885_v39 = vpack.c.bf16 %v1826_v16, %v1825_v40  ;;  %v1615_v63 = vpop.f32.mrf.mxu1  ;;  %v1693_v28 = vadd.f32 %v1526_v17, %v15007_v51  ;;  %v15489_v17 = vpop.f32.mrf.mxu3 }
 0x1e0   : > { %v1694_v13 = vadd.f32 %v1615_v63, %v15009_v52  ;;  %v1959_v57 = vor.u32 %v1957_v33, %v1956_v18  ;;  %v1966_v38 = vor.u32 %v1964_v56, %v1963_v27  ;;  %v15487_v52 = vpop.f32.mrf.mxu2  ;;  %v1387_v63 = vsel %vm694_vm4, %v14971_v0, %v1348_v9 }
 0x1e1   : > { %v1763_v12 = vadd.f32 %v15407_v31, %v1693_v28  ;;  %v1405_v42 = vsel %vm15182_vm7, %v1387_v63, 0  ;;  %v2286_v4 = vunpack.c.l.b16 %v1885_v39  ;;  %v2287_v20 = vunpack.c.h.b16 %v1885_v39 }
 0x1e2   : > { %v1764_v8 = vadd.f32 %v15409_v24, %v1694_v13  ;;  %v2121_v2 = vsel %vm14828_vm3, 0, %v1959_v57  ;;  %v2122_v11 = vsel %vm14828_vm3, 0, %v1966_v38 }
 0x1e3   : > { %v15482_v58 = vsel %vm694_vm4, %v2121_v2, %v2105_v25  ;;  %v15485_v51 = vsel %vm694_vm4, %v2122_v11, %v2106_v61  ;;  %v1827_v35 = vmax.f32 %v1763_v12, 0.0  ;;  %v1299_v2 = vpack.c.b16 %v15017_v62, %v15017_v62 }
 0x1e4   : > { %21502 = vst [vmem:[#allocation63_spill] sm:$0xff] %v15482_v58  ;;  %v1828_v45 = vmax.f32 %v1764_v8, 0.0 }
 0x1e5   : > { %21503 = vst [vmem:[#allocation64_spill] sm:$0xff] %v15485_v51 }
 0x1e6   : > { %v1886_v56 = vpack.c.bf16 %v1828_v45, %v1827_v35  ;;  %v1529_v57 = vpop.f32.mrf.mxu0 }
 0x1e7   : > { %v1618_v37 = vpop.f32.mrf.mxu1  ;;  %v1695_v40 = vadd.f32 %v1529_v57, %v15020_v7  ;;  %v1353_v57 = vshll.u32 %v1299_v2, 16 }
 0x1e8   : > { %v1696_v16 = vadd.f32 %v1618_v37, %v15022_v15  ;;  %v2288_v18 = vunpack.c.l.b16 %v1886_v56  ;;  %v2289_v33 = vunpack.c.h.b16 %v1886_v56  ;;  %v15507_v7 = vpop.f32.mrf.mxu2  ;;  %v15509_v15 = vpop.f32.mrf.mxu3  ;;  %v1350_v56 = vshrl.u32 %v1299_v2, 16 }
 0x1e9   : > { %v1765_v12 = vadd.f32 %v15407_v31, %v1695_v40  ;;  %9965 = vmatmul.msk.bf16.gmra.mxu0 %vm812_vm0, %v1405_v42  ;;  %v1145_v37 = vadd.f32 %v15060_v1, %v15034_v22 }
 0x1ea   : > { %v1766_v27 = vadd.f32 %v15409_v24, %v1696_v16  ;;  %v15500_v0 = vpack.c.b16 %v2288_v18, %v2286_v4  ;;  %v15502_v9 = vpack.c.b16 %v2289_v33, %v2287_v20  ;;  %9981 = vmatmul.msk.bf16.gmra.mxu1 %vm812_vm0, %v1405_v42  ;;  %v1234_v42 = vadd.f32 %v15062_v53, %v15036_v23 }
 0x1eb   : > { %v1829_v28 = vmax.f32 %v1765_v12, 0.0 }
 0x1ec   : > { %v1830_v39 = vmax.f32 %v1766_v27, 0.0  ;;  %2519 = vmatmul.bf16.gmra.mxu2 %v15500_v0  ;;  %2568 = vmatmul.bf16.gmra.mxu3 %v15502_v9 }
 0x1ee   : > { %v1887_v13 = vpack.c.bf16 %v1830_v39, %v1829_v28  ;;  %v1531_v38 = vpop.f32.mrf.mxu0  ;;  %v1352_v28 = vrot.slane %v1350_v56, 4  ;;  %v1355_v39 = vrot.slane %v1353_v57, 5 }
 0x1ef   : > { %v1620_v25 = vpop.f32.mrf.mxu1  ;;  %v1697_v61 = vadd.f32 %v1531_v38, %v15046_v46 }
 0x1f0   : > { %v1698_v8 = vadd.f32 %v1620_v25, %v15048_v48  ;;  %v15521_v20 = vpop.f32.mrf.mxu2  ;;  %v15523_v62 = vpop.f32.mrf.mxu3  ;;  %v2091_v12 = vunpack.c.l.b16 %v1887_v13  ;;  %v2092_v27 = vunpack.c.h.b16 %v1887_v13  ;;  %v1356_v57 = vor.u32 %v1355_v39, %v1352_v28 }
 0x1f1   : > { %v1767_v11 = vadd.f32 %v15407_v31, %v1697_v61 }
 0x1f2   : > { %v1768_v35 = vadd.f32 %v15409_v24, %v1698_v8 }
 0x1f3   : > { %v1831_v45 = vmax.f32 %v1767_v11, 0.0 }
 0x1f4   : > { %v1832_v63 = vmax.f32 %v1768_v35, 0.0  ;;  %v1147_v35 = vadd.f32 %v15069_v6, %v15051_v50 }
 0x1f6   : > { %v1888_v46 = vpack.c.bf16 %v1832_v63, %v1831_v45  ;;  %v1534_v4 = vpop.f32.mrf.mxu0  ;;  %v21504_v45 = vld [vmem:[#allocation10_spill] sm:$0xff] }
 0x1f7   : > { %v1623_v48 = vpop.f32.mrf.mxu1  ;;  %v1699_v18 = vadd.f32 %v1534_v4, %v1145_v37  ;;  %v1236_v63 = vadd.f32 %v21504_v45, %v15053_v55  ;;  %v13642_v37 = vld [vmem:[%s21397_s3 + $0x74] sm:$0xf0]  ;;  %v2108_v45 = vpack.c.b16 %v2092_v27, %v2092_v27 }
 0x1f8   : > { %v1923_v40 = vunpack.c.l.b16 %v1888_v46  ;;  %v1924_v16 = vunpack.c.h.b16 %v1888_v46  ;;  %v1700_v33 = vadd.f32 %v1623_v48, %v1234_v42  ;;  %v10268_v42 = vld [vmem:[%s21397_s3 + $0xf0] sm:$0xf]  ;;  %v13658_v55 = vld [vmem:[%s21397_s3 + $0xf4] sm:$0xf0] }
 0x1f9   : > { %v1769_v22 = vadd.f32 %v15407_v31, %v1699_v18  ;;  %9966 = vmatmul.msk.bf16.gmra.mxu0 %vm812_vm0, %v14996_v36 }
 0x1fa   : > { %v1770_v1 = vadd.f32 %v15409_v24, %v1700_v33  ;;  %v1939_v23 = vpack.c.b16 %v1923_v40, %v1923_v40  ;;  %v1940_v53 = vpack.c.b16 %v1924_v16, %v1924_v16  ;;  %9982 = vmatmul.msk.bf16.gmra.mxu1 %vm812_vm0, %v14996_v36  ;;  %v15531_v38 = vpack.c.b16 %v1923_v40, %v2091_v12  ;;  %v10204_v36 = vld [vmem:[%s21397_s3 + $0x70] sm:$0xf] }
 0x1fb   : > { %v15533_v25 = vpack.c.b16 %v1924_v16, %v2092_v27  ;;  %v1833_v61 = vmax.f32 %v1769_v22, 0.0  ;;  %v10205_v50 = vor.u32 %v13642_v37, %v10204_v36  ;;  %v10269_v33 = vor.u32 %v13658_v55, %v10268_v42  ;;  %v15551_v22 = vpop.f32.mrf.mxu2  ;;  %v21505_v36 = vld [vmem:[#allocation9_spill] sm:$0xff]  ;;  %v10260_v42 = vld [vmem:[%s21397_s3 + $0xe0] sm:$0xf] }
 0x1fc   : > { %v1834_v13 = vmax.f32 %v1770_v1, 0.0  ;;  %v1968_v8 = vshrl.u32 %v1939_v23, 16  ;;  %v1971_v2 = vshll.u32 %v1939_v23, 16  ;;  %v1975_v11 = vshrl.u32 %v1940_v53, 16  ;;  %v15553_v1 = vpop.f32.mrf.mxu3  ;;  %v10188_v55 = vld [vmem:[%s21397_s3 + $0x50] sm:$0xf] }
 0x1fd   : > { %v1978_v40 = vshll.u32 %v1940_v53, 16  ;;  %2862 = vmatpush.bf16.msra.mxu0 %v10205_v50  ;;  %2911 = vmatpush.bf16.msra.mxu1 %v10269_v33 }
 0x1fe   : > { %v1889_v56 = vpack.c.bf16 %v1834_v13, %v1833_v61  ;;  %v1536_v46 = vpop.f32.mrf.mxu0  ;;  %v1970_v6 = vrot.slane %v1968_v8, 7  ;;  %v1977_v48 = vrot.slane %v1975_v11, 7  ;;  %v2107_v13 = vpack.c.b16 %v2091_v12, %v2091_v12  ;;  %v13640_v12 = vld [vmem:[%s21397_s3 + $0x64] sm:$0xf0] }
 0x1ff   : > { %v1625_v4 = vpop.f32.mrf.mxu1  ;;  %v1701_v16 = vadd.f32 %v1536_v46, %v1147_v35  ;;  %v1391_v8 = vsel %vm694_vm4, %v21505_v36, %v1356_v57  ;;  %v13656_v46 = vld [vmem:[%s21397_s3 + $0xe4] sm:$0xf0] }
 0x200   : > { %v1702_v18 = vadd.f32 %v1625_v4, %v1236_v63  ;;  %v1973_v28 = vor.u32 %v1971_v2, %v1970_v6  ;;  %v1980_v39 = vor.u32 %v1978_v40, %v1977_v48  ;;  %v10196_v63 = vld [vmem:[%s21397_s3 + $0x60] sm:$0xf]  ;;  %v10261_v50 = vor.u32 %v13656_v46, %v10260_v42  ;;  %v13638_v6 = vld [vmem:[%s21397_s3 + $0x54] sm:$0xf0]  ;;  %v10252_v48 = vld [vmem:[%s21397_s3 + $0xd0] sm:$0xf] }
 0x201   : > { %v1771_v23 = vadd.f32 %v15407_v31, %v1701_v16  ;;  %v10197_v37 = vor.u32 %v13640_v12, %v10196_v63  ;;  %v2290_v33 = vunpack.c.l.b16 %v1889_v56  ;;  %v10180_v12 = vld [vmem:[%s21397_s3 + $0x40] sm:$0xf] }
 0x202   : > { %v1772_v61 = vadd.f32 %v15409_v24, %v1702_v18  ;;  %v2123_v53 = vsel %vm14828_vm3, 0, %v1973_v28  ;;  %v2124_v2 = vsel %vm14828_vm3, 0, %v1980_v39  ;;  %v1406_v18 = vsel %vm15182_vm7, %v1391_v8, 0  ;;  %2912 = vmatpush.bf16.msra.mxu1 %v10261_v50  ;;  %v10244_v46 = vld [vmem:[%s21397_s3 + $0xc0] sm:$0xf] }
 0x203   : > { %v1835_v11 = vmax.f32 %v1771_v23, 0.0  ;;  %v15570_v27 = vsel %vm694_vm4, %v2123_v53, %v2107_v13  ;;  %v15573_v57 = vsel %vm694_vm4, %v2124_v2, %v2108_v45  ;;  %v2291_v28 = vunpack.c.h.b16 %v1889_v56  ;;  %2863 = vmatpush.bf16.msra.mxu0 %v10197_v37  ;;  %v13654_v23 = vld [vmem:[%s21397_s3 + $0xd4] sm:$0xf0]  ;;  %v13636_v37 = vld [vmem:[%s21397_s3 + $0x44] sm:$0xf0]  ;;  %v21508_v50 = vld [vmem:[#allocation11_spill] sm:$0xff] }
 0x204   : > { %v1836_v35 = vmax.f32 %v1772_v61, 0.0  ;;  %21506 = vst [vmem:[#allocation10_spill] sm:$0xff] %v15570_v27  ;;  %v10189_v39 = vor.u32 %v13638_v6, %v10188_v55  ;;  %v10253_v53 = vor.u32 %v13654_v23, %v10252_v48  ;;  %v10181_v42 = vor.u32 %v13636_v37, %v10180_v12  ;;  %v21509_v6 = vld [vmem:[#allocation12_spill] sm:$0xff]  ;;  %v10172_v23 = vld [vmem:[%s21397_s3 + $0x30] sm:$0xf] }
 0x205   : > { %21507 = vst [vmem:[#allocation9_spill] sm:$0xff] %v15573_v57  ;;  %v1152_v55 = vadd.f32 %v15240_v43, %v21508_v50  ;;  %v1241_v48 = vadd.f32 %v15242_v47, %v21509_v6  ;;  %v10236_v43 = vld [vmem:[%s21397_s3 + $0xb0] sm:$0xf]  ;;  %v1300_v47 = vpack.c.b16 %v15093_v44, %v15093_v44  ;;  %v13632_v44 = vld [vmem:[%s21397_s3 + $0x24] sm:$0xf0] }
 0x206   : > { %v1890_v4 = vpack.c.bf16 %v1836_v35, %v1835_v11  ;;  %v1539_v40 = vpop.f32.mrf.mxu0  ;;  %2913 = vmatpush.bf16.msra.mxu1 %v10253_v53 }
 0x207   : > { %v1628_v16 = vpop.f32.mrf.mxu1  ;;  %v1703_v61 = vadd.f32 %v1539_v40, %v15107_v30  ;;  %2864 = vmatpush.bf16.msra.mxu0 %v10189_v39  ;;  %v15605_v30 = vpop.f32.mrf.mxu2  ;;  %v1358_v12 = vshrl.u32 %v1300_v47, 16 }
 0x208   : > { %v1704_v13 = vadd.f32 %v1628_v16, %v15109_v34  ;;  %v2292_v45 = vunpack.c.l.b16 %v1890_v4  ;;  %v2293_v36 = vunpack.c.h.b16 %v1890_v4  ;;  %v15607_v34 = vpop.f32.mrf.mxu3  ;;  %v13652_v4 = vld [vmem:[%s21397_s3 + $0xc4] sm:$0xf0] }
 0x209   : > { %v1773_v2 = vadd.f32 %v15407_v31, %v1703_v61  ;;  %9967 = vmatmul.msk.bf16.gmra.mxu0 %vm812_vm0, %v1406_v18  ;;  %v10245_v16 = vor.u32 %v13652_v4, %v10244_v46  ;;  %v13634_v61 = vld [vmem:[%s21397_s3 + $0x34] sm:$0xf0]  ;;  %v13648_v46 = vld [vmem:[%s21397_s3 + $0xa4] sm:$0xf0]  ;;  %v21510_v4 = vld [vmem:[#allocation13_spill] sm:$0xff] }
 0x20a   : > { %v1774_v8 = vadd.f32 %v15409_v24, %v1704_v13  ;;  %v15600_v56 = vpack.c.b16 %v2292_v45, %v2290_v33  ;;  %v15602_v11 = vpack.c.b16 %v2293_v36, %v2291_v28  ;;  %9983 = vmatmul.msk.bf16.gmra.mxu1 %vm812_vm0, %v1406_v18  ;;  %v10173_v13 = vor.u32 %v13634_v61, %v10172_v23  ;;  %v13650_v45 = vld [vmem:[%s21397_s3 + $0xb4] sm:$0xf0] }
 0x20b   : > { %v1837_v35 = vmax.f32 %v1773_v2, 0.0  ;;  %2865 = vmatpush.bf16.msra.mxu0 %v10181_v42  ;;  %2914 = vmatpush.bf16.msra.mxu1 %v10245_v16  ;;  %v10237_v2 = vor.u32 %v13650_v45, %v10236_v43  ;;  %v10228_v42 = vld [vmem:[%s21397_s3 + $0xa0] sm:$0xf]  ;;  %v1155_v50 = vadd.f32 %v15252_v14, %v21510_v4  ;;  %v10156_v14 = vld [vmem:[%s21397_s3 + $0x10] sm:$0xf] }
 0x20c   : > { %v1838_v63 = vmax.f32 %v1774_v8, 0.0  ;;  %2524 = vmatmul.bf16.gmra.mxu2 %v15600_v56  ;;  %2573 = vmatmul.bf16.gmra.mxu3 %v15602_v11 }
 0x20e   : > { %v1891_v40 = vpack.c.bf16 %v1838_v63, %v1837_v35  ;;  %v1541_v18 = vpop.f32.mrf.mxu0  ;;  %v10164_v63 = vld [vmem:[%s21397_s3 + $0x20] sm:$0xf] }
 0x20f   : > { %v1630_v33 = vpop.f32.mrf.mxu1  ;;  %v1705_v28 = vadd.f32 %v1541_v18, %v1152_v55  ;;  %2866 = vmatpush.bf16.msra.mxu0 %v10173_v13  ;;  %2915 = vmatpush.bf16.msra.mxu1 %v10237_v2  ;;  %v10165_v37 = vor.u32 %v13632_v44, %v10164_v63  ;;  %v1244_v55 = vadd.f32 %v15254_v10, %v15123_v54  ;;  %v15659_v6 = vpop.f32.mrf.mxu2  ;;  %v13630_v54 = vld [vmem:[%s21397_s3 + $0x14] sm:$0xf0]  ;;  %v10220_v10 = vld [vmem:[%s21397_s3 + $0x90] sm:$0xf] }
 0x210   : > { %v1706_v39 = vadd.f32 %v1630_v33, %v1241_v48  ;;  %v15661_v48 = vpop.f32.mrf.mxu3  ;;  %v10229_v18 = vor.u32 %v13648_v46, %v10228_v42  ;;  %v2093_v45 = vunpack.c.l.b16 %v1891_v40  ;;  %v13646_v2 = vld [vmem:[%s21397_s3 + $0x94] sm:$0xf0] }
 0x211   : > { %v1775_v36 = vadd.f32 %v15407_v31, %v1705_v28  ;;  %v14465_v63 = vld [vmem:[%s14811_s25 + $0x78] sm:$0xff]   ;;  %v10221_v44 = vor.u32 %v13646_v2, %v10220_v10 }
 0x212   : > { %v1776_v53 = vadd.f32 %v15409_v24, %v1706_v39  ;;  %v1361_v39 = vshll.u32 %v1300_v47, 16  ;;  %v2094_v47 = vunpack.c.h.b16 %v1891_v40 }
 0x213   : > { %v1839_v8 = vmax.f32 %v1775_v36, 0.0  ;;  %2867 = vmatpush.bf16.msra.mxu0 %v10165_v37  ;;  %v1360_v36 = vrot.slane %v1358_v12, 4  ;;  %2916 = vmatpush.bf16.msra.mxu1 %v10229_v18  ;;  %v1157_v18 = vadd.f32 %v15276_v19, %v15146_v59 }
 0x214   : > { %v1840_v35 = vmax.f32 %v1776_v53, 0.0  ;;  %v10157_v53 = vor.u32 %v13630_v54, %v10156_v14  ;;  %v1363_v42 = vrot.slane %v1361_v39, 5  ;;  %v13644_v39 = vld [vmem:[%s21397_s3 + $0x84] sm:$0xf0] }
 0x216   : > { %v1892_v16 = vpack.c.bf16 %v1840_v35, %v1839_v8  ;;  %v1544_v33 = vpop.f32.mrf.mxu0  ;;  %v1364_v59 = vor.u32 %v1363_v42, %v1360_v36 }
 0x217   : > { %v1633_v28 = vpop.f32.mrf.mxu1  ;;  %v1707_v43 = vadd.f32 %v1544_v33, %v1155_v50  ;;  %2868 = vmatpush.bf16.msra.mxu0 %v10157_v53  ;;  %2917 = vmatpush.bf16.msra.mxu1 %v10221_v44  ;;  %v15700_v2 = vpop.f32.mrf.mxu2 }
 0x218   : > { %v1925_v23 = vunpack.c.l.b16 %v1892_v16  ;;  %v1926_v61 = vunpack.c.h.b16 %v1892_v16  ;;  %v1708_v13 = vadd.f32 %v1633_v28, %v1244_v55  ;;  %v10148_v55 = vld [vmem:[%s21397_s3] sm:$0xf]  ;;  %v13628_v16 = vld [vmem:[%s21397_s3 + $0x4] sm:$0xf0] }
 0x219   : > { %v1777_v8 = vadd.f32 %v15407_v31, %v1707_v43  ;;  %9968 = vmatmul.msk.bf16.gmra.mxu0 %vm812_vm0, %v14465_v63  ;;  %v10149_v33 = vor.u32 %v13628_v16, %v10148_v55  ;;  %v10212_v28 = vld [vmem:[%s21397_s3 + $0x80] sm:$0xf]  ;;  %v14466_v16 = vld [vmem:[%s14811_s25 + $0x74] sm:$0xf] }
 0x21a   : > { %v1778_v35 = vadd.f32 %v15409_v24, %v1708_v13  ;;  %v1941_v37 = vpack.c.b16 %v1925_v23, %v1925_v23  ;;  %9984 = vmatmul.msk.bf16.gmra.mxu1 %vm812_vm0, %v14465_v63  ;;  %v1942_v40 = vpack.c.b16 %v1926_v61, %v1926_v61  ;;  %v15680_v12 = vpack.c.b16 %v1925_v23, %v2093_v45 }
 0x21b   : > { %v15682_v46 = vpack.c.b16 %v1926_v61, %v2094_v47  ;;  %v1841_v4 = vmax.f32 %v1777_v8, 0.0  ;;  %v1246_v61 = vadd.f32 %v15278_v60, %v15148_v3  ;;  %v10213_v13 = vor.u32 %v13644_v39, %v10212_v28  ;;  %2869 = vmatpush.bf16.msra.mxu0 %v10149_v33  ;;  %v15702_v8 = vpop.f32.mrf.mxu3 }
 0x21c   : > { %v1842_v50 = vmax.f32 %v1778_v35, 0.0  ;;  %v1982_v23 = vshrl.u32 %v1941_v37, 16  ;;  %v1989_v14 = vshrl.u32 %v1942_v40, 16  ;;  %v1985_v53 = vshll.u32 %v1941_v37, 16 }
 0x21d   : > { %21511 = vst [vmem:[#allocation11_spill] sm:$0xff] %v15682_v46  ;;  %2918 = vmatpush.bf16.msra.mxu1 %v10213_v13  ;;  %v1992_v3 = vshll.u32 %v1942_v40, 16  ;;  %v1395_v36 = vsel %vm694_vm4, %v14466_v16, %v1364_v59  ;;  %v2110_v39 = vpack.c.b16 %v2094_v47, %v2094_v47  ;;  %v21516_v16 = vld [vmem:[#allocation15_spill] sm:$0xff] }
 0x21e   : > { %v1893_v43 = vpack.c.bf16 %v1842_v50, %v1841_v4  ;;  %v1546_v54 = vpop.f32.mrf.mxu0  ;;  %v1984_v19 = vrot.slane %v1982_v23, 7  ;;  %v1991_v55 = vrot.slane %v1989_v14, 7  ;;  %v2109_v50 = vpack.c.b16 %v2093_v45, %v2093_v45  ;;  %v21513_v45 = vld [vmem:[#allocation14_spill] sm:$0xff] }
 0x21f   : > { %v1635_v10 = vpop.f32.mrf.mxu1  ;;  %v1709_v35 = vadd.f32 %v1546_v54, %v1157_v18  ;;  %v1160_v23 = vadd.f32 %v15312_v26, %v15152_v49 }
 0x220   : > { %v1710_v63 = vadd.f32 %v1635_v10, %v1246_v61  ;;  %v1987_v44 = vor.u32 %v1985_v53, %v1984_v19  ;;  %v1994_v42 = vor.u32 %v1992_v3, %v1991_v55  ;;  %v21514_v61 = vld [vmem:[#allocation43_spill] sm:$0xff]  ;;  %v1407_v19 = vsel %vm15182_vm7, %v1395_v36, 0  ;;  %v15724_v3 = vpop.f32.mrf.mxu2  ;;  %v21517_v36 = vld [vmem:[#allocation48_spill] sm:$0xff] }
 0x221   : > { %v1779_v60 = vadd.f32 %v15407_v31, %v1709_v35  ;;  %v1249_v13 = vadd.f32 %v21514_v61, %v21513_v45  ;;  %v2294_v53 = vunpack.c.l.b16 %v1893_v43  ;;  %v2295_v47 = vunpack.c.h.b16 %v1893_v43 }
 0x222   : > { %v1780_v4 = vadd.f32 %v15409_v24, %v1710_v63  ;;  %v2125_v37 = vsel %vm14828_vm3, 0, %v1987_v44  ;;  %v2126_v40 = vsel %vm14828_vm3, 0, %v1994_v42  ;;  %v21518_v42 = vld [vmem:[#allocation16_spill] sm:$0xff] }
 0x223   : > { %v1843_v33 = vmax.f32 %v1779_v60, 0.0  ;;  %v15711_v18 = vsel %vm694_vm4, %v2125_v37, %v2109_v50  ;;  %v15720_v54 = vsel %vm694_vm4, %v2126_v40, %v2110_v39  ;;  %v15726_v49 = vpop.f32.mrf.mxu3  ;;  %v1162_v37 = vadd.f32 %v21517_v36, %v21516_v16 }
 0x224   : > { %v1844_v28 = vmax.f32 %v1780_v4, 0.0  ;;  %21512 = vst [vmem:[#allocation12_spill] sm:$0xff] %v15711_v18 }
 0x225   : > { %21515 = vst [vmem:[#allocation13_spill] sm:$0xff] %v15720_v54 }
 0x226   : > { %v1894_v14 = vpack.c.bf16 %v1844_v28, %v1843_v33  ;;  %v1549_v10 = vpop.f32.mrf.mxu0  ;;  %v21519_v33 = vld [vmem:[#allocation49_spill] sm:$0xff] }
 0x227   : > { %v1638_v59 = vpop.f32.mrf.mxu1  ;;  %v1711_v35 = vadd.f32 %v1549_v10, %v1160_v23  ;;  %v1251_v28 = vadd.f32 %v21519_v33, %v21518_v42 }
 0x228   : > { %v1712_v63 = vadd.f32 %v1638_v59, %v1249_v13  ;;  %v2296_v44 = vunpack.c.l.b16 %v1894_v14  ;;  %v2297_v55 = vunpack.c.h.b16 %v1894_v14  ;;  %v15744_v10 = vpop.f32.mrf.mxu2 }
 0x229   : > { %v1781_v26 = vadd.f32 %v15407_v31, %v1711_v35  ;;  %9969 = vmatmul.msk.bf16.gmra.mxu0 %vm812_vm0, %v1407_v19  ;;  %v21521_v35 = vld [vmem:[#allocation52_spill] sm:$0xff] }
 0x22a   : > { %v1782_v60 = vadd.f32 %v15409_v24, %v1712_v63  ;;  %v15731_v4 = vpack.c.b16 %v2296_v44, %v2294_v53  ;;  %v15733_v5 = vpack.c.b16 %v2297_v55, %v2295_v47  ;;  %9985 = vmatmul.msk.bf16.gmra.mxu1 %vm812_vm0, %v1407_v19  ;;  %v21520_v47 = vld [vmem:[#allocation17_spill] sm:$0xff]  ;;  %v21522_v44 = vld [vmem:[#allocation18_spill] sm:$0xff] }
 0x22b   : > { %v1845_v43 = vmax.f32 %v1781_v26, 0.0  ;;  %v15746_v59 = vpop.f32.mrf.mxu3  ;;  %v1165_v63 = vadd.f32 %v21521_v35, %v21520_v47  ;;  %v21523_v55 = vld [vmem:[#allocation53_spill] sm:$0xff] }
 0x22c   : > { %v1846_v50 = vmax.f32 %v1782_v60, 0.0  ;;  %2529 = vmatmul.bf16.gmra.mxu2 %v15731_v4  ;;  %2578 = vmatmul.bf16.gmra.mxu3 %v15733_v5  ;;  %v1254_v26 = vadd.f32 %v21523_v55, %v21522_v44  ;;  %v21528_v55 = vld [vmem:[#allocation20_spill] sm:$0xff] }
 0x22e   : > { %v1895_v39 = vpack.c.bf16 %v1846_v50, %v1845_v43  ;;  %v1551_v40 = vpop.f32.mrf.mxu0 }
 0x22f   : > { %v1640_v23 = vpop.f32.mrf.mxu1  ;;  %v1713_v45 = vadd.f32 %v1551_v40, %v1162_v37 }
 0x230   : > { %v1714_v61 = vadd.f32 %v1640_v23, %v1251_v28  ;;  %v2095_v33 = vunpack.c.l.b16 %v1895_v39  ;;  %v2096_v28 = vunpack.c.h.b16 %v1895_v39  ;;  %v21527_v39 = vld [vmem:[#allocation54_spill] sm:$0xff] }
 0x231   : > { %v1783_v13 = vadd.f32 %v15407_v31, %v1713_v45 }
 0x232   : > { %v1784_v14 = vadd.f32 %v15409_v24, %v1714_v61 }
 0x233   : > { %v1847_v19 = vmax.f32 %v1783_v13, 0.0 }
 0x234   : > { %v1848_v53 = vmax.f32 %v1784_v14, 0.0 }
 0x236   : > { %v1896_v60 = vpack.c.bf16 %v1848_v53, %v1847_v19  ;;  %v1554_v43 = vpop.f32.mrf.mxu0 }
 0x237   : > { %v1643_v50 = vpop.f32.mrf.mxu1  ;;  %v1715_v37 = vadd.f32 %v1554_v43, %v1165_v63  ;;  %v21526_v63 = vld [vmem:[#allocation19_spill] sm:$0xff]  ;;  %v15766_v43 = vpop.f32.mrf.mxu3 }
 0x238   : > { %v1927_v16 = vunpack.c.l.b16 %v1896_v60  ;;  %v1928_v36 = vunpack.c.h.b16 %v1896_v60  ;;  %v1716_v42 = vadd.f32 %v1643_v50, %v1254_v26  ;;  %v1167_v44 = vadd.f32 %v21527_v39, %v21526_v63  ;;  %v15764_v60 = vpop.f32.mrf.mxu2 }
 0x239   : > { %v1785_v40 = vadd.f32 %v15407_v31, %v1715_v37  ;;  %2870 = vmatmul.bf16.vlgmr.msra.gmra.mxu0 %v15482_v58  ;;  %v1256_v26 = vadd.f32 %v15421_v41, %v21528_v55  ;;  %v2111_v41 = vpack.c.b16 %v2095_v33, %v2095_v33  ;;  %v2112_v55 = vpack.c.b16 %v2096_v28, %v2096_v28 }
 0x23a   : > { %v1786_v23 = vadd.f32 %v15409_v24, %v1716_v42  ;;  %v1943_v45 = vpack.c.b16 %v1927_v16, %v1927_v16  ;;  %v1944_v61 = vpack.c.b16 %v1928_v36, %v1928_v36  ;;  %2919 = vmatmul.bf16.vlgmr.msra.gmra.mxu1 %v15485_v51  ;;  %v15756_v13 = vpack.c.b16 %v1927_v16, %v2095_v33 }
 0x23b   : > { %v15758_v14 = vpack.c.b16 %v1928_v36, %v2096_v28  ;;  %v1849_v19 = vmax.f32 %v1785_v40, 0.0 }
 0x23c   : > { %21524 = vst [vmem:[#allocation14_spill] sm:$0xff] %v15756_v13  ;;  %v1850_v53 = vmax.f32 %v1786_v23, 0.0  ;;  %v1996_v47 = vshrl.u32 %v1943_v45, 16  ;;  %v2003_v35 = vshrl.u32 %v1944_v61, 16  ;;  %v1999_v36 = vshll.u32 %v1943_v45, 16 }
 0x23d   : > { %21525 = vst [vmem:[#allocation43_spill] sm:$0xff] %v15758_v14  ;;  %v2006_v40 = vshll.u32 %v1944_v61, 16 }
 0x23e   : > { %v1897_v50 = vpack.c.bf16 %v1850_v53, %v1849_v19  ;;  %v1998_v37 = vrot.slane %v1996_v47, 7  ;;  %v1556_v16 = vpop.f32.mrf.mxu0  ;;  %v2005_v51 = vrot.slane %v2003_v35, 7 }
 0x23f   : > { %v1645_v42 = vpop.f32.mrf.mxu1  ;;  %v1717_v23 = vadd.f32 %v1556_v16, %v1167_v44  ;;  %v15786_v16 = vpop.f32.mrf.mxu3 }
 0x240   : > { %v1718_v58 = vadd.f32 %v1645_v42, %v1256_v26  ;;  %v2001_v14 = vor.u32 %v1999_v36, %v1998_v37  ;;  %v2008_v13 = vor.u32 %v2006_v40, %v2005_v51  ;;  %v21529_v51 = vld [vmem:[#allocation21_spill] sm:$0xff]  ;;  %v2298_v26 = vunpack.c.l.b16 %v1897_v50 }
 0x241   : > { %v1787_v63 = vadd.f32 %v15407_v31, %v1717_v23  ;;  %v1170_v35 = vadd.f32 %v15429_v29, %v21529_v51  ;;  %v2299_v37 = vunpack.c.h.b16 %v1897_v50 }
 0x242   : > { %v1788_v39 = vadd.f32 %v15409_v24, %v1718_v58  ;;  %v2127_v46 = vsel %vm14828_vm3, 0, %v2001_v14  ;;  %v2128_v19 = vsel %vm14828_vm3, 0, %v2008_v13  ;;  %v21530_v58 = vld [vmem:[#allocation22_spill] sm:$0xff]  ;;  %v15784_v13 = vpop.f32.mrf.mxu2 }
 0x243   : > { %v1851_v53 = vmax.f32 %v1787_v63, 0.0  ;;  %v15775_v61 = vsel %vm694_vm4, %v2127_v46, %v2111_v41  ;;  %v15778_v47 = vsel %vm694_vm4, %v2128_v19, %v2112_v55  ;;  %v1259_v33 = vadd.f32 %v15431_v32, %v21530_v58  ;;  %v21533_v41 = vld [vmem:[#allocation23_spill] sm:$0xff]  ;;  %v21534_v55 = vld [vmem:[#allocation57_spill] sm:$0xff] }
 0x244   : > { %v1852_v45 = vmax.f32 %v1788_v39, 0.0  ;;  %v1172_v19 = vadd.f32 %v21534_v55, %v21533_v41 }
 0x246   : > { %v1898_v28 = vpack.c.bf16 %v1852_v45, %v1851_v53  ;;  %v1559_v44 = vpop.f32.mrf.mxu0  ;;  %v21535_v53 = vld [vmem:[#allocation24_spill] sm:$0xff]  ;;  %v21536_v45 = vld [vmem:[#allocation58_spill] sm:$0xff] }
 0x247   : > { %v1648_v14 = vpop.f32.mrf.mxu1  ;;  %v1719_v46 = vadd.f32 %v1559_v44, %v1170_v35  ;;  %v1261_v51 = vadd.f32 %v21536_v45, %v21535_v53  ;;  %v21539_v53 = vld [vmem:[#allocation26_spill] sm:$0xff] }
 0x248   : > { %v1720_v42 = vadd.f32 %v1648_v14, %v1259_v33  ;;  %v2300_v36 = vunpack.c.l.b16 %v1898_v28  ;;  %v2301_v40 = vunpack.c.h.b16 %v1898_v28 }
 0x249   : > { %v1789_v23 = vadd.f32 %v15407_v31, %v1719_v46  ;;  %2875 = vmatmul.bf16.gmra.mxu0 %v15570_v27 }
 0x24a   : > { %v1790_v29 = vadd.f32 %v15409_v24, %v1720_v42  ;;  %v15791_v32 = vpack.c.b16 %v2300_v36, %v2298_v26  ;;  %v15793_v63 = vpack.c.b16 %v2301_v40, %v2299_v37  ;;  %2924 = vmatmul.bf16.gmra.mxu1 %v15573_v57 }
 0x24b   : > { %v1853_v50 = vmax.f32 %v1789_v23, 0.0  ;;  %v21537_v23 = vld [vmem:[#allocation25_spill] sm:$0xff] }
 0x24c   : > { %21531 = vst [vmem:[#allocation15_spill] sm:$0xff] %v15791_v32  ;;  %v1854_v39 = vmax.f32 %v1790_v29, 0.0  ;;  %2534 = vmatmul.bf16.gmra.mxu2 %v15791_v32  ;;  %2583 = vmatmul.bf16.gmra.mxu3 %v15793_v63  ;;  %v21538_v29 = vld [vmem:[#allocation59_spill] sm:$0xff] }
 0x24d   : > { %21532 = vst [vmem:[#allocation48_spill] sm:$0xff] %v15793_v63  ;;  %v1175_v41 = vadd.f32 %v21538_v29, %v21537_v23 }
 0x24e   : > { %v1899_v35 = vpack.c.bf16 %v1854_v39, %v1853_v50  ;;  %v1561_v58 = vpop.f32.mrf.mxu0  ;;  %v21540_v50 = vld [vmem:[#allocation60_spill] sm:$0xff] }
 0x24f   : > { %v1650_v33 = vpop.f32.mrf.mxu1  ;;  %v1721_v28 = vadd.f32 %v1561_v58, %v1172_v19  ;;  %v2515_v14 = vpop.f32.mrf.mxu2  ;;  %v1264_v39 = vadd.f32 %v21540_v50, %v21539_v53 }
 0x250   : > { %v1722_v44 = vadd.f32 %v1650_v33, %v1261_v51  ;;  %v2564_v26 = vpop.f32.mrf.mxu3 }
 0x251   : > { %v15802_v37 = vadd.f32 %v2564_v26, %v2515_v14  ;;  %v1791_v46 = vadd.f32 %v15407_v31, %v1721_v28  ;;  %v2097_v14 = vunpack.c.l.b16 %v1899_v35  ;;  %v2098_v26 = vunpack.c.h.b16 %v1899_v35 }
 0x252   : > { %v1792_v42 = vadd.f32 %v15409_v24, %v1722_v44 }
 0x253   : > { %v1855_v36 = vmax.f32 %v1791_v46, 0.0  ;;  %v2114_v63 = vpack.c.b16 %v2098_v26, %v2098_v26 }
 0x254   : > { %v1856_v40 = vmax.f32 %v1792_v42, 0.0 }
 0x256   : > { %v1900_v55 = vpack.c.bf16 %v1856_v40, %v1855_v36  ;;  %v1564_v45 = vpop.f32.mrf.mxu0 }
 0x257   : > { %v1723_v58 = vadd.f32 %v1564_v45, %v1175_v41  ;;  %v1653_v33 = vpop.f32.mrf.mxu1 }
 0x258   : > { %v1929_v19 = vunpack.c.l.b16 %v1900_v55  ;;  %v1930_v51 = vunpack.c.h.b16 %v1900_v55  ;;  %v1724_v57 = vadd.f32 %v1653_v33, %v1264_v39  ;;  %v21543_v55 = vld [vmem:[#allocation27_spill] sm:$0xff]  ;;  %v21544_v33 = vld [vmem:[#allocation28_spill] sm:$0xff] }
 0x259   : > { %v1793_v28 = vadd.f32 %v15407_v31, %v1723_v58  ;;  %2880 = vmatmul.bf16.gmra.mxu0 %v15711_v18  ;;  %v1177_v35 = vadd.f32 %v15487_v52, %v21543_v55 }
 0x25a   : > { %v1945_v44 = vpack.c.b16 %v1929_v19, %v1929_v19  ;;  %v1946_v46 = vpack.c.b16 %v1930_v51, %v1930_v51  ;;  %v1794_v42 = vadd.f32 %v15409_v24, %v1724_v57  ;;  %2929 = vmatmul.bf16.gmra.mxu1 %v15720_v54  ;;  %v15814_v36 = vpack.c.b16 %v1929_v19, %v2097_v14 }
 0x25b   : > { %v15816_v40 = vpack.c.b16 %v1930_v51, %v2098_v26  ;;  %v1857_v23 = vmax.f32 %v1793_v28, 0.0  ;;  %v1266_v57 = vadd.f32 %v15489_v17, %v21544_v33 }
 0x25c   : > { %21541 = vst [vmem:[#allocation16_spill] sm:$0xff] %v15814_v36  ;;  %v2010_v29 = vshrl.u32 %v1945_v44, 16  ;;  %v2017_v41 = vshrl.u32 %v1946_v46, 16  ;;  %v1858_v53 = vmax.f32 %v1794_v42, 0.0  ;;  %v2013_v39 = vshll.u32 %v1945_v44, 16 }
 0x25d   : > { %21542 = vst [vmem:[#allocation49_spill] sm:$0xff] %v15816_v40  ;;  %v2020_v58 = vshll.u32 %v1946_v46, 16  ;;  %v2113_v36 = vpack.c.b16 %v2097_v14, %v2097_v14  ;;  %v21545_v14 = vld [vmem:[#allocation29_spill] sm:$0xff] }
 0x25e   : > { %v2012_v50 = vrot.slane %v2010_v29, 7  ;;  %v2019_v45 = vrot.slane %v2017_v41, 7  ;;  %v1901_v18 = vpack.c.bf16 %v1858_v53, %v1857_v23  ;;  %v1566_v54 = vpop.f32.mrf.mxu0  ;;  %v1180_v26 = vadd.f32 %v15507_v7, %v21545_v14  ;;  %v21546_v23 = vld [vmem:[#allocation30_spill] sm:$0xff]  ;;  %v15838_v41 = vpop.f32.mrf.mxu2 }
 0x25f   : > { %v1725_v19 = vadd.f32 %v1566_v54, %v1177_v35  ;;  %v1655_v27 = vpop.f32.mrf.mxu1  ;;  %v1269_v29 = vadd.f32 %v15509_v15, %v21546_v23  ;;  %v15840_v35 = vpop.f32.mrf.mxu3 }
 0x260   : > { %v2015_v51 = vor.u32 %v2013_v39, %v2012_v50  ;;  %v2022_v40 = vor.u32 %v2020_v58, %v2019_v45  ;;  %v1726_v28 = vadd.f32 %v1655_v27, %v1266_v57  ;;  %v2302_v50 = vunpack.c.l.b16 %v1901_v18 }
 0x261   : > { %v1795_v32 = vadd.f32 %v15407_v31, %v1725_v19  ;;  %v2303_v45 = vunpack.c.h.b16 %v1901_v18  ;;  %v21547_v18 = vld [vmem:[#allocation31_spill] sm:$0xff] }
 0x262   : > { %v2129_v52 = vsel %vm14828_vm3, 0, %v2015_v51  ;;  %v2130_v44 = vsel %vm14828_vm3, 0, %v2022_v40  ;;  %v1796_v46 = vadd.f32 %v15409_v24, %v1726_v28  ;;  %v1182_v51 = vadd.f32 %v15521_v20, %v21547_v18  ;;  %v21548_v28 = vld [vmem:[#allocation32_spill] sm:$0xff] }
 0x263   : > { %v15829_v17 = vsel %vm694_vm4, %v2129_v52, %v2113_v36  ;;  %v15832_v54 = vsel %vm694_vm4, %v2130_v44, %v2114_v63  ;;  %v1859_v42 = vmax.f32 %v1795_v32, 0.0  ;;  %v1271_v52 = vadd.f32 %v15523_v62, %v21548_v28 }
 0x264   : > { %v1860_v27 = vmax.f32 %v1796_v46, 0.0 }
 0x266   : > { %v1902_v55 = vpack.c.bf16 %v1860_v27, %v1859_v42  ;;  %v1569_v40 = vpop.f32.mrf.mxu0 }
 0x267   : > { %v1727_v53 = vadd.f32 %v1569_v40, %v1180_v26  ;;  %v1658_v36 = vpop.f32.mrf.mxu1 }
 0x268   : > { %v1728_v39 = vadd.f32 %v1658_v36, %v1269_v29  ;;  %v2304_v63 = vunpack.c.l.b16 %v1902_v55  ;;  %v2305_v32 = vunpack.c.h.b16 %v1902_v55 }
 0x269   : > { %v1797_v58 = vadd.f32 %v15407_v31, %v1727_v53  ;;  %2885 = vmatmul.bf16.gmra.mxu0 %v15775_v61 }
 0x26a   : > { %v1798_v7 = vadd.f32 %v15409_v24, %v1728_v39  ;;  %2934 = vmatmul.bf16.gmra.mxu1 %v15778_v47  ;;  %v15846_v15 = vpack.c.b16 %v2304_v63, %v2302_v50  ;;  %v15848_v33 = vpack.c.b16 %v2305_v32, %v2303_v45  ;;  %v21549_v50 = vld [vmem:[#allocation33_spill] sm:$0xff]  ;;  %v21550_v39 = vld [vmem:[#allocation34_spill] sm:$0xff] }
 0x26b   : > { %v1861_v57 = vmax.f32 %v1797_v58, 0.0  ;;  %v1185_v20 = vadd.f32 %v15551_v22, %v21549_v50  ;;  %v1274_v62 = vadd.f32 %v15553_v1, %v21550_v39 }
 0x26c   : > { %v1862_v19 = vmax.f32 %v1798_v7, 0.0  ;;  %2539 = vmatmul.bf16.gmra.mxu2 %v15846_v15  ;;  %2588 = vmatmul.bf16.gmra.mxu3 %v15848_v33 }
 0x26e   : > { %v1903_v44 = vpack.c.bf16 %v1862_v19, %v1861_v57  ;;  %v1571_v46 = vpop.f32.mrf.mxu0 }
 0x26f   : > { %v2520_v42 = vpop.f32.mrf.mxu2  ;;  %v1729_v27 = vadd.f32 %v1571_v46, %v1182_v51  ;;  %v1660_v14 = vpop.f32.mrf.mxu1 }
 0x270   : > { %v2569_v26 = vpop.f32.mrf.mxu3  ;;  %v1730_v23 = vadd.f32 %v1660_v14, %v1271_v52  ;;  %v2099_v7 = vunpack.c.l.b16 %v1903_v44  ;;  %v2100_v51 = vunpack.c.h.b16 %v1903_v44 }
 0x271   : > { %v15856_v29 = vadd.f32 %v2569_v26, %v2520_v42  ;;  %v1799_v55 = vadd.f32 %v15407_v31, %v1729_v27 }
 0x272   : > { %v1800_v40 = vadd.f32 %v15409_v24, %v1730_v23 }
 0x273   : > { %v1863_v53 = vmax.f32 %v1799_v55, 0.0  ;;  %v21551_v55 = vld [vmem:[#allocation35_spill] sm:$0xff] }
 0x274   : > { %v1864_v36 = vmax.f32 %v1800_v40, 0.0  ;;  %v1187_v44 = vadd.f32 %v15605_v30, %v21551_v55 }
 0x276   : > { %v1904_v63 = vpack.c.bf16 %v1864_v36, %v1863_v53  ;;  %v1574_v45 = vpop.f32.mrf.mxu0  ;;  %v21552_v36 = vld [vmem:[#allocation36_spill] sm:$0xff] }
 0x277   : > { %v1731_v32 = vadd.f32 %v1574_v45, %v1185_v20  ;;  %v1663_v58 = vpop.f32.mrf.mxu1  ;;  %v1276_v50 = vadd.f32 %v15607_v34, %v21552_v36  ;;  %v13673_v45 = vld [vmem:[%s21397_s3 + $0x174] sm:$0xf]  ;;  %v10142_v34 = vld [vmem:[%s21397_s3 + $0x1f8] sm:$0xf0] }
 0x278   : > { %v1931_v57 = vunpack.c.l.b16 %v1904_v63  ;;  %v1932_v19 = vunpack.c.h.b16 %v1904_v63  ;;  %v1732_v18 = vadd.f32 %v1663_v58, %v1274_v62 }
 0x279   : > { %v1801_v28 = vadd.f32 %v15407_v31, %v1731_v32  ;;  %2890 = vmatmul.bf16.gmra.mxu0 %v15829_v17  ;;  %v10078_v32 = vld [vmem:[%s21397_s3 + $0x178] sm:$0xf0] }
 0x27a   : > { %v1802_v52 = vadd.f32 %v15409_v24, %v1732_v18  ;;  %2939 = vmatmul.bf16.gmra.mxu1 %v15832_v54  ;;  %v1947_v22 = vpack.c.b16 %v1931_v57, %v1931_v57  ;;  %v1948_v46 = vpack.c.b16 %v1932_v19, %v1932_v19  ;;  %v15868_v1 = vpack.c.b16 %v1931_v57, %v2099_v7 }
 0x27b   : > { %v1865_v42 = vmax.f32 %v1801_v28, 0.0  ;;  %v15870_v27 = vpack.c.b16 %v1932_v19, %v2100_v51  ;;  %v10081_v30 = vor.u32 %v13673_v45, %v10078_v32  ;;  %v13689_v19 = vld [vmem:[%s21397_s3 + $0x1f4] sm:$0xf]  ;;  %v15913_v32 = vpop.f32.mrf.mxu2 }
 0x27c   : > { %v1866_v14 = vmax.f32 %v1802_v52, 0.0  ;;  %v2024_v26 = vshrl.u32 %v1947_v22, 16  ;;  %v2031_v23 = vshrl.u32 %v1948_v46, 16  ;;  %v2027_v40 = vshll.u32 %v1947_v22, 16 }
 0x27d   : > { %v2034_v53 = vshll.u32 %v1948_v46, 16  ;;  %v2115_v46 = vpack.c.b16 %v2099_v7, %v2099_v7  ;;  %2604 = vmatpush.bf16.msra.mxu2 %v10081_v30  ;;  %v10134_v30 = vld [vmem:[%s21397_s3 + $0x1e8] sm:$0xf0] }
 0x27e   : > { %v1905_v20 = vpack.c.bf16 %v1866_v14, %v1865_v42  ;;  %v1576_v39 = vpop.f32.mrf.mxu0  ;;  %v2026_v62 = vrot.slane %v2024_v26, 7  ;;  %v2033_v63 = vrot.slane %v2031_v23, 7  ;;  %v2116_v42 = vpack.c.b16 %v2100_v51, %v2100_v51  ;;  %v21553_v51 = vld [vmem:[#allocation37_spill] sm:$0xff] }
 0x27f   : > { %v1733_v58 = vadd.f32 %v1576_v39, %v1187_v44  ;;  %v1665_v57 = vpop.f32.mrf.mxu1  ;;  %v10145_v14 = vor.u32 %v13689_v19, %v10142_v34  ;;  %v10070_v39 = vld [vmem:[%s21397_s3 + $0x168] sm:$0xf0]  ;;  %v13669_v19 = vld [vmem:[%s21397_s3 + $0x154] sm:$0xf]  ;;  %v10062_v34 = vld [vmem:[%s21397_s3 + $0x158] sm:$0xf0] }
 0x280   : > { %v1734_v18 = vadd.f32 %v1665_v57, %v1276_v50  ;;  %v2029_v28 = vor.u32 %v2027_v40, %v2026_v62  ;;  %v2036_v52 = vor.u32 %v2034_v53, %v2033_v63  ;;  %v1190_v53 = vadd.f32 %v15659_v6, %v21553_v51  ;;  %v13671_v50 = vld [vmem:[%s21397_s3 + $0x164] sm:$0xf]  ;;  %v21554_v63 = vld [vmem:[#allocation38_spill] sm:$0xff] }
 0x281   : > { %v1803_v22 = vadd.f32 %v15407_v31, %v1733_v58  ;;  %2653 = vmatpush.bf16.msra.mxu3 %v10145_v14  ;;  %v13687_v62 = vld [vmem:[%s21397_s3 + $0x1e4] sm:$0xf]  ;;  %v1279_v45 = vadd.f32 %v15661_v48, %v21554_v63  ;;  %v10073_v6 = vor.u32 %v13671_v50, %v10070_v39 }
 0x282   : > { %v1804_v26 = vadd.f32 %v15409_v24, %v1734_v18  ;;  %v2131_v23 = vsel %vm14828_vm3, 0, %v2029_v28  ;;  %v2132_v55 = vsel %vm14828_vm3, 0, %v2036_v52  ;;  %v15924_v18 = vpop.f32.mrf.mxu3  ;;  %v2306_v52 = vunpack.c.l.b16 %v1905_v20 }
 0x283   : > { %v1867_v44 = vmax.f32 %v1803_v22, 0.0  ;;  %v15895_v36 = vsel %vm694_vm4, %v2131_v23, %v2115_v46  ;;  %v15898_v40 = vsel %vm694_vm4, %v2132_v55, %v2116_v42  ;;  %v10137_v22 = vor.u32 %v13687_v62, %v10134_v30  ;;  %v13685_v46 = vld [vmem:[%s21397_s3 + $0x1d4] sm:$0xf]  ;;  %v10126_v42 = vld [vmem:[%s21397_s3 + $0x1d8] sm:$0xf0]  ;;  %2605 = vmatpush.bf16.msra.mxu2 %v10073_v6  ;;  %v21556_v30 = vld [vmem:[#allocation40_spill] sm:$0xff] }
 0x284   : > { %v1868_v7 = vmax.f32 %v1804_v26, 0.0  ;;  %v2307_v23 = vunpack.c.h.b16 %v1905_v20  ;;  %v10129_v51 = vor.u32 %v13685_v46, %v10126_v42  ;;  %v21555_v20 = vld [vmem:[#allocation39_spill] sm:$0xff] }
 0x285   : > { %2654 = vmatpush.bf16.msra.mxu3 %v10137_v22  ;;  %v13683_v6 = vld [vmem:[%s21397_s3 + $0x1c4] sm:$0xf] }
 0x286   : > { %v1906_v58 = vpack.c.bf16 %v1868_v7, %v1867_v44  ;;  %v1579_v57 = vpop.f32.mrf.mxu0  ;;  %v10065_v7 = vor.u32 %v13669_v19, %v10062_v34  ;;  %v1281_v19 = vadd.f32 %v15702_v8, %v21556_v30  ;;  %v10046_v8 = vld [vmem:[%s21397_s3 + $0x138] sm:$0xf0]  ;;  %v10038_v30 = vld [vmem:[%s21397_s3 + $0x128] sm:$0xf0] }
 0x287   : > { %v1735_v48 = vadd.f32 %v1579_v57, %v1190_v53  ;;  %v1668_v28 = vpop.f32.mrf.mxu1  ;;  %v10054_v57 = vld [vmem:[%s21397_s3 + $0x148] sm:$0xf0] }
 0x288   : > { %v1736_v14 = vadd.f32 %v1668_v28, %v1279_v45  ;;  %v2308_v26 = vunpack.c.l.b16 %v1906_v58  ;;  %v2309_v55 = vunpack.c.h.b16 %v1906_v58  ;;  %v1192_v45 = vadd.f32 %v15700_v2, %v21555_v20  ;;  %2606 = vmatpush.bf16.msra.mxu2 %v10065_v7  ;;  %v13667_v58 = vld [vmem:[%s21397_s3 + $0x144] sm:$0xf] }
 0x289   : > { %v1805_v44 = vadd.f32 %v15407_v31, %v1735_v48  ;;  %2895 = vmatmul.bf16.gmra.mxu0 %v15895_v36  ;;  %2655 = vmatpush.bf16.msra.mxu3 %v10129_v51  ;;  %v10057_v28 = vor.u32 %v13667_v58, %v10054_v57  ;;  %v21557_v58 = vld [vmem:[#allocation41_spill] sm:$0xff] }
 0x28a   : > { %v1806_v53 = vadd.f32 %v15409_v24, %v1736_v14  ;;  %2944 = vmatmul.bf16.gmra.mxu1 %v15898_v40  ;;  %v15936_v50 = vpack.c.b16 %v2308_v26, %v2306_v52  ;;  %v15938_v39 = vpack.c.b16 %v2309_v55, %v2307_v23  ;;  %v10118_v52 = vld [vmem:[%s21397_s3 + $0x1c8] sm:$0xf0]  ;;  %v13665_v55 = vld [vmem:[%s21397_s3 + $0x134] sm:$0xf]  ;;  %v1195_v57 = vadd.f32 %v15724_v3, %v21557_v58  ;;  %v10094_v58 = vld [vmem:[%s21397_s3 + $0x198] sm:$0xf0] }
 0x28b   : > { %v1869_v62 = vmax.f32 %v1805_v44, 0.0  ;;  %v10121_v14 = vor.u32 %v13683_v6, %v10118_v52  ;;  %v13681_v44 = vld [vmem:[%s21397_s3 + $0x1b4] sm:$0xf]  ;;  %v10049_v51 = vor.u32 %v13665_v55, %v10046_v8  ;;  %v13663_v6 = vld [vmem:[%s21397_s3 + $0x124] sm:$0xf] }
 0x28c   : > { %v1870_v63 = vmax.f32 %v1806_v53, 0.0  ;;  %2544 = vmatmul.bf16.gmra.mxu2 %v15936_v50  ;;  %2593 = vmatmul.bf16.gmra.mxu3 %v15938_v39  ;;  %v10110_v53 = vld [vmem:[%s21397_s3 + $0x1b8] sm:$0xf0]  ;;  %v10041_v3 = vor.u32 %v13663_v6, %v10038_v30  ;;  %v21560_v8 = vld [vmem:[#allocation45_spill] sm:$0xff]  ;;  %v13706_v6 = vld [vmem:[%s21397_s3 + $0x274] sm:$0xf0] }
 0x28d   : > { %2607 = vmatpush.bf16.msra.mxu2 %v10057_v28  ;;  %2656 = vmatpush.bf16.msra.mxu3 %v10121_v14 }
 0x28e   : > { %v1907_v34 = vpack.c.bf16 %v1870_v63, %v1869_v62  ;;  %v1581_v48 = vpop.f32.mrf.mxu0  ;;  %v10113_v63 = vor.u32 %v13681_v44, %v10110_v53  ;;  %v1286_v44 = vadd.f32 %v15746_v59, %v21560_v8 }
 0x28f   : > { %v2525_v2 = vpop.f32.mrf.mxu2  ;;  %v1737_v22 = vadd.f32 %v1581_v48, %v1192_v45  ;;  %v1670_v46 = vpop.f32.mrf.mxu1  ;;  %v21558_v48 = vld [vmem:[#allocation42_spill] sm:$0xff] }
 0x290   : > { %v2574_v42 = vpop.f32.mrf.mxu3  ;;  %v1738_v26 = vadd.f32 %v1670_v46, %v1281_v19  ;;  %v13679_v19 = vld [vmem:[%s21397_s3 + $0x1a4] sm:$0xf]  ;;  %v21559_v46 = vld [vmem:[#allocation44_spill] sm:$0xff] }
 0x291   : > { %v15958_v23 = vadd.f32 %v2574_v42, %v2525_v2  ;;  %v1807_v7 = vadd.f32 %v15407_v31, %v1737_v22  ;;  %2608 = vmatpush.bf16.msra.mxu2 %v10049_v51  ;;  %2657 = vmatpush.bf16.msra.mxu3 %v10113_v63  ;;  %v1284_v2 = vadd.f32 %v15726_v49, %v21558_v48  ;;  %v10102_v22 = vld [vmem:[%s21397_s3 + $0x1a8] sm:$0xf0]  ;;  %v13661_v49 = vld [vmem:[%s21397_s3 + $0x114] sm:$0xf]  ;;  %v16003_v63 = vunpack.c.l.b16 %v1907_v34 }
 0x292   : > { %v1808_v62 = vadd.f32 %v15409_v24, %v1738_v26  ;;  %v1197_v42 = vadd.f32 %v15744_v10, %v21559_v46  ;;  %v10105_v55 = vor.u32 %v13679_v19, %v10102_v22  ;;  %v13677_v10 = vld [vmem:[%s21397_s3 + $0x194] sm:$0xf] }
 0x293   : > { %v1871_v20 = vmax.f32 %v1807_v7, 0.0  ;;  %v10097_v48 = vor.u32 %v13677_v10, %v10094_v58  ;;  %v10086_v10 = vld [vmem:[%s21397_s3 + $0x188] sm:$0xf0] }
 0x294   : > { %v1872_v45 = vmax.f32 %v1808_v62, 0.0  ;;  %v10030_v62 = vld [vmem:[%s21397_s3 + $0x118] sm:$0xf0] }
 0x295   : > { %2609 = vmatpush.bf16.msra.mxu2 %v10041_v3  ;;  %2658 = vmatpush.bf16.msra.mxu3 %v10105_v55 }
 0x296   : > { %v1908_v28 = vpack.c.bf16 %v1872_v45, %v1871_v20  ;;  %v1584_v52 = vpop.f32.mrf.mxu0  ;;  %v16005_v20 = vunpack.c.h.b16 %v1907_v34  ;;  %v10033_v45 = vor.u32 %v13661_v49, %v10030_v62 }
 0x297   : > { %v1739_v14 = vadd.f32 %v1584_v52, %v1195_v57  ;;  %v1673_v26 = vpop.f32.mrf.mxu1  ;;  %v10364_v57 = vld [vmem:[%s21397_s3 + $0x270] sm:$0xf]  ;;  %v13659_v52 = vld [vmem:[%s21397_s3 + $0x104] sm:$0xf] }
 0x298   : > { %v1933_v7 = vunpack.c.l.b16 %v1908_v28  ;;  %v1934_v51 = vunpack.c.h.b16 %v1908_v28  ;;  %v1740_v53 = vadd.f32 %v1673_v26, %v1284_v2  ;;  %v10428_v2 = vld [vmem:[%s21397_s3 + $0x2f0] sm:$0xf]  ;;  %v13722_v28 = vld [vmem:[%s21397_s3 + $0x2f4] sm:$0xf0]  ;;  %v10365_v22 = vor.u32 %v13706_v6, %v10364_v57  ;;  %v13675_v26 = vld [vmem:[%s21397_s3 + $0x184] sm:$0xf] }
 0x299   : > { %v1809_v59 = vadd.f32 %v15407_v31, %v1739_v14  ;;  %v10429_v46 = vor.u32 %v13722_v28, %v10428_v2  ;;  %v10022_v14 = vld [vmem:[%s21397_s3 + $0x108] sm:$0xf0]  ;;  %2610 = vmatpush.bf16.msra.mxu2 %v10033_v45  ;;  %2659 = vmatpush.bf16.msra.mxu3 %v10097_v48  ;;  %v10089_v57 = vor.u32 %v13675_v26, %v10086_v10  ;;  %v10356_v6 = vld [vmem:[%s21397_s3 + $0x260] sm:$0xf]  ;;  %v13718_v10 = vld [vmem:[%s21397_s3 + $0x2d4] sm:$0xf0] }
 0x29a   : > { %v1810_v34 = vadd.f32 %v15409_v24, %v1740_v53  ;;  %v1949_v30 = vpack.c.b16 %v1933_v7, %v1933_v7  ;;  %v1950_v19 = vpack.c.b16 %v1934_v51, %v1934_v51  ;;  %v16034_v55 = vpack.c.b16 %v1933_v7, %v16003_v63  ;;  %v13704_v7 = vld [vmem:[%s21397_s3 + $0x264] sm:$0xf0]  ;;  %3283 = vmatpush.bf16.msrb.mxu0 %v10365_v22  ;;  %v10420_v48 = vld [vmem:[%s21397_s3 + $0x2e0] sm:$0xf]  ;;  %v13702_v22 = vld [vmem:[%s21397_s3 + $0x254] sm:$0xf0] }
 0x29b   : > { %v1873_v3 = vmax.f32 %v1809_v59, 0.0  ;;  %v10025_v58 = vor.u32 %v13659_v52, %v10022_v14  ;;  %3332 = vmatpush.bf16.msrb.mxu1 %v10429_v46  ;;  %v10357_v45 = vor.u32 %v13704_v7, %v10356_v6  ;;  %v13720_v52 = vld [vmem:[%s21397_s3 + $0x2e4] sm:$0xf0]  ;;  %v10412_v46 = vld [vmem:[%s21397_s3 + $0x2d0] sm:$0xf]  ;;  %v2118_v7 = vpack.c.b16 %v16005_v20, %v16005_v20 }
 0x29c   : > { %v1874_v8 = vmax.f32 %v1810_v34, 0.0  ;;  %v2038_v53 = vshrl.u32 %v1949_v30, 16  ;;  %v2041_v49 = vshll.u32 %v1949_v30, 16  ;;  %v2045_v62 = vshrl.u32 %v1950_v19, 16 }
 0x29d   : > { %v2048_v59 = vshll.u32 %v1950_v19, 16  ;;  %v16046_v34 = vpack.c.b16 %v1934_v51, %v16005_v20  ;;  %v10421_v51 = vor.u32 %v13720_v52, %v10420_v48  ;;  %2611 = vmatpush.bf16.msra.mxu2 %v10025_v58  ;;  %2660 = vmatpush.bf16.msra.mxu3 %v10089_v57  ;;  %v13700_v20 = vld [vmem:[%s21397_s3 + $0x244] sm:$0xf0] }
 0x29e   : > { %v16048_v30 = vpack.c.bf16 %v1874_v8, %v1873_v3  ;;  %v1586_v2 = vpop.f32.mrf.mxu0  ;;  %v2040_v28 = vrot.slane %v2038_v53, 7  ;;  %v2047_v19 = vrot.slane %v2045_v62, 7  ;;  %v10348_v3 = vld [vmem:[%s21397_s3 + $0x250] sm:$0xf]  ;;  %v2117_v62 = vpack.c.b16 %v16003_v63, %v16003_v63  ;;  %3284 = vmatpush.bf16.msrb.mxu0 %v10357_v45  ;;  %v13716_v45 = vld [vmem:[%s21397_s3 + $0x2c4] sm:$0xf0] }
 0x29f   : > { %v1741_v14 = vadd.f32 %v1586_v2, %v1197_v42  ;;  %v1675_v26 = vpop.f32.mrf.mxu1  ;;  %v10349_v2 = vor.u32 %v13702_v22, %v10348_v3  ;;  %3333 = vmatpush.bf16.msrb.mxu1 %v10421_v51  ;;  %v21562_v51 = vld [vmem:[#allocation47_spill] sm:$0xff]  ;;  %v10332_v22 = vld [vmem:[%s21397_s3 + $0x230] sm:$0xf] }
 0x2a0   : > { %v1742_v8 = vadd.f32 %v1675_v26, %v1286_v44  ;;  %v2043_v53 = vor.u32 %v2041_v49, %v2040_v28  ;;  %v2050_v42 = vor.u32 %v2048_v59, %v2047_v19  ;;  %v10413_v49 = vor.u32 %v13718_v10, %v10412_v46  ;;  %v10340_v59 = vld [vmem:[%s21397_s3 + $0x240] sm:$0xf]  ;;  %v16105_v46 = vpop.f32.mrf.mxu2  ;;  %v13698_v10 = vld [vmem:[%s21397_s3 + $0x234] sm:$0xf0] }
 0x2a1   : > { %v1811_v6 = vadd.f32 %v15407_v31, %v1741_v14  ;;  %v10404_v19 = vld [vmem:[%s21397_s3 + $0x2c0] sm:$0xf]  ;;  %v21561_v14 = vld [vmem:[#allocation46_spill] sm:$0xff]  ;;  %v1289_v3 = vadd.f32 %v15766_v43, %v21562_v51 }
 0x2a2   : > { %v1812_v48 = vadd.f32 %v15409_v24, %v1742_v8  ;;  %v2133_v44 = vsel %vm14828_vm3, 0, %v2043_v53  ;;  %v2134_v63 = vsel %vm14828_vm3, 0, %v2050_v42  ;;  %v1200_v26 = vadd.f32 %v15764_v60, %v21561_v14  ;;  %3285 = vmatpush.bf16.msrb.mxu0 %v10349_v2  ;;  %v10396_v60 = vld [vmem:[%s21397_s3 + $0x2b0] sm:$0xf]  ;;  %v13714_v43 = vld [vmem:[%s21397_s3 + $0x2b4] sm:$0xf0] }
 0x2a3   : > { %v1875_v58 = vmax.f32 %v1811_v6, 0.0  ;;  %v16085_v57 = vsel %vm694_vm4, %v2133_v44, %v2117_v62  ;;  %v16088_v28 = vsel %vm694_vm4, %v2134_v63, %v2118_v7  ;;  %3334 = vmatpush.bf16.msrb.mxu1 %v10413_v49  ;;  %v10341_v62 = vor.u32 %v13700_v20, %v10340_v59  ;;  %v16116_v6 = vpop.f32.mrf.mxu3 }
 0x2a4   : > { %v1876_v52 = vmax.f32 %v1812_v48, 0.0  ;;  %2900 = vmatmul.bf16.gmra.mxu0 %v16085_v57  ;;  %2949 = vmatmul.bf16.gmra.mxu1 %v16088_v28  ;;  %v10405_v42 = vor.u32 %v13716_v45, %v10404_v19  ;;  %v2310_v2 = vunpack.c.l.b16 %v16048_v30  ;;  %v2311_v49 = vunpack.c.h.b16 %v16048_v30  ;;  %v13696_v30 = vld [vmem:[%s21397_s3 + $0x224] sm:$0xf0] }
 0x2a5   : > { %v10397_v19 = vor.u32 %v13714_v43, %v10396_v60 }
 0x2a6   : > { %v1910_v8 = vpack.c.bf16 %v1876_v52, %v1875_v58  ;;  %v1589_v53 = vpop.f32.mrf.mxu0  ;;  %v10333_v58 = vor.u32 %v13698_v10, %v10332_v22  ;;  %3286 = vmatpush.bf16.msrb.mxu0 %v10341_v62  ;;  %v13712_v22 = vld [vmem:[%s21397_s3 + $0x2a4] sm:$0xf0] }
 0x2a7   : > { %v1743_v7 = vadd.f32 %v1589_v53, %v1200_v26  ;;  %v1678_v48 = vpop.f32.mrf.mxu1  ;;  %3335 = vmatpush.bf16.msrb.mxu1 %v10405_v42  ;;  %v10324_v26 = vld [vmem:[%s21397_s3 + $0x220] sm:$0xf]  ;;  %v21563_v53 = vld [vmem:[#allocation50_spill] sm:$0xff] }
 0x2a8   : > { %v1744_v44 = vadd.f32 %v1678_v48, %v1289_v3  ;;  %v2312_v63 = vunpack.c.l.b16 %v1910_v8  ;;  %v2313_v59 = vunpack.c.h.b16 %v1910_v8  ;;  %v10388_v3 = vld [vmem:[%s21397_s3 + $0x2a0] sm:$0xf]  ;;  %v1202_v62 = vadd.f32 %v15784_v13, %v21563_v53  ;;  %v13694_v13 = vld [vmem:[%s21397_s3 + $0x214] sm:$0xf0] }
 0x2a9   : > { %v1813_v20 = vadd.f32 %v15407_v31, %v1743_v7  ;;  %v21564_v42 = vld [vmem:[#allocation51_spill] sm:$0xff]  ;;  %v10325_v48 = vor.u32 %v13696_v30, %v10324_v26 }
 0x2aa   : > { %v1814_v45 = vadd.f32 %v15409_v24, %v1744_v44  ;;  %v16122_v52 = vpack.c.b16 %v2312_v63, %v2310_v2  ;;  %v16124_v14 = vpack.c.b16 %v2313_v59, %v2311_v49  ;;  %v1291_v10 = vadd.f32 %v15786_v16, %v21564_v42  ;;  %3287 = vmatpush.bf16.msrb.mxu0 %v10333_v58  ;;  %v10316_v44 = vld [vmem:[%s21397_s3 + $0x210] sm:$0xf]  ;;  %v10372_v53 = vld [vmem:[%s21397_s3 + $0x280] sm:$0xf] }
 0x2ab   : > { %v1877_v51 = vmax.f32 %v1813_v20, 0.0  ;;  %3336 = vmatpush.bf16.msrb.mxu1 %v10397_v19  ;;  %v10389_v2 = vor.u32 %v13712_v22, %v10388_v3  ;;  %v10380_v16 = vld [vmem:[%s21397_s3 + $0x290] sm:$0xf]  ;;  %v13710_v20 = vld [vmem:[%s21397_s3 + $0x294] sm:$0xf0]  ;;  %v10317_v30 = vor.u32 %v13694_v13, %v10316_v44 }
 0x2ac   : > { %v1878_v8 = vmax.f32 %v1814_v45, 0.0  ;;  %2549 = vmatmul.bf16.gmra.mxu2 %v16122_v52  ;;  %2598 = vmatmul.bf16.gmra.mxu3 %v16124_v14  ;;  %v10308_v3 = vld [vmem:[%s21397_s3 + $0x200] sm:$0xf]  ;;  %v13692_v22 = vld [vmem:[%s21397_s3 + $0x204] sm:$0xf0] }
 0x2ae   : > { %v1911_v60 = vpack.c.bf16 %v1878_v8, %v1877_v51  ;;  %v1591_v43 = vpop.f32.mrf.mxu0  ;;  %3288 = vmatpush.bf16.msrb.mxu0 %v10325_v48  ;;  %v10381_v51 = vor.u32 %v13710_v20, %v10380_v16 }
 0x2af   : > { %v2530_v7 = vpop.f32.mrf.mxu2  ;;  %v1745_v63 = vadd.f32 %v1591_v43, %v1202_v62  ;;  %v1680_v49 = vpop.f32.mrf.mxu1  ;;  %3337 = vmatpush.bf16.msrb.mxu1 %v10389_v2 }
 0x2b0   : > { %v2579_v59 = vpop.f32.mrf.mxu3  ;;  %v1746_v58 = vadd.f32 %v1680_v49, %v1291_v10  ;;  %v10309_v10 = vor.u32 %v13692_v22, %v10308_v3  ;;  %v2103_v2 = vunpack.c.l.b16 %v1911_v60  ;;  %v2104_v49 = vunpack.c.h.b16 %v1911_v60 }
 0x2b1   : > { %v16156_v19 = vadd.f32 %v2579_v59, %v2530_v7  ;;  %v1815_v45 = vadd.f32 %v15407_v31, %v1745_v63  ;;  %v13708_v31 = vld [vmem:[%s21397_s3 + $0x284] sm:$0xf0] }
 0x2b2   : > { %v1816_v26 = vadd.f32 %v15409_v24, %v1746_v58  ;;  %3289 = vmatpush.bf16.msrb.mxu0 %v10317_v30  ;;  %v10373_v43 = vor.u32 %v13708_v31, %v10372_v53 }
 0x2b3   : > { %v1879_v8 = vmax.f32 %v1815_v45, 0.0  ;;  %3338 = vmatpush.bf16.msrb.mxu1 %v10381_v51  ;;  %v21565_v45 = vld [vmem:[#allocation55_spill] sm:$0xff] }
 0x2b4   : > { %v1880_v24 = vmax.f32 %v1816_v26, 0.0  ;;  %v21566_v26 = vld [vmem:[#allocation56_spill] sm:$0xff] }
 0x2b6   : > { %v1912_v62 = vpack.c.bf16 %v1880_v24, %v1879_v8  ;;  %v2871_v42 = vpop.f32.mrf.mxu0  ;;  %3290 = vmatpush.bf16.msrb.mxu0 %v10309_v10 }
 0x2b7   : > { %v2872_v7 = vadd.f32 %v2871_v42, %v15802_v37  ;;  %v2920_v48 = vpop.f32.mrf.mxu1  ;;  %3339 = vmatpush.bf16.msrb.mxu1 %v10373_v43  ;;  %v2120_v42 = vpack.c.b16 %v2104_v49, %v2104_v49 }
 0x2b8   : > { %v1935_v44 = vunpack.c.l.b16 %v1912_v62  ;;  %v1936_v63 = vunpack.c.h.b16 %v1912_v62  ;;  %v2119_v62 = vpack.c.b16 %v2103_v2, %v2103_v2 }
 0x2b9   : > { %v16173_v59 = vadd.f32 %v2920_v48, %v2872_v7 }
 0x2ba   : > { %v1951_v13 = vpack.c.b16 %v1935_v44, %v1935_v44  ;;  %v1952_v16 = vpack.c.b16 %v1936_v63, %v1936_v63  ;;  %v16175_v20 = vpack.c.b16 %v1935_v44, %v2103_v2  ;;  %v16177_v58 = vpack.c.b16 %v1936_v63, %v2104_v49  ;;  %v16197_v44 = vpop.f32.mrf.mxu2  ;;  %v16199_v2 = vpop.f32.mrf.mxu3 }
 0x2bc   : > { %2612 = vmatmul.bf16.vlgmr.msra.gmra.mxu2 %v21565_v45  ;;  %2661 = vmatmul.bf16.vlgmr.msra.gmra.mxu3 %v21566_v26  ;;  %v2052_v37 = vshrl.u32 %v1951_v13, 16  ;;  %v2059_v30 = vshrl.u32 %v1952_v16, 16  ;;  %v2055_v60 = vshll.u32 %v1951_v13, 16  ;;  %v2062_v8 = vshll.u32 %v1952_v16, 16 }
 0x2be   : > { %v16181_v51 = vpop.f32.mrf.mxu0  ;;  %v2054_v3 = vrot.slane %v2052_v37, 7  ;;  %v2061_v22 = vrot.slane %v2059_v30, 7 }
 0x2bf   : > { %v16183_v53 = vpop.f32.mrf.mxu1 }
 0x2c0   : > { %v2057_v31 = vor.u32 %v2055_v60, %v2054_v3  ;;  %v2064_v24 = vor.u32 %v2062_v8, %v2061_v22  ;;  %v21567_v60 = vld [vmem:[#allocation61_spill] sm:$0xff]  ;;  %v21568_v22 = vld [vmem:[#allocation62_spill] sm:$0xff] }
 0x2c2   : > { %v2135_v10 = vsel %vm14828_vm3, 0, %v2057_v31  ;;  %v2136_v43 = vsel %vm14828_vm3, 0, %v2064_v24 }
 0x2c3   : > { %v16190_v7 = vsel %vm694_vm4, %v2135_v10, %v2119_v62  ;;  %v16193_v48 = vsel %vm694_vm4, %v2136_v43, %v2120_v42 }
 0x2c4   : > { %2905 = vmatmul.bf16.gmra.mxu0 %v16190_v7  ;;  %2954 = vmatmul.bf16.gmra.mxu1 %v16193_v48 }
 0x2c6   : > { %v2876_v63 = vpop.f32.mrf.mxu0 }
 0x2c7   : > { %v2877_v49 = vadd.f32 %v2876_v63, %v15856_v29  ;;  %v2925_v13 = vpop.f32.mrf.mxu1 }
 0x2c9   : > { %v16202_v16 = vadd.f32 %v2925_v13, %v2877_v49 }
 0x2cc   : > { %2617 = vmatmul.bf16.gmra.mxu2 %v15500_v0  ;;  %2666 = vmatmul.bf16.gmra.mxu3 %v15502_v9 }
 0x2ce   : > { %v16206_v30 = vpop.f32.mrf.mxu0 }
 0x2cf   : > { %v2535_v45 = vpop.f32.mrf.mxu2  ;;  %v2584_v26 = vpop.f32.mrf.mxu3 }
 0x2d0   : > { %v2585_v37 = vadd.f32 %v2584_v26, %v2535_v45  ;;  %v16208_v3 = vpop.f32.mrf.mxu1  ;;  %v21574_v26 = vld [vmem:[#allocation11_spill] sm:$0xff] }
 0x2d4   : > { %3291 = vmatmul.bf16.vlgmr.msrb.gmra.mxu0 %v21567_v60  ;;  %3340 = vmatmul.bf16.vlgmr.msrb.gmra.mxu1 %v21568_v22 }
 0x2d6   : > { %v2881_v8 = vpop.f32.mrf.mxu0 }
 0x2d7   : > { %v2882_v31 = vadd.f32 %v2881_v8, %v15958_v23  ;;  %v16223_v62 = vpop.f32.mrf.mxu2  ;;  %v16225_v42 = vpop.f32.mrf.mxu3 }
 0x2d8   : > { %v2930_v29 = vpop.f32.mrf.mxu1  ;;  %21569 = vst [vmem:[#allocation17_spill] sm:$0xff] %v16223_v62 }
 0x2d9   : > { %v16213_v24 = vadd.f32 %v2930_v29, %v2882_v31  ;;  %21570 = vst [vmem:[#allocation52_spill] sm:$0xff] %v16225_v42 }
 0x2dc   : > { %2622 = vmatmul.bf16.gmra.mxu2 %v15600_v56  ;;  %2671 = vmatmul.bf16.gmra.mxu3 %v15602_v11 }
 0x2de   : > { %v16217_v0 = vpop.f32.mrf.mxu0 }
 0x2e0   : > { %v16219_v9 = vpop.f32.mrf.mxu1 }
 0x2e4   : > { %3296 = vmatmul.bf16.gmra.mxu0 %v15531_v38  ;;  %3345 = vmatmul.bf16.gmra.mxu1 %v15533_v25 }
 0x2e6   : > { %v2886_v10 = vpop.f32.mrf.mxu0 }
 0x2e7   : > { %v2887_v43 = vadd.f32 %v2886_v10, %v16156_v19  ;;  %v21576_v10 = vld [vmem:[#allocation15_spill] sm:$0xff] }
 0x2e8   : > { %v2935_v23 = vpop.f32.mrf.mxu1 }
 0x2e9   : > { %v16228_v63 = vadd.f32 %v2935_v23, %v2887_v43  ;;  %v10206_v23 = vld [vmem:[%s21397_s3 + $0x78] sm:$0xf0]  ;;  %v13657_v43 = vld [vmem:[%s21397_s3 + $0xf4] sm:$0xf] }
 0x2eb   : > { %21571 = vst [vmem:[#allocation18_spill] sm:$0xff] %v16228_v63 }
 0x2ec   : > { %2627 = vmatmul.bf16.gmra.mxu2 %v15731_v4  ;;  %2676 = vmatmul.bf16.gmra.mxu3 %v15733_v5  ;;  %v21577_v4 = vld [vmem:[#allocation48_spill] sm:$0xff]  ;;  %v13641_v5 = vld [vmem:[%s21397_s3 + $0x74] sm:$0xf] }
 0x2ee   : > { %v16232_v13 = vpop.f32.mrf.mxu0 }
 0x2ef   : > { %v2540_v56 = vpop.f32.mrf.mxu2  ;;  %v2589_v11 = vpop.f32.mrf.mxu3  ;;  %21572 = vst [vmem:[#allocation53_spill] sm:$0xff] %v16232_v13 }
 0x2f0   : > { %v2590_v49 = vadd.f32 %v2589_v11, %v2540_v56  ;;  %v16234_v45 = vpop.f32.mrf.mxu1  ;;  %v10209_v56 = vor.u32 %v13641_v5, %v10206_v23  ;;  %v10198_v5 = vld [vmem:[%s21397_s3 + $0x68] sm:$0xf0]  ;;  %v13655_v23 = vld [vmem:[%s21397_s3 + $0xe4] sm:$0xf] }
 0x2f1   : > { %21573 = vst [vmem:[#allocation19_spill] sm:$0xff] %v16234_v45 }
 0x2f2   : > { %2960 = vmatpush.bf16.msrb.mxu2 %v10209_v56  ;;  %v10262_v56 = vld [vmem:[%s21397_s3 + $0xe8] sm:$0xf0] }
 0x2f4   : > { %3301 = vmatmul.bf16.gmra.mxu0 %v15680_v12  ;;  %3350 = vmatmul.bf16.gmra.mxu1 %v21574_v26 }
 0x2f6   : > { %v2891_v8 = vpop.f32.mrf.mxu0 }
 0x2f7   : > { %v2892_v19 = vadd.f32 %v2891_v8, %v2585_v37  ;;  %v10270_v37 = vld [vmem:[%s21397_s3 + $0xf8] sm:$0xf0] }
 0x2f8   : > { %v2940_v29 = vpop.f32.mrf.mxu1  ;;  %v10273_v11 = vor.u32 %v13657_v43, %v10270_v37  ;;  %v13637_v37 = vld [vmem:[%s21397_s3 + $0x54] sm:$0xf] }
 0x2f9   : > { %v16238_v31 = vadd.f32 %v2940_v29, %v2892_v19  ;;  %v21580_v19 = vld [vmem:[#allocation14_spill] sm:$0xff] }
 0x2fa   : > { %3009 = vmatpush.bf16.msrb.mxu3 %v10273_v11  ;;  %v10190_v11 = vld [vmem:[%s21397_s3 + $0x58] sm:$0xf0] }
 0x2fb   : > { %21575 = vst [vmem:[#allocation54_spill] sm:$0xff] %v16238_v31  ;;  %v13653_v31 = vld [vmem:[%s21397_s3 + $0xd4] sm:$0xf]  ;;  %v10193_v42 = vor.u32 %v13637_v37, %v10190_v11 }
 0x2fc   : > { %2632 = vmatmul.bf16.gmra.mxu2 %v21576_v10  ;;  %2681 = vmatmul.bf16.gmra.mxu3 %v21577_v4  ;;  %v21581_v10 = vld [vmem:[#allocation43_spill] sm:$0xff] }
 0x2fd   : > { %v13639_v4 = vld [vmem:[%s21397_s3 + $0x64] sm:$0xf] }
 0x2fe   : > { %v16254_v8 = vpop.f32.mrf.mxu0  ;;  %v10201_v43 = vor.u32 %v13639_v4, %v10198_v5  ;;  %v10254_v4 = vld [vmem:[%s21397_s3 + $0xd8] sm:$0xf0]  ;;  %v16284_v5 = vpop.f32.mrf.mxu2 }
 0x2ff   : > { %21578 = vst [vmem:[#allocation20_spill] sm:$0xff] %v16254_v8  ;;  %v16286_v8 = vpop.f32.mrf.mxu3  ;;  %v10257_v13 = vor.u32 %v13653_v31, %v10254_v4  ;;  %v13631_v4 = vld [vmem:[%s21397_s3 + $0x24] sm:$0xf] }
 0x300   : > { %v16256_v29 = vpop.f32.mrf.mxu1  ;;  %2961 = vmatpush.bf16.msrb.mxu2 %v10201_v43  ;;  %v10182_v43 = vld [vmem:[%s21397_s3 + $0x48] sm:$0xf0] }
 0x301   : > { %21579 = vst [vmem:[#allocation21_spill] sm:$0xff] %v16256_v29  ;;  %v10265_v29 = vor.u32 %v13655_v23, %v10262_v56  ;;  %v13635_v56 = vld [vmem:[%s21397_s3 + $0x44] sm:$0xf] }
 0x303   : > { %3010 = vmatpush.bf16.msrb.mxu3 %v10265_v29 }
 0x304   : > { %3306 = vmatmul.bf16.gmra.mxu0 %v21580_v19  ;;  %3355 = vmatmul.bf16.gmra.mxu1 %v21581_v10 }
 0x305   : > { %2962 = vmatpush.bf16.msrb.mxu2 %v10193_v42  ;;  %v10174_v42 = vld [vmem:[%s21397_s3 + $0x38] sm:$0xf0] }
 0x306   : > { %v2896_v62 = vpop.f32.mrf.mxu0 }
 0x307   : > { %v2897_v45 = vadd.f32 %v2896_v62, %v2590_v49  ;;  %v13651_v62 = vld [vmem:[%s21397_s3 + $0xc4] sm:$0xf]  ;;  %3011 = vmatpush.bf16.msrb.mxu3 %v10257_v13  ;;  %v10238_v13 = vld [vmem:[%s21397_s3 + $0xb8] sm:$0xf0] }
 0x308   : > { %v2945_v63 = vpop.f32.mrf.mxu1 }
 0x309   : > { %v16288_v23 = vadd.f32 %v2945_v63, %v2897_v45  ;;  %v10185_v63 = vor.u32 %v13635_v56, %v10182_v43  ;;  %v13649_v45 = vld [vmem:[%s21397_s3 + $0xb4] sm:$0xf]  ;;  %v10166_v56 = vld [vmem:[%s21397_s3 + $0x28] sm:$0xf0] }
 0x30a   : > { %v10241_v43 = vor.u32 %v13649_v45, %v10238_v13  ;;  %v13645_v13 = vld [vmem:[%s21397_s3 + $0x94] sm:$0xf] }
 0x30b   : > { %21582 = vst [vmem:[#allocation22_spill] sm:$0xff] %v16288_v23  ;;  %2963 = vmatpush.bf16.msrb.mxu2 %v10185_v63  ;;  %v10230_v63 = vld [vmem:[%s21397_s3 + $0xa8] sm:$0xf0] }
 0x30c   : > { %2637 = vmatmul.bf16.gmra.mxu2 %v15846_v15  ;;  %2686 = vmatmul.bf16.gmra.mxu3 %v15848_v33  ;;  %v10246_v15 = vld [vmem:[%s21397_s3 + $0xc8] sm:$0xf0]  ;;  %v13633_v33 = vld [vmem:[%s21397_s3 + $0x34] sm:$0xf] }
 0x30d   : > { %v10249_v49 = vor.u32 %v13651_v62, %v10246_v15  ;;  %v10177_v37 = vor.u32 %v13633_v33, %v10174_v42  ;;  %v13647_v62 = vld [vmem:[%s21397_s3 + $0xa4] sm:$0xf]  ;;  %v10169_v15 = vor.u32 %v13631_v4, %v10166_v56  ;;  %v21583_v33 = vld [vmem:[#allocation16_spill] sm:$0xff]  ;;  %v21584_v42 = vld [vmem:[#allocation49_spill] sm:$0xff] }
 0x30e   : > { %v10233_v45 = vor.u32 %v13647_v62, %v10230_v63  ;;  %v13627_v4 = vld [vmem:[%s21397_s3 + $0x4] sm:$0xf]  ;;  %v10150_v56 = vld [vmem:[%s21397_s3 + $0x8] sm:$0xf0] }
 0x30f   : > { %v2545_v31 = vpop.f32.mrf.mxu2  ;;  %v2594_v29 = vpop.f32.mrf.mxu3  ;;  %3012 = vmatpush.bf16.msrb.mxu3 %v10249_v49  ;;  %2964 = vmatpush.bf16.msrb.mxu2 %v10177_v37  ;;  %v10158_v49 = vld [vmem:[%s21397_s3 + $0x18] sm:$0xf0]  ;;  %v13643_v63 = vld [vmem:[%s21397_s3 + $0x84] sm:$0xf] }
 0x310   : > { %v2595_v11 = vadd.f32 %v2594_v29, %v2545_v31  ;;  %v13629_v31 = vld [vmem:[%s21397_s3 + $0x14] sm:$0xf]  ;;  %v10222_v29 = vld [vmem:[%s21397_s3 + $0x98] sm:$0xf0] }
 0x311   : > { %v10161_v37 = vor.u32 %v13629_v31, %v10158_v49  ;;  %v10225_v62 = vor.u32 %v13645_v13, %v10222_v29  ;;  %v16356_v31 = vpop.f32.mrf.mxu1  ;;  %v10153_v49 = vor.u32 %v13627_v4, %v10150_v56 }
 0x312   : > { %21586 = vst [vmem:[#allocation57_spill] sm:$0xff] %v16356_v31 }
 0x313   : > { %3013 = vmatpush.bf16.msrb.mxu3 %v10241_v43  ;;  %2965 = vmatpush.bf16.msrb.mxu2 %v10169_v15  ;;  %v16348_v43 = vpop.f32.mrf.mxu0  ;;  %v10214_v15 = vld [vmem:[%s21397_s3 + $0x88] sm:$0xf0] }
 0x314   : > { %3311 = vmatmul.bf16.gmra.mxu0 %v21583_v33  ;;  %3360 = vmatmul.bf16.gmra.mxu1 %v21584_v42  ;;  %21585 = vst [vmem:[#allocation23_spill] sm:$0xff] %v16348_v43  ;;  %v10217_v23 = vor.u32 %v13643_v63, %v10214_v15  ;;  %v21593_v15 = vld [vmem:[#allocation63_spill] sm:$0xff] }
 0x317   : > { %3014 = vmatpush.bf16.msrb.mxu3 %v10233_v45  ;;  %2966 = vmatpush.bf16.msrb.mxu2 %v10161_v37  ;;  %v16364_v31 = vpop.f32.mrf.mxu2  ;;  %v16366_v37 = vpop.f32.mrf.mxu3 }
 0x318   : > { %21588 = vst [vmem:[#allocation58_spill] sm:$0xff] %v16364_v31 }
 0x319   : > { %21589 = vst [vmem:[#allocation25_spill] sm:$0xff] %v16366_v37 }
 0x31b   : > { %3015 = vmatpush.bf16.msrb.mxu3 %v10225_v62  ;;  %2967 = vmatpush.bf16.msrb.mxu2 %v10153_v49 }
 0x31c   : > { %2642 = vmatmul.bf16.gmra.mxu2 %v15936_v50  ;;  %2691 = vmatmul.bf16.gmra.mxu3 %v15938_v39 }
 0x31f   : > { %3016 = vmatpush.bf16.msrb.mxu3 %v10217_v23 }
 0x321   : > { %v2901_v45 = vpop.f32.mrf.mxu0  ;;  %v2950_v29 = vpop.f32.mrf.mxu1 }
 0x322   : > { %v2902_v13 = vadd.f32 %v2901_v45, %v2595_v11 }
 0x324   : > { %v16360_v43 = vadd.f32 %v2950_v29, %v2902_v13  ;;  %3316 = vmatmul.bf16.gmra.mxu0 %v15868_v1  ;;  %3365 = vmatmul.bf16.gmra.mxu1 %v15870_v27 }
 0x326   : > { %21587 = vst [vmem:[#allocation24_spill] sm:$0xff] %v16360_v43 }
 0x329   : > { %v16374_v62 = vpop.f32.mrf.mxu0  ;;  %v16376_v63 = vpop.f32.mrf.mxu1 }
 0x32a   : > { %21591 = vst [vmem:[#allocation26_spill] sm:$0xff] %v16374_v62 }
 0x32b   : > { %21592 = vst [vmem:[#allocation60_spill] sm:$0xff] %v16376_v63 }
 0x32c   : > { %2647 = vmatmul.bf16.gmra.mxu2 %v16122_v52  ;;  %2696 = vmatmul.bf16.gmra.mxu3 %v16124_v14  ;;  %v21594_v52 = vld [vmem:[#allocation64_spill] sm:$0xff] }
 0x32f   : > { %v2550_v50 = vpop.f32.mrf.mxu2  ;;  %v2599_v39 = vpop.f32.mrf.mxu3 }
 0x330   : > { %v2600_v4 = vadd.f32 %v2599_v39, %v2550_v50 }
 0x334   : > { %3321 = vmatmul.bf16.gmra.mxu0 %v16034_v55  ;;  %3370 = vmatmul.bf16.gmra.mxu1 %v16046_v34 }
 0x337   : > { %v2552_v23 = vpop.f32.mrf.mxu2  ;;  %v2601_v11 = vpop.f32.mrf.mxu3 }
 0x338   : > { %v16372_v56 = vadd.f32 %v2601_v11, %v2552_v23 }
 0x33a   : > { %21590 = vst [vmem:[#allocation59_spill] sm:$0xff] %v16372_v56 }
 0x33c   : > { %2968 = vmatmul.bf16.vlgmr.msrb.gmra.mxu2 %v21593_v15  ;;  %3017 = vmatmul.bf16.vlgmr.msrb.gmra.mxu3 %v21594_v52  ;;  %v21596_v15 = vld [vmem:[#allocation10_spill] sm:$0xff]  ;;  %v21597_v52 = vld [vmem:[#allocation9_spill] sm:$0xff] }
 0x33f   : > { %v2613_v14 = vpop.f32.mrf.mxu2  ;;  %v2662_v49 = vpop.f32.mrf.mxu3 }
 0x340   : > { %v16380_v45 = vadd.f32 %v2662_v49, %v2613_v14 }
 0x341   : > { %v2906_v13 = vpop.f32.mrf.mxu0  ;;  %v2955_v50 = vpop.f32.mrf.mxu1 }
 0x342   : > { %v2907_v29 = vadd.f32 %v2906_v13, %v2600_v4 }
 0x344   : > { %v16382_v39 = vadd.f32 %v2955_v50, %v2907_v29  ;;  %3326 = vmatmul.bf16.gmra.mxu0 %v16175_v20  ;;  %3375 = vmatmul.bf16.gmra.mxu1 %v16177_v58  ;;  %v21598_v50 = vld [vmem:[#allocation12_spill] sm:$0xff] }
 0x346   : > { %21595 = vst [vmem:[#allocation27_spill] sm:$0xff] %v16382_v39  ;;  %v21599_v39 = vld [vmem:[#allocation13_spill] sm:$0xff] }
 0x347   : > { %v2615_v23 = vpop.f32.mrf.mxu2  ;;  %v2664_v11 = vpop.f32.mrf.mxu3 }
 0x348   : > { %v16386_v56 = vadd.f32 %v2664_v11, %v2615_v23 }
 0x34c   : > { %2973 = vmatmul.bf16.gmra.mxu2 %v21596_v15  ;;  %3022 = vmatmul.bf16.gmra.mxu3 %v21597_v52 }
 0x34f   : > { %v2618_v63 = vpop.f32.mrf.mxu2  ;;  %v2667_v14 = vpop.f32.mrf.mxu3 }
 0x350   : > { %v16390_v49 = vadd.f32 %v2667_v14, %v2618_v63 }
 0x357   : > { %v2620_v4 = vpop.f32.mrf.mxu2  ;;  %v2669_v13 = vpop.f32.mrf.mxu3 }
 0x358   : > { %v16392_v29 = vadd.f32 %v2669_v13, %v2620_v4 }
 0x35c   : > { %2978 = vmatmul.bf16.gmra.mxu2 %v21598_v50  ;;  %3027 = vmatmul.bf16.gmra.mxu3 %v21599_v39 }
 0x35f   : > { %v2623_v62 = vpop.f32.mrf.mxu2  ;;  %v2672_v37 = vpop.f32.mrf.mxu3 }
 0x360   : > { %v16396_v23 = vadd.f32 %v2672_v37, %v2623_v62 }
 0x367   : > { %v2625_v11 = vpop.f32.mrf.mxu2  ;;  %v2674_v15 = vpop.f32.mrf.mxu3 }
 0x368   : > { %v16398_v31 = vadd.f32 %v2674_v15, %v2625_v11  ;;  %v13721_v15 = vld [vmem:[%s21397_s3 + $0x2f4] sm:$0xf] }
 0x36c   : > { %2983 = vmatmul.bf16.gmra.mxu2 %v15775_v61  ;;  %3032 = vmatmul.bf16.gmra.mxu3 %v15778_v47  ;;  %v13705_v61 = vld [vmem:[%s21397_s3 + $0x274] sm:$0xf]  ;;  %v10366_v47 = vld [vmem:[%s21397_s3 + $0x278] sm:$0xf0] }
 0x36d   : > { %v10369_v11 = vor.u32 %v13705_v61, %v10366_v47 }
 0x36f   : > { %v2628_v63 = vpop.f32.mrf.mxu2  ;;  %v2677_v52 = vpop.f32.mrf.mxu3  ;;  %3381 = vmatpush.bf16.msra.mxu2 %v10369_v11 }
 0x370   : > { %v16402_v14 = vadd.f32 %v2677_v52, %v2628_v63  ;;  %v13703_v63 = vld [vmem:[%s21397_s3 + $0x264] sm:$0xf]  ;;  %v10358_v52 = vld [vmem:[%s21397_s3 + $0x268] sm:$0xf0] }
 0x377   : > { %v2630_v4 = vpop.f32.mrf.mxu2  ;;  %v2679_v13 = vpop.f32.mrf.mxu3 }
 0x378   : > { %v16404_v50 = vadd.f32 %v2679_v13, %v2630_v4  ;;  %v13719_v4 = vld [vmem:[%s21397_s3 + $0x2e4] sm:$0xf]  ;;  %v10361_v13 = vor.u32 %v13703_v63, %v10358_v52  ;;  %v13717_v63 = vld [vmem:[%s21397_s3 + $0x2d4] sm:$0xf]  ;;  %v10414_v52 = vld [vmem:[%s21397_s3 + $0x2d8] sm:$0xf0] }
 0x37a   : > { %3382 = vmatpush.bf16.msra.mxu2 %v10361_v13  ;;  %v13699_v13 = vld [vmem:[%s21397_s3 + $0x244] sm:$0xf] }
 0x37c   : > { %2988 = vmatmul.bf16.gmra.mxu2 %v15829_v17  ;;  %3037 = vmatmul.bf16.gmra.mxu3 %v15832_v54  ;;  %v10430_v17 = vld [vmem:[%s21397_s3 + $0x2f8] sm:$0xf0] }
 0x37d   : > { %v10433_v54 = vor.u32 %v13721_v15, %v10430_v17  ;;  %v13701_v15 = vld [vmem:[%s21397_s3 + $0x254] sm:$0xf]  ;;  %v10350_v17 = vld [vmem:[%s21397_s3 + $0x258] sm:$0xf0] }
 0x37f   : > { %v2633_v37 = vpop.f32.mrf.mxu2  ;;  %v2682_v62 = vpop.f32.mrf.mxu3  ;;  %3430 = vmatpush.bf16.msra.mxu3 %v10433_v54  ;;  %v10353_v54 = vor.u32 %v13701_v15, %v10350_v17 }
 0x380   : > { %v16408_v39 = vadd.f32 %v2682_v62, %v2633_v37  ;;  %v10422_v37 = vld [vmem:[%s21397_s3 + $0x2e8] sm:$0xf0] }
 0x381   : > { %v10425_v47 = vor.u32 %v13719_v4, %v10422_v37  ;;  %v10417_v4 = vor.u32 %v13717_v63, %v10414_v52  ;;  %3383 = vmatpush.bf16.msra.mxu2 %v10353_v54  ;;  %v10342_v37 = vld [vmem:[%s21397_s3 + $0x248] sm:$0xf0]  ;;  %v13697_v54 = vld [vmem:[%s21397_s3 + $0x234] sm:$0xf]  ;;  %v10334_v63 = vld [vmem:[%s21397_s3 + $0x238] sm:$0xf0] }
 0x382   : > { %v10337_v52 = vor.u32 %v13697_v54, %v10334_v63 }
 0x383   : > { %3431 = vmatpush.bf16.msra.mxu3 %v10425_v47 }
 0x387   : > { %v2635_v62 = vpop.f32.mrf.mxu2  ;;  %v2684_v61 = vpop.f32.mrf.mxu3  ;;  %3432 = vmatpush.bf16.msra.mxu3 %v10417_v4  ;;  %v13713_v4 = vld [vmem:[%s21397_s3 + $0x2b4] sm:$0xf] }
 0x388   : > { %v16434_v11 = vadd.f32 %v2684_v61, %v2635_v62  ;;  %v13715_v62 = vld [vmem:[%s21397_s3 + $0x2c4] sm:$0xf]  ;;  %v10345_v61 = vor.u32 %v13699_v13, %v10342_v37  ;;  %v10398_v13 = vld [vmem:[%s21397_s3 + $0x2b8] sm:$0xf0] }
 0x389   : > { %v10401_v37 = vor.u32 %v13713_v4, %v10398_v13  ;;  %v13693_v4 = vld [vmem:[%s21397_s3 + $0x214] sm:$0xf]  ;;  %v10318_v13 = vld [vmem:[%s21397_s3 + $0x218] sm:$0xf0] }
 0x38a   : > { %21600 = vst [vmem:[#allocation28_spill] sm:$0xff] %v16434_v11  ;;  %3384 = vmatpush.bf16.msra.mxu2 %v10345_v61  ;;  %v10326_v61 = vld [vmem:[%s21397_s3 + $0x228] sm:$0xf0] }
 0x38c   : > { %2993 = vmatmul.bf16.gmra.mxu2 %v15895_v36  ;;  %3042 = vmatmul.bf16.gmra.mxu3 %v15898_v40  ;;  %v10406_v36 = vld [vmem:[%s21397_s3 + $0x2c8] sm:$0xf0] }
 0x38d   : > { %v10409_v15 = vor.u32 %v13715_v62, %v10406_v36  ;;  %v13695_v62 = vld [vmem:[%s21397_s3 + $0x224] sm:$0xf] }
 0x38e   : > { %3385 = vmatpush.bf16.msra.mxu2 %v10337_v52  ;;  %v13711_v36 = vld [vmem:[%s21397_s3 + $0x2a4] sm:$0xf] }
 0x38f   : > { %v2638_v40 = vpop.f32.mrf.mxu2  ;;  %v2687_v47 = vpop.f32.mrf.mxu3  ;;  %3433 = vmatpush.bf16.msra.mxu3 %v10409_v15 }
 0x390   : > { %v16462_v17 = vadd.f32 %v2687_v47, %v2638_v40  ;;  %v10329_v40 = vor.u32 %v13695_v62, %v10326_v61  ;;  %v10390_v47 = vld [vmem:[%s21397_s3 + $0x2a8] sm:$0xf0]  ;;  %v13709_v62 = vld [vmem:[%s21397_s3 + $0x294] sm:$0xf]  ;;  %v10382_v61 = vld [vmem:[%s21397_s3 + $0x298] sm:$0xf0] }
 0x391   : > { %v10393_v63 = vor.u32 %v13711_v36, %v10390_v47  ;;  %v10385_v36 = vor.u32 %v13709_v62, %v10382_v61  ;;  %v10310_v47 = vld [vmem:[%s21397_s3 + $0x208] sm:$0xf0] }
 0x392   : > { %3386 = vmatpush.bf16.msra.mxu2 %v10329_v40  ;;  %v13691_v40 = vld [vmem:[%s21397_s3 + $0x204] sm:$0xf] }
 0x393   : > { %3434 = vmatpush.bf16.msra.mxu3 %v10401_v37  ;;  %v10321_v37 = vor.u32 %v13693_v4, %v10318_v13 }
 0x396   : > { %3387 = vmatpush.bf16.msra.mxu2 %v10321_v37 }
 0x397   : > { %v2640_v15 = vpop.f32.mrf.mxu2  ;;  %v2689_v54 = vpop.f32.mrf.mxu3  ;;  %3435 = vmatpush.bf16.msra.mxu3 %v10393_v63 }
 0x398   : > { %v16488_v52 = vadd.f32 %v2689_v54, %v2640_v15  ;;  %v13707_v15 = vld [vmem:[%s21397_s3 + $0x284] sm:$0xf]  ;;  %v10313_v54 = vor.u32 %v13691_v40, %v10310_v47 }
 0x39a   : > { %21601 = vst [vmem:[#allocation29_spill] sm:$0xff] %v16488_v52  ;;  %3388 = vmatpush.bf16.msra.mxu2 %v10313_v54 }
 0x39b   : > { %3436 = vmatpush.bf16.msra.mxu3 %v10385_v36 }
 0x39c   : > { %2998 = vmatmul.bf16.gmra.mxu2 %v16085_v57  ;;  %3047 = vmatmul.bf16.gmra.mxu3 %v16088_v28  ;;  %v10374_v57 = vld [vmem:[%s21397_s3 + $0x288] sm:$0xf0] }
 0x39d   : > { %v10377_v4 = vor.u32 %v13707_v15, %v10374_v57 }
 0x39f   : > { %v2643_v28 = vpop.f32.mrf.mxu2  ;;  %v2692_v63 = vpop.f32.mrf.mxu3  ;;  %3437 = vmatpush.bf16.msra.mxu3 %v10377_v4 }
 0x3a0   : > { %v16516_v13 = vadd.f32 %v2692_v63, %v2643_v28 }
 0x3a7   : > { %v2645_v37 = vpop.f32.mrf.mxu2  ;;  %v2694_v62 = vpop.f32.mrf.mxu3 }
 0x3a8   : > { %v16518_v61 = vadd.f32 %v2694_v62, %v2645_v37 }
 0x3ac   : > { %3003 = vmatmul.bf16.gmra.mxu2 %v16190_v7  ;;  %3052 = vmatmul.bf16.gmra.mxu3 %v16193_v48 }
 0x3af   : > { %v2648_v36 = vpop.f32.mrf.mxu2  ;;  %v2697_v40 = vpop.f32.mrf.mxu3 }
 0x3b0   : > { %v16522_v47 = vadd.f32 %v2697_v40, %v2648_v36 }
 0x3b7   : > { %v2650_v52 = vpop.f32.mrf.mxu2  ;;  %v2699_v43 = vpop.f32.mrf.mxu3 }
 0x3b8   : > { %v16524_v11 = vadd.f32 %v2699_v43, %v2650_v52 }
 0x3ba   : > { %21602 = vst [vmem:[#allocation30_spill] sm:$0xff] %v16524_v11 }
 0x3bc   : > { %3389 = vmatmul.bf16.vlgmr.msra.gmra.mxu2 %v21567_v60  ;;  %3438 = vmatmul.bf16.vlgmr.msra.gmra.mxu3 %v21568_v22 }
 0x3bf   : > { %v2969_v15 = vpop.f32.mrf.mxu2  ;;  %v3018_v54 = vpop.f32.mrf.mxu3 }
 0x3c0   : > { %v2970_v57 = vadd.f32 %v2969_v15, %v16380_v45 }
 0x3c2   : > { %v16529_v28 = vadd.f32 %v3018_v54, %v2970_v57 }
 0x3c7   : > { %v2971_v7 = vpop.f32.mrf.mxu2  ;;  %v3020_v48 = vpop.f32.mrf.mxu3 }
 0x3c8   : > { %v2972_v63 = vadd.f32 %v2971_v7, %v16386_v56 }
 0x3ca   : > { %v16532_v4 = vadd.f32 %v3020_v48, %v2972_v63 }
 0x3cc   : > { %3394 = vmatmul.bf16.gmra.mxu2 %v15531_v38  ;;  %3443 = vmatmul.bf16.gmra.mxu3 %v15533_v25 }
 0x3cf   : > { %v2974_v43 = vpop.f32.mrf.mxu2  ;;  %v3023_v60 = vpop.f32.mrf.mxu3 }
 0x3d0   : > { %v2975_v22 = vadd.f32 %v2974_v43, %v16390_v49 }
 0x3d2   : > { %v16537_v52 = vadd.f32 %v3023_v60, %v2975_v22 }
 0x3d7   : > { %v2976_v37 = vpop.f32.mrf.mxu2  ;;  %v3025_v45 = vpop.f32.mrf.mxu3 }
 0x3d8   : > { %v2977_v62 = vadd.f32 %v2976_v37, %v16392_v29  ;;  %v16567_v37 = vpop.f32.mrf.mxu0 }
 0x3da   : > { %v16540_v36 = vadd.f32 %v3025_v45, %v2977_v62  ;;  %v16569_v45 = vpop.f32.mrf.mxu1 }
 0x3db   : > { %21603 = vst [vmem:[#allocation31_spill] sm:$0xff] %v16569_v45 }
 0x3dc   : > { %3399 = vmatmul.bf16.gmra.mxu2 %v15680_v12  ;;  %3448 = vmatmul.bf16.gmra.mxu3 %v21574_v26 }
 0x3df   : > { %v2979_v56 = vpop.f32.mrf.mxu2  ;;  %v3028_v38 = vpop.f32.mrf.mxu3 }
 0x3e0   : > { %v2980_v25 = vadd.f32 %v2979_v56, %v16396_v23 }
 0x3e2   : > { %v16545_v40 = vadd.f32 %v3028_v38, %v2980_v25  ;;  %v16578_v56 = vpop.f32.mrf.mxu1 }
 0x3e7   : > { %v2981_v15 = vpop.f32.mrf.mxu2  ;;  %v3030_v49 = vpop.f32.mrf.mxu3 }
 0x3e8   : > { %v2982_v54 = vadd.f32 %v2981_v15, %v16398_v31 }
 0x3ea   : > { %v16548_v57 = vadd.f32 %v3030_v49, %v2982_v54 }
 0x3ec   : > { %3404 = vmatmul.bf16.gmra.mxu2 %v21580_v19  ;;  %3453 = vmatmul.bf16.gmra.mxu3 %v21581_v10 }
 0x3ef   : > { %v2984_v29 = vpop.f32.mrf.mxu2  ;;  %v3033_v12 = vpop.f32.mrf.mxu3 }
 0x3f0   : > { %v2985_v26 = vadd.f32 %v2984_v29, %v16402_v14  ;;  %v10524_v29 = vld [vmem:[%s21399_s5 + $0x170] sm:$0xf] }
 0x3f2   : > { %v16553_v7 = vadd.f32 %v3033_v12, %v2985_v26  ;;  %v13786_v26 = vld [vmem:[%s21399_s5 + $0x1f4] sm:$0xf0] }
 0x3f7   : > { %v2986_v48 = vpop.f32.mrf.mxu2  ;;  %v3035_v23 = vpop.f32.mrf.mxu3 }
 0x3f8   : > { %v2987_v63 = vadd.f32 %v2986_v48, %v16404_v50  ;;  %v10526_v48 = vld [vmem:[%s21399_s5 + $0x178] sm:$0xf0] }
 0x3fa   : > { %v16556_v43 = vadd.f32 %v3035_v23, %v2987_v63 }
 0x3fc   : > { %3409 = vmatmul.bf16.gmra.mxu2 %v21583_v33  ;;  %3458 = vmatmul.bf16.gmra.mxu3 %v21584_v42 }
 0x3ff   : > { %v2989_v31 = vpop.f32.mrf.mxu2  ;;  %v3038_v19 = vpop.f32.mrf.mxu3 }
 0x400   : > { %v2990_v10 = vadd.f32 %v2989_v31, %v16408_v39  ;;  %v16576_v39 = vpop.f32.mrf.mxu0  ;;  %v13785_v31 = vld [vmem:[%s21399_s5 + $0x1f4] sm:$0xf] }
 0x402   : > { %v16561_v60 = vadd.f32 %v3038_v19, %v2990_v10  ;;  %v10590_v19 = vld [vmem:[%s21399_s5 + $0x1f8] sm:$0xf0] }
 0x403   : > { %v10593_v10 = vor.u32 %v13785_v31, %v10590_v19  ;;  %v10508_v19 = vld [vmem:[%s21399_s5 + $0x150] sm:$0xf] }
 0x405   : > { %4165 = vmatpush.bf16.msrb.mxu3 %v10593_v10  ;;  %v13766_v10 = vld [vmem:[%s21399_s5 + $0x154] sm:$0xf0] }
 0x407   : > { %v16563_v22 = vpop.f32.mrf.mxu2  ;;  %v16565_v14 = vpop.f32.mrf.mxu3 }
 0x40c   : > { %3414 = vmatmul.bf16.gmra.mxu2 %v15868_v1  ;;  %3463 = vmatmul.bf16.gmra.mxu3 %v15870_v27  ;;  %v16586_v1 = vpop.f32.mrf.mxu0  ;;  %v16588_v27 = vpop.f32.mrf.mxu1 }
 0x40f   : > { %v2994_v33 = vpop.f32.mrf.mxu2  ;;  %v3043_v42 = vpop.f32.mrf.mxu3 }
 0x410   : > { %v2995_v50 = vadd.f32 %v2994_v33, %v16462_v17 }
 0x412   : > { %v16574_v62 = vadd.f32 %v3043_v42, %v2995_v50  ;;  %v10516_v50 = vld [vmem:[%s21399_s5 + $0x160] sm:$0xf] }
 0x417   : > { %v16580_v38 = vpop.f32.mrf.mxu2  ;;  %v16582_v25 = vpop.f32.mrf.mxu3 }
 0x41c   : > { %3419 = vmatmul.bf16.gmra.mxu2 %v16034_v55  ;;  %3468 = vmatmul.bf16.gmra.mxu3 %v16046_v34  ;;  %v13770_v55 = vld [vmem:[%s21399_s5 + $0x174] sm:$0xf0]  ;;  %v10588_v34 = vld [vmem:[%s21399_s5 + $0x1f0] sm:$0xf] }
 0x41d   : > { %v10525_v12 = vor.u32 %v13770_v55, %v10524_v29  ;;  %v10589_v23 = vor.u32 %v13786_v26, %v10588_v34  ;;  %v16632_v29 = vpop.f32.mrf.mxu1  ;;  %v13784_v34 = vld [vmem:[%s21399_s5 + $0x1e4] sm:$0xf0]  ;;  %v10518_v26 = vld [vmem:[%s21399_s5 + $0x168] sm:$0xf0] }
 0x41f   : > { %v2999_v15 = vpop.f32.mrf.mxu2  ;;  %v3048_v17 = vpop.f32.mrf.mxu3  ;;  %4078 = vmatpush.bf16.msra.mxu0 %v10525_v12  ;;  %4107 = vmatpush.bf16.msra.mxu1 %v10589_v23  ;;  %v13767_v12 = vld [vmem:[%s21399_s5 + $0x164] sm:$0xf] }
 0x420   : > { %v3000_v49 = vadd.f32 %v2999_v15, %v16516_v13  ;;  %v13769_v13 = vld [vmem:[%s21399_s5 + $0x174] sm:$0xf]  ;;  %v13768_v15 = vld [vmem:[%s21399_s5 + $0x164] sm:$0xf0]  ;;  %v13783_v23 = vld [vmem:[%s21399_s5 + $0x1e4] sm:$0xf] }
 0x421   : > { %v10529_v63 = vor.u32 %v13769_v13, %v10526_v48  ;;  %v10517_v55 = vor.u32 %v13768_v15, %v10516_v50  ;;  %v10521_v48 = vor.u32 %v13767_v12, %v10518_v26  ;;  %v10572_v50 = vld [vmem:[%s21399_s5 + $0x1d0] sm:$0xf]  ;;  %v10509_v15 = vor.u32 %v13766_v10, %v10508_v19  ;;  %v10564_v19 = vld [vmem:[%s21399_s5 + $0x1c0] sm:$0xf] }
 0x422   : > { %v16591_v54 = vadd.f32 %v3048_v17, %v3000_v49  ;;  %v10580_v17 = vld [vmem:[%s21399_s5 + $0x1e0] sm:$0xf]  ;;  %v16630_v49 = vpop.f32.mrf.mxu0 }
 0x423   : > { %4136 = vmatpush.bf16.msrb.mxu2 %v10529_v63  ;;  %v10581_v13 = vor.u32 %v13784_v34, %v10580_v17  ;;  %v10582_v63 = vld [vmem:[%s21399_s5 + $0x1e8] sm:$0xf0]  ;;  %4079 = vmatpush.bf16.msra.mxu0 %v10517_v55  ;;  %v13782_v17 = vld [vmem:[%s21399_s5 + $0x1d4] sm:$0xf0]  ;;  %v13765_v55 = vld [vmem:[%s21399_s5 + $0x154] sm:$0xf] }
 0x424   : > { %v10585_v31 = vor.u32 %v13783_v23, %v10582_v63  ;;  %v10510_v34 = vld [vmem:[%s21399_s5 + $0x158] sm:$0xf0]  ;;  %v10573_v12 = vor.u32 %v13782_v17, %v10572_v50  ;;  %v10500_v63 = vld [vmem:[%s21399_s5 + $0x140] sm:$0xf]  ;;  %v13763_v17 = vld [vmem:[%s21399_s5 + $0x144] sm:$0xf] }
 0x425   : > { %4108 = vmatpush.bf16.msra.mxu1 %v10581_v13  ;;  %v10513_v26 = vor.u32 %v13765_v55, %v10510_v34  ;;  %v10502_v55 = vld [vmem:[%s21399_s5 + $0x148] sm:$0xf0] }
 0x426   : > { %4166 = vmatpush.bf16.msrb.mxu3 %v10585_v31  ;;  %v13764_v31 = vld [vmem:[%s21399_s5 + $0x144] sm:$0xf0] }
 0x427   : > { %v16617_v33 = vpop.f32.mrf.mxu2  ;;  %v16619_v42 = vpop.f32.mrf.mxu3  ;;  %4137 = vmatpush.bf16.msrb.mxu2 %v10521_v48  ;;  %4080 = vmatpush.bf16.msra.mxu0 %v10509_v15  ;;  %v10501_v50 = vor.u32 %v13764_v31, %v10500_v63  ;;  %v13780_v15 = vld [vmem:[%s21399_s5 + $0x1c4] sm:$0xf0]  ;;  %v13762_v31 = vld [vmem:[%s21399_s5 + $0x134] sm:$0xf0] }
 0x428   : > { %v10565_v34 = vor.u32 %v13780_v15, %v10564_v19  ;;  %v10556_v19 = vld [vmem:[%s21399_s5 + $0x1b0] sm:$0xf] }
 0x429   : > { %4109 = vmatpush.bf16.msra.mxu1 %v10573_v12  ;;  %v10505_v12 = vor.u32 %v13763_v17, %v10502_v55 }
 0x42b   : > { %4138 = vmatpush.bf16.msrb.mxu2 %v10513_v26  ;;  %v10566_v26 = vld [vmem:[%s21399_s5 + $0x1c8] sm:$0xf0]  ;;  %4081 = vmatpush.bf16.msra.mxu0 %v10501_v50  ;;  %v10494_v50 = vld [vmem:[%s21399_s5 + $0x138] sm:$0xf0] }
 0x42c   : > { %3424 = vmatmul.bf16.gmra.mxu2 %v16175_v20  ;;  %3473 = vmatmul.bf16.gmra.mxu3 %v16177_v58  ;;  %v13781_v20 = vld [vmem:[%s21399_s5 + $0x1d4] sm:$0xf]  ;;  %v10574_v58 = vld [vmem:[%s21399_s5 + $0x1d8] sm:$0xf0] }
 0x42d   : > { %v10577_v13 = vor.u32 %v13781_v20, %v10574_v58  ;;  %v16700_v20 = vpop.f32.mrf.mxu0  ;;  %v16702_v58 = vpop.f32.mrf.mxu1  ;;  %4110 = vmatpush.bf16.msra.mxu1 %v10565_v34  ;;  %v13777_v34 = vld [vmem:[%s21399_s5 + $0x1b4] sm:$0xf] }
 0x42f   : > { %v3004_v48 = vpop.f32.mrf.mxu2  ;;  %v3053_v23 = vpop.f32.mrf.mxu3  ;;  %4167 = vmatpush.bf16.msrb.mxu3 %v10577_v13  ;;  %4139 = vmatpush.bf16.msrb.mxu2 %v10505_v12  ;;  %v10492_v13 = vld [vmem:[%s21399_s5 + $0x130] sm:$0xf]  ;;  %v10558_v12 = vld [vmem:[%s21399_s5 + $0x1b8] sm:$0xf0] }
 0x430   : > { %v3005_v10 = vadd.f32 %v3004_v48, %v16522_v47  ;;  %v13779_v47 = vld [vmem:[%s21399_s5 + $0x1c4] sm:$0xf]  ;;  %v10493_v15 = vor.u32 %v13762_v31, %v10492_v13  ;;  %v13760_v31 = vld [vmem:[%s21399_s5 + $0x124] sm:$0xf0] }
 0x431   : > { %v10569_v63 = vor.u32 %v13779_v47, %v10566_v26  ;;  %v10561_v47 = vor.u32 %v13777_v34, %v10558_v12  ;;  %v13775_v34 = vld [vmem:[%s21399_s5 + $0x1a4] sm:$0xf]  ;;  %v10550_v12 = vld [vmem:[%s21399_s5 + $0x1a8] sm:$0xf0] }
 0x432   : > { %v16704_v48 = vadd.f32 %v3053_v23, %v3005_v10  ;;  %v13778_v23 = vld [vmem:[%s21399_s5 + $0x1b4] sm:$0xf0]  ;;  %v13761_v10 = vld [vmem:[%s21399_s5 + $0x134] sm:$0xf]  ;;  %4082 = vmatpush.bf16.msra.mxu0 %v10493_v15 }
 0x433   : > { %4168 = vmatpush.bf16.msrb.mxu3 %v10569_v63  ;;  %v10557_v17 = vor.u32 %v13778_v23, %v10556_v19  ;;  %v10497_v55 = vor.u32 %v13761_v10, %v10494_v50  ;;  %v10484_v63 = vld [vmem:[%s21399_s5 + $0x120] sm:$0xf]  ;;  %v13776_v23 = vld [vmem:[%s21399_s5 + $0x1a4] sm:$0xf0]  ;;  %v13759_v10 = vld [vmem:[%s21399_s5 + $0x124] sm:$0xf] }
 0x434   : > { %v10548_v19 = vld [vmem:[%s21399_s5 + $0x1a0] sm:$0xf]  ;;  %v10485_v15 = vor.u32 %v13760_v31, %v10484_v63  ;;  %v10486_v50 = vld [vmem:[%s21399_s5 + $0x128] sm:$0xf0]  ;;  %v3342_v63 = vadd.f32 %v16578_v56, %v16576_v39  ;;  %v10540_v39 = vld [vmem:[%s21399_s5 + $0x190] sm:$0xf] }
 0x435   : > { %4111 = vmatpush.bf16.msra.mxu1 %v10557_v17  ;;  %4140 = vmatpush.bf16.msrb.mxu2 %v10497_v55  ;;  %v10549_v17 = vor.u32 %v13776_v23, %v10548_v19  ;;  %v10489_v55 = vor.u32 %v13759_v10, %v10486_v50  ;;  %v3511_v31 = vld [vmem:[%s21398_s4] sm:$0x3]  ;;  %v13758_v19 = vld [vmem:[%s21399_s5 + $0x114] sm:$0xf0]  ;;  %v16772_v56 = vpop.f32.mrf.mxu0  ;;  %v16774_v23 = vpop.f32.mrf.mxu1  ;;  %v13757_v50 = vld [vmem:[%s21399_s5 + $0x114] sm:$0xf] }
 0x436   : > { %4083 = vmatpush.bf16.msra.mxu0 %v10485_v15  ;;  %v13774_v10 = vld [vmem:[%s21399_s5 + $0x194] sm:$0xf0]  ;;  %v16794_v11 = vperm.slane %v3511_v31, 1 }
 0x437   : > { %v16730_v26 = vpop.f32.mrf.mxu2  ;;  %v16732_v13 = vpop.f32.mrf.mxu3  ;;  %4169 = vmatpush.bf16.msrb.mxu3 %v10561_v47  ;;  %v10476_v47 = vld [vmem:[%s21399_s5 + $0x110] sm:$0xf] }
 0x438   : > { %21604 = vst [vmem:[#allocation32_spill] sm:$0xff] %v16730_v26  ;;  %v10477_v15 = vor.u32 %v13758_v19, %v10476_v47  ;;  %v10542_v47 = vld [vmem:[%s21399_s5 + $0x198] sm:$0xf0]  ;;  %v3479_v19 = vadd.f32 %v3342_v63, %v16173_v59  ;;  %v16792_v26 = vperm.slane %v3511_v31, 0  ;;  %v13756_v59 = vld [vmem:[%s21399_s5 + $0x104] sm:$0xf0] }
 0x439   : > { %21605 = vst [vmem:[#allocation33_spill] sm:$0xff] %v16732_v13  ;;  %v10553_v13 = vor.u32 %v13775_v34, %v10550_v12  ;;  %4112 = vmatpush.bf16.msra.mxu1 %v10549_v17  ;;  %4141 = vmatpush.bf16.msrb.mxu2 %v10489_v55  ;;  %v10478_v17 = vld [vmem:[%s21399_s5 + $0x118] sm:$0xf0]  ;;  %v10541_v55 = vor.u32 %v13774_v10, %v10540_v39  ;;  %v13773_v12 = vld [vmem:[%s21399_s5 + $0x194] sm:$0xf] }
 0x43a   : > { %v10481_v34 = vor.u32 %v13757_v50, %v10478_v17  ;;  %4084 = vmatpush.bf16.msra.mxu0 %v10477_v15  ;;  %v10545_v45 = vor.u32 %v13773_v12, %v10542_v47  ;;  %v10468_v50 = vld [vmem:[%s21399_s5 + $0x100] sm:$0xf]  ;;  %v10470_v17 = vld [vmem:[%s21399_s5 + $0x108] sm:$0xf0]  ;;  %v13771_v47 = vld [vmem:[%s21399_s5 + $0x184] sm:$0xf] }
 0x43b   : > { %4170 = vmatpush.bf16.msrb.mxu3 %v10553_v13  ;;  %v2567_v13 = vadd.f32 %v15840_v35, %v15838_v41  ;;  %v10532_v63 = vld [vmem:[%s21399_s5 + $0x180] sm:$0xf]  ;;  %v10469_v15 = vor.u32 %v13756_v59, %v10468_v50  ;;  %v13772_v41 = vld [vmem:[%s21399_s5 + $0x184] sm:$0xf0]  ;;  %v13755_v35 = vld [vmem:[%s21399_s5 + $0x104] sm:$0xf] }
 0x43c   : > { %v10473_v12 = vor.u32 %v13755_v35, %v10470_v17 }
 0x43d   : > { %4113 = vmatpush.bf16.msra.mxu1 %v10541_v55  ;;  %4142 = vmatpush.bf16.msrb.mxu2 %v10481_v34  ;;  %v2874_v55 = vadd.f32 %v16181_v51, %v2567_v13  ;;  %v10533_v34 = vor.u32 %v13772_v41, %v10532_v63  ;;  %v3344_v51 = vadd.f32 %v16588_v27, %v16586_v1  ;;  %v16829_v41 = vpop.f32.mrf.mxu0  ;;  %v16831_v35 = vpop.f32.mrf.mxu1 }
 0x43e   : > { %4085 = vmatpush.bf16.msra.mxu0 %v10469_v15 }
 0x43f   : > { %v3390_v39 = vpop.f32.mrf.mxu2  ;;  %v3439_v10 = vpop.f32.mrf.mxu3  ;;  %4171 = vmatpush.bf16.msrb.mxu3 %v10545_v45  ;;  %v2923_v13 = vadd.f32 %v16183_v53, %v2874_v55  ;;  %v2572_v55 = vadd.f32 %v15924_v18, %v15913_v32 }
 0x440   : > { %v3440_v31 = vadd.f32 %v3439_v10, %v3390_v39  ;;  %v10534_v39 = vld [vmem:[%s21399_s5 + $0x188] sm:$0xf0]  ;;  %v3517_v10 = vadd.f32 %v16792_v26, %v3479_v19 }
 0x441   : > { %v10537_v59 = vor.u32 %v13771_v47, %v10534_v39  ;;  %4114 = vmatpush.bf16.msra.mxu1 %v10533_v34  ;;  %4143 = vmatpush.bf16.msrb.mxu2 %v10473_v12  ;;  %v3481_v17 = vadd.f32 %v3344_v51, %v2923_v13  ;;  %v3347_v34 = vadd.f32 %v16632_v29, %v16630_v49 }
 0x442   : > { %v3480_v50 = vadd.f32 %v3440_v31, %v16529_v28  ;;  %v3549_v63 = vmax.f32 %v3517_v10, 0.0  ;;  %v2879_v51 = vadd.f32 %v16206_v30, %v2572_v55  ;;  %v3349_v49 = vadd.f32 %v16702_v58, %v16700_v20 }
 0x443   : > { %4172 = vmatpush.bf16.msrb.mxu3 %v10537_v59  ;;  %v3519_v27 = vadd.f32 %v16792_v26, %v3481_v17  ;;  %v3483_v10 = vadd.f32 %v3347_v34, %v16202_v16 }
 0x444   : > { %v3518_v45 = vadd.f32 %v16794_v11, %v3480_v50  ;;  %v2928_v18 = vadd.f32 %v16208_v3, %v2879_v51 }
 0x445   : > { %v3551_v39 = vmax.f32 %v3519_v27, 0.0  ;;  %v3521_v32 = vadd.f32 %v16792_v26, %v3483_v10 }
 0x446   : > { %v3550_v19 = vmax.f32 %v3518_v45, 0.0  ;;  %v16842_v45 = vpop.f32.mrf.mxu0  ;;  %v3485_v17 = vadd.f32 %v3349_v49, %v2928_v18 }
 0x447   : > { %v3392_v28 = vpop.f32.mrf.mxu2  ;;  %v3441_v31 = vpop.f32.mrf.mxu3 }
 0x448   : > { %v3581_v15 = vpack.c.bf16 %v3550_v19, %v3549_v63  ;;  %v3442_v47 = vadd.f32 %v3441_v31, %v3392_v28  ;;  %v3553_v28 = vmax.f32 %v3521_v32, 0.0  ;;  %v3523_v20 = vadd.f32 %v16792_v26, %v3485_v17 }
 0x44a   : > { %v3482_v1 = vadd.f32 %v3442_v47, %v16532_v4  ;;  %v16844_v4 = vpop.f32.mrf.mxu1  ;;  %v3887_v10 = vunpack.c.h.b16 %v3581_v15 }
 0x44c   : > { %v3520_v53 = vadd.f32 %v16794_v11, %v3482_v1 }
 0x44e   : > { %v3552_v12 = vmax.f32 %v3520_v53, 0.0  ;;  %v16855_v58 = vpop.f32.mrf.mxu0 }
 0x44f   : > { %v3395_v50 = vpop.f32.mrf.mxu2  ;;  %v3444_v59 = vpop.f32.mrf.mxu3 }
 0x450   : > { %v3445_v13 = vadd.f32 %v3444_v59, %v3395_v50  ;;  %v3582_v63 = vpack.c.bf16 %v3552_v12, %v3551_v39  ;;  %v3886_v39 = vunpack.c.l.b16 %v3581_v15 }
 0x452   : > { %v3484_v29 = vadd.f32 %v3445_v13, %v16537_v52  ;;  %v3605_v19 = vunpack.c.l.b16 %v3582_v63  ;;  %v3606_v30 = vunpack.c.h.b16 %v3582_v63  ;;  %v3352_v52 = vadd.f32 %v16774_v23, %v16772_v56  ;;  %v16857_v3 = vpop.f32.mrf.mxu1 }
 0x453   : > { %v2577_v56 = vadd.f32 %v16116_v6, %v16105_v46  ;;  %v3354_v6 = vadd.f32 %v16831_v35, %v16829_v41 }
 0x454   : > { %v3522_v16 = vadd.f32 %v16794_v11, %v3484_v29  ;;  %v3621_v34 = vpack.c.b16 %v3605_v19, %v3605_v19  ;;  %v3622_v55 = vpack.c.b16 %v3606_v30, %v3606_v30  ;;  %v3555_v29 = vmax.f32 %v3523_v20, 0.0 }
 0x455   : > { %v3487_v23 = vadd.f32 %v3352_v52, %v16213_v24 }
 0x456   : > { %v3554_v31 = vmax.f32 %v3522_v16, 0.0  ;;  %v3638_v13 = vshrl.u32 %v3621_v34, 16  ;;  %v3645_v32 = vshrl.u32 %v3622_v55, 16  ;;  %v3641_v24 = vshll.u32 %v3621_v34, 16  ;;  %v16869_v52 = vpop.f32.mrf.mxu0 }
 0x457   : > { %v3397_v47 = vpop.f32.mrf.mxu2  ;;  %v3446_v1 = vpop.f32.mrf.mxu3  ;;  %v3525_v46 = vadd.f32 %v16792_v26, %v3487_v23  ;;  %v3648_v20 = vshll.u32 %v3622_v55, 16 }
 0x458   : > { %v3447_v27 = vadd.f32 %v3446_v1, %v3397_v47  ;;  %v3583_v53 = vpack.c.bf16 %v3554_v31, %v3553_v28  ;;  %v2884_v28 = vadd.f32 %v16217_v0, %v2577_v56  ;;  %v3640_v31 = vrot.slane %v3638_v13, 7 }
 0x459   : > { %v3647_v47 = vrot.slane %v3645_v32, 7  ;;  %v3557_v35 = vmax.f32 %v3525_v46, 0.0 }
 0x45a   : > { %v3486_v12 = vadd.f32 %v3447_v27, %v16540_v36  ;;  %v3888_v50 = vunpack.c.l.b16 %v3583_v53  ;;  %v3889_v59 = vunpack.c.h.b16 %v3583_v53 }
 0x45b   : > { %v3650_v41 = vor.u32 %v3648_v20, %v3647_v47 }
 0x45c   : > { %v3524_v51 = vadd.f32 %v16794_v11, %v3486_v12  ;;  %v3902_v63 = vpack.c.b16 %v3888_v50, %v3886_v39  ;;  %v3903_v49 = vpack.c.b16 %v3889_v59, %v3887_v10  ;;  %v16871_v12 = vpop.f32.mrf.mxu1  ;;  %v2933_v59 = vadd.f32 %v16219_v9, %v2884_v28 }
 0x45d   : > { %v3766_v28 = vsel %vm14828_vm3, 0, %v3650_v41 }
 0x45e   : > { %v3556_v18 = vmax.f32 %v3524_v51, 0.0  ;;  %4086 = vmatmul.bf16.vlgmr.msra.gmra.mxu0 %v3902_v63  ;;  %4115 = vmatmul.bf16.vlgmr.msra.gmra.mxu1 %v3903_v49  ;;  %v3489_v34 = vadd.f32 %v3354_v6, %v2933_v59  ;;  %v21606_v6 = vld [vmem:[#allocation18_spill] sm:$0xff]  ;;  %v16895_v20 = vpop.f32.mrf.mxu0 }
 0x45f   : > { %v3400_v36 = vpop.f32.mrf.mxu2  ;;  %v3449_v16 = vpop.f32.mrf.mxu3  ;;  %4144 = vmatmul.bf16.vlgmr.msrb.gmra.mxu2 %v3902_v63  ;;  %4173 = vmatmul.bf16.vlgmr.msrb.gmra.mxu3 %v3903_v49 }
 0x460   : > { %v3584_v15 = vpack.c.bf16 %v3556_v18, %v3555_v29  ;;  %v3450_v17 = vadd.f32 %v3449_v16, %v3400_v36  ;;  %v3527_v47 = vadd.f32 %v16792_v26, %v3489_v34 }
 0x462   : > { %v3607_v1 = vunpack.c.l.b16 %v3584_v15  ;;  %v3608_v27 = vunpack.c.h.b16 %v3584_v15  ;;  %v3488_v53 = vadd.f32 %v3450_v17, %v16545_v40  ;;  %v3643_v40 = vor.u32 %v3641_v24, %v3640_v31 }
 0x463   : > { %v2582_v31 = vadd.f32 %v16199_v2, %v16197_v44  ;;  %v21607_v2 = vld [vmem:[#allocation53_spill] sm:$0xff] }
 0x464   : > { %v3623_v39 = vpack.c.b16 %v3607_v1, %v3607_v1  ;;  %v3624_v10 = vpack.c.b16 %v3608_v27, %v3608_v27  ;;  %v3526_v0 = vadd.f32 %v16794_v11, %v3488_v53  ;;  %v16874_v50 = vpack.c.b16 %v3607_v1, %v3605_v19 }
 0x465   : > { %v16877_v51 = vpack.c.b16 %v3608_v27, %v3606_v30  ;;  %v3357_v19 = vadd.f32 %v16844_v4, %v16842_v45  ;;  %v3765_v30 = vsel %vm14828_vm3, 0, %v3643_v40  ;;  %v3798_v53 = vunpack.c.l.b16 %v3766_v28 }
 0x466   : > { %v3652_v13 = vshrl.u32 %v3623_v39, 16  ;;  %v3659_v63 = vshrl.u32 %v3624_v10, 16  ;;  %v3655_v55 = vshll.u32 %v3623_v39, 16  ;;  %v3558_v49 = vmax.f32 %v3526_v0, 0.0  ;;  %v3363_v39 = vpop.f32.mrf.mxu1 }
 0x467   : > { %v3402_v29 = vpop.f32.mrf.mxu2  ;;  %v3451_v32 = vpop.f32.mrf.mxu3  ;;  %v3662_v23 = vshll.u32 %v3624_v10, 16  ;;  %v3797_v27 = vunpack.c.l.b16 %v3765_v30  ;;  %v3491_v24 = vadd.f32 %v3357_v19, %v21606_v6  ;;  %v2889_v10 = vadd.f32 %v21607_v2, %v2582_v31 }
 0x468   : > { %v3654_v18 = vrot.slane %v3652_v13, 7  ;;  %v3661_v56 = vrot.slane %v3659_v63, 7  ;;  %v3452_v36 = vadd.f32 %v3451_v32, %v3402_v29  ;;  %v3585_v9 = vpack.c.bf16 %v3558_v49, %v3557_v35  ;;  %v21608_v29 = vld [vmem:[#allocation19_spill] sm:$0xff] }
 0x469   : > { %v3559_v63 = vmax.f32 %v3527_v47, 0.0  ;;  %v3359_v35 = vadd.f32 %v16857_v3, %v16855_v58  ;;  %v3529_v34 = vadd.f32 %v16792_v26, %v3491_v24  ;;  %v2938_v32 = vadd.f32 %v21608_v29, %v2889_v10 }
 0x46a   : > { %v3490_v16 = vadd.f32 %v3452_v36, %v16548_v57  ;;  %v3657_v15 = vor.u32 %v3655_v55, %v3654_v18  ;;  %v3664_v17 = vor.u32 %v3662_v23, %v3661_v56  ;;  %v3890_v47 = vunpack.c.l.b16 %v3585_v9 }
 0x46b   : > { %v3493_v56 = vadd.f32 %v3359_v35, %v2938_v32  ;;  %v3561_v23 = vmax.f32 %v3529_v34, 0.0  ;;  %v2592_v29 = vadd.f32 %v16286_v8, %v16284_v5  ;;  %v21613_v32 = vld [vmem:[#allocation21_spill] sm:$0xff] }
 0x46c   : > { %v3528_v1 = vadd.f32 %v16794_v11, %v3490_v16  ;;  %v3767_v45 = vsel %vm14828_vm3, 0, %v3657_v15  ;;  %v3768_v4 = vsel %vm14828_vm3, 0, %v3664_v17  ;;  %v16908_v17 = vpop.f32.mrf.mxu0 }
 0x46d   : > { %v3799_v57 = vunpack.c.l.b16 %v3767_v45  ;;  %v3800_v46 = vunpack.c.l.b16 %v3768_v4  ;;  %v3531_v31 = vadd.f32 %v16792_v26, %v3493_v56 }
 0x46e   : > { %v3560_v44 = vmax.f32 %v3528_v1, 0.0  ;;  %v16910_v28 = vpop.f32.mrf.mxu1  ;;  %v3891_v1 = vunpack.c.h.b16 %v3585_v9 }
 0x46f   : > { %v3405_v0 = vpop.f32.mrf.mxu2  ;;  %v3454_v59 = vpop.f32.mrf.mxu3  ;;  %v16898_v40 = vpack.c.b16 %v3799_v57, %v3797_v27  ;;  %v16900_v13 = vpack.c.b16 %v3800_v46, %v3798_v53  ;;  %v21609_v53 = vld [vmem:[#allocation17_spill] sm:$0xff]  ;;  %v21610_v46 = vld [vmem:[#allocation52_spill] sm:$0xff] }
 0x470   : > { %v3455_v41 = vadd.f32 %v3454_v59, %v3405_v0  ;;  %v3586_v55 = vpack.c.bf16 %v3560_v44, %v3559_v63  ;;  %v2587_v6 = vadd.f32 %v21610_v46, %v21609_v53  ;;  %v21611_v0 = vld [vmem:[#allocation20_spill] sm:$0xff]  ;;  %v21612_v63 = vld [vmem:[#allocation54_spill] sm:$0xff]  ;;  %v21615_v53 = vld [vmem:[#allocation23_spill] sm:$0xff] }
 0x471   : > { %v2899_v46 = vadd.f32 %v21615_v53, %v2592_v29  ;;  %v21616_v29 = vld [vmem:[#allocation57_spill] sm:$0xff] }
 0x472   : > { %v3492_v49 = vadd.f32 %v3455_v41, %v16553_v7  ;;  %v3609_v36 = vunpack.c.l.b16 %v3586_v55  ;;  %v3610_v30 = vunpack.c.h.b16 %v3586_v55  ;;  %v3362_v7 = vadd.f32 %v16871_v12, %v16869_v52 }
 0x473   : > { %v2894_v59 = vadd.f32 %v21611_v0, %v2587_v6  ;;  %v3563_v52 = vmax.f32 %v3531_v31, 0.0  ;;  %v3364_v31 = vadd.f32 %v3363_v39, %v16895_v20 }
 0x474   : > { %v3530_v18 = vadd.f32 %v16794_v11, %v3492_v49  ;;  %v3625_v57 = vpack.c.b16 %v3609_v36, %v3609_v36  ;;  %v3626_v24 = vpack.c.b16 %v3610_v30, %v3610_v30  ;;  %v3495_v41 = vadd.f32 %v3362_v7, %v21612_v63  ;;  %v21614_v7 = vld [vmem:[#allocation28_spill] sm:$0xff] }
 0x476   : > { %v3562_v19 = vmax.f32 %v3530_v18, 0.0  ;;  %v3673_v34 = vshrl.u32 %v3626_v24, 16  ;;  %v2943_v18 = vadd.f32 %v21613_v32, %v2894_v59  ;;  %v3533_v56 = vadd.f32 %v16792_v26, %v3495_v41 }
 0x477   : > { %v3407_v16 = vpop.f32.mrf.mxu2  ;;  %v3456_v15 = vpop.f32.mrf.mxu3  ;;  %v2948_v32 = vadd.f32 %v21616_v29, %v2899_v46 }
 0x478   : > { %v3587_v58 = vpack.c.bf16 %v3562_v19, %v3561_v23  ;;  %v3457_v3 = vadd.f32 %v3456_v15, %v3407_v16  ;;  %v3319_v23 = vpop.f32.mrf.mxu0  ;;  %v3368_v19 = vpop.f32.mrf.mxu1  ;;  %v3565_v6 = vmax.f32 %v3533_v56, 0.0  ;;  %v3497_v0 = vadd.f32 %v3364_v31, %v2943_v18 }
 0x47a   : > { %v3494_v45 = vadd.f32 %v3457_v3, %v16556_v43  ;;  %v3892_v4 = vunpack.c.l.b16 %v3587_v58  ;;  %v3893_v27 = vunpack.c.h.b16 %v3587_v58  ;;  %v3666_v43 = vshrl.u32 %v3625_v57, 16 }
 0x47b   : > { %v3535_v18 = vadd.f32 %v16792_v26, %v3497_v0  ;;  %v21619_v0 = vld [vmem:[#allocation29_spill] sm:$0xff] }
 0x47c   : > { %v3532_v44 = vadd.f32 %v16794_v11, %v3494_v45  ;;  %v3904_v2 = vpack.c.b16 %v3892_v4, %v3890_v47  ;;  %v3905_v10 = vpack.c.b16 %v3893_v27, %v3891_v1  ;;  %v3668_v3 = vrot.slane %v3666_v43, 7 }
 0x47d   : > { %v2992_v47 = vadd.f32 %v16563_v22, %v21614_v7  ;;  %v3669_v1 = vshll.u32 %v3625_v57, 16  ;;  %v3675_v45 = vrot.slane %v3673_v34, 7 }
 0x47e   : > { %v3564_v12 = vmax.f32 %v3532_v44, 0.0  ;;  %4091 = vmatmul.bf16.gmra.mxu0 %v3904_v2  ;;  %4120 = vmatmul.bf16.gmra.mxu1 %v3905_v10  ;;  %v3676_v44 = vshll.u32 %v3626_v24, 16 }
 0x47f   : > { %4149 = vmatmul.bf16.gmra.mxu2 %v3904_v2  ;;  %4178 = vmatmul.bf16.gmra.mxu3 %v3905_v10  ;;  %v3410_v9 = vpop.f32.mrf.mxu2  ;;  %v3459_v35 = vpop.f32.mrf.mxu3  ;;  %v3671_v10 = vor.u32 %v3669_v1, %v3668_v3  ;;  %v3041_v22 = vadd.f32 %v16565_v14, %v2992_v47 }
 0x480   : > { %v3588_v55 = vpack.c.bf16 %v3564_v12, %v3563_v52  ;;  %v3460_v49 = vadd.f32 %v3459_v35, %v3410_v9  ;;  %v3678_v41 = vor.u32 %v3676_v44, %v3675_v45  ;;  %v3369_v9 = vadd.f32 %v3368_v19, %v3319_v23  ;;  %v3322_v56 = vpop.f32.mrf.mxu0 }
 0x482   : > { %v3611_v16 = vunpack.c.l.b16 %v3588_v55  ;;  %v3612_v15 = vunpack.c.h.b16 %v3588_v55  ;;  %v3496_v58 = vadd.f32 %v3460_v49, %v16561_v60  ;;  %v3769_v55 = vsel %vm14828_vm3, 0, %v3671_v10 }
 0x483   : > { %v3770_v49 = vsel %vm14828_vm3, 0, %v3678_v41  ;;  %v3801_v23 = vunpack.c.l.b16 %v3769_v55  ;;  %v3501_v31 = vadd.f32 %v3369_v9, %v2948_v32  ;;  %v13753_v9 = vld [vmem:[%s21399_s5 + $0xf4] sm:$0xf] }
 0x484   : > { %v3534_v8 = vadd.f32 %v16794_v11, %v3496_v58  ;;  %v3627_v5 = vpack.c.b16 %v3611_v16, %v3611_v16  ;;  %v3628_v4 = vpack.c.b16 %v3612_v15, %v3612_v15  ;;  %v16930_v27 = vpack.c.b16 %v3611_v16, %v3609_v36  ;;  %v3371_v16 = vpop.f32.mrf.mxu1  ;;  %v21617_v58 = vld [vmem:[#allocation22_spill] sm:$0xff] }
 0x485   : > { %v16933_v2 = vpack.c.b16 %v3612_v15, %v3610_v30  ;;  %v3367_v30 = vadd.f32 %v16910_v28, %v16908_v17  ;;  %v3802_v7 = vunpack.c.l.b16 %v3770_v49  ;;  %v3372_v1 = vadd.f32 %v3371_v16, %v3322_v56  ;;  %v21621_v56 = vld [vmem:[#allocation25_spill] sm:$0xff] }
 0x486   : > { %v3566_v60 = vmax.f32 %v3534_v8, 0.0  ;;  %v3680_v20 = vshrl.u32 %v3627_v5, 16  ;;  %v3687_v39 = vshrl.u32 %v3628_v4, 16  ;;  %v3683_v63 = vshll.u32 %v3627_v5, 16 }
 0x487   : > { %v3412_v57 = vpop.f32.mrf.mxu2  ;;  %v3461_v59 = vpop.f32.mrf.mxu3  ;;  %v3690_v24 = vshll.u32 %v3628_v4, 16  ;;  %v3499_v3 = vadd.f32 %v3367_v30, %v21617_v58  ;;  %v10644_v58 = vld [vmem:[%s21399_s5 + $0x60] sm:$0xf] }
 0x488   : > { %v16936_v52 = vpack.c.bf16 %v3566_v60, %v3565_v6  ;;  %v3462_v36 = vadd.f32 %v3461_v59, %v3412_v57  ;;  %v3682_v12 = vrot.slane %v3680_v20, 7  ;;  %v3689_v43 = vrot.slane %v3687_v39, 7  ;;  %v21618_v20 = vld [vmem:[#allocation24_spill] sm:$0xff]  ;;  %v10652_v57 = vld [vmem:[%s21399_s5 + $0x70] sm:$0xf] }
 0x489   : > { %v3567_v6 = vmax.f32 %v3535_v18, 0.0  ;;  %v3537_v44 = vadd.f32 %v16792_v26, %v3499_v3  ;;  %v16958_v60 = vadd.f32 %v16792_v26, %v3501_v31  ;;  %v3503_v39 = vadd.f32 %v3372_v1, %v21618_v20  ;;  %v13738_v59 = vld [vmem:[%s21399_s5 + $0x74] sm:$0xf0]  ;;  %v13736_v3 = vld [vmem:[%s21399_s5 + $0x64] sm:$0xf0] }
 0x48a   : > { %v3498_v35 = vadd.f32 %v3462_v36, %v3041_v22  ;;  %v3685_v34 = vor.u32 %v3683_v63, %v3682_v12  ;;  %v3692_v14 = vor.u32 %v3690_v24, %v3689_v43  ;;  %v2997_v22 = vadd.f32 %v16580_v38, %v21619_v0  ;;  %v10716_v63 = vld [vmem:[%s21399_s5 + $0xf0] sm:$0xf]  ;;  %v13754_v36 = vld [vmem:[%s21399_s5 + $0xf4] sm:$0xf0]  ;;  %v13737_v38 = vld [vmem:[%s21399_s5 + $0x74] sm:$0xf] }
 0x48b   : > { %v10654_v12 = vld [vmem:[%s21399_s5 + $0x78] sm:$0xf0]  ;;  %v10717_v30 = vor.u32 %v13754_v36, %v10716_v63  ;;  %v3571_v55 = vmax.f32 %v16958_v60, 0.0  ;;  %v10708_v31 = vld [vmem:[%s21399_s5 + $0xe0] sm:$0xf]  ;;  %v10645_v1 = vor.u32 %v13736_v3, %v10644_v58  ;;  %v21623_v58 = vld [vmem:[#allocation60_spill] sm:$0xff] }
 0x48c   : > { %v3771_v17 = vsel %vm14828_vm3, 0, %v3685_v34  ;;  %v3536_v28 = vadd.f32 %v16794_v11, %v3498_v35  ;;  %v3772_v15 = vsel %vm14828_vm3, 0, %v3692_v14  ;;  %v10657_v24 = vor.u32 %v13737_v38, %v10654_v12  ;;  %v10718_v35 = vld [vmem:[%s21399_s5 + $0xf8] sm:$0xf0]  ;;  %v3324_v14 = vpop.f32.mrf.mxu0  ;;  %v3373_v49 = vpop.f32.mrf.mxu1  ;;  %v10710_v20 = vld [vmem:[%s21399_s5 + $0xe8] sm:$0xf0] }
 0x48d   : > { %v3803_v19 = vunpack.c.l.b16 %v3771_v17  ;;  %v3804_v47 = vunpack.c.l.b16 %v3772_v15  ;;  %v3569_v34 = vmax.f32 %v3537_v44, 0.0  ;;  %v10721_v32 = vor.u32 %v13753_v9, %v10718_v35  ;;  %v21620_v18 = vld [vmem:[#allocation58_spill] sm:$0xff]  ;;  %4399 = vmatpush.bf16.msrb.mxu1 %v10717_v30  ;;  %v10700_v36 = vld [vmem:[%s21399_s5 + $0xd0] sm:$0xf]  ;;  %v13733_v9 = vld [vmem:[%s21399_s5 + $0x54] sm:$0xf] }
 0x48e   : > { %v3568_v46 = vmax.f32 %v3536_v28, 0.0  ;;  %v2597_v16 = vadd.f32 %v21621_v56, %v21620_v18  ;;  %v16993_v17 = vadd.f32 %v16792_v26, %v3503_v39  ;;  %v3046_v28 = vadd.f32 %v16582_v25, %v2997_v22  ;;  %4428 = vmatpush.bf16.msra.mxu2 %v10657_v24  ;;  %v13750_v24 = vld [vmem:[%s21399_s5 + $0xd4] sm:$0xf0]  ;;  %v10638_v35 = vld [vmem:[%s21399_s5 + $0x58] sm:$0xf0] }
 0x48f   : > { %v3415_v45 = vpop.f32.mrf.mxu2  ;;  %v3464_v8 = vpop.f32.mrf.mxu3  ;;  %v16952_v5 = vpack.c.b16 %v3803_v19, %v3801_v23  ;;  %v16954_v53 = vpack.c.b16 %v3804_v47, %v3802_v7  ;;  %v3894_v15 = vunpack.c.l.b16 %v16936_v52  ;;  %v3895_v47 = vunpack.c.h.b16 %v16936_v52  ;;  %4457 = vmatpush.bf16.msra.mxu3 %v10721_v32  ;;  %v13749_v32 = vld [vmem:[%s21399_s5 + $0xd4] sm:$0xf]  ;;  %v10702_v18 = vld [vmem:[%s21399_s5 + $0xd8] sm:$0xf0] }
 0x490   : > { %v3465_v4 = vadd.f32 %v3464_v8, %v3415_v45  ;;  %v3590_v43 = vpack.c.bf16 %v3568_v46, %v3567_v6  ;;  %v13752_v45 = vld [vmem:[%s21399_s5 + $0xe4] sm:$0xf0]  ;;  %v13735_v8 = vld [vmem:[%s21399_s5 + $0x64] sm:$0xf] }
 0x491   : > { %v10709_v44 = vor.u32 %v13752_v45, %v10708_v31 }
 0x492   : > { %v3500_v10 = vadd.f32 %v3465_v4, %v16574_v62  ;;  %v10653_v62 = vor.u32 %v13738_v59, %v10652_v57  ;;  %v10646_v4 = vld [vmem:[%s21399_s5 + $0x68] sm:$0xf0]  ;;  %v17016_v46 = vunpack.c.l.b16 %v3590_v43  ;;  %v17018_v6 = vunpack.c.h.b16 %v3590_v43  ;;  %v21622_v59 = vld [vmem:[#allocation26_spill] sm:$0xff] }
 0x493   : > { %v10649_v52 = vor.u32 %v13735_v8, %v10646_v4  ;;  %v2904_v63 = vadd.f32 %v21622_v59, %v2597_v16  ;;  %4400 = vmatpush.bf16.msrb.mxu1 %v10709_v44  ;;  %v13748_v8 = vld [vmem:[%s21399_s5 + $0xc4] sm:$0xf0]  ;;  %v13731_v4 = vld [vmem:[%s21399_s5 + $0x44] sm:$0xf]  ;;  %v10630_v44 = vld [vmem:[%s21399_s5 + $0x48] sm:$0xf0]  ;;  %v3002_v59 = vadd.f32 %v16617_v33, %v16518_v61 }
 0x494   : > { %v3538_v41 = vadd.f32 %v16794_v11, %v3500_v10  ;;  %4370 = vmatpush.bf16.msrb.mxu0 %v10653_v62  ;;  %v13751_v10 = vld [vmem:[%s21399_s5 + $0xe4] sm:$0xf]  ;;  %v13734_v62 = vld [vmem:[%s21399_s5 + $0x54] sm:$0xf0]  ;;  %v17054_v56 = vpack.c.b16 %v17016_v46, %v17016_v46  ;;  %v17058_v16 = vpack.c.b16 %v17018_v6, %v17018_v6  ;;  %v10622_v33 = vld [vmem:[%s21399_s5 + $0x38] sm:$0xf0] }
 0x495   : > { %v10713_v57 = vor.u32 %v13751_v10, %v10710_v20  ;;  %4429 = vmatpush.bf16.msra.mxu2 %v10649_v52  ;;  %v2953_v3 = vadd.f32 %v21623_v58, %v2904_v63  ;;  %v3327_v52 = vpop.f32.mrf.mxu0  ;;  %v3376_v10 = vpop.f32.mrf.mxu1  ;;  %v13747_v20 = vld [vmem:[%s21399_s5 + $0xc4] sm:$0xf]  ;;  %v13746_v61 = vld [vmem:[%s21399_s5 + $0xb4] sm:$0xf0] }
 0x496   : > { %v3570_v29 = vmax.f32 %v3538_v41, 0.0  ;;  %v10636_v41 = vld [vmem:[%s21399_s5 + $0x50] sm:$0xf] }
 0x497   : > { %v3417_v23 = vpop.f32.mrf.mxu2  ;;  %v3466_v19 = vpop.f32.mrf.mxu3  ;;  %4458 = vmatpush.bf16.msra.mxu3 %v10713_v57  ;;  %v10637_v30 = vor.u32 %v13734_v62, %v10636_v41  ;;  %v10620_v62 = vld [vmem:[%s21399_s5 + $0x30] sm:$0xf] }
 0x498   : > { %v3591_v7 = vpack.c.bf16 %v3570_v29, %v3569_v34  ;;  %v3467_v25 = vadd.f32 %v3466_v19, %v3417_v23  ;;  %4371 = vmatpush.bf16.msrb.mxu0 %v10645_v1  ;;  %v10701_v34 = vor.u32 %v13750_v24, %v10700_v36  ;;  %v10641_v29 = vor.u32 %v13733_v9, %v10638_v35  ;;  %v13730_v36 = vld [vmem:[%s21399_s5 + $0x34] sm:$0xf0]  ;;  %v13745_v35 = vld [vmem:[%s21399_s5 + $0xb4] sm:$0xf] }
 0x499   : > { %v3374_v23 = vadd.f32 %v3373_v49, %v3324_v14  ;;  %v10692_v14 = vld [vmem:[%s21399_s5 + $0xc0] sm:$0xf]  ;;  %v10621_v24 = vor.u32 %v13730_v36, %v10620_v62  ;;  %v13741_v62 = vld [vmem:[%s21399_s5 + $0x94] sm:$0xf]  ;;  %v10670_v36 = vld [vmem:[%s21399_s5 + $0x98] sm:$0xf0] }
 0x49a   : > { %v3502_v39 = vadd.f32 %v3467_v25, %v3046_v28  ;;  %v3896_v0 = vunpack.c.l.b16 %v3591_v7  ;;  %v3897_v22 = vunpack.c.h.b16 %v3591_v7  ;;  %v3573_v28 = vmax.f32 %v16993_v17, 0.0  ;;  %v10628_v25 = vld [vmem:[%s21399_s5 + $0x40] sm:$0xf]  ;;  %4401 = vmatpush.bf16.msrb.mxu1 %v10701_v34  ;;  %4430 = vmatpush.bf16.msra.mxu2 %v10641_v29  ;;  %v10686_v34 = vld [vmem:[%s21399_s5 + $0xb8] sm:$0xf0] }
 0x49b   : > { %v10693_v60 = vor.u32 %v13748_v8, %v10692_v14  ;;  %v3505_v57 = vadd.f32 %v3374_v23, %v2953_v3  ;;  %v10612_v29 = vld [vmem:[%s21399_s5 + $0x20] sm:$0xf]  ;;  %v13728_v23 = vld [vmem:[%s21399_s5 + $0x24] sm:$0xf0]  ;;  %v3377_v3 = vadd.f32 %v3376_v10, %v3327_v52  ;;  %v10668_v17 = vld [vmem:[%s21399_s5 + $0x90] sm:$0xf] }
 0x49c   : > { %v3540_v38 = vadd.f32 %v16794_v11, %v3502_v39  ;;  %v3906_v12 = vpack.c.b16 %v3896_v0, %v3894_v15  ;;  %v3907_v43 = vpack.c.b16 %v3897_v22, %v3895_v47  ;;  %v10705_v15 = vor.u32 %v13749_v32, %v10702_v18  ;;  %v13732_v47 = vld [vmem:[%s21399_s5 + $0x44] sm:$0xf0]  ;;  %4372 = vmatpush.bf16.msrb.mxu0 %v10637_v30  ;;  %v10694_v39 = vld [vmem:[%s21399_s5 + $0xc8] sm:$0xf0] }
 0x49d   : > { %v10629_v45 = vor.u32 %v13732_v47, %v10628_v25  ;;  %v3694_v0 = vshrl.u32 %v17054_v56, 16  ;;  %v3701_v22 = vshrl.u32 %v17058_v16, 16  ;;  %v10697_v41 = vor.u32 %v13747_v20, %v10694_v39  ;;  %v13727_v25 = vld [vmem:[%s21399_s5 + $0x24] sm:$0xf]  ;;  %v10614_v47 = vld [vmem:[%s21399_s5 + $0x28] sm:$0xf0] }
 0x49e   : > { %v3572_v19 = vmax.f32 %v3540_v38, 0.0  ;;  %4096 = vmatmul.bf16.gmra.mxu0 %v3906_v12  ;;  %4125 = vmatmul.bf16.gmra.mxu1 %v3907_v43  ;;  %v10684_v38 = vld [vmem:[%s21399_s5 + $0xb0] sm:$0xf]  ;;  %v10689_v18 = vor.u32 %v13745_v35, %v10686_v34  ;;  %v17131_v58 = vadd.f32 %v16792_v26, %v3505_v57 }
 0x49f   : > { %4154 = vmatmul.bf16.gmra.mxu2 %v3906_v12  ;;  %4183 = vmatmul.bf16.gmra.mxu3 %v3907_v43  ;;  %v3420_v31 = vpop.f32.mrf.mxu2  ;;  %v3469_v7 = vpop.f32.mrf.mxu3  ;;  %v10685_v9 = vor.u32 %v13746_v61, %v10684_v38  ;;  %v3696_v8 = vrot.slane %v3694_v0, 7  ;;  %v3703_v20 = vrot.slane %v3701_v22, 7  ;;  %v13725_v0 = vld [vmem:[%s21399_s5 + $0x14] sm:$0xf] }
 0x4a0   : > { %v3592_v49 = vpack.c.bf16 %v3572_v19, %v3571_v55  ;;  %v3470_v1 = vadd.f32 %v3469_v7, %v3420_v31  ;;  %4459 = vmatpush.bf16.msra.mxu3 %v10705_v15  ;;  %v10633_v55 = vor.u32 %v13731_v4, %v10630_v44  ;;  %4373 = vmatpush.bf16.msrb.mxu0 %v10629_v45  ;;  %v10676_v19 = vld [vmem:[%s21399_s5 + $0xa0] sm:$0xf]  ;;  %v13744_v15 = vld [vmem:[%s21399_s5 + $0xa4] sm:$0xf0]  ;;  %v13743_v45 = vld [vmem:[%s21399_s5 + $0xa4] sm:$0xf] }
 0x4a1   : > { %4402 = vmatpush.bf16.msrb.mxu1 %v10693_v60  ;;  %v3051_v31 = vadd.f32 %v16619_v42, %v3002_v59  ;;  %v10678_v42 = vld [vmem:[%s21399_s5 + $0xa8] sm:$0xf0]  ;;  %v10677_v60 = vor.u32 %v13744_v15, %v10676_v19  ;;  %v21624_v59 = vld [vmem:[#allocation59_spill] sm:$0xff]  ;;  %v3575_v61 = vmax.f32 %v17131_v58, 0.0 }
 0x4a2   : > { %v3504_v63 = vadd.f32 %v3470_v1, %v16591_v54  ;;  %v3615_v12 = vunpack.c.l.b16 %v3592_v49  ;;  %v3616_v43 = vunpack.c.h.b16 %v3592_v49  ;;  %v13729_v54 = vld [vmem:[%s21399_s5 + $0x34] sm:$0xf]  ;;  %4431 = vmatpush.bf16.msra.mxu2 %v10633_v55  ;;  %v10613_v1 = vor.u32 %v13728_v23, %v10612_v29  ;;  %v10604_v55 = vld [vmem:[%s21399_s5 + $0x10] sm:$0xf]  ;;  %v13724_v29 = vld [vmem:[%s21399_s5 + $0x4] sm:$0xf0] }
 0x4a3   : > { %v10625_v32 = vor.u32 %v13729_v54, %v10622_v33  ;;  %v10681_v39 = vor.u32 %v13743_v45, %v10678_v42  ;;  %v2909_v22 = vadd.f32 %v16567_v37, %v21624_v59  ;;  %v3329_v33 = vpop.f32.mrf.mxu0  ;;  %v3378_v37 = vpop.f32.mrf.mxu1  ;;  %v13723_v23 = vld [vmem:[%s21399_s5 + $0x4] sm:$0xf]  ;;  %v10598_v19 = vld [vmem:[%s21399_s5 + $0x8] sm:$0xf0] }
 0x4a4   : > { %v3542_v30 = vadd.f32 %v16794_v11, %v3504_v63  ;;  %4460 = vmatpush.bf16.msra.mxu3 %v10697_v41  ;;  %v17147_v4 = vpack.c.b16 %v3615_v12, %v17016_v46  ;;  %v17150_v44 = vpack.c.b16 %v3616_v43, %v17018_v6  ;;  %4374 = vmatpush.bf16.msrb.mxu0 %v10621_v24  ;;  %v13726_v46 = vld [vmem:[%s21399_s5 + $0x14] sm:$0xf0]  ;;  %v10606_v41 = vld [vmem:[%s21399_s5 + $0x18] sm:$0xf0]  ;;  %v3697_v24 = vshll.u32 %v17054_v56, 16 }
 0x4a5   : > { %4403 = vmatpush.bf16.msrb.mxu1 %v10685_v9  ;;  %v10617_v6 = vor.u32 %v13727_v25, %v10614_v47  ;;  %v3631_v57 = vpack.c.b16 %v3615_v12, %v3615_v12  ;;  %v3632_v38 = vpack.c.b16 %v3616_v43, %v3616_v43  ;;  %v21625_v12 = vld [vmem:[#allocation27_spill] sm:$0xff]  ;;  %v3704_v9 = vshll.u32 %v17058_v16, 16  ;;  %v13740_v56 = vld [vmem:[%s21399_s5 + $0x84] sm:$0xf0]  ;;  %v10662_v25 = vld [vmem:[%s21399_s5 + $0x88] sm:$0xf0] }
 0x4a6   : > { %v3574_v7 = vmax.f32 %v3542_v30, 0.0  ;;  %4432 = vmatpush.bf16.msra.mxu2 %v10625_v32  ;;  %v3507_v54 = vadd.f32 %v3377_v3, %v21625_v12  ;;  %v10596_v30 = vld [vmem:[%s21399_s5] sm:$0xf]  ;;  %v10605_v34 = vor.u32 %v13726_v46, %v10604_v55  ;;  %v10609_v16 = vor.u32 %v13725_v0, %v10606_v41 }
 0x4a7   : > { %v3422_v14 = vpop.f32.mrf.mxu2  ;;  %v3471_v49 = vpop.f32.mrf.mxu3  ;;  %v10660_v32 = vld [vmem:[%s21399_s5 + $0x80] sm:$0xf]  ;;  %v3699_v15 = vor.u32 %v3697_v24, %v3696_v8  ;;  %v3708_v58 = vshrl.u32 %v3631_v57, 16  ;;  %v3379_v3 = vadd.f32 %v3378_v37, %v3329_v33  ;;  %v3706_v47 = vor.u32 %v3704_v9, %v3703_v20 }
 0x4a8   : > { %v17154_v52 = vpack.c.bf16 %v3574_v7, %v3573_v28  ;;  %v3472_v10 = vadd.f32 %v3471_v49, %v3422_v14  ;;  %4461 = vmatpush.bf16.msra.mxu3 %v10689_v18  ;;  %v13742_v28 = vld [vmem:[%s21399_s5 + $0x94] sm:$0xf0]  ;;  %4375 = vmatpush.bf16.msrb.mxu0 %v10613_v1  ;;  %v10673_v18 = vor.u32 %v13741_v62, %v10670_v36  ;;  %v13739_v7 = vld [vmem:[%s21399_s5 + $0x84] sm:$0xf]  ;;  %v3715_v14 = vshrl.u32 %v3632_v38, 16 }
 0x4a9   : > { %4404 = vmatpush.bf16.msrb.mxu1 %v10677_v60  ;;  %v10669_v43 = vor.u32 %v13742_v28, %v10668_v17  ;;  %v10597_v45 = vor.u32 %v13724_v29, %v10596_v30  ;;  %v10661_v42 = vor.u32 %v13740_v56, %v10660_v32  ;;  %v3711_v60 = vshll.u32 %v3631_v57, 16  ;;  %v21626_v41 = vld [vmem:[#allocation31_spill] sm:$0xff]  ;;  %v21627_v36 = vld [vmem:[#allocation30_spill] sm:$0xff] }
 0x4aa   : > { %v3506_v63 = vadd.f32 %v3472_v10, %v3051_v31  ;;  %4433 = vmatpush.bf16.msra.mxu2 %v10617_v6  ;;  %v3710_v10 = vrot.slane %v3708_v58, 7  ;;  %v10601_v55 = vor.u32 %v13723_v23, %v10598_v19  ;;  %v3717_v46 = vrot.slane %v3715_v14, 7 }
 0x4ab   : > { %v3718_v6 = vshll.u32 %v3632_v38, 16  ;;  %v10665_v17 = vor.u32 %v13739_v7, %v10662_v25  ;;  %v3773_v20 = vsel %vm14828_vm3, 0, %v3699_v15  ;;  %v3545_v0 = vadd.f32 %v16792_v26, %v3507_v54  ;;  %v21628_v38 = vld [vmem:[#allocation32_spill] sm:$0xff] }
 0x4ac   : > { %v3544_v35 = vadd.f32 %v16794_v11, %v3506_v63  ;;  %4462 = vmatpush.bf16.msra.mxu3 %v10681_v39  ;;  %4376 = vmatpush.bf16.msrb.mxu0 %v10605_v34  ;;  %v3713_v28 = vor.u32 %v3711_v60, %v3710_v10  ;;  %v3774_v57 = vsel %vm14828_vm3, 0, %v3706_v47  ;;  %v2958_v62 = vadd.f32 %v21626_v41, %v2909_v22 }
 0x4ad   : > { %4405 = vmatpush.bf16.msrb.mxu1 %v10669_v43  ;;  %v3720_v63 = vor.u32 %v3718_v6, %v3717_v46  ;;  %v3805_v37 = vunpack.c.l.b16 %v3773_v20  ;;  %v3806_v22 = vunpack.c.l.b16 %v3774_v57 }
 0x4ae   : > { %v3576_v31 = vmax.f32 %v3544_v35, 0.0  ;;  %4434 = vmatpush.bf16.msra.mxu2 %v10609_v16  ;;  %v3775_v12 = vsel %vm14828_vm3, 0, %v3713_v28  ;;  %v3509_v30 = vadd.f32 %v3379_v3, %v2958_v62  ;;  %v3577_v35 = vmax.f32 %v3545_v0, 0.0 }
 0x4af   : > { %v3425_v49 = vpop.f32.mrf.mxu2  ;;  %v3474_v1 = vpop.f32.mrf.mxu3  ;;  %v3807_v54 = vunpack.c.l.b16 %v3775_v12  ;;  %v3898_v3 = vunpack.c.l.b16 %v17154_v52 }
 0x4b0   : > { %v3475_v8 = vadd.f32 %v3474_v1, %v3425_v49  ;;  %v3594_v39 = vpack.c.bf16 %v3576_v31, %v3575_v61  ;;  %4463 = vmatpush.bf16.msra.mxu3 %v10673_v18  ;;  %v3007_v61 = vadd.f32 %v21628_v38, %v21627_v36  ;;  %4377 = vmatpush.bf16.msrb.mxu0 %v10597_v45  ;;  %v21629_v18 = vld [vmem:[#allocation33_spill] sm:$0xff]  ;;  %v3899_v31 = vunpack.c.h.b16 %v17154_v52 }
 0x4b1   : > { %4406 = vmatpush.bf16.msrb.mxu1 %v10661_v42  ;;  %v17225_v29 = vpack.c.b16 %v3807_v54, %v3805_v37  ;;  %v3547_v58 = vadd.f32 %v16792_v26, %v3509_v30 }
 0x4b2   : > { %v3508_v59 = vadd.f32 %v3475_v8, %v16704_v48  ;;  %v3776_v48 = vsel %vm14828_vm3, 0, %v3720_v63  ;;  %v3617_v24 = vunpack.c.l.b16 %v3594_v39  ;;  %4435 = vmatpush.bf16.msra.mxu2 %v10601_v55  ;;  %v3618_v34 = vunpack.c.h.b16 %v3594_v39 }
 0x4b3   : > { %v3808_v9 = vunpack.c.l.b16 %v3776_v48  ;;  %v3056_v23 = vadd.f32 %v21629_v18, %v3007_v61  ;;  %v3579_v10 = vmax.f32 %v3547_v58, 0.0 }
 0x4b4   : > { %v3546_v33 = vadd.f32 %v16794_v11, %v3508_v59  ;;  %4464 = vmatpush.bf16.msra.mxu3 %v10665_v17  ;;  %v3633_v7 = vpack.c.b16 %v3617_v24, %v3617_v24  ;;  %v3634_v49 = vpack.c.b16 %v3618_v34, %v3618_v34 }
 0x4b5   : > { %v17227_v16 = vpack.c.b16 %v3808_v9, %v3806_v22 }
 0x4b6   : > { %v3578_v43 = vmax.f32 %v3546_v33, 0.0  ;;  %v3722_v8 = vshrl.u32 %v3633_v7, 16  ;;  %v3729_v55 = vshrl.u32 %v3634_v49, 16  ;;  %v3725_v17 = vshll.u32 %v3633_v7, 16  ;;  %v10804_v7 = vld [vmem:[%s21399_s5 + $0x260] sm:$0xf] }
 0x4b7   : > { %v3427_v32 = vpop.f32.mrf.mxu2  ;;  %v3476_v56 = vpop.f32.mrf.mxu3  ;;  %v3732_v28 = vshll.u32 %v3634_v49, 16  ;;  %v13816_v49 = vld [vmem:[%s21399_s5 + $0x2e4] sm:$0xf0] }
 0x4b8   : > { %v3595_v19 = vpack.c.bf16 %v3578_v43, %v3577_v35  ;;  %v3477_v15 = vadd.f32 %v3476_v56, %v3427_v32  ;;  %v3724_v6 = vrot.slane %v3722_v8, 7  ;;  %v3731_v39 = vrot.slane %v3729_v55, 7  ;;  %v10812_v43 = vld [vmem:[%s21399_s5 + $0x270] sm:$0xf]  ;;  %v10870_v55 = vld [vmem:[%s21399_s5 + $0x2e8] sm:$0xf0] }
 0x4b9   : > { %v10876_v32 = vld [vmem:[%s21399_s5 + $0x2f0] sm:$0xf] }
 0x4ba   : > { %v3510_v25 = vadd.f32 %v3477_v15, %v3056_v23  ;;  %v3900_v47 = vunpack.c.l.b16 %v3595_v19  ;;  %v3901_v14 = vunpack.c.h.b16 %v3595_v19  ;;  %v3727_v63 = vor.u32 %v3725_v17, %v3724_v6  ;;  %v10814_v19 = vld [vmem:[%s21399_s5 + $0x278] sm:$0xf0]  ;;  %v10860_v6 = vld [vmem:[%s21399_s5 + $0x2d0] sm:$0xf]  ;;  %v13797_v17 = vld [vmem:[%s21399_s5 + $0x254] sm:$0xf] }
 0x4bb   : > { %v3734_v41 = vor.u32 %v3732_v28, %v3731_v39  ;;  %v10813_v23 = vor.u32 %v13802_v21, %v10812_v43  ;;  %v13814_v39 = vld [vmem:[%s21399_s5 + $0x2d4] sm:$0xf0]  ;;  %v10780_v21 = vld [vmem:[%s21399_s5 + $0x230] sm:$0xf] }
 0x4bc   : > { %v3548_v1 = vadd.f32 %v16794_v11, %v3510_v25  ;;  %v3908_v45 = vpack.c.b16 %v3900_v47, %v3898_v3  ;;  %v3909_v42 = vpack.c.b16 %v3901_v14, %v3899_v31  ;;  %v3777_v37 = vsel %vm14828_vm3, 0, %v3727_v63  ;;  %v13817_v3 = vld [vmem:[%s21399_s5 + $0x2f4] sm:$0xf]  ;;  %v10878_v31 = vld [vmem:[%s21399_s5 + $0x2f8] sm:$0xf0] }
 0x4bd   : > { %v3778_v48 = vsel %vm14828_vm3, 0, %v3734_v41  ;;  %v3809_v22 = vunpack.c.l.b16 %v3777_v37  ;;  %4695 = vmatpush.bf16.msra.mxu0 %v10813_v23  ;;  %v10881_v25 = vor.u32 %v13817_v3, %v10878_v31  ;;  %v13800_v47 = vld [vmem:[%s21399_s5 + $0x264] sm:$0xf0]  ;;  %v10868_v14 = vld [vmem:[%s21399_s5 + $0x2e0] sm:$0xf] }
 0x4be   : > { %v3580_v60 = vmax.f32 %v3548_v1, 0.0  ;;  %4101 = vmatmul.bf16.gmra.mxu0 %v3908_v45  ;;  %4130 = vmatmul.bf16.gmra.mxu1 %v3909_v42  ;;  %v3810_v35 = vunpack.c.l.b16 %v3778_v48  ;;  %v10805_v1 = vor.u32 %v13800_v47, %v10804_v7  ;;  %v10862_v63 = vld [vmem:[%s21399_s5 + $0x2d8] sm:$0xf0]  ;;  %v13812_v48 = vld [vmem:[%s21399_s5 + $0x2c4] sm:$0xf0] }
 0x4bf   : > { %4159 = vmatmul.bf16.gmra.mxu2 %v3908_v45  ;;  %4188 = vmatmul.bf16.gmra.mxu3 %v3909_v42  ;;  %v10869_v45 = vor.u32 %v13816_v49, %v10868_v14  ;;  %v13799_v42 = vld [vmem:[%s21399_s5 + $0x264] sm:$0xf]  ;;  %v10844_v23 = vld [vmem:[%s21399_s5 + $0x2b0] sm:$0xf]  ;;  %v10846_v3 = vld [vmem:[%s21399_s5 + $0x2b8] sm:$0xf0] }
 0x4c0   : > { %v3596_v26 = vpack.c.bf16 %v3580_v60, %v3579_v10  ;;  %v10806_v10 = vld [vmem:[%s21399_s5 + $0x268] sm:$0xf0]  ;;  %v13815_v60 = vld [vmem:[%s21399_s5 + $0x2e4] sm:$0xf]  ;;  %4782 = vmatpush.bf16.msrb.mxu3 %v10881_v25  ;;  %v10772_v14 = vld [vmem:[%s21399_s5 + $0x220] sm:$0xf] }
 0x4c1   : > { %v10809_v8 = vor.u32 %v13799_v42, %v10806_v10  ;;  %4696 = vmatpush.bf16.msra.mxu0 %v10805_v1  ;;  %v13792_v49 = vld [vmem:[%s21399_s5 + $0x224] sm:$0xf0]  ;;  %v10836_v1 = vld [vmem:[%s21399_s5 + $0x2a0] sm:$0xf]  ;;  %v13791_v10 = vld [vmem:[%s21399_s5 + $0x224] sm:$0xf] }
 0x4c2   : > { %v3619_v46 = vunpack.c.l.b16 %v3596_v26  ;;  %v3620_v52 = vunpack.c.h.b16 %v3596_v26  ;;  %v10796_v26 = vld [vmem:[%s21399_s5 + $0x250] sm:$0xf]  ;;  %v13808_v42 = vld [vmem:[%s21399_s5 + $0x2a4] sm:$0xf0] }
 0x4c4   : > { %v3635_v20 = vpack.c.b16 %v3619_v46, %v3619_v46  ;;  %v3636_v0 = vpack.c.b16 %v3620_v52, %v3620_v52  ;;  %v17234_v11 = vpack.c.b16 %v3619_v46, %v3617_v24  ;;  %v17236_v59 = vpack.c.b16 %v3620_v52, %v3618_v34  ;;  %v13798_v46 = vld [vmem:[%s21399_s5 + $0x254] sm:$0xf0] }
 0x4c5   : > { %v10873_v52 = vor.u32 %v13815_v60, %v10870_v55  ;;  %v10797_v28 = vor.u32 %v13798_v46, %v10796_v26  ;;  %v10774_v60 = vld [vmem:[%s21399_s5 + $0x228] sm:$0xf0]  ;;  %v13807_v26 = vld [vmem:[%s21399_s5 + $0x2a4] sm:$0xf] }
 0x4c6   : > { %v3736_v57 = vshrl.u32 %v3635_v20, 16  ;;  %v3743_v62 = vshrl.u32 %v3636_v0, 16  ;;  %v3739_v38 = vshll.u32 %v3635_v20, 16  ;;  %v3746_v12 = vshll.u32 %v3636_v0, 16  ;;  %v10798_v20 = vld [vmem:[%s21399_s5 + $0x258] sm:$0xf0] }
 0x4c7   : > { %v13813_v0 = vld [vmem:[%s21399_s5 + $0x2d4] sm:$0xf]  ;;  %v10801_v41 = vor.u32 %v13797_v17, %v10798_v20  ;;  %4783 = vmatpush.bf16.msrb.mxu3 %v10873_v52  ;;  %4697 = vmatpush.bf16.msra.mxu0 %v10797_v28  ;;  %v10777_v55 = vor.u32 %v13791_v10, %v10774_v60  ;;  %v10838_v46 = vld [vmem:[%s21399_s5 + $0x2a8] sm:$0xf0]  ;;  %v10764_v52 = vld [vmem:[%s21399_s5 + $0x210] sm:$0xf] }
 0x4c8   : > { %v3738_v36 = vrot.slane %v3736_v57, 7  ;;  %v3745_v61 = vrot.slane %v3743_v62, 7  ;;  %v10861_v57 = vor.u32 %v13814_v39, %v10860_v6  ;;  %v10865_v62 = vor.u32 %v13813_v0, %v10862_v63  ;;  %v13790_v39 = vld [vmem:[%s21399_s5 + $0x214] sm:$0xf0]  ;;  %v10828_v17 = vld [vmem:[%s21399_s5 + $0x290] sm:$0xf] }
 0x4c9   : > { %v10841_v6 = vor.u32 %v13807_v26, %v10838_v46  ;;  %v13806_v28 = vld [vmem:[%s21399_s5 + $0x294] sm:$0xf0]  ;;  %v10765_v20 = vor.u32 %v13790_v39, %v10764_v52  ;;  %v13789_v63 = vld [vmem:[%s21399_s5 + $0x214] sm:$0xf] }
 0x4ca   : > { %v3741_v33 = vor.u32 %v3739_v38, %v3738_v36  ;;  %v3748_v54 = vor.u32 %v3746_v12, %v3745_v61  ;;  %v10788_v61 = vld [vmem:[%s21399_s5 + $0x240] sm:$0xf]  ;;  %v13796_v12 = vld [vmem:[%s21399_s5 + $0x244] sm:$0xf0]  ;;  %v10829_v0 = vor.u32 %v13806_v28, %v10828_v17 }
 0x4cb   : > { %4784 = vmatpush.bf16.msrb.mxu3 %v10865_v62 }
 0x4cc   : > { %v3779_v30 = vsel %vm14828_vm3, 0, %v3741_v33  ;;  %v3780_v24 = vsel %vm14828_vm3, 0, %v3748_v54  ;;  %v10852_v33 = vld [vmem:[%s21399_s5 + $0x2c0] sm:$0xf]  ;;  %v10789_v54 = vor.u32 %v13796_v12, %v10788_v61  ;;  %v13788_v12 = vld [vmem:[%s21399_s5 + $0x204] sm:$0xf0] }
 0x4cd   : > { %v3811_v9 = vunpack.c.l.b16 %v3779_v30  ;;  %v3812_v34 = vunpack.c.l.b16 %v3780_v24  ;;  %v13795_v30 = vld [vmem:[%s21399_s5 + $0x244] sm:$0xf]  ;;  %v10790_v24 = vld [vmem:[%s21399_s5 + $0x248] sm:$0xf0]  ;;  %v10756_v61 = vld [vmem:[%s21399_s5 + $0x200] sm:$0xf] }
 0x4ce   : > { %4378 = vmatmul.bf16.vlgmr.msrb.gmra.mxu0 %v16898_v40  ;;  %4407 = vmatmul.bf16.vlgmr.msrb.gmra.mxu1 %v16900_v13 }
 0x4cf   : > { %4436 = vmatmul.bf16.vlgmr.msra.gmra.mxu2 %v16898_v40  ;;  %4465 = vmatmul.bf16.vlgmr.msra.gmra.mxu3 %v16900_v13  ;;  %v17259_v56 = vpack.c.b16 %v3811_v9, %v3809_v22  ;;  %v17261_v18 = vpack.c.b16 %v3812_v34, %v3810_v35  ;;  %v13818_v40 = vld [vmem:[%s21399_s5 + $0x2f4] sm:$0xf0]  ;;  %v13801_v13 = vld [vmem:[%s21399_s5 + $0x274] sm:$0xf]  ;;  %v10853_v22 = vor.u32 %v13812_v48, %v10852_v33  ;;  %v13811_v35 = vld [vmem:[%s21399_s5 + $0x2c4] sm:$0xf] }
 0x4d0   : > { %v10877_v15 = vor.u32 %v13818_v40, %v10876_v32  ;;  %v10817_v58 = vor.u32 %v13801_v13, %v10814_v19  ;;  %v10793_v9 = vor.u32 %v13795_v30, %v10790_v24  ;;  %v10854_v34 = vld [vmem:[%s21399_s5 + $0x2c8] sm:$0xf0]  ;;  %v13794_v32 = vld [vmem:[%s21399_s5 + $0x234] sm:$0xf0]  ;;  %4698 = vmatpush.bf16.msra.mxu0 %v10789_v54  ;;  %v10782_v13 = vld [vmem:[%s21399_s5 + $0x238] sm:$0xf0]  ;;  %v10757_v54 = vor.u32 %v13788_v12, %v10756_v61 }
 0x4d1   : > { %v10857_v43 = vor.u32 %v13811_v35, %v10854_v34  ;;  %v10781_v40 = vor.u32 %v13794_v32, %v10780_v21  ;;  %v10820_v33 = vld [vmem:[%s21399_s5 + $0x280] sm:$0xf]  ;;  %v13804_v48 = vld [vmem:[%s21399_s5 + $0x284] sm:$0xf0]  ;;  %v13787_v30 = vld [vmem:[%s21399_s5 + $0x204] sm:$0xf] }
 0x4d2   : > { %4724 = vmatpush.bf16.msra.mxu1 %v10877_v15  ;;  %4753 = vmatpush.bf16.msrb.mxu2 %v10817_v58  ;;  %v13809_v58 = vld [vmem:[%s21399_s5 + $0x2b4] sm:$0xf]  ;;  %v10758_v24 = vld [vmem:[%s21399_s5 + $0x208] sm:$0xf0]  ;;  %v13803_v35 = vld [vmem:[%s21399_s5 + $0x284] sm:$0xf] }
 0x4d3   : > { %4785 = vmatpush.bf16.msrb.mxu3 %v10857_v43  ;;  %v10849_v31 = vor.u32 %v13809_v58, %v10846_v3  ;;  %v10822_v34 = vld [vmem:[%s21399_s5 + $0x288] sm:$0xf0] }
 0x4d4   : > { %4699 = vmatpush.bf16.msra.mxu0 %v10781_v40  ;;  %v10825_v43 = vor.u32 %v13803_v35, %v10822_v34 }
 0x4d6   : > { %4725 = vmatpush.bf16.msra.mxu1 %v10869_v45  ;;  %4754 = vmatpush.bf16.msrb.mxu2 %v10809_v8  ;;  %v10773_v45 = vor.u32 %v13792_v49, %v10772_v14  ;;  %v10837_v8 = vor.u32 %v13808_v42, %v10836_v1 }
 0x4d7   : > { %4786 = vmatpush.bf16.msrb.mxu3 %v10849_v31 }
 0x4d8   : > { %4700 = vmatpush.bf16.msra.mxu0 %v10773_v45 }
 0x4da   : > { %4726 = vmatpush.bf16.msra.mxu1 %v10861_v57  ;;  %4755 = vmatpush.bf16.msrb.mxu2 %v10801_v41  ;;  %v10766_v57 = vld [vmem:[%s21399_s5 + $0x218] sm:$0xf0]  ;;  %v13805_v41 = vld [vmem:[%s21399_s5 + $0x294] sm:$0xf] }
 0x4db   : > { %v4087_v36 = vpop.f32.mrf.mxu0  ;;  %v4116_v38 = vpop.f32.mrf.mxu1  ;;  %4787 = vmatpush.bf16.msrb.mxu3 %v10841_v6  ;;  %v10769_v62 = vor.u32 %v13789_v63, %v10766_v57 }
 0x4dc   : > { %v17335_v37 = vadd.f32 %v4116_v38, %v4087_v36  ;;  %v10830_v36 = vld [vmem:[%s21399_s5 + $0x298] sm:$0xf0]  ;;  %4701 = vmatpush.bf16.msra.mxu0 %v10765_v20 }
 0x4dd   : > { %v10833_v38 = vor.u32 %v13805_v41, %v10830_v36 }
 0x4de   : > { %4383 = vmatmul.bf16.gmra.mxu0 %v16952_v5  ;;  %4412 = vmatmul.bf16.gmra.mxu1 %v16954_v53 }
 0x4df   : > { %4441 = vmatmul.bf16.gmra.mxu2 %v16952_v5  ;;  %4470 = vmatmul.bf16.gmra.mxu3 %v16954_v53  ;;  %v13810_v5 = vld [vmem:[%s21399_s5 + $0x2b4] sm:$0xf0]  ;;  %v13793_v53 = vld [vmem:[%s21399_s5 + $0x234] sm:$0xf] }
 0x4e0   : > { %4727 = vmatpush.bf16.msra.mxu1 %v10853_v22  ;;  %4756 = vmatpush.bf16.msrb.mxu2 %v10793_v9  ;;  %v10845_v19 = vor.u32 %v13810_v5, %v10844_v23  ;;  %v10785_v15 = vor.u32 %v13793_v53, %v10782_v13  ;;  %v10821_v22 = vor.u32 %v13804_v48, %v10820_v33 }
 0x4e1   : > { %4788 = vmatpush.bf16.msrb.mxu3 %v10833_v38  ;;  %v10761_v9 = vor.u32 %v13787_v30, %v10758_v24  ;;  %4702 = vmatpush.bf16.msra.mxu0 %v10757_v54 }
 0x4e2   : > { %v4145_v7 = vpop.f32.mrf.mxu2  ;;  %v4174_v25 = vpop.f32.mrf.mxu3 }
 0x4e3   : > { %v17380_v47 = vadd.f32 %v4174_v25, %v4145_v7  ;;  %v17458_v21 = vpop.f32.mrf.mxu0  ;;  %v17460_v32 = vpop.f32.mrf.mxu1 }
 0x4e4   : > { %4728 = vmatpush.bf16.msra.mxu1 %v10845_v19  ;;  %4757 = vmatpush.bf16.msrb.mxu2 %v10785_v15 }
 0x4e5   : > { %4789 = vmatpush.bf16.msrb.mxu3 %v10825_v43 }
 0x4e8   : > { %4729 = vmatpush.bf16.msra.mxu1 %v10837_v8  ;;  %4758 = vmatpush.bf16.msrb.mxu2 %v10777_v55 }
 0x4ea   : > { %v17462_v23 = vpop.f32.mrf.mxu2  ;;  %v17464_v40 = vpop.f32.mrf.mxu3 }
 0x4ec   : > { %4730 = vmatpush.bf16.msra.mxu1 %v10829_v0  ;;  %4759 = vmatpush.bf16.msrb.mxu2 %v10769_v62 }
 0x4ee   : > { %4388 = vmatmul.bf16.gmra.mxu0 %v17225_v29  ;;  %4417 = vmatmul.bf16.gmra.mxu1 %v17227_v16 }
 0x4ef   : > { %4446 = vmatmul.bf16.gmra.mxu2 %v17225_v29  ;;  %4475 = vmatmul.bf16.gmra.mxu3 %v17227_v16 }
 0x4f0   : > { %4731 = vmatpush.bf16.msra.mxu1 %v10821_v22  ;;  %4760 = vmatpush.bf16.msrb.mxu2 %v10761_v9 }
 0x4fb   : > { %v4092_v5 = vpop.f32.mrf.mxu0  ;;  %v4121_v53 = vpop.f32.mrf.mxu1 }
 0x4fc   : > { %v4122_v13 = vadd.f32 %v4121_v53, %v4092_v5 }
 0x4fe   : > { %4393 = vmatmul.bf16.gmra.mxu0 %v17259_v56  ;;  %4422 = vmatmul.bf16.gmra.mxu1 %v17261_v18 }
 0x4ff   : > { %4451 = vmatmul.bf16.gmra.mxu2 %v17259_v56  ;;  %4480 = vmatmul.bf16.gmra.mxu3 %v17261_v18 }
 0x502   : > { %v4150_v29 = vpop.f32.mrf.mxu2  ;;  %v4179_v16 = vpop.f32.mrf.mxu3 }
 0x503   : > { %v4180_v19 = vadd.f32 %v4179_v16, %v4150_v29  ;;  %v17474_v15 = vpop.f32.mrf.mxu0  ;;  %v17476_v58 = vpop.f32.mrf.mxu1 }
 0x50a   : > { %v17478_v3 = vpop.f32.mrf.mxu2  ;;  %v17480_v56 = vpop.f32.mrf.mxu3 }
 0x50e   : > { %4703 = vmatmul.bf16.vlgmr.msra.gmra.mxu0 %v16874_v50  ;;  %4732 = vmatmul.bf16.vlgmr.msra.gmra.mxu1 %v16877_v51 }
 0x50f   : > { %4761 = vmatmul.bf16.vlgmr.msrb.gmra.mxu2 %v16874_v50  ;;  %4790 = vmatmul.bf16.vlgmr.msrb.gmra.mxu3 %v16877_v51 }
 0x51b   : > { %v4097_v18 = vpop.f32.mrf.mxu0  ;;  %v4126_v31 = vpop.f32.mrf.mxu1 }
 0x51c   : > { %v4127_v7 = vadd.f32 %v4126_v31, %v4097_v18 }
 0x51e   : > { %4708 = vmatmul.bf16.gmra.mxu0 %v16930_v27  ;;  %4737 = vmatmul.bf16.gmra.mxu1 %v16933_v2 }
 0x51f   : > { %4766 = vmatmul.bf16.gmra.mxu2 %v16930_v27  ;;  %4795 = vmatmul.bf16.gmra.mxu3 %v16933_v2 }
 0x522   : > { %v4155_v50 = vpop.f32.mrf.mxu2  ;;  %v4184_v51 = vpop.f32.mrf.mxu3 }
 0x523   : > { %v4185_v25 = vadd.f32 %v4184_v51, %v4155_v50  ;;  %v17490_v14 = vpop.f32.mrf.mxu0  ;;  %v17492_v49 = vpop.f32.mrf.mxu1 }
 0x52a   : > { %v17494_v1 = vpop.f32.mrf.mxu2  ;;  %v17496_v27 = vpop.f32.mrf.mxu3 }
 0x52e   : > { %4713 = vmatmul.bf16.gmra.mxu0 %v17147_v4  ;;  %4742 = vmatmul.bf16.gmra.mxu1 %v17150_v44 }
 0x52f   : > { %4771 = vmatmul.bf16.gmra.mxu2 %v17147_v4  ;;  %4800 = vmatmul.bf16.gmra.mxu3 %v17150_v44 }
 0x53b   : > { %v4102_v2 = vpop.f32.mrf.mxu0  ;;  %v4131_v45 = vpop.f32.mrf.mxu1 }
 0x53c   : > { %v4132_v42 = vadd.f32 %v4131_v45, %v4102_v2 }
 0x53e   : > { %4718 = vmatmul.bf16.gmra.mxu0 %v17234_v11  ;;  %4747 = vmatmul.bf16.gmra.mxu1 %v17236_v59 }
 0x53f   : > { %4776 = vmatmul.bf16.gmra.mxu2 %v17234_v11  ;;  %4805 = vmatmul.bf16.gmra.mxu3 %v17236_v59 }
 0x542   : > { %v4160_v4 = vpop.f32.mrf.mxu2  ;;  %v4189_v44 = vpop.f32.mrf.mxu3 }
 0x543   : > { %v4190_v10 = vadd.f32 %v4189_v44, %v4160_v4  ;;  %v17502_v60 = vpop.f32.mrf.mxu0  ;;  %v17504_v8 = vpop.f32.mrf.mxu1 }
 0x54a   : > { %v17506_v55 = vpop.f32.mrf.mxu2  ;;  %v17508_v26 = vpop.f32.mrf.mxu3 }
 0x54b   : > { %v4379_v46 = vpop.f32.mrf.mxu0  ;;  %v4408_v52 = vpop.f32.mrf.mxu1 }
 0x54c   : > { %v4380_v6 = vadd.f32 %v4379_v46, %v17335_v37 }
 0x54e   : > { %v17511_v39 = vadd.f32 %v4408_v52, %v4380_v6  ;;  %v11076_v6 = vld [vmem:[%s21401_s7 + $0x2e0] sm:$0xf] }
 0x552   : > { %v4437_v11 = vpop.f32.mrf.mxu2  ;;  %v4466_v17 = vpop.f32.mrf.mxu3 }
 0x553   : > { %v4438_v59 = vadd.f32 %v4437_v11, %v17380_v47  ;;  %v17514_v28 = vpop.f32.mrf.mxu0  ;;  %v17516_v20 = vpop.f32.mrf.mxu1 }
 0x555   : > { %v17518_v0 = vadd.f32 %v4466_v17, %v4438_v59 }
 0x55a   : > { %v17520_v63 = vpop.f32.mrf.mxu2  ;;  %v17522_v57 = vpop.f32.mrf.mxu3 }
 0x55b   : > { %v4384_v41 = vpop.f32.mrf.mxu0  ;;  %v4413_v62 = vpop.f32.mrf.mxu1 }
 0x55c   : > { %v4385_v36 = vadd.f32 %v4384_v41, %v4122_v13  ;;  %v13945_v41 = vld [vmem:[%s21401_s7 + $0x3ec] sm:$0xf0] }
 0x55e   : > { %v17524_v37 = vadd.f32 %v4413_v62, %v4385_v36  ;;  %v13911_v62 = vld [vmem:[%s21401_s7 + $0x2e4] sm:$0xf]  ;;  %v11078_v36 = vld [vmem:[%s21401_s7 + $0x2f0] sm:$0xf0] }
 0x562   : > { %v4442_v38 = vpop.f32.mrf.mxu2  ;;  %v4471_v61 = vpop.f32.mrf.mxu3 }
 0x563   : > { %v4443_v12 = vadd.f32 %v4442_v38, %v4180_v19  ;;  %v17526_v33 = vpop.f32.mrf.mxu0  ;;  %v17528_v47 = vpop.f32.mrf.mxu1 }
 0x565   : > { %v17530_v54 = vadd.f32 %v4471_v61, %v4443_v12  ;;  %v11081_v61 = vor.u32 %v13911_v62, %v11078_v36  ;;  %v13943_v12 = vld [vmem:[%s21401_s7 + $0x3e4] sm:$0xf] }
 0x567   : > { %5443 = vmatpush.bf16.msra.mxu2 %v11081_v61  ;;  %v13905_v61 = vld [vmem:[%s21401_s7 + $0x2ac] sm:$0xf0] }
 0x56a   : > { %v17532_v48 = vpop.f32.mrf.mxu2  ;;  %v17534_v30 = vpop.f32.mrf.mxu3 }
 0x56b   : > { %v4389_v24 = vpop.f32.mrf.mxu0  ;;  %v4418_v22 = vpop.f32.mrf.mxu1 }
 0x56c   : > { %v4390_v9 = vadd.f32 %v4389_v24, %v4127_v7  ;;  %v11206_v24 = vld [vmem:[%s21401_s7 + $0x3f0] sm:$0xf0] }
 0x56e   : > { %v17536_v35 = vadd.f32 %v4418_v22, %v4390_v9  ;;  %v4827_v9 = vld [vmem:[%s21400_s6] sm:$0x3] }
 0x56f   : > { %v17614_v36 = vperm.slane %v4827_v9, 1 }
 0x572   : > { %v4447_v34 = vpop.f32.mrf.mxu2  ;;  %v4476_v43 = vpop.f32.mrf.mxu3 }
 0x573   : > { %v4448_v5 = vadd.f32 %v4447_v34, %v4185_v25  ;;  %v17538_v53 = vpop.f32.mrf.mxu0  ;;  %v17540_v13 = vpop.f32.mrf.mxu1  ;;  %v11209_v34 = vor.u32 %v13943_v12, %v11206_v24 }
 0x575   : > { %v17542_v29 = vadd.f32 %v4476_v43, %v4448_v5  ;;  %v11060_v43 = vld [vmem:[%s21401_s7 + $0x2c0] sm:$0xf]  ;;  %v13909_v5 = vld [vmem:[%s21401_s7 + $0x2cc] sm:$0xf0]  ;;  %5456 = vmatpush.bf16.msra.mxu3 %v11209_v34 }
 0x576   : > { %v13937_v34 = vld [vmem:[%s21401_s7 + $0x3ac] sm:$0xf0] }
 0x57a   : > { %v17544_v16 = vpop.f32.mrf.mxu2  ;;  %v17546_v19 = vpop.f32.mrf.mxu3 }
 0x57b   : > { %v4394_v18 = vpop.f32.mrf.mxu0  ;;  %v4423_v31 = vpop.f32.mrf.mxu1 }
 0x57c   : > { %v4395_v50 = vadd.f32 %v4394_v18, %v4132_v42  ;;  %v13913_v42 = vld [vmem:[%s21401_s7 + $0x2ec] sm:$0xf0]  ;;  %v11188_v18 = vld [vmem:[%s21401_s7 + $0x3c0] sm:$0xf] }
 0x57d   : > { %v11077_v59 = vor.u32 %v13913_v42, %v11076_v6  ;;  %v13939_v42 = vld [vmem:[%s21401_s7 + $0x3c4] sm:$0xf] }
 0x57e   : > { %v17548_v51 = vadd.f32 %v4423_v31, %v4395_v50  ;;  %v11061_v31 = vor.u32 %v13909_v5, %v11060_v43  ;;  %v13941_v50 = vld [vmem:[%s21401_s7 + $0x3cc] sm:$0xf0]  ;;  %v13903_v43 = vld [vmem:[%s21401_s7 + $0x2a4] sm:$0xf] }
 0x57f   : > { %5417 = vmatpush.bf16.msrb.mxu0 %v11077_v59 }
 0x582   : > { %v4452_v7 = vpop.f32.mrf.mxu2  ;;  %v4481_v2 = vpop.f32.mrf.mxu3 }
 0x583   : > { %v4453_v45 = vadd.f32 %v4452_v7, %v4190_v10  ;;  %v17550_v4 = vpop.f32.mrf.mxu0  ;;  %v17552_v25 = vpop.f32.mrf.mxu1  ;;  %v11204_v10 = vld [vmem:[%s21401_s7 + $0x3e0] sm:$0xf]  ;;  %v13907_v7 = vld [vmem:[%s21401_s7 + $0x2c4] sm:$0xf]  ;;  %5418 = vmatpush.bf16.msrb.mxu0 %v11061_v31 }
 0x584   : > { %v11205_v38 = vor.u32 %v13945_v41, %v11204_v10  ;;  %v11190_v10 = vld [vmem:[%s21401_s7 + $0x3d0] sm:$0xf0]  ;;  %v13935_v31 = vld [vmem:[%s21401_s7 + $0x3a4] sm:$0xf] }
 0x585   : > { %v17554_v44 = vadd.f32 %v4481_v2, %v4453_v45  ;;  %v11062_v2 = vld [vmem:[%s21401_s7 + $0x2d0] sm:$0xf0]  ;;  %v11189_v45 = vor.u32 %v13941_v50, %v11188_v18  ;;  %v11193_v59 = vor.u32 %v13939_v42, %v11190_v10  ;;  %v11028_v42 = vld [vmem:[%s21401_s7 + $0x280] sm:$0xf]  ;;  %v13901_v10 = vld [vmem:[%s21401_s7 + $0x28c] sm:$0xf0] }
 0x586   : > { %5430 = vmatpush.bf16.msrb.mxu1 %v11205_v38  ;;  %v11065_v6 = vor.u32 %v13907_v7, %v11062_v2  ;;  %v11044_v38 = vld [vmem:[%s21401_s7 + $0x2a0] sm:$0xf]  ;;  %v11046_v18 = vld [vmem:[%s21401_s7 + $0x2b0] sm:$0xf0] }
 0x587   : > { %5457 = vmatpush.bf16.msra.mxu3 %v11193_v59  ;;  %v11174_v50 = vld [vmem:[%s21401_s7 + $0x3b0] sm:$0xf0]  ;;  %v11156_v59 = vld [vmem:[%s21401_s7 + $0x380] sm:$0xf] }
 0x588   : > { %5444 = vmatpush.bf16.msra.mxu2 %v11065_v6  ;;  %v11177_v6 = vor.u32 %v13935_v31, %v11174_v50  ;;  %v11012_v50 = vld [vmem:[%s21401_s7 + $0x260] sm:$0xf] }
 0x58a   : > { %v17556_v46 = vpop.f32.mrf.mxu2  ;;  %v17558_v52 = vpop.f32.mrf.mxu3  ;;  %5431 = vmatpush.bf16.msrb.mxu1 %v11189_v45  ;;  %v11049_v45 = vor.u32 %v13903_v43, %v11046_v18 }
 0x58b   : > { %v4704_v11 = vpop.f32.mrf.mxu0  ;;  %v4733_v17 = vpop.f32.mrf.mxu1  ;;  %5458 = vmatpush.bf16.msra.mxu3 %v11177_v6 }
 0x58c   : > { %v4734_v22 = vadd.f32 %v4733_v17, %v4704_v11  ;;  %v17612_v17 = vperm.slane %v4827_v9, 0  ;;  %v11172_v9 = vld [vmem:[%s21401_s7 + $0x3a0] sm:$0xf]  ;;  %5445 = vmatpush.bf16.msra.mxu2 %v11049_v45 }
 0x58d   : > { %v11173_v5 = vor.u32 %v13937_v34, %v11172_v9  ;;  %v11158_v9 = vld [vmem:[%s21401_s7 + $0x390] sm:$0xf0] }
 0x58e   : > { %v4811_v11 = vadd.f32 %v4734_v22, %v17511_v39  ;;  %v11045_v22 = vor.u32 %v13905_v61, %v11044_v38  ;;  %v11030_v38 = vld [vmem:[%s21401_s7 + $0x290] sm:$0xf0] }
 0x58f   : > { %5432 = vmatpush.bf16.msrb.mxu1 %v11173_v5 }
 0x590   : > { %v4833_v7 = vadd.f32 %v17612_v17, %v4811_v11  ;;  %5419 = vmatpush.bf16.msrb.mxu0 %v11045_v22  ;;  %v13931_v22 = vld [vmem:[%s21401_s7 + $0x384] sm:$0xf] }
 0x591   : > { %v11161_v5 = vor.u32 %v13931_v22, %v11158_v9  ;;  %v10996_v9 = vld [vmem:[%s21401_s7 + $0x240] sm:$0xf] }
 0x592   : > { %v4762_v41 = vpop.f32.mrf.mxu2  ;;  %v4791_v62 = vpop.f32.mrf.mxu3  ;;  %v4849_v34 = vmax.f32 %v4833_v7, 0.0 }
 0x593   : > { %v4792_v12 = vadd.f32 %v4791_v62, %v4762_v41  ;;  %v17622_v39 = vpop.f32.mrf.mxu0  ;;  %v17624_v24 = vpop.f32.mrf.mxu1  ;;  %v13933_v41 = vld [vmem:[%s21401_s7 + $0x38c] sm:$0xf0]  ;;  %v13899_v62 = vld [vmem:[%s21401_s7 + $0x284] sm:$0xf]  ;;  %5459 = vmatpush.bf16.msra.mxu3 %v11161_v5 }
 0x594   : > { %v11157_v61 = vor.u32 %v13933_v41, %v11156_v59  ;;  %v13929_v59 = vld [vmem:[%s21401_s7 + $0x36c] sm:$0xf0]  ;;  %v11014_v41 = vld [vmem:[%s21401_s7 + $0x270] sm:$0xf0] }
 0x595   : > { %v4812_v2 = vadd.f32 %v4792_v12, %v17518_v0  ;;  %v11029_v0 = vor.u32 %v13901_v10, %v11028_v42  ;;  %v11033_v12 = vor.u32 %v13899_v62, %v11030_v38  ;;  %v11140_v10 = vld [vmem:[%s21401_s7 + $0x360] sm:$0xf]  ;;  %v13927_v62 = vld [vmem:[%s21401_s7 + $0x364] sm:$0xf]  ;;  %v11142_v38 = vld [vmem:[%s21401_s7 + $0x370] sm:$0xf0] }
 0x596   : > { %5433 = vmatpush.bf16.msrb.mxu1 %v11157_v61  ;;  %v11145_v22 = vor.u32 %v13927_v62, %v11142_v38  ;;  %v10980_v38 = vld [vmem:[%s21401_s7 + $0x220] sm:$0xf] }
 0x597   : > { %v4834_v11 = vadd.f32 %v17614_v36, %v4812_v2  ;;  %5420 = vmatpush.bf16.msrb.mxu0 %v11029_v0  ;;  %v13897_v2 = vld [vmem:[%s21401_s7 + $0x26c] sm:$0xf0]  ;;  %5446 = vmatpush.bf16.msra.mxu2 %v11033_v12  ;;  %v11141_v0 = vor.u32 %v13929_v59, %v11140_v10  ;;  %v13923_v10 = vld [vmem:[%s21401_s7 + $0x344] sm:$0xf]  ;;  %v11126_v59 = vld [vmem:[%s21401_s7 + $0x350] sm:$0xf0] }
 0x598   : > { %v11013_v42 = vor.u32 %v13897_v2, %v11012_v50  ;;  %v13925_v50 = vld [vmem:[%s21401_s7 + $0x34c] sm:$0xf0]  ;;  %v13891_v2 = vld [vmem:[%s21401_s7 + $0x244] sm:$0xf]  ;;  %5460 = vmatpush.bf16.msra.mxu3 %v11145_v22 }
 0x599   : > { %v4850_v43 = vmax.f32 %v4834_v11, 0.0  ;;  %v13895_v11 = vld [vmem:[%s21401_s7 + $0x264] sm:$0xf] }
 0x59a   : > { %v17671_v18 = vpop.f32.mrf.mxu2  ;;  %v17673_v31 = vpop.f32.mrf.mxu3  ;;  %v11017_v12 = vor.u32 %v13895_v11, %v11014_v41  ;;  %5434 = vmatpush.bf16.msrb.mxu1 %v11141_v0  ;;  %v11129_v0 = vor.u32 %v13923_v10, %v11126_v59 }
 0x59b   : > { %v17681_v45 = vpack.c.bf16 %v4850_v43, %v4849_v34  ;;  %v4709_v6 = vpop.f32.mrf.mxu0  ;;  %v4738_v7 = vpop.f32.mrf.mxu1  ;;  %5421 = vmatpush.bf16.msrb.mxu0 %v11013_v42  ;;  %v13893_v34 = vld [vmem:[%s21401_s7 + $0x24c] sm:$0xf0]  ;;  %v11124_v43 = vld [vmem:[%s21401_s7 + $0x340] sm:$0xf] }
 0x59c   : > { %v4739_v61 = vadd.f32 %v4738_v7, %v4709_v6  ;;  %5447 = vmatpush.bf16.msra.mxu2 %v11017_v12  ;;  %v10997_v5 = vor.u32 %v13893_v34, %v10996_v9  ;;  %v10998_v6 = vld [vmem:[%s21401_s7 + $0x250] sm:$0xf0]  ;;  %v11125_v7 = vor.u32 %v13925_v50, %v11124_v43  ;;  %v13889_v12 = vld [vmem:[%s21401_s7 + $0x22c] sm:$0xf0]  ;;  %5461 = vmatpush.bf16.msra.mxu3 %v11129_v0 }
 0x59d   : > { %v11001_v42 = vor.u32 %v13891_v2, %v10998_v6  ;;  %v13921_v43 = vld [vmem:[%s21401_s7 + $0x32c] sm:$0xf0]  ;;  %v10982_v2 = vld [vmem:[%s21401_s7 + $0x230] sm:$0xf0]  ;;  %v13919_v6 = vld [vmem:[%s21401_s7 + $0x324] sm:$0xf] }
 0x59e   : > { %v4815_v11 = vadd.f32 %v4739_v61, %v17524_v37  ;;  %5435 = vmatpush.bf16.msrb.mxu1 %v11125_v7  ;;  %v10981_v37 = vor.u32 %v13889_v12, %v10980_v38  ;;  %v11108_v61 = vld [vmem:[%s21401_s7 + $0x320] sm:$0xf]  ;;  %v11110_v7 = vld [vmem:[%s21401_s7 + $0x330] sm:$0xf0]  ;;  %v13917_v12 = vld [vmem:[%s21401_s7 + $0x30c] sm:$0xf0] }
 0x59f   : > { %5422 = vmatpush.bf16.msrb.mxu0 %v10997_v5  ;;  %v13887_v5 = vld [vmem:[%s21401_s7 + $0x224] sm:$0xf]  ;;  %v11109_v50 = vor.u32 %v13921_v43, %v11108_v61  ;;  %v11113_v0 = vor.u32 %v13919_v6, %v11110_v7  ;;  %v11092_v38 = vld [vmem:[%s21401_s7 + $0x300] sm:$0xf] }
 0x5a0   : > { %5448 = vmatpush.bf16.msra.mxu2 %v11001_v42  ;;  %v4837_v42 = vadd.f32 %v17612_v17, %v4815_v11  ;;  %v10985_v59 = vor.u32 %v13887_v5, %v10982_v2  ;;  %v11093_v61 = vor.u32 %v13917_v12, %v11092_v38  ;;  %v13915_v5 = vld [vmem:[%s21401_s7 + $0x304] sm:$0xf]  ;;  %v11084_v2 = vld [vmem:[%s21401_s7 + $0x2e8] sm:$0xf] }
 0x5a1   : > { %5462 = vmatpush.bf16.msra.mxu3 %v11113_v0  ;;  %v11212_v0 = vld [vmem:[%s21401_s7 + $0x3e8] sm:$0xf] }
 0x5a2   : > { %v4767_v41 = vpop.f32.mrf.mxu2  ;;  %v4796_v62 = vpop.f32.mrf.mxu3  ;;  %5436 = vmatpush.bf16.msrb.mxu1 %v11109_v50  ;;  %v11094_v50 = vld [vmem:[%s21401_s7 + $0x310] sm:$0xf0]  ;;  %v4853_v6 = vmax.f32 %v4837_v42, 0.0  ;;  %v13946_v42 = vld [vmem:[%s21401_s7 + $0x3f4] sm:$0xf0] }
 0x5a3   : > { %v4797_v22 = vadd.f32 %v4796_v62, %v4767_v41  ;;  %v17732_v9 = vpop.f32.mrf.mxu0  ;;  %v17734_v34 = vpop.f32.mrf.mxu1  ;;  %5423 = vmatpush.bf16.msrb.mxu0 %v10981_v37  ;;  %v10964_v41 = vld [vmem:[%s21401_s7 + $0x200] sm:$0xf]  ;;  %v13885_v62 = vld [vmem:[%s21401_s7 + $0x20c] sm:$0xf0]  ;;  %v10966_v37 = vld [vmem:[%s21401_s7 + $0x210] sm:$0xf0] }
 0x5a4   : > { %5449 = vmatpush.bf16.msra.mxu2 %v10985_v59  ;;  %v13914_v59 = vld [vmem:[%s21401_s7 + $0x2f4] sm:$0xf0] }
 0x5a5   : > { %v4816_v10 = vadd.f32 %v4797_v22, %v17530_v54  ;;  %v10965_v54 = vor.u32 %v13885_v62, %v10964_v41  ;;  %v13883_v22 = vld [vmem:[%s21401_s7 + $0x204] sm:$0xf]  ;;  %v11085_v38 = vor.u32 %v13914_v59, %v11084_v2  ;;  %v4177_v2 = vadd.f32 %v17464_v40, %v17462_v23  ;;  %v13910_v59 = vld [vmem:[%s21401_s7 + $0x2d4] sm:$0xf0] }
 0x5a6   : > { %v10969_v43 = vor.u32 %v13883_v22, %v10966_v37  ;;  %5437 = vmatpush.bf16.msrb.mxu1 %v11093_v61  ;;  %v11213_v37 = vor.u32 %v13946_v42, %v11212_v0  ;;  %v13944_v61 = vld [vmem:[%s21401_s7 + $0x3ec] sm:$0xf]  ;;  %v11196_v0 = vld [vmem:[%s21401_s7 + $0x3c8] sm:$0xf]  ;;  %v4119_v42 = vadd.f32 %v17460_v32, %v17458_v21 }
 0x5a7   : > { %v4838_v11 = vadd.f32 %v17614_v36, %v4816_v10  ;;  %5424 = vmatpush.bf16.msrb.mxu0 %v10965_v54  ;;  %v11097_v10 = vor.u32 %v13915_v5, %v11094_v50  ;;  %v11086_v5 = vld [vmem:[%s21401_s7 + $0x2f8] sm:$0xf0] }
 0x5a8   : > { %5450 = vmatpush.bf16.msra.mxu2 %v10969_v43  ;;  %v11214_v50 = vld [vmem:[%s21401_s7 + $0x3f8] sm:$0xf0] }
 0x5a9   : > { %v4854_v7 = vmax.f32 %v4838_v11, 0.0  ;;  %v13912_v11 = vld [vmem:[%s21401_s7 + $0x2ec] sm:$0xf]  ;;  %5463 = vmatpush.bf16.msra.mxu3 %v11097_v10  ;;  %v11217_v43 = vor.u32 %v13944_v61, %v11214_v50  ;;  %v13942_v10 = vld [vmem:[%s21401_s7 + $0x3d4] sm:$0xf0] }
 0x5aa   : > { %v17790_v41 = vpop.f32.mrf.mxu2  ;;  %v17792_v62 = vpop.f32.mrf.mxu3  ;;  %5482 = vmatpush.bf16.msra.mxu1 %v11213_v37  ;;  %v11197_v21 = vor.u32 %v13942_v10, %v11196_v0  ;;  %v11052_v61 = vld [vmem:[%s21401_s7 + $0x2a8] sm:$0xf]  ;;  %v13904_v0 = vld [vmem:[%s21401_s7 + $0x2ac] sm:$0xf]  ;;  %v11054_v10 = vld [vmem:[%s21401_s7 + $0x2b8] sm:$0xf0] }
 0x5ab   : > { %v17800_v54 = vpack.c.bf16 %v4854_v7, %v4853_v6  ;;  %v4714_v12 = vpop.f32.mrf.mxu0  ;;  %v4743_v22 = vpop.f32.mrf.mxu1  ;;  %5469 = vmatpush.bf16.msra.mxu0 %v11085_v38  ;;  %v11089_v6 = vor.u32 %v13912_v11, %v11086_v5  ;;  %v11068_v7 = vld [vmem:[%s21401_s7 + $0x2c8] sm:$0xf]  ;;  %v13908_v38 = vld [vmem:[%s21401_s7 + $0x2cc] sm:$0xf]  ;;  %v11070_v11 = vld [vmem:[%s21401_s7 + $0x2d8] sm:$0xf0]  ;;  %v4440_v5 = vadd.f32 %v17520_v63, %v4177_v2  ;;  %v4124_v2 = vadd.f32 %v17476_v58, %v17474_v15 }
 0x5ac   : > { %v4744_v23 = vadd.f32 %v4743_v22, %v4714_v12  ;;  %v11069_v40 = vor.u32 %v13910_v59, %v11068_v7  ;;  %v11073_v32 = vor.u32 %v13908_v38, %v11070_v11  ;;  %v13940_v12 = vld [vmem:[%s21401_s7 + $0x3cc] sm:$0xf]  ;;  %v11198_v22 = vld [vmem:[%s21401_s7 + $0x3d8] sm:$0xf0]  ;;  %v13906_v63 = vld [vmem:[%s21401_s7 + $0x2b4] sm:$0xf0]  ;;  %v4182_v15 = vadd.f32 %v17480_v56, %v17478_v3 }
 0x5ad   : > { %5495 = vmatpush.bf16.msrb.mxu2 %v11089_v6  ;;  %5508 = vmatpush.bf16.msrb.mxu3 %v11217_v43  ;;  %v11201_v37 = vor.u32 %v13940_v12, %v11198_v22  ;;  %v11180_v50 = vld [vmem:[%s21401_s7 + $0x3a8] sm:$0xf]  ;;  %v4382_v6 = vadd.f32 %v17514_v28, %v4119_v42  ;;  %v4794_v43 = vadd.f32 %v17673_v31, %v17671_v18  ;;  %v13938_v59 = vld [vmem:[%s21401_s7 + $0x3b4] sm:$0xf0]  ;;  %v13936_v31 = vld [vmem:[%s21401_s7 + $0x3ac] sm:$0xf] }
 0x5ae   : > { %v11053_v7 = vor.u32 %v13906_v63, %v11052_v61  ;;  %v4129_v58 = vadd.f32 %v17492_v49, %v17490_v14  ;;  %v4819_v28 = vadd.f32 %v4744_v23, %v17536_v35  ;;  %5483 = vmatpush.bf16.msra.mxu1 %v11197_v21  ;;  %v11181_v18 = vor.u32 %v13938_v59, %v11180_v50  ;;  %v11182_v42 = vld [vmem:[%s21401_s7 + $0x3b8] sm:$0xf0]  ;;  %v13934_v22 = vld [vmem:[%s21401_s7 + $0x394] sm:$0xf0]  ;;  %v13932_v50 = vld [vmem:[%s21401_s7 + $0x38c] sm:$0xf] }
 0x5af   : > { %5470 = vmatpush.bf16.msra.mxu0 %v11069_v40  ;;  %v4469_v40 = vadd.f32 %v17522_v57, %v4440_v5  ;;  %v11057_v3 = vor.u32 %v13904_v0, %v11054_v10  ;;  %v11185_v56 = vor.u32 %v13936_v31, %v11182_v42  ;;  %v4187_v14 = vadd.f32 %v17496_v27, %v17494_v1  ;;  %v11036_v57 = vld [vmem:[%s21401_s7 + $0x288] sm:$0xf]  ;;  %v13902_v5 = vld [vmem:[%s21401_s7 + $0x294] sm:$0xf0]  ;;  %v11038_v61 = vld [vmem:[%s21401_s7 + $0x298] sm:$0xf0] }
 0x5b0   : > { %v4387_v49 = vadd.f32 %v17526_v33, %v4124_v2  ;;  %v4445_v35 = vadd.f32 %v17532_v48, %v4182_v15  ;;  %v4411_v1 = vadd.f32 %v17516_v20, %v4382_v6  ;;  %v4736_v27 = vadd.f32 %v17624_v24, %v17622_v39  ;;  %v11166_v2 = vld [vmem:[%s21401_s7 + $0x398] sm:$0xf0]  ;;  %v11020_v0 = vld [vmem:[%s21401_s7 + $0x268] sm:$0xf] }
 0x5b1   : > { %5496 = vmatpush.bf16.msrb.mxu2 %v11073_v32  ;;  %5509 = vmatpush.bf16.msrb.mxu3 %v11201_v37  ;;  %v11164_v32 = vld [vmem:[%s21401_s7 + $0x388] sm:$0xf]  ;;  %v4814_v33 = vadd.f32 %v4794_v43, %v4469_v40  ;;  %v11037_v48 = vor.u32 %v13902_v5, %v11036_v57  ;;  %v13900_v37 = vld [vmem:[%s21401_s7 + $0x28c] sm:$0xf]  ;;  %v4799_v20 = vadd.f32 %v17792_v62, %v17790_v41 }
 0x5b2   : > { %v4772_v38 = vpop.f32.mrf.mxu2  ;;  %v4801_v11 = vpop.f32.mrf.mxu3  ;;  %v4841_v39 = vadd.f32 %v17612_v17, %v4819_v28  ;;  %5484 = vmatpush.bf16.msra.mxu1 %v11181_v18  ;;  %v11165_v63 = vor.u32 %v13934_v22, %v11164_v32  ;;  %v4392_v6 = vadd.f32 %v17538_v53, %v4129_v58  ;;  %v11041_v43 = vor.u32 %v13900_v37, %v11038_v61  ;;  %v13898_v53 = vld [vmem:[%s21401_s7 + $0x274] sm:$0xf0]  ;;  %v11148_v10 = vld [vmem:[%s21401_s7 + $0x368] sm:$0xf]  ;;  %v13896_v28 = vld [vmem:[%s21401_s7 + $0x26c] sm:$0xf] }
 0x5b3   : > { %v4802_v23 = vadd.f32 %v4801_v11, %v4772_v38  ;;  %v4716_v21 = vpop.f32.mrf.mxu0  ;;  %v4745_v12 = vpop.f32.mrf.mxu1  ;;  %5471 = vmatpush.bf16.msra.mxu0 %v11053_v7  ;;  %v11169_v41 = vor.u32 %v13932_v50, %v11166_v2  ;;  %v4416_v62 = vadd.f32 %v17528_v47, %v4387_v49  ;;  %v4450_v7 = vadd.f32 %v17544_v16, %v4187_v14  ;;  %v13930_v58 = vld [vmem:[%s21401_s7 + $0x374] sm:$0xf0]  ;;  %v11022_v18 = vld [vmem:[%s21401_s7 + $0x278] sm:$0xf0]  ;;  %v13892_v22 = vld [vmem:[%s21401_s7 + $0x24c] sm:$0xf] }
 0x5b4   : > { %v4813_v15 = vadd.f32 %v4736_v27, %v4411_v1  ;;  %v17925_v47 = vadd.f32 %v17614_v36, %v4814_v33  ;;  %v11021_v16 = vor.u32 %v13898_v53, %v11020_v0  ;;  %v4857_v42 = vmax.f32 %v4841_v39, 0.0  ;;  %v11132_v33 = vld [vmem:[%s21401_s7 + $0x348] sm:$0xf]  ;;  %v11134_v39 = vld [vmem:[%s21401_s7 + $0x358] sm:$0xf0] }
 0x5b5   : > { %v4820_v24 = vadd.f32 %v4802_v23, %v17542_v29  ;;  %5497 = vmatpush.bf16.msrb.mxu2 %v11057_v3  ;;  %5510 = vmatpush.bf16.msrb.mxu3 %v11185_v56  ;;  %v4474_v29 = vadd.f32 %v17534_v30, %v4445_v35  ;;  %v4741_v30 = vadd.f32 %v17734_v34, %v17732_v9  ;;  %v13928_v9 = vld [vmem:[%s21401_s7 + $0x36c] sm:$0xf]  ;;  %v11150_v34 = vld [vmem:[%s21401_s7 + $0x378] sm:$0xf0]  ;;  %v11004_v35 = vld [vmem:[%s21401_s7 + $0x248] sm:$0xf] }
 0x5b6   : > { %5485 = vmatpush.bf16.msra.mxu1 %v11165_v63  ;;  %v11149_v38 = vor.u32 %v13930_v58, %v11148_v10  ;;  %v4421_v11 = vadd.f32 %v17540_v13, %v4392_v6  ;;  %v11025_v14 = vor.u32 %v13896_v28, %v11022_v18  ;;  %v11153_v49 = vor.u32 %v13928_v9, %v11150_v34  ;;  %v13894_v23 = vld [vmem:[%s21401_s7 + $0x254] sm:$0xf0]  ;;  %v10988_v6 = vld [vmem:[%s21401_s7 + $0x228] sm:$0xf]  ;;  %v10990_v10 = vld [vmem:[%s21401_s7 + $0x238] sm:$0xf0] }
 0x5b7   : > { %v4842_v59 = vadd.f32 %v17614_v36, %v4820_v24  ;;  %5472 = vmatpush.bf16.msra.mxu0 %v11037_v48  ;;  %v4818_v31 = vadd.f32 %v4799_v20, %v4474_v29  ;;  %v4479_v57 = vadd.f32 %v17546_v19, %v4450_v7  ;;  %v4746_v32 = vadd.f32 %v4745_v12, %v4716_v21  ;;  %v13926_v48 = vld [vmem:[%s21401_s7 + $0x354] sm:$0xf0]  ;;  %v11006_v12 = vld [vmem:[%s21401_s7 + $0x258] sm:$0xf0]  ;;  %v13924_v20 = vld [vmem:[%s21401_s7 + $0x34c] sm:$0xf] }
 0x5b8   : > { %v4835_v19 = vadd.f32 %v17612_v17, %v4813_v15  ;;  %v4817_v37 = vadd.f32 %v4741_v30, %v4416_v62  ;;  %v11005_v21 = vor.u32 %v13894_v23, %v11004_v35  ;;  %v4852_v24 = vmax.f32 %v17925_v47, 0.0  ;;  %v11116_v29 = vld [vmem:[%s21401_s7 + $0x328] sm:$0xf]  ;;  %v13922_v7 = vld [vmem:[%s21401_s7 + $0x334] sm:$0xf0] }
 0x5b9   : > { %v4858_v40 = vmax.f32 %v4842_v59, 0.0  ;;  %5498 = vmatpush.bf16.msrb.mxu2 %v11041_v43  ;;  %5511 = vmatpush.bf16.msrb.mxu3 %v11169_v41  ;;  %v4840_v63 = vadd.f32 %v17614_v36, %v4818_v31  ;;  %v11133_v2 = vor.u32 %v13926_v48, %v11132_v33  ;;  %v13890_v43 = vld [vmem:[%s21401_s7 + $0x234] sm:$0xf0]  ;;  %v11009_v41 = vor.u32 %v13892_v22, %v11006_v12  ;;  %v13888_v59 = vld [vmem:[%s21401_s7 + $0x22c] sm:$0xf] }
 0x5ba   : > { %v4774_v3 = vpop.f32.mrf.mxu2  ;;  %v4803_v56 = vpop.f32.mrf.mxu3  ;;  %5486 = vmatpush.bf16.msra.mxu1 %v11149_v38  ;;  %v11137_v62 = vor.u32 %v13924_v20, %v11134_v39  ;;  %v4134_v0 = vadd.f32 %v17504_v8, %v17502_v60  ;;  %v4821_v53 = vadd.f32 %v4746_v32, %v4421_v11  ;;  %v13920_v15 = vld [vmem:[%s21401_s7 + $0x32c] sm:$0xf]  ;;  %v11118_v47 = vld [vmem:[%s21401_s7 + $0x338] sm:$0xf0]  ;;  %v4192_v30 = vadd.f32 %v17508_v26, %v17506_v55  ;;  %v13886_v55 = vld [vmem:[%s21401_s7 + $0x214] sm:$0xf0] }
 0x5bb   : > { %v17952_v5 = vpack.c.bf16 %v4858_v40, %v4857_v42  ;;  %v4804_v13 = vadd.f32 %v4803_v56, %v4774_v3  ;;  %v4719_v1 = vpop.f32.mrf.mxu0  ;;  %v4748_v27 = vpop.f32.mrf.mxu1  ;;  %5473 = vmatpush.bf16.msra.mxu0 %v11021_v16  ;;  %v4839_v16 = vadd.f32 %v17612_v17, %v4817_v37  ;;  %v10989_v8 = vor.u32 %v13890_v43, %v10988_v6  ;;  %v10972_v42 = vld [vmem:[%s21401_s7 + $0x208] sm:$0xf]  ;;  %v13918_v3 = vld [vmem:[%s21401_s7 + $0x314] sm:$0xf0]  ;;  %v10974_v32 = vld [vmem:[%s21401_s7 + $0x218] sm:$0xf0] }
 0x5bc   : > { %v4749_v61 = vadd.f32 %v4748_v27, %v4719_v1  ;;  %v4851_v58 = vmax.f32 %v4835_v19, 0.0  ;;  %v4856_v28 = vmax.f32 %v4840_v63, 0.0  ;;  %v11117_v31 = vor.u32 %v13922_v7, %v11116_v29  ;;  %v11100_v11 = vld [vmem:[%s21401_s7 + $0x308] sm:$0xf]  ;;  %v11102_v1 = vld [vmem:[%s21401_s7 + $0x318] sm:$0xf0] }
 0x5bd   : > { %v4822_v50 = vadd.f32 %v4804_v13, %v4479_v57  ;;  %5499 = vmatpush.bf16.msrb.mxu2 %v11025_v14  ;;  %5512 = vmatpush.bf16.msrb.mxu3 %v11153_v49  ;;  %v4397_v26 = vadd.f32 %v17550_v4, %v4134_v0  ;;  %v10993_v9 = vor.u32 %v13888_v59, %v10990_v10  ;;  %v13884_v4 = vld [vmem:[%s21401_s7 + $0x20c] sm:$0xf]  ;;  %v4855_v27 = vmax.f32 %v4839_v16, 0.0 }
 0x5be   : > { %v4823_v60 = vadd.f32 %v4749_v61, %v17548_v51  ;;  %5487 = vmatpush.bf16.msra.mxu1 %v11133_v2  ;;  %v5010_v51 = vunpack.c.l.b16 %v17681_v45  ;;  %v11121_v34 = vor.u32 %v13920_v15, %v11118_v47  ;;  %v4455_v56 = vadd.f32 %v17556_v46, %v4192_v30  ;;  %v13916_v13 = vld [vmem:[%s21401_s7 + $0x30c] sm:$0xf] }
 0x5bf   : > { %5474 = vmatpush.bf16.msra.mxu0 %v11005_v21  ;;  %v4844_v18 = vadd.f32 %v17614_v36, %v4822_v50  ;;  %v18024_v14 = vpack.c.bf16 %v4852_v24, %v4851_v58  ;;  %v4843_v49 = vadd.f32 %v17612_v17, %v4821_v53  ;;  %v5011_v46 = vunpack.c.h.b16 %v17681_v45 }
 0x5c0   : > { %v4845_v33 = vadd.f32 %v17612_v17, %v4823_v60  ;;  %v10973_v48 = vor.u32 %v13886_v55, %v10972_v42  ;;  %v11101_v61 = vor.u32 %v13918_v3, %v11100_v11  ;;  %v18039_v21 = vunpack.i.l.s16 %v5010_v51 }
 0x5c1   : > { %5500 = vmatpush.bf16.msrb.mxu2 %v11009_v41  ;;  %5513 = vmatpush.bf16.msrb.mxu3 %v11137_v62  ;;  %v4860_v22 = vmax.f32 %v4844_v18, 0.0  ;;  %v4868_v12 = vpack.c.bf16 %v4856_v28, %v4855_v27  ;;  %v10977_v20 = vor.u32 %v13884_v4, %v10974_v32  ;;  %v11105_v39 = vor.u32 %v13916_v13, %v11102_v1 }
 0x5c2   : > { %v4777_v40 = vpop.f32.mrf.mxu2  ;;  %v4806_v38 = vpop.f32.mrf.mxu3  ;;  %5488 = vmatpush.bf16.msra.mxu1 %v11117_v31  ;;  %v4426_v45 = vadd.f32 %v17552_v25, %v4397_v26  ;;  %v5012_v24 = vunpack.c.l.b16 %v18024_v14  ;;  %v4859_v63 = vmax.f32 %v4843_v49, 0.0  ;;  %v4484_v2 = vadd.f32 %v17558_v52, %v4455_v56 }
 0x5c3   : > { %v4807_v35 = vadd.f32 %v4806_v38, %v4777_v40  ;;  %v4721_v23 = vpop.f32.mrf.mxu0  ;;  %v4750_v57 = vpop.f32.mrf.mxu1  ;;  %5475 = vmatpush.bf16.msra.mxu0 %v10989_v8  ;;  %v5015_v6 = vunpack.c.h.b16 %v17800_v54  ;;  %v4861_v41 = vmax.f32 %v4845_v33, 0.0  ;;  %v18047_v7 = vunpack.i.l.s16 %v5011_v46 }
 0x5c4   : > { %v4751_v37 = vadd.f32 %v4750_v57, %v4721_v23  ;;  %v4870_v43 = vpack.c.bf16 %v4860_v22, %v4859_v63  ;;  %v5013_v25 = vunpack.c.h.b16 %v18024_v14  ;;  %v5016_v59 = vunpack.c.l.b16 %v4868_v12 }
 0x5c5   : > { %v4824_v19 = vadd.f32 %v4807_v35, %v17554_v44  ;;  %5501 = vmatpush.bf16.msrb.mxu2 %v10993_v9  ;;  %5514 = vmatpush.bf16.msrb.mxu3 %v11121_v34  ;;  %v5014_v44 = vunpack.c.l.b16 %v17800_v54  ;;  %v5058_v52 = vrot.slane %v18039_v21, 1  ;;  %v18051_v10 = vunpack.i.l.s16 %v5012_v24 }
 0x5c6   : > { %v4825_v29 = vadd.f32 %v4751_v37, %v4426_v45  ;;  %5489 = vmatpush.bf16.msra.mxu1 %v11101_v61  ;;  %v5017_v54 = vunpack.c.h.b16 %v4868_v12  ;;  %v18055_v16 = vunpack.i.l.s16 %v5015_v6  ;;  %v5018_v60 = vunpack.c.l.b16 %v17952_v5  ;;  %v11460_v6 = vld [vmem:[%s21401_s7 + $0x1e0] sm:$0xf] }
 0x5c7   : > { %v4846_v50 = vadd.f32 %v17614_v36, %v4824_v19  ;;  %5476 = vmatpush.bf16.msra.mxu0 %v10973_v48  ;;  %v18053_v30 = vunpack.i.l.s16 %v5014_v44  ;;  %v5019_v8 = vunpack.c.h.b16 %v17952_v5  ;;  %v5020_v58 = vunpack.c.l.b16 %v4870_v43  ;;  %v13849_v44 = vld [vmem:[%s21401_s7 + $0xec] sm:$0xf0] }
 0x5c8   : > { %v5021_v28 = vunpack.c.h.b16 %v4870_v43  ;;  %v4847_v18 = vadd.f32 %v17612_v17, %v4825_v29  ;;  %v18060_v42 = vunpack.i.l.s16 %v5016_v59  ;;  %v5079_v51 = vrot.slane %v18047_v7, 1  ;;  %v13847_v59 = vld [vmem:[%s21401_s7 + $0xe4] sm:$0xf] }
 0x5c9   : > { %v4862_v62 = vmax.f32 %v4846_v50, 0.0  ;;  %5502 = vmatpush.bf16.msrb.mxu2 %v10977_v20  ;;  %5515 = vmatpush.bf16.msrb.mxu3 %v11105_v39  ;;  %v18063_v40 = vunpack.i.l.s16 %v5013_v25  ;;  %v18065_v38 = vunpack.i.l.s16 %v5017_v54  ;;  %v5060_v5 = vsel %vm5059_vm8, %v18051_v10, %v5058_v52  ;;  %v13881_v25 = vld [vmem:[%s21401_s7 + $0x1ec] sm:$0xf0]  ;;  %v11334_v52 = vld [vmem:[%s21401_s7 + $0xf0] sm:$0xf0] }
 0x5ca   : > { %v4779_v0 = vpop.f32.mrf.mxu2  ;;  %v4808_v53 = vpop.f32.mrf.mxu3  ;;  %v18070_v34 = vunpack.i.l.s16 %v5018_v60  ;;  %v18072_v17 = vunpack.i.l.s16 %v5019_v8  ;;  %v5061_v11 = vrot.slane %v18053_v30, 7  ;;  %v5081_v3 = vrot.slane %v18055_v16, 7  ;;  %v13879_v54 = vld [vmem:[%s21401_s7 + $0x1e4] sm:$0xf] }
 0x5cb   : > { %v4871_v15 = vpack.c.bf16 %v4862_v62, %v4861_v41  ;;  %v4809_v47 = vadd.f32 %v4808_v53, %v4779_v0  ;;  %v18076_v4 = vunpack.i.l.s16 %v5020_v58  ;;  %v18078_v56 = vunpack.i.l.s16 %v5021_v28 }
 0x5cc   : > { %v4863_v14 = vmax.f32 %v4847_v18, 0.0  ;;  %v5064_v23 = vrot.slane %v18060_v42, 6  ;;  %v5080_v32 = vsel %vm5059_vm8, %v18063_v40, %v5079_v51  ;;  %v5083_v13 = vrot.slane %v18065_v38, 6 }
 0x5cd   : > { %v4826_v31 = vadd.f32 %v4809_v47, %v4484_v2  ;;  %v5022_v55 = vunpack.c.l.b16 %v4871_v15  ;;  %v5023_v26 = vunpack.c.h.b16 %v4871_v15  ;;  %v5063_v1 = vsel %vm5062_vm9, %v5061_v11, %v5060_v5  ;;  %v11332_v2 = vld [vmem:[%s21401_s7 + $0xe0] sm:$0xf]  ;;  %v11462_v15 = vld [vmem:[%s21401_s7 + $0x1f0] sm:$0xf0]  ;;  %v13877_v5 = vld [vmem:[%s21401_s7 + $0x1cc] sm:$0xf0] }
 0x5ce   : > { %v5067_v46 = vrot.slane %v18070_v34, 5  ;;  %v5082_v27 = vsel %vm5062_vm9, %v5081_v3, %v5080_v32  ;;  %v5085_v33 = vrot.slane %v18072_v17, 5  ;;  %v5070_v19 = vrot.slane %v18076_v4, 4  ;;  %v13843_v11 = vld [vmem:[%s21401_s7 + $0xc4] sm:$0xf] }
 0x5cf   : > { %v4848_v9 = vadd.f32 %v17614_v36, %v4826_v31  ;;  %v18080_v35 = vunpack.i.l.s16 %v5022_v55  ;;  %v18082_v36 = vunpack.i.l.s16 %v5023_v26  ;;  %v5087_v37 = vrot.slane %v18078_v56, 4  ;;  %v11316_v31 = vld [vmem:[%s21401_s7 + $0xc0] sm:$0xf]  ;;  %v13845_v55 = vld [vmem:[%s21401_s7 + $0xcc] sm:$0xf0] }
 0x5d0   : > { %v5066_v61 = vsel %vm5065_vm10, %v5064_v23, %v5063_v1  ;;  %v5084_v24 = vsel %vm5065_vm10, %v5083_v13, %v5082_v27  ;;  %v11333_v28 = vor.u32 %v13849_v44, %v11332_v2  ;;  %v11461_v18 = vor.u32 %v13881_v25, %v11460_v6  ;;  %v11318_v3 = vld [vmem:[%s21401_s7 + $0xd0] sm:$0xf0]  ;;  %v11300_v32 = vld [vmem:[%s21401_s7 + $0xa0] sm:$0xf]  ;;  %v13841_v13 = vld [vmem:[%s21401_s7 + $0xac] sm:$0xf0] }
 0x5d1   : > { %v4864_v49 = vmax.f32 %v4848_v9, 0.0  ;;  %v5073_v12 = vrot.slane %v18080_v35, 3  ;;  %v5089_v20 = vrot.slane %v18082_v36, 3  ;;  %v5069_v63 = vsel %vm5068_vm11, %v5067_v46, %v5066_v61  ;;  %v11444_v9 = vld [vmem:[%s21401_s7 + $0x1c0] sm:$0xf] }
 0x5d2   : > { %v5086_v50 = vsel %vm5068_vm11, %v5085_v33, %v5084_v24  ;;  %v5072_v43 = vsel %vm5071_vm12, %v5070_v19, %v5069_v63  ;;  %v11337_v26 = vor.u32 %v13847_v59, %v11334_v52  ;;  %v11465_v51 = vor.u32 %v13879_v54, %v11462_v15  ;;  %v11428_v27 = vld [vmem:[%s21401_s7 + $0x1a0] sm:$0xf]  ;;  %v13873_v33 = vld [vmem:[%s21401_s7 + $0x1ac] sm:$0xf0]  ;;  %v13871_v19 = vld [vmem:[%s21401_s7 + $0x1a4] sm:$0xf] }
 0x5d3   : > { %v4872_v57 = vpack.c.bf16 %v4864_v49, %v4863_v14  ;;  %v5088_v62 = vsel %vm5071_vm12, %v5087_v37, %v5086_v50  ;;  %v5075_v0 = vsel %vm5074_vm13, %v5073_v12, %v5072_v43  ;;  %v13875_v14 = vld [vmem:[%s21401_s7 + $0x1c4] sm:$0xf]  ;;  %v11446_v49 = vld [vmem:[%s21401_s7 + $0x1d0] sm:$0xf0]  ;;  %v11317_v23 = vor.u32 %v13845_v55, %v11316_v31  ;;  %v13837_v24 = vld [vmem:[%s21401_s7 + $0x8c] sm:$0xf0] }
 0x5d4   : > { %v5090_v53 = vsel %vm5074_vm13, %v5089_v20, %v5088_v62  ;;  %v11321_v1 = vor.u32 %v13843_v11, %v11318_v3  ;;  %v11449_v46 = vor.u32 %v13875_v14, %v11446_v49  ;;  %v11430_v37 = vld [vmem:[%s21401_s7 + $0x1b0] sm:$0xf0]  ;;  %v11301_v61 = vor.u32 %v13841_v13, %v11300_v32  ;;  %v11284_v20 = vld [vmem:[%s21401_s7 + $0x80] sm:$0xf]  ;;  %v13869_v44 = vld [vmem:[%s21401_s7 + $0x18c] sm:$0xf0] }
 0x5d5   : > { %v5024_v48 = vunpack.c.l.b16 %v4872_v57  ;;  %v5025_v22 = vunpack.c.h.b16 %v4872_v57  ;;  %v11445_v57 = vor.u32 %v13877_v5, %v11444_v9  ;;  %v11429_v12 = vor.u32 %v13873_v33, %v11428_v27  ;;  %v11412_v2 = vld [vmem:[%s21401_s7 + $0x180] sm:$0xf]  ;;  %v13835_v6 = vld [vmem:[%s21401_s7 + $0x84] sm:$0xf]  ;;  %v11286_v43 = vld [vmem:[%s21401_s7 + $0x90] sm:$0xf0] }
 0x5d6   : > { %v11433_v50 = vor.u32 %v13871_v19, %v11430_v37  ;;  %v11414_v62 = vld [vmem:[%s21401_s7 + $0x190] sm:$0xf0]  ;;  %v11413_v25 = vor.u32 %v13869_v44, %v11412_v2  ;;  %v11268_v59 = vld [vmem:[%s21401_s7 + $0x60] sm:$0xf]  ;;  %v13865_v15 = vld [vmem:[%s21401_s7 + $0x16c] sm:$0xf0] }
 0x5d7   : > { %v18097_v39 = vunpack.i.l.s16 %v5024_v48  ;;  %v18099_v45 = vunpack.i.l.s16 %v5025_v22  ;;  %v13839_v48 = vld [vmem:[%s21401_s7 + $0xa4] sm:$0xf]  ;;  %v11302_v22 = vld [vmem:[%s21401_s7 + $0xb0] sm:$0xf0]  ;;  %v11396_v54 = vld [vmem:[%s21401_s7 + $0x160] sm:$0xf] }
 0x5d8   : > { %v11305_v63 = vor.u32 %v13839_v48, %v11302_v22  ;;  %v11397_v55 = vor.u32 %v13865_v15, %v11396_v54  ;;  %v5521_v9 = vrot.slane %v18051_v10, 7  ;;  %v11380_v3 = vld [vmem:[%s21401_s7 + $0x140] sm:$0xf]  ;;  %v13861_v14 = vld [vmem:[%s21401_s7 + $0x14c] sm:$0xf0]  ;;  %v5527_v22 = vrot.slane %v18070_v34, 4 }
 0x5d9   : > { %v5076_v41 = vrot.slane %v18097_v39, 2  ;;  %v5091_v29 = vrot.slane %v18099_v45, 2  ;;  %v13827_v49 = vld [vmem:[%s21401_s7 + $0x44] sm:$0xf]  ;;  %v11382_v32 = vld [vmem:[%s21401_s7 + $0x150] sm:$0xf0]  ;;  %v11381_v33 = vor.u32 %v13861_v14, %v11380_v3 }
 0x5da   : > { %v11236_v13 = vld [vmem:[%s21401_s7 + $0x20] sm:$0xf]  ;;  %v13825_v48 = vld [vmem:[%s21401_s7 + $0x2c] sm:$0xf0]  ;;  %v5529_v2 = vrot.slane %v18076_v4, 3  ;;  %v5537_v44 = vrot.slane %v18055_v16, 6 }
 0x5db   : > { %v5078_v47 = vsel %vm5077_vm14, %v5076_v41, %v5075_v0  ;;  %v5092_v60 = vsel %vm5077_vm14, %v5091_v29, %v5090_v53  ;;  %v13867_v41 = vld [vmem:[%s21401_s7 + $0x184] sm:$0xf]  ;;  %v11285_v29 = vor.u32 %v13837_v24, %v11284_v20  ;;  %v13833_v0 = vld [vmem:[%s21401_s7 + $0x6c] sm:$0xf0]  ;;  %v11289_v53 = vor.u32 %v13835_v6, %v11286_v43  ;;  %v11238_v20 = vld [vmem:[%s21401_s7 + $0x30] sm:$0xf0] }
 0x5dc   : > { %v18136_v8 = vpack.c.b16 %v5078_v47, %v5078_v47  ;;  %v18138_v58 = vpack.c.b16 %v5092_v60, %v5092_v60  ;;  %v11417_v52 = vor.u32 %v13867_v41, %v11414_v62  ;;  %v13831_v47 = vld [vmem:[%s21401_s7 + $0x64] sm:$0xf]  ;;  %v11270_v60 = vld [vmem:[%s21401_s7 + $0x70] sm:$0xf0]  ;;  %v11269_v31 = vor.u32 %v13833_v0, %v11268_v59  ;;  %v11220_v6 = vld [vmem:[%s21401_s7] sm:$0xf] }
 0x5dd   : > { %v11273_v5 = vor.u32 %v13831_v47, %v11270_v60  ;;  %v13855_v24 = vld [vmem:[%s21401_s7 + $0x124] sm:$0xf]  ;;  %v13821_v43 = vld [vmem:[%s21401_s7 + $0xc] sm:$0xf0]  ;;  %v11348_v41 = vld [vmem:[%s21401_s7 + $0x100] sm:$0xf] }
 0x5de   : > { %5425 = vmatmul.bf16.vlgmr.msrb.gmra.mxu0 %v18136_v8  ;;  %5438 = vmatmul.bf16.vlgmr.msrb.gmra.mxu1 %v18138_v58  ;;  %v13853_v62 = vld [vmem:[%s21401_s7 + $0x10c] sm:$0xf0]  ;;  %v5539_v0 = vrot.slane %v18065_v38, 5  ;;  %v13819_v54 = vld [vmem:[%s21401_s7 + $0x4] sm:$0xf]  ;;  %v5533_v14 = vrot.slane %v18097_v39, 1 }
 0x5df   : > { %5451 = vmatmul.bf16.vlgmr.msra.gmra.mxu2 %v18136_v8  ;;  %5464 = vmatmul.bf16.vlgmr.msra.gmra.mxu3 %v18138_v58  ;;  %v11222_v15 = vld [vmem:[%s21401_s7 + $0x10] sm:$0xf0]  ;;  %v13851_v47 = vld [vmem:[%s21401_s7 + $0x104] sm:$0xf] }
 0x5e0   : > { %5873 = vmatpush.bf16.msrb.mxu0 %v11333_v28  ;;  %5886 = vmatpush.bf16.msrb.mxu1 %v11461_v18  ;;  %v13863_v28 = vld [vmem:[%s21401_s7 + $0x164] sm:$0xf]  ;;  %v11398_v18 = vld [vmem:[%s21401_s7 + $0x170] sm:$0xf0] }
 0x5e1   : > { %5899 = vmatpush.bf16.msra.mxu2 %v11337_v26  ;;  %5912 = vmatpush.bf16.msra.mxu3 %v11465_v51  ;;  %v11252_v26 = vld [vmem:[%s21401_s7 + $0x40] sm:$0xf]  ;;  %v13829_v51 = vld [vmem:[%s21401_s7 + $0x4c] sm:$0xf0]  ;;  %v11401_v11 = vor.u32 %v13863_v28, %v11398_v18  ;;  %v5541_v28 = vrot.slane %v18072_v17, 4 }
 0x5e2   : > { %v11253_v27 = vor.u32 %v13829_v51, %v11252_v26  ;;  %v11340_v26 = vld [vmem:[%s21401_s7 + $0xe8] sm:$0xf] }
 0x5e4   : > { %5874 = vmatpush.bf16.msrb.mxu0 %v11317_v23  ;;  %5887 = vmatpush.bf16.msrb.mxu1 %v11445_v57  ;;  %v11254_v23 = vld [vmem:[%s21401_s7 + $0x50] sm:$0xf0]  ;;  %v13859_v57 = vld [vmem:[%s21401_s7 + $0x144] sm:$0xf] }
 0x5e5   : > { %5900 = vmatpush.bf16.msra.mxu2 %v11321_v1  ;;  %5913 = vmatpush.bf16.msra.mxu3 %v11449_v46  ;;  %v5523_v1 = vrot.slane %v18053_v30, 6  ;;  %v5535_v46 = vrot.slane %v18063_v40, 7  ;;  %v11257_v19 = vor.u32 %v13827_v49, %v11254_v23  ;;  %v11385_v37 = vor.u32 %v13859_v57, %v11382_v32  ;;  %v13882_v57 = vld [vmem:[%s21401_s7 + $0x1f4] sm:$0xf0]  ;;  %v13848_v32 = vld [vmem:[%s21401_s7 + $0xec] sm:$0xf] }
 0x5e6   : > { %v5545_v23 = vrot.slane %v18082_v36, 2 }
 0x5e7   : > { %v5536_v59 = vsel %vm5059_vm8, %v5535_v46, %v18047_v7  ;;  %v5547_v46 = vrot.slane %v18099_v45, 1 }
 0x5e8   : > { %5875 = vmatpush.bf16.msrb.mxu0 %v11301_v61  ;;  %5888 = vmatpush.bf16.msrb.mxu1 %v11429_v12  ;;  %v13857_v61 = vld [vmem:[%s21401_s7 + $0x12c] sm:$0xf0]  ;;  %v13823_v12 = vld [vmem:[%s21401_s7 + $0x24] sm:$0xf]  ;;  %v5538_v49 = vsel %vm5062_vm9, %v5537_v44, %v5536_v59  ;;  %v13876_v59 = vld [vmem:[%s21401_s7 + $0x1cc] sm:$0xf] }
 0x5e9   : > { %5901 = vmatpush.bf16.msra.mxu2 %v11305_v63  ;;  %5914 = vmatpush.bf16.msra.mxu3 %v11433_v50  ;;  %v11366_v63 = vld [vmem:[%s21401_s7 + $0x130] sm:$0xf0]  ;;  %v5522_v50 = vsel %vm5059_vm8, %v5521_v9, %v18039_v21  ;;  %v11241_v18 = vor.u32 %v13823_v12, %v11238_v20  ;;  %v5543_v9 = vrot.slane %v18078_v56, 3 }
 0x5ec   : > { %5876 = vmatpush.bf16.msrb.mxu0 %v11285_v29  ;;  %5889 = vmatpush.bf16.msrb.mxu1 %v11413_v25  ;;  %v5524_v29 = vsel %vm5062_vm9, %v5523_v1, %v5522_v50  ;;  %v5531_v25 = vrot.slane %v18080_v35, 2  ;;  %v5540_v1 = vsel %vm5065_vm10, %v5539_v0, %v5538_v49  ;;  %v11324_v50 = vld [vmem:[%s21401_s7 + $0xc8] sm:$0xf]  ;;  %v11454_v0 = vld [vmem:[%s21401_s7 + $0x1d8] sm:$0xf0] }
 0x5ed   : > { %5902 = vmatpush.bf16.msra.mxu2 %v11289_v53  ;;  %5915 = vmatpush.bf16.msra.mxu3 %v11417_v52  ;;  %v11237_v53 = vor.u32 %v13825_v48, %v11236_v13  ;;  %v11342_v48 = vld [vmem:[%s21401_s7 + $0xf8] sm:$0xf0]  ;;  %v13838_v49 = vld [vmem:[%s21401_s7 + $0x94] sm:$0xf0] }
 0x5ee   : > { %5477 = vmatmul.bf16.vlgmr.msra.gmra.mxu0 %v18136_v8  ;;  %5490 = vmatmul.bf16.vlgmr.msra.gmra.mxu1 %v18138_v58  ;;  %v11345_v44 = vor.u32 %v13848_v32, %v11342_v48  ;;  %v11420_v32 = vld [vmem:[%s21401_s7 + $0x188] sm:$0xf] }
 0x5ef   : > { %5503 = vmatmul.bf16.vlgmr.msrb.gmra.mxu2 %v18136_v8  ;;  %5516 = vmatmul.bf16.vlgmr.msrb.gmra.mxu3 %v18138_v58  ;;  %v11364_v8 = vld [vmem:[%s21401_s7 + $0x120] sm:$0xf]  ;;  %v5525_v58 = vrot.slane %v18060_v42, 5 }
 0x5f0   : > { %5877 = vmatpush.bf16.msrb.mxu0 %v11269_v31  ;;  %5890 = vmatpush.bf16.msrb.mxu1 %v11397_v55  ;;  %v11365_v52 = vor.u32 %v13857_v61, %v11364_v8  ;;  %v11369_v31 = vor.u32 %v13855_v24, %v11366_v63  ;;  %v11350_v55 = vld [vmem:[%s21401_s7 + $0x110] sm:$0xf0]  ;;  %v13880_v8 = vld [vmem:[%s21401_s7 + $0x1ec] sm:$0xf] }
 0x5f1   : > { %5903 = vmatpush.bf16.msra.mxu2 %v11273_v5  ;;  %5916 = vmatpush.bf16.msra.mxu3 %v11401_v11  ;;  %v5526_v60 = vsel %vm5065_vm10, %v5525_v58, %v5524_v29  ;;  %v13850_v5 = vld [vmem:[%s21401_s7 + $0xf4] sm:$0xf0]  ;;  %v11468_v11 = vld [vmem:[%s21401_s7 + $0x1e8] sm:$0xf]  ;;  %v11470_v58 = vld [vmem:[%s21401_s7 + $0x1f8] sm:$0xf0] }
 0x5f2   : > { %v5528_v51 = vsel %vm5068_vm11, %v5527_v22, %v5526_v60  ;;  %v5542_v22 = vsel %vm5068_vm11, %v5541_v28, %v5540_v1  ;;  %v11341_v12 = vor.u32 %v13850_v5, %v11340_v26  ;;  %v11469_v20 = vor.u32 %v13882_v57, %v11468_v11  ;;  %v13844_v29 = vld [vmem:[%s21401_s7 + $0xcc] sm:$0xf]  ;;  %v13842_v60 = vld [vmem:[%s21401_s7 + $0xb4] sm:$0xf0]  ;;  %v11438_v5 = vld [vmem:[%s21401_s7 + $0x1b8] sm:$0xf0] }
 0x5f3   : > { %v5530_v3 = vsel %vm5071_vm12, %v5529_v2, %v5528_v51  ;;  %v5544_v61 = vsel %vm5071_vm12, %v5543_v9, %v5542_v22  ;;  %v13846_v2 = vld [vmem:[%s21401_s7 + $0xd4] sm:$0xf0]  ;;  %v13840_v26 = vld [vmem:[%s21401_s7 + $0xac] sm:$0xf]  ;;  %v11310_v51 = vld [vmem:[%s21401_s7 + $0xb8] sm:$0xf0] }
 0x5f4   : > { %5878 = vmatpush.bf16.msrb.mxu0 %v11253_v27  ;;  %5891 = vmatpush.bf16.msrb.mxu1 %v11381_v33  ;;  %v5532_v13 = vsel %vm5074_vm13, %v5531_v25, %v5530_v3  ;;  %v11221_v27 = vor.u32 %v13821_v43, %v11220_v6  ;;  %v11349_v33 = vor.u32 %v13853_v62, %v11348_v41  ;;  %v11452_v41 = vld [vmem:[%s21401_s7 + $0x1c8] sm:$0xf]  ;;  %v13878_v62 = vld [vmem:[%s21401_s7 + $0x1d4] sm:$0xf0]  ;;  %v11326_v25 = vld [vmem:[%s21401_s7 + $0xd8] sm:$0xf0] }
 0x5f5   : > { %5904 = vmatpush.bf16.msra.mxu2 %v11257_v19  ;;  %5917 = vmatpush.bf16.msra.mxu3 %v11385_v37  ;;  %v11225_v19 = vor.u32 %v13819_v54, %v11222_v15  ;;  %v11353_v37 = vor.u32 %v13851_v47, %v11350_v55  ;;  %v5534_v24 = vsel %vm5077_vm14, %v5533_v14, %v5532_v13  ;;  %v11308_v47 = vld [vmem:[%s21401_s7 + $0xa8] sm:$0xf]  ;;  %v13874_v55 = vld [vmem:[%s21401_s7 + $0x1b4] sm:$0xf0]  ;;  %v13872_v9 = vld [vmem:[%s21401_s7 + $0x1ac] sm:$0xf] }
 0x5f6   : > { %v5546_v63 = vsel %vm5074_vm13, %v5545_v23, %v5544_v61  ;;  %v11473_v6 = vor.u32 %v13880_v8, %v11470_v58  ;;  %v11325_v54 = vor.u32 %v13846_v2, %v11324_v50  ;;  %v11453_v15 = vor.u32 %v13878_v62, %v11452_v41  ;;  %v11292_v14 = vld [vmem:[%s21401_s7 + $0x88] sm:$0xf]  ;;  %v13870_v13 = vld [vmem:[%s21401_s7 + $0x194] sm:$0xf0]  ;;  %v13836_v1 = vld [vmem:[%s21401_s7 + $0x8c] sm:$0xf] }
 0x5f7   : > { %v5548_v43 = vsel %vm5077_vm14, %v5547_v46, %v5546_v63  ;;  %v11329_v28 = vor.u32 %v13844_v29, %v11326_v25  ;;  %v11309_v11 = vor.u32 %v13842_v60, %v11308_v47  ;;  %v11313_v23 = vor.u32 %v13840_v26, %v11310_v51  ;;  %v11294_v46 = vld [vmem:[%s21401_s7 + $0x98] sm:$0xf0]  ;;  %v11276_v58 = vld [vmem:[%s21401_s7 + $0x68] sm:$0xf]  ;;  %v13834_v22 = vld [vmem:[%s21401_s7 + $0x74] sm:$0xf0] }
 0x5f8   : > { %5879 = vmatpush.bf16.msrb.mxu0 %v11237_v53  ;;  %5892 = vmatpush.bf16.msrb.mxu1 %v11365_v52  ;;  %v18394_v53 = vpack.c.b16 %v5534_v24, %v5534_v24  ;;  %v18396_v52 = vpack.c.b16 %v5548_v43, %v5548_v43  ;;  %v11441_v57 = vor.u32 %v13872_v9, %v11438_v5  ;;  %v11404_v61 = vld [vmem:[%s21401_s7 + $0x168] sm:$0xf]  ;;  %v11278_v24 = vld [vmem:[%s21401_s7 + $0x78] sm:$0xf0]  ;;  %v13864_v63 = vld [vmem:[%s21401_s7 + $0x16c] sm:$0xf] }
 0x5f9   : > { %5905 = vmatpush.bf16.msra.mxu2 %v11241_v18  ;;  %5918 = vmatpush.bf16.msra.mxu3 %v11369_v31  ;;  %v11457_v18 = vor.u32 %v13876_v59, %v11454_v0  ;;  %v11436_v31 = vld [vmem:[%s21401_s7 + $0x1a8] sm:$0xf]  ;;  %v11293_v48 = vor.u32 %v13838_v49, %v11292_v14  ;;  %v11421_v8 = vor.u32 %v13870_v13, %v11420_v32  ;;  %v11406_v50 = vld [vmem:[%s21401_s7 + $0x178] sm:$0xf0]  ;;  %v13830_v43 = vld [vmem:[%s21401_s7 + $0x54] sm:$0xf0] }
 0x5fa   : > { %v11437_v3 = vor.u32 %v13874_v55, %v11436_v31  ;;  %v11277_v2 = vor.u32 %v13834_v22, %v11276_v58  ;;  %v11409_v62 = vor.u32 %v13864_v63, %v11406_v50  ;;  %v11388_v29 = vld [vmem:[%s21401_s7 + $0x148] sm:$0xf]  ;;  %v13862_v25 = vld [vmem:[%s21401_s7 + $0x154] sm:$0xf0]  ;;  %v13828_v59 = vld [vmem:[%s21401_s7 + $0x4c] sm:$0xf] }
 0x5fb   : > { %v11262_v0 = vld [vmem:[%s21401_s7 + $0x58] sm:$0xf0]  ;;  %v11389_v60 = vor.u32 %v13862_v25, %v11388_v29  ;;  %v11372_v26 = vld [vmem:[%s21401_s7 + $0x128] sm:$0xf]  ;;  %v13858_v51 = vld [vmem:[%s21401_s7 + $0x134] sm:$0xf0] }
 0x5fc   : > { %5880 = vmatpush.bf16.msrb.mxu0 %v11221_v27  ;;  %5893 = vmatpush.bf16.msrb.mxu1 %v11349_v33  ;;  %v13868_v27 = vld [vmem:[%s21401_s7 + $0x18c] sm:$0xf]  ;;  %v11422_v33 = vld [vmem:[%s21401_s7 + $0x198] sm:$0xf0]  ;;  %v11265_v31 = vor.u32 %v13828_v59, %v11262_v0  ;;  %v11228_v14 = vld [vmem:[%s21401_s7 + $0x8] sm:$0xf] }
 0x5fd   : > { %5906 = vmatpush.bf16.msra.mxu2 %v11225_v19  ;;  %5919 = vmatpush.bf16.msra.mxu3 %v11353_v37  ;;  %v11297_v19 = vor.u32 %v13836_v1, %v11294_v46  ;;  %v11425_v37 = vor.u32 %v13868_v27, %v11422_v33  ;;  %v13824_v9 = vld [vmem:[%s21401_s7 + $0x2c] sm:$0xf]  ;;  %v11246_v5 = vld [vmem:[%s21401_s7 + $0x38] sm:$0xf0]  ;;  %v11356_v32 = vld [vmem:[%s21401_s7 + $0x108] sm:$0xf] }
 0x5fe   : > { %v13854_v13 = vld [vmem:[%s21401_s7 + $0x114] sm:$0xf0]  ;;  %v11249_v1 = vor.u32 %v13824_v9, %v11246_v5  ;;  %v13820_v27 = vld [vmem:[%s21401_s7 + $0xc] sm:$0xf]  ;;  %v11230_v33 = vld [vmem:[%s21401_s7 + $0x18] sm:$0xf0] }
 0x5ff   : > { %5881 = vmatmul.bf16.vlgmr.msrb.gmra.mxu0 %v18394_v53  ;;  %5894 = vmatmul.bf16.vlgmr.msrb.gmra.mxu1 %v18396_v52  ;;  %v11652_v58 = vld [vmem:[%s21401_s7 + $0x4e0] sm:$0xf]  ;;  %v13977_v22 = vld [vmem:[%s21401_s7 + $0x4ec] sm:$0xf0]  ;;  %v14007_v63 = vld [vmem:[%s21401_s7 + $0x5e4] sm:$0xf] }
 0x600   : > { %5925 = vmatpush.bf16.msra.mxu0 %v11341_v12  ;;  %5938 = vmatpush.bf16.msra.mxu1 %v11469_v20  ;;  %v13866_v12 = vld [vmem:[%s21401_s7 + $0x174] sm:$0xf0]  ;;  %v13832_v20 = vld [vmem:[%s21401_s7 + $0x6c] sm:$0xf]  ;;  %v11782_v50 = vld [vmem:[%s21401_s7 + $0x5f0] sm:$0xf0] }
 0x601   : > { %5951 = vmatpush.bf16.msrb.mxu2 %v11345_v44  ;;  %5964 = vmatpush.bf16.msrb.mxu3 %v11473_v6  ;;  %v11405_v44 = vor.u32 %v13866_v12, %v11404_v61  ;;  %v11260_v6 = vld [vmem:[%s21401_s7 + $0x48] sm:$0xf]  ;;  %v11281_v41 = vor.u32 %v13832_v20, %v11278_v24  ;;  %v13975_v61 = vld [vmem:[%s21401_s7 + $0x4e4] sm:$0xf]  ;;  %v11357_v20 = vor.u32 %v13854_v13, %v11356_v32  ;;  %v11654_v24 = vld [vmem:[%s21401_s7 + $0x4f0] sm:$0xf0] }
 0x602   : > { %5907 = vmatmul.bf16.vlgmr.msra.gmra.mxu2 %v18394_v53  ;;  %5920 = vmatmul.bf16.vlgmr.msra.gmra.mxu3 %v18396_v52  ;;  %v11261_v47 = vor.u32 %v13830_v43, %v11260_v6  ;;  %v11653_v6 = vor.u32 %v13977_v22, %v11652_v58  ;;  %v11657_v29 = vor.u32 %v13975_v61, %v11654_v24  ;;  %v11764_v59 = vld [vmem:[%s21401_s7 + $0x5c0] sm:$0xf]  ;;  %v14005_v0 = vld [vmem:[%s21401_s7 + $0x5cc] sm:$0xf0]  ;;  %v6043_v61 = vrot.slane %v18051_v10, 1 }
 0x603   : > { %v11785_v25 = vor.u32 %v14007_v63, %v11782_v50  ;;  %v11748_v9 = vld [vmem:[%s21401_s7 + $0x5a0] sm:$0xf]  ;;  %v14001_v5 = vld [vmem:[%s21401_s7 + $0x5ac] sm:$0xf0]  ;;  %v13959_v50 = vld [vmem:[%s21401_s7 + $0x464] sm:$0xf] }
 0x604   : > { %5926 = vmatpush.bf16.msra.mxu0 %v11325_v54  ;;  %5939 = vmatpush.bf16.msra.mxu1 %v11453_v15  ;;  %v13860_v54 = vld [vmem:[%s21401_s7 + $0x14c] sm:$0xf]  ;;  %v11390_v15 = vld [vmem:[%s21401_s7 + $0x158] sm:$0xf0]  ;;  %v11604_v32 = vld [vmem:[%s21401_s7 + $0x480] sm:$0xf] }
 0x605   : > { %5952 = vmatpush.bf16.msrb.mxu2 %v11329_v28  ;;  %5965 = vmatpush.bf16.msrb.mxu3 %v11457_v18  ;;  %v11244_v28 = vld [vmem:[%s21401_s7 + $0x28] sm:$0xf]  ;;  %v13826_v18 = vld [vmem:[%s21401_s7 + $0x34] sm:$0xf0]  ;;  %v11393_v55 = vor.u32 %v13860_v54, %v11390_v15  ;;  %v13971_v54 = vld [vmem:[%s21401_s7 + $0x4c4] sm:$0xf] }
 0x606   : > { %v11245_v49 = vor.u32 %v13826_v18, %v11244_v28  ;;  %v11638_v15 = vld [vmem:[%s21401_s7 + $0x4d0] sm:$0xf0]  ;;  %v11765_v18 = vor.u32 %v14005_v0, %v11764_v59  ;;  %v13965_v13 = vld [vmem:[%s21401_s7 + $0x48c] sm:$0xf0]  ;;  %v11716_v24 = vld [vmem:[%s21401_s7 + $0x560] sm:$0xf] }
 0x607   : > { %v11605_v58 = vor.u32 %v13965_v13, %v11604_v32  ;;  %v13993_v63 = vld [vmem:[%s21401_s7 + $0x56c] sm:$0xf0]  ;;  %v6046_v59 = vrot.slane %v18060_v42, 7  ;;  %v6048_v0 = vrot.slane %v18070_v34, 6  ;;  %v6064_v32 = vrot.slane %v18078_v56, 5 }
 0x608   : > { %5927 = vmatpush.bf16.msra.mxu0 %v11309_v11  ;;  %5940 = vmatpush.bf16.msra.mxu1 %v11437_v3  ;;  %v13856_v11 = vld [vmem:[%s21401_s7 + $0x12c] sm:$0xf]  ;;  %v11374_v3 = vld [vmem:[%s21401_s7 + $0x138] sm:$0xf0] }
 0x609   : > { %5953 = vmatpush.bf16.msrb.mxu2 %v11313_v23  ;;  %5966 = vmatpush.bf16.msrb.mxu3 %v11441_v57  ;;  %v11373_v23 = vor.u32 %v13858_v51, %v11372_v26  ;;  %v13822_v57 = vld [vmem:[%s21401_s7 + $0x14] sm:$0xf0]  ;;  %v11377_v46 = vor.u32 %v13856_v11, %v11374_v3  ;;  %v11641_v26 = vor.u32 %v13971_v54, %v11638_v15  ;;  %v13967_v11 = vld [vmem:[%s21401_s7 + $0x4a4] sm:$0xf]  ;;  %v11622_v3 = vld [vmem:[%s21401_s7 + $0x4b0] sm:$0xf0] }
 0x60a   : > { %v11229_v12 = vor.u32 %v13822_v57, %v11228_v14  ;;  %v13999_v14 = vld [vmem:[%s21401_s7 + $0x5a4] sm:$0xf]  ;;  %v11749_v57 = vor.u32 %v14001_v5, %v11748_v9  ;;  %v6056_v9 = vrot.slane %v18047_v7, 2  ;;  %v6057_v5 = vrot.slane %v18063_v40, 1 }
 0x60c   : > { %5928 = vmatpush.bf16.msra.mxu0 %v11293_v48  ;;  %5941 = vmatpush.bf16.msra.mxu1 %v11421_v8  ;;  %v13852_v48 = vld [vmem:[%s21401_s7 + $0x10c] sm:$0xf]  ;;  %v11358_v8 = vld [vmem:[%s21401_s7 + $0x118] sm:$0xf0] }
 0x60d   : > { %5954 = vmatpush.bf16.msrb.mxu2 %v11297_v19  ;;  %5967 = vmatpush.bf16.msrb.mxu3 %v11425_v37  ;;  %v11780_v19 = vld [vmem:[%s21401_s7 + $0x5e0] sm:$0xf]  ;;  %v14009_v37 = vld [vmem:[%s21401_s7 + $0x5ec] sm:$0xf0] }
 0x60e   : > { %v11781_v43 = vor.u32 %v14009_v37, %v11780_v19  ;;  %v11588_v19 = vld [vmem:[%s21401_s7 + $0x460] sm:$0xf]  ;;  %v13961_v37 = vld [vmem:[%s21401_s7 + $0x46c] sm:$0xf0] }
 0x610   : > { %5929 = vmatpush.bf16.msra.mxu0 %v11277_v2  ;;  %5942 = vmatpush.bf16.msra.mxu1 %v11405_v44  ;;  %v11233_v2 = vor.u32 %v13820_v27, %v11230_v33  ;;  %v11361_v44 = vor.u32 %v13852_v48, %v11358_v8  ;;  %v13963_v27 = vld [vmem:[%s21401_s7 + $0x484] sm:$0xf]  ;;  %v11606_v33 = vld [vmem:[%s21401_s7 + $0x490] sm:$0xf0] }
 0x611   : > { %5955 = vmatpush.bf16.msrb.mxu2 %v11281_v41  ;;  %5968 = vmatpush.bf16.msrb.mxu3 %v11409_v62  ;;  %v11636_v41 = vld [vmem:[%s21401_s7 + $0x4c0] sm:$0xf]  ;;  %v13973_v62 = vld [vmem:[%s21401_s7 + $0x4cc] sm:$0xf0]  ;;  %v13995_v48 = vld [vmem:[%s21401_s7 + $0x584] sm:$0xf] }
 0x612   : > { %v11637_v28 = vor.u32 %v13973_v62, %v11636_v41  ;;  %v11734_v8 = vld [vmem:[%s21401_s7 + $0x590] sm:$0xf0]  ;;  %v11589_v41 = vor.u32 %v13961_v37, %v11588_v19  ;;  %v11717_v62 = vor.u32 %v13993_v63, %v11716_v24  ;;  %v6052_v19 = vrot.slane %v18080_v35, 4  ;;  %v13949_v63 = vld [vmem:[%s21401_s7 + $0x40c] sm:$0xf0] }
 0x613   : > { %v6054_v37 = vrot.slane %v18097_v39, 3 }
 0x614   : > { %5930 = vmatpush.bf16.msra.mxu0 %v11261_v47  ;;  %5943 = vmatpush.bf16.msra.mxu1 %v11389_v60  ;;  %v14003_v47 = vld [vmem:[%s21401_s7 + $0x5c4] sm:$0xf]  ;;  %v11766_v60 = vld [vmem:[%s21401_s7 + $0x5d0] sm:$0xf0] }
 0x615   : > { %5956 = vmatpush.bf16.msrb.mxu2 %v11265_v31  ;;  %5969 = vmatpush.bf16.msrb.mxu3 %v11393_v55  ;;  %v11620_v31 = vld [vmem:[%s21401_s7 + $0x4a0] sm:$0xf]  ;;  %v13969_v55 = vld [vmem:[%s21401_s7 + $0x4ac] sm:$0xf0]  ;;  %v11769_v51 = vor.u32 %v14003_v47, %v11766_v60 }
 0x616   : > { %v11700_v47 = vld [vmem:[%s21401_s7 + $0x540] sm:$0xf]  ;;  %v13989_v60 = vld [vmem:[%s21401_s7 + $0x54c] sm:$0xf0] }
 0x618   : > { %5931 = vmatpush.bf16.msra.mxu0 %v11245_v49  ;;  %5944 = vmatpush.bf16.msra.mxu1 %v11373_v23  ;;  %v11750_v49 = vld [vmem:[%s21401_s7 + $0x5b0] sm:$0xf0]  ;;  %v11621_v23 = vor.u32 %v13969_v55, %v11620_v31  ;;  %v13987_v31 = vld [vmem:[%s21401_s7 + $0x544] sm:$0xf] }
 0x619   : > { %5957 = vmatpush.bf16.msrb.mxu2 %v11249_v1  ;;  %5970 = vmatpush.bf16.msrb.mxu3 %v11377_v46  ;;  %v11625_v1 = vor.u32 %v13967_v11, %v11622_v3  ;;  %v11753_v46 = vor.u32 %v13999_v14, %v11750_v49  ;;  %v11702_v55 = vld [vmem:[%s21401_s7 + $0x550] sm:$0xf0]  ;;  %v6060_v11 = vrot.slane %v18065_v38, 7  ;;  %v11701_v14 = vor.u32 %v13989_v60, %v11700_v47  ;;  %v11556_v49 = vld [vmem:[%s21401_s7 + $0x420] sm:$0xf] }
 0x61c   : > { %5932 = vmatpush.bf16.msra.mxu0 %v11229_v12  ;;  %5945 = vmatpush.bf16.msra.mxu1 %v11357_v20  ;;  %v11609_v12 = vor.u32 %v13963_v27, %v11606_v33  ;;  %v11737_v20 = vor.u32 %v13995_v48, %v11734_v8  ;;  %v11558_v33 = vld [vmem:[%s21401_s7 + $0x430] sm:$0xf0]  ;;  %v13983_v48 = vld [vmem:[%s21401_s7 + $0x524] sm:$0xf] }
 0x61d   : > { %5958 = vmatpush.bf16.msrb.mxu2 %v11233_v2  ;;  %5971 = vmatpush.bf16.msrb.mxu3 %v11361_v44  ;;  %v11590_v2 = vld [vmem:[%s21401_s7 + $0x470] sm:$0xf0]  ;;  %v13991_v44 = vld [vmem:[%s21401_s7 + $0x564] sm:$0xf] }
 0x61e   : > { %v11593_v54 = vor.u32 %v13959_v50, %v11590_v2  ;;  %v11686_v8 = vld [vmem:[%s21401_s7 + $0x530] sm:$0xf0]  ;;  %v11668_v50 = vld [vmem:[%s21401_s7 + $0x500] sm:$0xf]  ;;  %v13981_v2 = vld [vmem:[%s21401_s7 + $0x50c] sm:$0xf0] }
 0x61f   : > { %5933 = vmatmul.bf16.vlgmr.msra.gmra.mxu0 %v18394_v53  ;;  %5946 = vmatmul.bf16.vlgmr.msra.gmra.mxu1 %v18396_v52 }
 0x620   : > { %6394 = vmatpush.bf16.msrb.mxu0 %v11653_v6  ;;  %6407 = vmatpush.bf16.msrb.mxu1 %v11781_v43  ;;  %v11718_v6 = vld [vmem:[%s21401_s7 + $0x570] sm:$0xf0]  ;;  %v6042_v43 = vrot.slane %v18039_v21, 2 }
 0x621   : > { %6420 = vmatpush.bf16.msra.mxu2 %v11657_v29  ;;  %6433 = vmatpush.bf16.msra.mxu3 %v11785_v25  ;;  %v11572_v29 = vld [vmem:[%s21401_s7 + $0x440] sm:$0xf]  ;;  %v13957_v25 = vld [vmem:[%s21401_s7 + $0x44c] sm:$0xf0]  ;;  %v11721_v15 = vor.u32 %v13991_v44, %v11718_v6  ;;  %v6058_v44 = vsel %vm5059_vm8, %v6057_v5, %v6056_v9  ;;  %v11669_v9 = vor.u32 %v13981_v2, %v11668_v50  ;;  %v11662_v5 = vld [vmem:[%s21401_s7 + $0x4f8] sm:$0xf0] }
 0x622   : > { %5959 = vmatmul.bf16.vlgmr.msrb.gmra.mxu2 %v18394_v53  ;;  %5972 = vmatmul.bf16.vlgmr.msrb.gmra.mxu3 %v18396_v52  ;;  %v11732_v53 = vld [vmem:[%s21401_s7 + $0x580] sm:$0xf]  ;;  %v13997_v52 = vld [vmem:[%s21401_s7 + $0x58c] sm:$0xf0]  ;;  %v11573_v3 = vor.u32 %v13957_v25, %v11572_v29  ;;  %v13979_v29 = vld [vmem:[%s21401_s7 + $0x504] sm:$0xf]  ;;  %v6059_v25 = vsel %vm5062_vm9, %v18055_v16, %v6058_v44 }
 0x623   : > { %v11733_v22 = vor.u32 %v13997_v52, %v11732_v53  ;;  %v13985_v53 = vld [vmem:[%s21401_s7 + $0x52c] sm:$0xf0]  ;;  %v13951_v52 = vld [vmem:[%s21401_s7 + $0x424] sm:$0xf]  ;;  %v6061_v60 = vsel %vm5065_vm10, %v6060_v11, %v6059_v25  ;;  %v14008_v11 = vld [vmem:[%s21401_s7 + $0x5ec] sm:$0xf] }
 0x624   : > { %6395 = vmatpush.bf16.msrb.mxu0 %v11637_v28  ;;  %6408 = vmatpush.bf16.msrb.mxu1 %v11765_v18  ;;  %v13955_v28 = vld [vmem:[%s21401_s7 + $0x444] sm:$0xf]  ;;  %v11574_v18 = vld [vmem:[%s21401_s7 + $0x450] sm:$0xf0]  ;;  %v11561_v6 = vor.u32 %v13951_v52, %v11558_v33  ;;  %v13970_v50 = vld [vmem:[%s21401_s7 + $0x4b4] sm:$0xf0] }
 0x625   : > { %6421 = vmatpush.bf16.msra.mxu2 %v11641_v26  ;;  %6434 = vmatpush.bf16.msra.mxu3 %v11769_v51  ;;  %v6044_v26 = vsel %vm5059_vm8, %v6043_v61, %v6042_v43  ;;  %v6050_v51 = vrot.slane %v18076_v4, 5  ;;  %v11577_v13 = vor.u32 %v13955_v28, %v11574_v18  ;;  %v6066_v61 = vrot.slane %v18082_v36, 4  ;;  %v11788_v28 = vld [vmem:[%s21401_s7 + $0x5e8] sm:$0xf]  ;;  %v14010_v18 = vld [vmem:[%s21401_s7 + $0x5f4] sm:$0xf0] }
 0x626   : > { %v6045_v27 = vsel %vm5062_vm9, %v18053_v30, %v6044_v26  ;;  %v11689_v43 = vor.u32 %v13983_v48, %v11686_v8  ;;  %v11772_v48 = vld [vmem:[%s21401_s7 + $0x5c8] sm:$0xf]  ;;  %v14006_v8 = vld [vmem:[%s21401_s7 + $0x5d4] sm:$0xf0]  ;;  %v11758_v25 = vld [vmem:[%s21401_s7 + $0x5b8] sm:$0xf0] }
 0x628   : > { %6396 = vmatpush.bf16.msrb.mxu0 %v11621_v23  ;;  %6409 = vmatpush.bf16.msrb.mxu1 %v11749_v57  ;;  %v13953_v23 = vld [vmem:[%s21401_s7 + $0x42c] sm:$0xf0]  ;;  %v6062_v57 = vrot.slane %v18072_v17, 6 }
 0x629   : > { %6422 = vmatpush.bf16.msra.mxu2 %v11625_v1  ;;  %6435 = vmatpush.bf16.msra.mxu3 %v11753_v46  ;;  %v11705_v1 = vor.u32 %v13987_v31, %v11702_v55  ;;  %v11684_v46 = vld [vmem:[%s21401_s7 + $0x520] sm:$0xf]  ;;  %v13976_v31 = vld [vmem:[%s21401_s7 + $0x4ec] sm:$0xf] }
 0x62a   : > { %v11685_v24 = vor.u32 %v13985_v53, %v11684_v46  ;;  %v6063_v26 = vsel %vm5068_vm11, %v6062_v57, %v6061_v60  ;;  %v11644_v53 = vld [vmem:[%s21401_s7 + $0x4c8] sm:$0xf]  ;;  %v11665_v52 = vor.u32 %v13976_v31, %v11662_v5  ;;  %v13998_v31 = vld [vmem:[%s21401_s7 + $0x594] sm:$0xf0] }
 0x62c   : > { %6397 = vmatpush.bf16.msrb.mxu0 %v11605_v58  ;;  %6410 = vmatpush.bf16.msrb.mxu1 %v11733_v22  ;;  %v6047_v58 = vsel %vm5065_vm10, %v6046_v59, %v6045_v27  ;;  %v11540_v22 = vld [vmem:[%s21401_s7 + $0x400] sm:$0xf]  ;;  %v11670_v59 = vld [vmem:[%s21401_s7 + $0x510] sm:$0xf0] }
 0x62d   : > { %6423 = vmatpush.bf16.msra.mxu2 %v11609_v12  ;;  %6436 = vmatpush.bf16.msra.mxu3 %v11737_v20  ;;  %v6068_v12 = vrot.slane %v18099_v45, 3  ;;  %v11557_v20 = vor.u32 %v13953_v23, %v11556_v49  ;;  %v6049_v47 = vsel %vm5068_vm11, %v6048_v0, %v6047_v58  ;;  %v11541_v0 = vor.u32 %v13949_v63, %v11540_v22  ;;  %v13972_v58 = vld [vmem:[%s21401_s7 + $0x4cc] sm:$0xf]  ;;  %v11646_v22 = vld [vmem:[%s21401_s7 + $0x4d8] sm:$0xf0] }
 0x62e   : > { %v6051_v55 = vsel %vm5071_vm12, %v6050_v51, %v6049_v47  ;;  %v6065_v51 = vsel %vm5071_vm12, %v6064_v32, %v6063_v26  ;;  %v11673_v49 = vor.u32 %v13979_v29, %v11670_v59  ;;  %v13974_v32 = vld [vmem:[%s21401_s7 + $0x4d4] sm:$0xf0]  ;;  %v11628_v63 = vld [vmem:[%s21401_s7 + $0x4a8] sm:$0xf]  ;;  %v11649_v2 = vor.u32 %v13972_v58, %v11646_v22  ;;  %v14000_v29 = vld [vmem:[%s21401_s7 + $0x5ac] sm:$0xf] }
 0x62f   : > { %v6053_v23 = vsel %vm5074_vm13, %v6052_v19, %v6051_v55  ;;  %v6067_v46 = vsel %vm5074_vm13, %v6066_v61, %v6065_v51  ;;  %v14004_v19 = vld [vmem:[%s21401_s7 + $0x5cc] sm:$0xf]  ;;  %v11629_v59 = vor.u32 %v13970_v50, %v11628_v63  ;;  %v13966_v47 = vld [vmem:[%s21401_s7 + $0x494] sm:$0xf0]  ;;  %v11614_v26 = vld [vmem:[%s21401_s7 + $0x498] sm:$0xf0] }
 0x630   : > { %6398 = vmatpush.bf16.msrb.mxu0 %v11589_v41  ;;  %6411 = vmatpush.bf16.msrb.mxu1 %v11717_v62  ;;  %v13947_v41 = vld [vmem:[%s21401_s7 + $0x404] sm:$0xf]  ;;  %v11542_v62 = vld [vmem:[%s21401_s7 + $0x410] sm:$0xf0]  ;;  %v6069_v33 = vsel %vm5077_vm14, %v6068_v12, %v6067_v46  ;;  %v13964_v55 = vld [vmem:[%s21401_s7 + $0x48c] sm:$0xf] }
 0x631   : > { %6424 = vmatpush.bf16.msra.mxu2 %v11593_v54  ;;  %6437 = vmatpush.bf16.msra.mxu3 %v11721_v15  ;;  %v11660_v54 = vld [vmem:[%s21401_s7 + $0x4e8] sm:$0xf]  ;;  %v13978_v15 = vld [vmem:[%s21401_s7 + $0x4f4] sm:$0xf0]  ;;  %v18822_v12 = vpack.c.b16 %v6069_v33, %v6069_v33  ;;  %v13992_v46 = vld [vmem:[%s21401_s7 + $0x56c] sm:$0xf] }
 0x632   : > { %v11661_v57 = vor.u32 %v13978_v15, %v11660_v54  ;;  %v11612_v15 = vld [vmem:[%s21401_s7 + $0x488] sm:$0xf]  ;;  %v13962_v51 = vld [vmem:[%s21401_s7 + $0x474] sm:$0xf0] }
 0x633   : > { %v11613_v5 = vor.u32 %v13966_v47, %v11612_v15  ;;  %v13958_v33 = vld [vmem:[%s21401_s7 + $0x454] sm:$0xf0]  ;;  %v11708_v58 = vld [vmem:[%s21401_s7 + $0x548] sm:$0xf] }
 0x634   : > { %6399 = vmatpush.bf16.msrb.mxu0 %v11573_v3  ;;  %6412 = vmatpush.bf16.msrb.mxu1 %v11701_v14  ;;  %v11790_v3 = vld [vmem:[%s21401_s7 + $0x5f8] sm:$0xf0]  ;;  %v11545_v14 = vor.u32 %v13947_v41, %v11542_v62  ;;  %v13968_v41 = vld [vmem:[%s21401_s7 + $0x4ac] sm:$0xf]  ;;  %v13990_v22 = vld [vmem:[%s21401_s7 + $0x554] sm:$0xf0] }
 0x635   : > { %6425 = vmatpush.bf16.msra.mxu2 %v11577_v13  ;;  %6438 = vmatpush.bf16.msra.mxu3 %v11705_v1  ;;  %v11789_v13 = vor.u32 %v14010_v18, %v11788_v28  ;;  %v6055_v1 = vsel %vm5077_vm14, %v6054_v37, %v6053_v23  ;;  %v11793_v27 = vor.u32 %v14008_v11, %v11790_v3  ;;  %v11774_v37 = vld [vmem:[%s21401_s7 + $0x5d8] sm:$0xf0]  ;;  %v11740_v18 = vld [vmem:[%s21401_s7 + $0x588] sm:$0xf] }
 0x636   : > { %v18820_v61 = vpack.c.b16 %v6055_v1, %v6055_v1  ;;  %v11777_v44 = vor.u32 %v14004_v19, %v11774_v37  ;;  %v11630_v62 = vld [vmem:[%s21401_s7 + $0x4b8] sm:$0xf0]  ;;  %v11761_v28 = vor.u32 %v14000_v29, %v11758_v25  ;;  %v11741_v11 = vor.u32 %v13998_v31, %v11740_v18  ;;  %v11596_v3 = vld [vmem:[%s21401_s7 + $0x468] sm:$0xf]  ;;  %v13956_v19 = vld [vmem:[%s21401_s7 + $0x44c] sm:$0xf] }
 0x637   : > { %v11633_v60 = vor.u32 %v13968_v41, %v11630_v62  ;;  %v11724_v23 = vld [vmem:[%s21401_s7 + $0x568] sm:$0xf]  ;;  %v11598_v1 = vld [vmem:[%s21401_s7 + $0x478] sm:$0xf0]  ;;  %v11709_v50 = vor.u32 %v13990_v22, %v11708_v58  ;;  %v13986_v62 = vld [vmem:[%s21401_s7 + $0x534] sm:$0xf0] }
 0x638   : > { %6400 = vmatpush.bf16.msrb.mxu0 %v11557_v20  ;;  %6413 = vmatpush.bf16.msrb.mxu1 %v11685_v24  ;;  %v11645_v20 = vor.u32 %v13974_v32, %v11644_v53  ;;  %v11773_v24 = vor.u32 %v14006_v8, %v11772_v48  ;;  %v11726_v53 = vld [vmem:[%s21401_s7 + $0x578] sm:$0xf0]  ;;  %v11597_v32 = vor.u32 %v13962_v51, %v11596_v3  ;;  %v11692_v41 = vld [vmem:[%s21401_s7 + $0x528] sm:$0xf]  ;;  %v13952_v29 = vld [vmem:[%s21401_s7 + $0x42c] sm:$0xf] }
 0x639   : > { %6426 = vmatpush.bf16.msra.mxu2 %v11561_v6  ;;  %6439 = vmatpush.bf16.msra.mxu3 %v11689_v43  ;;  %v11756_v6 = vld [vmem:[%s21401_s7 + $0x5a8] sm:$0xf]  ;;  %v14002_v43 = vld [vmem:[%s21401_s7 + $0x5b4] sm:$0xf0]  ;;  %v11729_v8 = vor.u32 %v13992_v46, %v11726_v53  ;;  %v11582_v37 = vld [vmem:[%s21401_s7 + $0x458] sm:$0xf0] }
 0x63a   : > { %v11757_v54 = vor.u32 %v14002_v43, %v11756_v6  ;;  %v11585_v6 = vor.u32 %v13956_v19, %v11582_v37  ;;  %v11566_v25 = vld [vmem:[%s21401_s7 + $0x438] sm:$0xf0]  ;;  %v11548_v15 = vld [vmem:[%s21401_s7 + $0x408] sm:$0xf]  ;;  %v13982_v31 = vld [vmem:[%s21401_s7 + $0x514] sm:$0xf0] }
 0x63b   : > { %v11676_v18 = vld [vmem:[%s21401_s7 + $0x508] sm:$0xf]  ;;  %v11972_v3 = vld [vmem:[%s21401_s7 + $0x6e0] sm:$0xf]  ;;  %v14041_v51 = vld [vmem:[%s21401_s7 + $0x6ec] sm:$0xf0] }
 0x63c   : > { %6401 = vmatpush.bf16.msrb.mxu0 %v11541_v0  ;;  %6414 = vmatpush.bf16.msrb.mxu1 %v11669_v9  ;;  %v13996_v0 = vld [vmem:[%s21401_s7 + $0x58c] sm:$0xf]  ;;  %v11742_v9 = vld [vmem:[%s21401_s7 + $0x598] sm:$0xf0]  ;;  %v14071_v46 = vld [vmem:[%s21401_s7 + $0x7e4] sm:$0xf] }
 0x63d   : > { %6427 = vmatpush.bf16.msra.mxu2 %v11545_v14  ;;  %6440 = vmatpush.bf16.msra.mxu3 %v11673_v49  ;;  %v11617_v14 = vor.u32 %v13964_v55, %v11614_v26  ;;  %v11745_v49 = vor.u32 %v13996_v0, %v11742_v9  ;;  %v11569_v55 = vor.u32 %v13952_v29, %v11566_v25  ;;  %v13948_v0 = vld [vmem:[%s21401_s7 + $0x40c] sm:$0xf]  ;;  %v11550_v9 = vld [vmem:[%s21401_s7 + $0x418] sm:$0xf0]  ;;  %v12102_v53 = vld [vmem:[%s21401_s7 + $0x7f0] sm:$0xf0] }
 0x63e   : > { %v12105_v22 = vor.u32 %v14071_v46, %v12102_v53  ;;  %v12084_v19 = vld [vmem:[%s21401_s7 + $0x7c0] sm:$0xf]  ;;  %v14069_v37 = vld [vmem:[%s21401_s7 + $0x7cc] sm:$0xf0] }
 0x63f   : > { %6402 = vmatmul.bf16.vlgmr.msrb.gmra.mxu0 %v18820_v61  ;;  %6415 = vmatmul.bf16.vlgmr.msrb.gmra.mxu1 %v18822_v12  ;;  %v12068_v29 = vld [vmem:[%s21401_s7 + $0x7a0] sm:$0xf]  ;;  %v14065_v25 = vld [vmem:[%s21401_s7 + $0x7ac] sm:$0xf0] }
 0x640   : > { %6446 = vmatpush.bf16.msra.mxu0 %v11661_v57  ;;  %6459 = vmatpush.bf16.msra.mxu1 %v11789_v13  ;;  %v13994_v57 = vld [vmem:[%s21401_s7 + $0x574] sm:$0xf0]  ;;  %v13960_v13 = vld [vmem:[%s21401_s7 + $0x46c] sm:$0xf] }
 0x641   : > { %6472 = vmatpush.bf16.msrb.mxu2 %v11665_v52  ;;  %6485 = vmatpush.bf16.msrb.mxu3 %v11793_v27  ;;  %v11725_v52 = vor.u32 %v13994_v57, %v11724_v23  ;;  %v11580_v27 = vld [vmem:[%s21401_s7 + $0x448] sm:$0xf]  ;;  %v11601_v48 = vor.u32 %v13960_v13, %v11598_v1  ;;  %v14039_v23 = vld [vmem:[%s21401_s7 + $0x6e4] sm:$0xf]  ;;  %v11677_v13 = vor.u32 %v13982_v31, %v11676_v18  ;;  %v11974_v1 = vld [vmem:[%s21401_s7 + $0x6f0] sm:$0xf0] }
 0x642   : > { %6428 = vmatmul.bf16.vlgmr.msra.gmra.mxu2 %v18820_v61  ;;  %6441 = vmatmul.bf16.vlgmr.msra.gmra.mxu3 %v18822_v12  ;;  %v11581_v63 = vor.u32 %v13958_v33, %v11580_v27  ;;  %v11973_v27 = vor.u32 %v14041_v51, %v11972_v3  ;;  %v11977_v58 = vor.u32 %v14039_v23, %v11974_v1  ;;  %v11926_v3 = vld [vmem:[%s21401_s7 + $0x690] sm:$0xf0]  ;;  %v14059_v51 = vld [vmem:[%s21401_s7 + $0x784] sm:$0xf]  ;;  %v6568_v1 = vrot.slane %v18051_v10, 2 }
 0x643   : > { %v12069_v31 = vor.u32 %v14065_v25, %v12068_v29  ;;  %v12020_v29 = vld [vmem:[%s21401_s7 + $0x740] sm:$0xf]  ;;  %v14053_v25 = vld [vmem:[%s21401_s7 + $0x74c] sm:$0xf0] }
 0x644   : > { %6447 = vmatpush.bf16.msra.mxu0 %v11645_v20  ;;  %6460 = vmatpush.bf16.msra.mxu1 %v11773_v24  ;;  %v13988_v20 = vld [vmem:[%s21401_s7 + $0x54c] sm:$0xf]  ;;  %v11710_v24 = vld [vmem:[%s21401_s7 + $0x558] sm:$0xf0] }
 0x645   : > { %6473 = vmatpush.bf16.msrb.mxu2 %v11649_v2  ;;  %6486 = vmatpush.bf16.msrb.mxu3 %v11777_v44  ;;  %v11564_v2 = vld [vmem:[%s21401_s7 + $0x428] sm:$0xf]  ;;  %v13954_v44 = vld [vmem:[%s21401_s7 + $0x434] sm:$0xf0]  ;;  %v11713_v43 = vor.u32 %v13988_v20, %v11710_v24  ;;  %v14035_v20 = vld [vmem:[%s21401_s7 + $0x6c4] sm:$0xf] }
 0x646   : > { %v11565_v47 = vor.u32 %v13954_v44, %v11564_v2  ;;  %v11958_v24 = vld [vmem:[%s21401_s7 + $0x6d0] sm:$0xf0]  ;;  %v12085_v44 = vor.u32 %v14069_v37, %v12084_v19 }
 0x648   : > { %6448 = vmatpush.bf16.msra.mxu0 %v11629_v59  ;;  %6461 = vmatpush.bf16.msra.mxu1 %v11757_v54  ;;  %v13984_v59 = vld [vmem:[%s21401_s7 + $0x52c] sm:$0xf]  ;;  %v11694_v54 = vld [vmem:[%s21401_s7 + $0x538] sm:$0xf0] }
 0x649   : > { %6474 = vmatpush.bf16.msrb.mxu2 %v11633_v60  ;;  %6487 = vmatpush.bf16.msrb.mxu3 %v11761_v28  ;;  %v11693_v60 = vor.u32 %v13986_v62, %v11692_v41  ;;  %v13950_v28 = vld [vmem:[%s21401_s7 + $0x414] sm:$0xf0]  ;;  %v11697_v26 = vor.u32 %v13984_v59, %v11694_v54  ;;  %v11961_v41 = vor.u32 %v14035_v20, %v11958_v24  ;;  %v14031_v59 = vld [vmem:[%s21401_s7 + $0x6a4] sm:$0xf]  ;;  %v11942_v54 = vld [vmem:[%s21401_s7 + $0x6b0] sm:$0xf0] }
 0x64a   : > { %v11549_v57 = vor.u32 %v13950_v28, %v11548_v15  ;;  %v14063_v15 = vld [vmem:[%s21401_s7 + $0x7a4] sm:$0xf]  ;;  %v6567_v24 = vrot.slane %v18039_v21, 3 }
 0x64c   : > { %6449 = vmatpush.bf16.msra.mxu0 %v11613_v5  ;;  %6462 = vmatpush.bf16.msra.mxu1 %v11741_v11  ;;  %v13980_v5 = vld [vmem:[%s21401_s7 + $0x50c] sm:$0xf]  ;;  %v11678_v11 = vld [vmem:[%s21401_s7 + $0x518] sm:$0xf0] }
 0x64d   : > { %6475 = vmatpush.bf16.msrb.mxu2 %v11617_v14  ;;  %6488 = vmatpush.bf16.msrb.mxu3 %v11745_v49  ;;  %v12100_v14 = vld [vmem:[%s21401_s7 + $0x7e0] sm:$0xf]  ;;  %v14073_v49 = vld [vmem:[%s21401_s7 + $0x7ec] sm:$0xf0] }
 0x64e   : > { %v12101_v33 = vor.u32 %v14073_v49, %v12100_v14  ;;  %v12054_v14 = vld [vmem:[%s21401_s7 + $0x790] sm:$0xf0] }
 0x64f   : > { %v12057_v53 = vor.u32 %v14059_v51, %v12054_v14  ;;  %v12004_v14 = vld [vmem:[%s21401_s7 + $0x720] sm:$0xf] }
 0x650   : > { %6450 = vmatpush.bf16.msra.mxu0 %v11597_v32  ;;  %6463 = vmatpush.bf16.msra.mxu1 %v11725_v52  ;;  %v11553_v32 = vor.u32 %v13948_v0, %v11550_v9  ;;  %v11681_v52 = vor.u32 %v13980_v5, %v11678_v11  ;;  %v14029_v0 = vld [vmem:[%s21401_s7 + $0x68c] sm:$0xf0]  ;;  %v12052_v9 = vld [vmem:[%s21401_s7 + $0x780] sm:$0xf]  ;;  %v14027_v11 = vld [vmem:[%s21401_s7 + $0x684] sm:$0xf] }
 0x651   : > { %6476 = vmatpush.bf16.msrb.mxu2 %v11601_v48  ;;  %6489 = vmatpush.bf16.msrb.mxu3 %v11729_v8  ;;  %v11956_v48 = vld [vmem:[%s21401_s7 + $0x6c0] sm:$0xf]  ;;  %v14037_v8 = vld [vmem:[%s21401_s7 + $0x6cc] sm:$0xf0]  ;;  %v11929_v46 = vor.u32 %v14027_v11, %v11926_v3  ;;  %v6587_v11 = vrot.slane %v18072_v17, 7 }
 0x652   : > { %v11957_v2 = vor.u32 %v14037_v8, %v11956_v48  ;;  %v14061_v5 = vld [vmem:[%s21401_s7 + $0x78c] sm:$0xf0]  ;;  %v11910_v8 = vld [vmem:[%s21401_s7 + $0x670] sm:$0xf0] }
 0x653   : > { %v12053_v23 = vor.u32 %v14061_v5, %v12052_v9  ;;  %v14017_v9 = vld [vmem:[%s21401_s7 + $0x62c] sm:$0xf0]  ;;  %v6577_v5 = vrot.slane %v18080_v35, 5 }
 0x654   : > { %6451 = vmatpush.bf16.msra.mxu0 %v11581_v63  ;;  %6464 = vmatpush.bf16.msra.mxu1 %v11709_v50  ;;  %v14067_v63 = vld [vmem:[%s21401_s7 + $0x7c4] sm:$0xf]  ;;  %v12086_v50 = vld [vmem:[%s21401_s7 + $0x7d0] sm:$0xf0] }
 0x655   : > { %6477 = vmatpush.bf16.msrb.mxu2 %v11585_v6  ;;  %6490 = vmatpush.bf16.msrb.mxu3 %v11713_v43  ;;  %v11940_v6 = vld [vmem:[%s21401_s7 + $0x6a0] sm:$0xf]  ;;  %v14033_v43 = vld [vmem:[%s21401_s7 + $0x6ac] sm:$0xf0]  ;;  %v12089_v62 = vor.u32 %v14067_v63, %v12086_v50 }
 0x656   : > { %v11941_v18 = vor.u32 %v14033_v43, %v11940_v6  ;;  %v6570_v6 = vrot.slane %v18053_v30, 1  ;;  %v6582_v43 = vrot.slane %v18063_v40, 2 }
 0x658   : > { %6452 = vmatpush.bf16.msra.mxu0 %v11565_v47  ;;  %6465 = vmatpush.bf16.msra.mxu1 %v11693_v60  ;;  %v12070_v47 = vld [vmem:[%s21401_s7 + $0x7b0] sm:$0xf0] }
 0x659   : > { %6478 = vmatpush.bf16.msrb.mxu2 %v11569_v55  ;;  %6491 = vmatpush.bf16.msrb.mxu3 %v11697_v26  ;;  %v11924_v26 = vld [vmem:[%s21401_s7 + $0x680] sm:$0xf] }
 0x65a   : > { %v11925_v49 = vor.u32 %v14029_v0, %v11924_v26  ;;  %v6584_v26 = vrot.slane %v18055_v16, 1 }
 0x65b   : > { %v5426_v60 = vpop.f32.mrf.mxu0  ;;  %v5439_v28 = vpop.f32.mrf.mxu1 }
 0x65c   : > { %6453 = vmatpush.bf16.msra.mxu0 %v11549_v57  ;;  %6466 = vmatpush.bf16.msra.mxu1 %v11677_v13  ;;  %v19048_v55 = vadd.f32 %v5439_v28, %v5426_v60  ;;  %v11908_v57 = vld [vmem:[%s21401_s7 + $0x660] sm:$0xf]  ;;  %v14025_v13 = vld [vmem:[%s21401_s7 + $0x66c] sm:$0xf0]  ;;  %v6569_v60 = vsel %vm5059_vm8, %v6568_v1, %v6567_v24  ;;  %v6573_v28 = vrot.slane %v18070_v34, 7 }
 0x65d   : > { %6479 = vmatpush.bf16.msrb.mxu2 %v11553_v32  ;;  %6492 = vmatpush.bf16.msrb.mxu3 %v11681_v52  ;;  %v12036_v32 = vld [vmem:[%s21401_s7 + $0x760] sm:$0xf]  ;;  %v14057_v52 = vld [vmem:[%s21401_s7 + $0x76c] sm:$0xf0]  ;;  %v11909_v63 = vor.u32 %v14025_v13, %v11908_v57  ;;  %v6571_v57 = vsel %vm5062_vm9, %v6570_v6, %v6569_v60 }
 0x65e   : > { %v12037_v50 = vor.u32 %v14057_v52, %v12036_v32  ;;  %v12006_v32 = vld [vmem:[%s21401_s7 + $0x730] sm:$0xf0]  ;;  %v6572_v52 = vsel %vm5065_vm10, %v18060_v42, %v6571_v57  ;;  %v14045_v6 = vld [vmem:[%s21401_s7 + $0x70c] sm:$0xf0] }
 0x65f   : > { %6454 = vmatmul.bf16.vlgmr.msra.gmra.mxu0 %v18820_v61  ;;  %6467 = vmatmul.bf16.vlgmr.msra.gmra.mxu1 %v18822_v12  ;;  %v6574_v60 = vsel %vm5068_vm11, %v6573_v28, %v6572_v52 }
 0x660   : > { %6919 = vmatpush.bf16.msrb.mxu0 %v11973_v27  ;;  %6932 = vmatpush.bf16.msrb.mxu1 %v12101_v33  ;;  %v14023_v27 = vld [vmem:[%s21401_s7 + $0x664] sm:$0xf] }
 0x661   : > { %6945 = vmatpush.bf16.msra.mxu2 %v11977_v58  ;;  %6958 = vmatpush.bf16.msra.mxu3 %v12105_v22  ;;  %v14055_v58 = vld [vmem:[%s21401_s7 + $0x764] sm:$0xf]  ;;  %v12038_v22 = vld [vmem:[%s21401_s7 + $0x770] sm:$0xf0] }
 0x662   : > { %6480 = vmatmul.bf16.vlgmr.msrb.gmra.mxu2 %v18820_v61  ;;  %6493 = vmatmul.bf16.vlgmr.msrb.gmra.mxu3 %v18822_v12  ;;  %v11945_v61 = vor.u32 %v14031_v59, %v11942_v54  ;;  %v12073_v12 = vor.u32 %v14063_v15, %v12070_v47  ;;  %v5452_v33 = vpop.f32.mrf.mxu2  ;;  %v5465_v48 = vpop.f32.mrf.mxu3  ;;  %v14019_v59 = vld [vmem:[%s21401_s7 + $0x644] sm:$0xf]  ;;  %v11894_v54 = vld [vmem:[%s21401_s7 + $0x650] sm:$0xf0] }
 0x663   : > { %v19099_v19 = vadd.f32 %v5465_v48, %v5452_v33  ;;  %v5428_v37 = vpop.f32.mrf.mxu0  ;;  %v5441_v20 = vpop.f32.mrf.mxu1  ;;  %v14051_v15 = vld [vmem:[%s21401_s7 + $0x744] sm:$0xf]  ;;  %v12022_v47 = vld [vmem:[%s21401_s7 + $0x750] sm:$0xf0]  ;;  %v11897_v3 = vor.u32 %v14019_v59, %v11894_v54 }
 0x664   : > { %6920 = vmatpush.bf16.msrb.mxu0 %v11957_v2  ;;  %6933 = vmatpush.bf16.msrb.mxu1 %v12085_v44  ;;  %v11892_v2 = vld [vmem:[%s21401_s7 + $0x640] sm:$0xf]  ;;  %v14021_v44 = vld [vmem:[%s21401_s7 + $0x64c] sm:$0xf0]  ;;  %v12025_v51 = vor.u32 %v14051_v15, %v12022_v47  ;;  %v6591_v37 = vrot.slane %v18082_v36, 5  ;;  %v6593_v20 = vrot.slane %v18099_v45, 4 }
 0x665   : > { %6946 = vmatpush.bf16.msra.mxu2 %v11961_v41  ;;  %6959 = vmatpush.bf16.msra.mxu3 %v12089_v62  ;;  %v11913_v41 = vor.u32 %v14023_v27, %v11910_v8  ;;  %v12041_v62 = vor.u32 %v14055_v58, %v12038_v22  ;;  %v11893_v0 = vor.u32 %v14021_v44, %v11892_v2  ;;  %v11860_v8 = vld [vmem:[%s21401_s7 + $0x600] sm:$0xf]  ;;  %v6579_v58 = vrot.slane %v18097_v39, 4  ;;  %v14013_v2 = vld [vmem:[%s21401_s7 + $0x60c] sm:$0xf0] }
 0x666   : > { %v6589_v22 = vrot.slane %v18078_v56, 6  ;;  %v11988_v44 = vld [vmem:[%s21401_s7 + $0x700] sm:$0xf]  ;;  %v11990_v54 = vld [vmem:[%s21401_s7 + $0x710] sm:$0xf0]  ;;  %v11861_v28 = vor.u32 %v14013_v2, %v11860_v8 }
 0x667   : > { %v11980_v15 = vld [vmem:[%s21401_s7 + $0x6e8] sm:$0xf]  ;;  %v14042_v47 = vld [vmem:[%s21401_s7 + $0x6f4] sm:$0xf0]  ;;  %v14036_v2 = vld [vmem:[%s21401_s7 + $0x6cc] sm:$0xf] }
 0x668   : > { %6921 = vmatpush.bf16.msrb.mxu0 %v11941_v18  ;;  %6934 = vmatpush.bf16.msrb.mxu1 %v12069_v31  ;;  %v6575_v18 = vrot.slane %v18076_v4, 6  ;;  %v6581_v31 = vrot.slane %v18047_v7, 3 }
 0x669   : > { %6947 = vmatpush.bf16.msra.mxu2 %v11945_v61  ;;  %6960 = vmatpush.bf16.msra.mxu3 %v12073_v12  ;;  %v12021_v61 = vor.u32 %v14053_v25, %v12020_v29  ;;  %v11876_v12 = vld [vmem:[%s21401_s7 + $0x620] sm:$0xf]  ;;  %v11862_v29 = vld [vmem:[%s21401_s7 + $0x610] sm:$0xf0]  ;;  %v14043_v25 = vld [vmem:[%s21401_s7 + $0x704] sm:$0xf] }
 0x66a   : > { %v5454_v13 = vpop.f32.mrf.mxu2  ;;  %v5467_v1 = vpop.f32.mrf.mxu3  ;;  %v6583_v27 = vsel %vm5059_vm8, %v6582_v43, %v6581_v31  ;;  %v11877_v24 = vor.u32 %v14017_v9, %v11876_v12  ;;  %v6576_v12 = vsel %vm5071_vm12, %v6575_v18, %v6574_v60  ;;  %v14066_v60 = vld [vmem:[%s21401_s7 + $0x7b4] sm:$0xf0] }
 0x66b   : > { %v5478_v33 = vpop.f32.mrf.mxu0  ;;  %v5491_v48 = vpop.f32.mrf.mxu1  ;;  %v6585_v59 = vsel %vm5062_vm9, %v6584_v26, %v6583_v27  ;;  %v12108_v26 = vld [vmem:[%s21401_s7 + $0x7e8] sm:$0xf]  ;;  %v6578_v18 = vsel %vm5074_vm13, %v6577_v5, %v6576_v12  ;;  %v11981_v13 = vor.u32 %v14042_v47, %v11980_v15  ;;  %v14038_v5 = vld [vmem:[%s21401_s7 + $0x6d4] sm:$0xf0] }
 0x66c   : > { %6922 = vmatpush.bf16.msrb.mxu0 %v11925_v49  ;;  %6935 = vmatpush.bf16.msrb.mxu1 %v12053_v23  ;;  %v14049_v49 = vld [vmem:[%s21401_s7 + $0x72c] sm:$0xf0]  ;;  %v14015_v23 = vld [vmem:[%s21401_s7 + $0x624] sm:$0xf]  ;;  %v6586_v31 = vsel %vm5065_vm10, %v18065_v38, %v6585_v59  ;;  %v11964_v27 = vld [vmem:[%s21401_s7 + $0x6c8] sm:$0xf] }
 0x66d   : > { %6948 = vmatpush.bf16.msra.mxu2 %v11929_v46  ;;  %6961 = vmatpush.bf16.msra.mxu3 %v12057_v53  ;;  %v11878_v46 = vld [vmem:[%s21401_s7 + $0x630] sm:$0xf0]  ;;  %v14047_v53 = vld [vmem:[%s21401_s7 + $0x724] sm:$0xf]  ;;  %v6588_v9 = vsel %vm5068_vm11, %v6587_v11, %v6586_v31  ;;  %v14034_v59 = vld [vmem:[%s21401_s7 + $0x6b4] sm:$0xf0] }
 0x66e   : > { %v11881_v43 = vor.u32 %v14015_v23, %v11878_v46  ;;  %v11993_v23 = vor.u32 %v14043_v25, %v11990_v54  ;;  %v6590_v57 = vsel %vm5071_vm12, %v6589_v22, %v6588_v9  ;;  %v11948_v25 = vld [vmem:[%s21401_s7 + $0x6a8] sm:$0xf]  ;;  %v14032_v31 = vld [vmem:[%s21401_s7 + $0x6ac] sm:$0xf] }
 0x66f   : > { %v6592_v52 = vsel %vm5074_vm13, %v6591_v37, %v6590_v57  ;;  %v14070_v37 = vld [vmem:[%s21401_s7 + $0x7d4] sm:$0xf0]  ;;  %v12076_v47 = vld [vmem:[%s21401_s7 + $0x7a8] sm:$0xf]  ;;  %v11949_v12 = vor.u32 %v14034_v59, %v11948_v25  ;;  %v14028_v57 = vld [vmem:[%s21401_s7 + $0x68c] sm:$0xf] }
 0x670   : > { %6923 = vmatpush.bf16.msrb.mxu0 %v11909_v63  ;;  %6936 = vmatpush.bf16.msrb.mxu1 %v12037_v50  ;;  %v12005_v63 = vor.u32 %v14049_v49, %v12004_v14  ;;  %v19170_v50 = vadd.f32 %v5491_v48, %v5478_v33  ;;  %v14072_v14 = vld [vmem:[%s21401_s7 + $0x7ec] sm:$0xf]  ;;  %v12110_v49 = vld [vmem:[%s21401_s7 + $0x7f8] sm:$0xf0]  ;;  %v6594_v22 = vsel %vm5077_vm14, %v6593_v20, %v6592_v52  ;;  %v14022_v25 = vld [vmem:[%s21401_s7 + $0x654] sm:$0xf0] }
 0x671   : > { %6949 = vmatpush.bf16.msra.mxu2 %v11913_v41  ;;  %6962 = vmatpush.bf16.msra.mxu3 %v12041_v62  ;;  %v12009_v41 = vor.u32 %v14047_v53, %v12006_v32  ;;  %v14011_v62 = vld [vmem:[%s21401_s7 + $0x604] sm:$0xf]  ;;  %v6580_v32 = vsel %vm5077_vm14, %v6579_v58, %v6578_v18  ;;  %v12113_v48 = vor.u32 %v14072_v14, %v12110_v49  ;;  %v12092_v58 = vld [vmem:[%s21401_s7 + $0x7c8] sm:$0xf]  ;;  %v11966_v20 = vld [vmem:[%s21401_s7 + $0x6d8] sm:$0xf0] }
 0x672   : > { %v11865_v11 = vor.u32 %v14011_v62, %v11862_v29  ;;  %v5504_v46 = vpop.f32.mrf.mxu2  ;;  %v5517_v53 = vpop.f32.mrf.mxu3  ;;  %v11965_v62 = vor.u32 %v14038_v5, %v11964_v27  ;;  %v12093_v29 = vor.u32 %v14070_v37, %v12092_v58  ;;  %v11969_v54 = vor.u32 %v14036_v2, %v11966_v20  ;;  %v14030_v14 = vld [vmem:[%s21401_s7 + $0x694] sm:$0xf0]  ;;  %v14024_v58 = vld [vmem:[%s21401_s7 + $0x66c] sm:$0xf]  ;;  %v11918_v2 = vld [vmem:[%s21401_s7 + $0x678] sm:$0xf0] }
 0x673   : > { %v19233_v8 = vadd.f32 %v5517_v53, %v5504_v46  ;;  %v12077_v9 = vor.u32 %v14066_v60, %v12076_v47  ;;  %v12062_v46 = vld [vmem:[%s21401_s7 + $0x798] sm:$0xf0]  ;;  %v14056_v20 = vld [vmem:[%s21401_s7 + $0x76c] sm:$0xf]  ;;  %v11921_v59 = vor.u32 %v14024_v58, %v11918_v2  ;;  %v14054_v47 = vld [vmem:[%s21401_s7 + $0x754] sm:$0xf0] }
 0x674   : > { %6924 = vmatpush.bf16.msrb.mxu0 %v11893_v0  ;;  %6937 = vmatpush.bf16.msrb.mxu1 %v12021_v61  ;;  %v14074_v0 = vld [vmem:[%s21401_s7 + $0x7f4] sm:$0xf0]  ;;  %v14040_v61 = vld [vmem:[%s21401_s7 + $0x6ec] sm:$0xf]  ;;  %v11870_v58 = vld [vmem:[%s21401_s7 + $0x618] sm:$0xf0] }
 0x675   : > { %6950 = vmatpush.bf16.msra.mxu2 %v11897_v3  ;;  %6963 = vmatpush.bf16.msra.mxu3 %v12025_v51  ;;  %v11989_v3 = vor.u32 %v14045_v6, %v11988_v44  ;;  %v11982_v51 = vld [vmem:[%s21401_s7 + $0x6f8] sm:$0xf0]  ;;  %v12109_v1 = vor.u32 %v14074_v0, %v12108_v26  ;;  %v14068_v44 = vld [vmem:[%s21401_s7 + $0x7cc] sm:$0xf] }
 0x676   : > { %v11985_v33 = vor.u32 %v14040_v61, %v11982_v51  ;;  %v12094_v6 = vld [vmem:[%s21401_s7 + $0x7d8] sm:$0xf0]  ;;  %v14064_v0 = vld [vmem:[%s21401_s7 + $0x7ac] sm:$0xf]  ;;  %v11932_v51 = vld [vmem:[%s21401_s7 + $0x688] sm:$0xf] }
 0x677   : > { %v12097_v15 = vor.u32 %v14068_v44, %v12094_v6  ;;  %v11950_v26 = vld [vmem:[%s21401_s7 + $0x6b8] sm:$0xf0]  ;;  %v11933_v27 = vor.u32 %v14030_v14, %v11932_v51  ;;  %v14020_v60 = vld [vmem:[%s21401_s7 + $0x64c] sm:$0xf] }
 0x678   : > { %6925 = vmatpush.bf16.msrb.mxu0 %v11877_v24  ;;  %6938 = vmatpush.bf16.msrb.mxu1 %v12005_v63  ;;  %v5480_v24 = vpop.f32.mrf.mxu0  ;;  %v5493_v63 = vpop.f32.mrf.mxu1  ;;  %v12078_v61 = vld [vmem:[%s21401_s7 + $0x7b8] sm:$0xf0]  ;;  %v11953_v49 = vor.u32 %v14032_v31, %v11950_v26  ;;  %v14044_v2 = vld [vmem:[%s21401_s7 + $0x70c] sm:$0xf] }
 0x679   : > { %6951 = vmatpush.bf16.msra.mxu2 %v11881_v43  ;;  %6964 = vmatpush.bf16.msra.mxu3 %v12009_v41  ;;  %v19254_v43 = vpack.c.b16 %v6580_v32, %v6580_v32  ;;  %v19256_v41 = vpack.c.b16 %v6594_v22, %v6594_v22  ;;  %v12081_v18 = vor.u32 %v14064_v0, %v12078_v61  ;;  %v12044_v63 = vld [vmem:[%s21401_s7 + $0x768] sm:$0xf]  ;;  %v12046_v44 = vld [vmem:[%s21401_s7 + $0x778] sm:$0xf0]  ;;  %v14052_v61 = vld [vmem:[%s21401_s7 + $0x74c] sm:$0xf] }
 0x67a   : > { %v11902_v0 = vld [vmem:[%s21401_s7 + $0x658] sm:$0xf0] }
 0x67c   : > { %6926 = vmatpush.bf16.msrb.mxu0 %v11861_v28  ;;  %6939 = vmatpush.bf16.msrb.mxu1 %v11989_v3  ;;  %v5506_v28 = vpop.f32.mrf.mxu2  ;;  %v5519_v3 = vpop.f32.mrf.mxu3 }
 0x67d   : > { %6952 = vmatpush.bf16.msra.mxu2 %v11865_v11  ;;  %6965 = vmatpush.bf16.msra.mxu3 %v11993_v23  ;;  %v12060_v11 = vld [vmem:[%s21401_s7 + $0x788] sm:$0xf]  ;;  %v14062_v23 = vld [vmem:[%s21401_s7 + $0x794] sm:$0xf0] }
 0x67e   : > { %v12061_v5 = vor.u32 %v14062_v23, %v12060_v11  ;;  %v11905_v23 = vor.u32 %v14020_v60, %v11902_v0  ;;  %v12294_v60 = vld [vmem:[%s21401_s7 + $0x8f0] sm:$0xf0] }
 0x67f   : > { %6927 = vmatmul.bf16.vlgmr.msrb.gmra.mxu0 %v19254_v43  ;;  %6940 = vmatmul.bf16.vlgmr.msrb.gmra.mxu1 %v19256_v41 }
 0x680   : > { %6971 = vmatpush.bf16.msra.mxu0 %v11981_v13  ;;  %6984 = vmatpush.bf16.msra.mxu1 %v12109_v1  ;;  %v11934_v13 = vld [vmem:[%s21401_s7 + $0x698] sm:$0xf0]  ;;  %v14060_v1 = vld [vmem:[%s21401_s7 + $0x78c] sm:$0xf]  ;;  %v5882_v53 = vpop.f32.mrf.mxu0  ;;  %v5895_v32 = vpop.f32.mrf.mxu1 }
 0x681   : > { %6997 = vmatpush.bf16.msrb.mxu2 %v11985_v33  ;;  %7010 = vmatpush.bf16.msrb.mxu3 %v12113_v48  ;;  %v5883_v52 = vadd.f32 %v5882_v53, %v19048_v55  ;;  %v11916_v33 = vld [vmem:[%s21401_s7 + $0x668] sm:$0xf]  ;;  %v14026_v48 = vld [vmem:[%s21401_s7 + $0x674] sm:$0xf0]  ;;  %v11937_v22 = vor.u32 %v14028_v57, %v11934_v13  ;;  %v12065_v24 = vor.u32 %v14060_v1, %v12062_v46  ;;  %v14016_v1 = vld [vmem:[%s21401_s7 + $0x62c] sm:$0xf] }
 0x682   : > { %6953 = vmatmul.bf16.vlgmr.msra.gmra.mxu2 %v19254_v43  ;;  %6966 = vmatmul.bf16.vlgmr.msra.gmra.mxu3 %v19256_v41  ;;  %v14058_v55 = vld [vmem:[%s21401_s7 + $0x774] sm:$0xf0]  ;;  %v11917_v6 = vor.u32 %v14026_v48, %v11916_v33  ;;  %v12012_v57 = vld [vmem:[%s21401_s7 + $0x728] sm:$0xf]  ;;  %v11886_v46 = vld [vmem:[%s21401_s7 + $0x638] sm:$0xf0] }
 0x683   : > { %v19326_v37 = vadd.f32 %v5895_v32, %v5883_v52  ;;  %v14050_v13 = vld [vmem:[%s21401_s7 + $0x734] sm:$0xf0]  ;;  %v14048_v53 = vld [vmem:[%s21401_s7 + $0x72c] sm:$0xf]  ;;  %v12014_v32 = vld [vmem:[%s21401_s7 + $0x738] sm:$0xf0] }
 0x684   : > { %6972 = vmatpush.bf16.msra.mxu0 %v11965_v62  ;;  %6985 = vmatpush.bf16.msra.mxu1 %v12093_v29  ;;  %v12045_v62 = vor.u32 %v14058_v55, %v12044_v63  ;;  %v11900_v29 = vld [vmem:[%s21401_s7 + $0x648] sm:$0xf]  ;;  %v14014_v33 = vld [vmem:[%s21401_s7 + $0x614] sm:$0xf0]  ;;  %v12017_v63 = vor.u32 %v14048_v53, %v12014_v32  ;;  %v14012_v55 = vld [vmem:[%s21401_s7 + $0x60c] sm:$0xf] }
 0x685   : > { %6998 = vmatpush.bf16.msrb.mxu2 %v11969_v54  ;;  %7011 = vmatpush.bf16.msrb.mxu3 %v12097_v15  ;;  %v12049_v54 = vor.u32 %v14056_v20, %v12046_v44  ;;  %v12028_v15 = vld [vmem:[%s21401_s7 + $0x748] sm:$0xf]  ;;  %v5908_v31 = vpop.f32.mrf.mxu2  ;;  %v5921_v26 = vpop.f32.mrf.mxu3  ;;  %v11901_v51 = vor.u32 %v14022_v25, %v11900_v29  ;;  %v14105_v29 = vld [vmem:[%s21401_s7 + $0x8ec] sm:$0xf0]  ;;  %v12420_v25 = vld [vmem:[%s21401_s7 + $0x9e0] sm:$0xf]  ;;  %v11873_v0 = vor.u32 %v14012_v55, %v11870_v58 }
 0x686   : > { %v12029_v14 = vor.u32 %v14054_v47, %v12028_v15  ;;  %v11868_v52 = vld [vmem:[%s21401_s7 + $0x608] sm:$0xf]  ;;  %v12260_v53 = vld [vmem:[%s21401_s7 + $0x8a0] sm:$0xf]  ;;  %v14097_v32 = vld [vmem:[%s21401_s7 + $0x8ac] sm:$0xf0] }
 0x687   : > { %v11996_v48 = vld [vmem:[%s21401_s7 + $0x708] sm:$0xf]  ;;  %v11869_v15 = vor.u32 %v14014_v33, %v11868_v52  ;;  %v14129_v33 = vld [vmem:[%s21401_s7 + $0x9ac] sm:$0xf0]  ;;  %v12261_v55 = vor.u32 %v14097_v32, %v12260_v53  ;;  %v7097_v53 = vrot.slane %v18060_v42, 1  ;;  %v7100_v32 = vrot.slane %v18076_v4, 7 }
 0x688   : > { %6973 = vmatpush.bf16.msra.mxu0 %v11949_v12  ;;  %6986 = vmatpush.bf16.msra.mxu1 %v12077_v9  ;;  %v12030_v12 = vld [vmem:[%s21401_s7 + $0x758] sm:$0xf0]  ;;  %v5909_v9 = vadd.f32 %v5908_v31, %v19099_v19  ;;  %v5884_v28 = vpop.f32.mrf.mxu0  ;;  %v5897_v3 = vpop.f32.mrf.mxu1  ;;  %v14135_v31 = vld [vmem:[%s21401_s7 + $0x9e4] sm:$0xf] }
 0x689   : > { %6999 = vmatpush.bf16.msrb.mxu2 %v11953_v49  ;;  %7012 = vmatpush.bf16.msrb.mxu3 %v12081_v18  ;;  %v11884_v49 = vld [vmem:[%s21401_s7 + $0x628] sm:$0xf]  ;;  %v14018_v18 = vld [vmem:[%s21401_s7 + $0x634] sm:$0xf0]  ;;  %v12033_v19 = vor.u32 %v14052_v61, %v12030_v12  ;;  %v12276_v28 = vld [vmem:[%s21401_s7 + $0x8c0] sm:$0xf] }
 0x68a   : > { %v19368_v11 = vadd.f32 %v5921_v26, %v5909_v9  ;;  %v12422_v26 = vld [vmem:[%s21401_s7 + $0x9f0] sm:$0xf0]  ;;  %v14101_v3 = vld [vmem:[%s21401_s7 + $0x8cc] sm:$0xf0] }
 0x68c   : > { %6974 = vmatpush.bf16.msra.mxu0 %v11933_v27  ;;  %6987 = vmatpush.bf16.msra.mxu1 %v12061_v5  ;;  %v11885_v27 = vor.u32 %v14018_v18, %v11884_v49  ;;  %v12013_v5 = vor.u32 %v14050_v13, %v12012_v57  ;;  %v12404_v49 = vld [vmem:[%s21401_s7 + $0x9c0] sm:$0xf]  ;;  %v14133_v18 = vld [vmem:[%s21401_s7 + $0x9cc] sm:$0xf0]  ;;  %v14131_v57 = vld [vmem:[%s21401_s7 + $0x9c4] sm:$0xf] }
 0x68d   : > { %7000 = vmatpush.bf16.msrb.mxu2 %v11937_v22  ;;  %7013 = vmatpush.bf16.msrb.mxu3 %v12065_v24  ;;  %v14046_v22 = vld [vmem:[%s21401_s7 + $0x714] sm:$0xf0]  ;;  %v11889_v24 = vor.u32 %v14016_v1, %v11886_v46  ;;  %v5910_v20 = vpop.f32.mrf.mxu2  ;;  %v5923_v44 = vpop.f32.mrf.mxu3  ;;  %v12406_v13 = vld [vmem:[%s21401_s7 + $0x9d0] sm:$0xf0]  ;;  %v12277_v1 = vor.u32 %v14101_v3, %v12276_v28  ;;  %v12405_v46 = vor.u32 %v14133_v18, %v12404_v49  ;;  %v14121_v3 = vld [vmem:[%s21401_s7 + $0x96c] sm:$0xf0] }
 0x68e   : > { %v11997_v47 = vor.u32 %v14046_v22, %v11996_v48  ;;  %v14095_v48 = vld [vmem:[%s21401_s7 + $0x8a4] sm:$0xf]  ;;  %v12262_v22 = vld [vmem:[%s21401_s7 + $0x8b0] sm:$0xf0]  ;;  %v14093_v20 = vld [vmem:[%s21401_s7 + $0x88c] sm:$0xf0] }
 0x68f   : > { %v12265_v44 = vor.u32 %v14095_v48, %v12262_v22  ;;  %v12230_v49 = vld [vmem:[%s21401_s7 + $0x870] sm:$0xf0]  ;;  %v14119_v18 = vld [vmem:[%s21401_s7 + $0x964] sm:$0xf] }
 0x690   : > { %6975 = vmatpush.bf16.msra.mxu0 %v11917_v6  ;;  %6988 = vmatpush.bf16.msra.mxu1 %v12045_v62  ;;  %v11998_v6 = vld [vmem:[%s21401_s7 + $0x718] sm:$0xf0]  ;;  %v12292_v62 = vld [vmem:[%s21401_s7 + $0x8e0] sm:$0xf]  ;;  %v14083_v48 = vld [vmem:[%s21401_s7 + $0x844] sm:$0xf] }
 0x691   : > { %7001 = vmatpush.bf16.msrb.mxu2 %v11921_v59  ;;  %7014 = vmatpush.bf16.msrb.mxu3 %v12049_v54  ;;  %v14137_v59 = vld [vmem:[%s21401_s7 + $0x9ec] sm:$0xf0]  ;;  %v14103_v54 = vld [vmem:[%s21401_s7 + $0x8e4] sm:$0xf]  ;;  %v12001_v61 = vor.u32 %v14044_v2, %v11998_v6  ;;  %v12293_v12 = vor.u32 %v14105_v29, %v12292_v62  ;;  %v12244_v2 = vld [vmem:[%s21401_s7 + $0x880] sm:$0xf] }
 0x692   : > { %v12421_v9 = vor.u32 %v14137_v59, %v12420_v25  ;;  %v14091_v62 = vld [vmem:[%s21401_s7 + $0x884] sm:$0xf]  ;;  %v12246_v29 = vld [vmem:[%s21401_s7 + $0x890] sm:$0xf0] }
 0x693   : > { %v14123_v25 = vld [vmem:[%s21401_s7 + $0x984] sm:$0xf]  ;;  %v12374_v59 = vld [vmem:[%s21401_s7 + $0x990] sm:$0xf0] }
 0x694   : > { %6976 = vmatpush.bf16.msra.mxu0 %v11901_v51  ;;  %6989 = vmatpush.bf16.msra.mxu1 %v12029_v14  ;;  %v12297_v51 = vor.u32 %v14103_v54, %v12294_v60  ;;  %v12425_v14 = vor.u32 %v14135_v31, %v12422_v26  ;;  %v12245_v31 = vor.u32 %v14093_v20, %v12244_v2  ;;  %v12342_v2 = vld [vmem:[%s21401_s7 + $0x950] sm:$0xf0] }
 0x695   : > { %7002 = vmatpush.bf16.msrb.mxu2 %v11905_v23  ;;  %7015 = vmatpush.bf16.msrb.mxu3 %v12033_v19  ;;  %v14099_v23 = vld [vmem:[%s21401_s7 + $0x8c4] sm:$0xf]  ;;  %v12278_v19 = vld [vmem:[%s21401_s7 + $0x8d0] sm:$0xf0]  ;;  %v12377_v28 = vor.u32 %v14123_v25, %v12374_v59 }
 0x696   : > { %v12281_v52 = vor.u32 %v14099_v23, %v12278_v19  ;;  %v12358_v23 = vld [vmem:[%s21401_s7 + $0x970] sm:$0xf0]  ;;  %v7092_v19 = vrot.slane %v18039_v21, 4 }
 0x698   : > { %6977 = vmatpush.bf16.msra.mxu0 %v11885_v27  ;;  %6990 = vmatpush.bf16.msra.mxu1 %v12013_v5  ;;  %v12409_v27 = vor.u32 %v14131_v57, %v12406_v13  ;;  %v12388_v5 = vld [vmem:[%s21401_s7 + $0x9a0] sm:$0xf] }
 0x699   : > { %7003 = vmatpush.bf16.msrb.mxu2 %v11889_v24  ;;  %7016 = vmatpush.bf16.msrb.mxu3 %v12017_v63  ;;  %v14127_v24 = vld [vmem:[%s21401_s7 + $0x9a4] sm:$0xf]  ;;  %v12390_v63 = vld [vmem:[%s21401_s7 + $0x9b0] sm:$0xf0]  ;;  %v12389_v58 = vor.u32 %v14129_v33, %v12388_v5  ;;  %v12340_v5 = vld [vmem:[%s21401_s7 + $0x940] sm:$0xf] }
 0x69a   : > { %v12393_v6 = vor.u32 %v14127_v24, %v12390_v63  ;;  %v14117_v33 = vld [vmem:[%s21401_s7 + $0x94c] sm:$0xf0] }
 0x69b   : > { %v12341_v59 = vor.u32 %v14117_v33, %v12340_v5  ;;  %v14075_v33 = vld [vmem:[%s21401_s7 + $0x804] sm:$0xf] }
 0x69c   : > { %6978 = vmatpush.bf16.msra.mxu0 %v11869_v15  ;;  %6991 = vmatpush.bf16.msra.mxu1 %v11997_v47  ;;  %v5934_v54 = vpop.f32.mrf.mxu0  ;;  %v5947_v15 = vpop.f32.mrf.mxu1  ;;  %v7093_v47 = vrot.slane %v18051_v10, 3 }
 0x69d   : > { %7004 = vmatpush.bf16.msrb.mxu2 %v11873_v0  ;;  %7017 = vmatpush.bf16.msrb.mxu3 %v12001_v61  ;;  %v5935_v60 = vadd.f32 %v5934_v54, %v19170_v50  ;;  %v12228_v0 = vld [vmem:[%s21401_s7 + $0x860] sm:$0xf]  ;;  %v14089_v61 = vld [vmem:[%s21401_s7 + $0x86c] sm:$0xf0] }
 0x69e   : > { %v12356_v50 = vld [vmem:[%s21401_s7 + $0x960] sm:$0xf]  ;;  %v12229_v57 = vor.u32 %v14089_v61, %v12228_v0  ;;  %v7094_v22 = vsel %vm5059_vm8, %v7093_v47, %v7092_v19  ;;  %v7111_v47 = vrot.slane %v18065_v38, 1  ;;  %v14113_v61 = vld [vmem:[%s21401_s7 + $0x92c] sm:$0xf0]  ;;  %v7118_v19 = vrot.slane %v18099_v45, 5 }
 0x69f   : > { %6979 = vmatmul.bf16.vlgmr.msra.gmra.mxu0 %v19254_v43  ;;  %6992 = vmatmul.bf16.vlgmr.msra.gmra.mxu1 %v19256_v41  ;;  %v12357_v13 = vor.u32 %v14121_v3, %v12356_v50  ;;  %v12196_v54 = vld [vmem:[%s21401_s7 + $0x820] sm:$0xf]  ;;  %v12326_v50 = vld [vmem:[%s21401_s7 + $0x930] sm:$0xf0] }
 0x6a0   : > { %7444 = vmatpush.bf16.msrb.mxu0 %v12293_v12  ;;  %7457 = vmatpush.bf16.msrb.mxu1 %v12421_v9  ;;  %v7095_v12 = vrot.slane %v18053_v30, 2  ;;  %v12249_v9 = vor.u32 %v14091_v62, %v12246_v29  ;;  %v7106_v62 = vrot.slane %v18047_v7, 4  ;;  %v7107_v29 = vrot.slane %v18063_v40, 3  ;;  %v12324_v0 = vld [vmem:[%s21401_s7 + $0x920] sm:$0xf] }
 0x6a1   : > { %7470 = vmatpush.bf16.msra.mxu2 %v12297_v51  ;;  %7483 = vmatpush.bf16.msra.mxu3 %v12425_v14  ;;  %v14087_v51 = vld [vmem:[%s21401_s7 + $0x864] sm:$0xf]  ;;  %v19530_v14 = vadd.f32 %v5947_v15, %v5935_v60  ;;  %v7109_v15 = vrot.slane %v18055_v16, 2 }
 0x6a2   : > { %7005 = vmatmul.bf16.vlgmr.msrb.gmra.mxu2 %v19254_v43  ;;  %7018 = vmatmul.bf16.vlgmr.msrb.gmra.mxu3 %v19256_v41  ;;  %v12372_v43 = vld [vmem:[%s21401_s7 + $0x980] sm:$0xf]  ;;  %v14125_v41 = vld [vmem:[%s21401_s7 + $0x98c] sm:$0xf0]  ;;  %v7096_v20 = vsel %vm5062_vm9, %v7095_v12, %v7094_v22  ;;  %v14079_v12 = vld [vmem:[%s21401_s7 + $0x824] sm:$0xf] }
 0x6a3   : > { %v12373_v26 = vor.u32 %v14125_v41, %v12372_v43  ;;  %v7102_v41 = vrot.slane %v18080_v35, 6  ;;  %v7098_v3 = vsel %vm5065_vm10, %v7097_v53, %v7096_v20  ;;  %v14109_v53 = vld [vmem:[%s21401_s7 + $0x90c] sm:$0xf0]  ;;  %v14107_v22 = vld [vmem:[%s21401_s7 + $0x904] sm:$0xf] }
 0x6a4   : > { %7445 = vmatpush.bf16.msrb.mxu0 %v12277_v1  ;;  %7458 = vmatpush.bf16.msrb.mxu1 %v12405_v46  ;;  %v12212_v1 = vld [vmem:[%s21401_s7 + $0x840] sm:$0xf]  ;;  %v14085_v46 = vld [vmem:[%s21401_s7 + $0x84c] sm:$0xf0]  ;;  %v5949_v43 = vpop.f32.mrf.mxu1  ;;  %v14106_v20 = vld [vmem:[%s21401_s7 + $0x8f4] sm:$0xf0] }
 0x6a5   : > { %7471 = vmatpush.bf16.msra.mxu2 %v12281_v52  ;;  %7484 = vmatpush.bf16.msra.mxu3 %v12409_v27  ;;  %v12233_v52 = vor.u32 %v14087_v51, %v12230_v49  ;;  %v12361_v27 = vor.u32 %v14119_v18, %v12358_v23  ;;  %v5960_v24 = vpop.f32.mrf.mxu2  ;;  %v5973_v63 = vpop.f32.mrf.mxu3  ;;  %v12213_v25 = vor.u32 %v14085_v46, %v12212_v1  ;;  %v12180_v51 = vld [vmem:[%s21401_s7 + $0x800] sm:$0xf]  ;;  %v7104_v49 = vrot.slane %v18097_v39, 5  ;;  %v14077_v1 = vld [vmem:[%s21401_s7 + $0x80c] sm:$0xf0] }
 0x6a6   : > { %v7114_v18 = vrot.slane %v18078_v56, 7  ;;  %v7116_v23 = vrot.slane %v18082_v36, 6  ;;  %v12308_v46 = vld [vmem:[%s21401_s7 + $0x900] sm:$0xf]  ;;  %v12428_v43 = vld [vmem:[%s21401_s7 + $0x9e8] sm:$0xf] }
 0x6a8   : > { %7446 = vmatpush.bf16.msrb.mxu0 %v12261_v55  ;;  %7459 = vmatpush.bf16.msrb.mxu1 %v12389_v58  ;;  %v12214_v55 = vld [vmem:[%s21401_s7 + $0x850] sm:$0xf0]  ;;  %v14115_v58 = vld [vmem:[%s21401_s7 + $0x944] sm:$0xf] }
 0x6a9   : > { %7472 = vmatpush.bf16.msra.mxu2 %v12265_v44  ;;  %7485 = vmatpush.bf16.msra.mxu3 %v12393_v6  ;;  %v5961_v44 = vadd.f32 %v5960_v24, %v19233_v8  ;;  %v5936_v6 = vpop.f32.mrf.mxu0  ;;  %v14081_v8 = vld [vmem:[%s21401_s7 + $0x82c] sm:$0xf0]  ;;  %v7108_v24 = vsel %vm5059_vm8, %v7107_v29, %v7106_v62  ;;  %v14138_v62 = vld [vmem:[%s21401_s7 + $0x9f4] sm:$0xf0]  ;;  %v14104_v29 = vld [vmem:[%s21401_s7 + $0x8ec] sm:$0xf] }
 0x6aa   : > { %v7110_v6 = vsel %vm5062_vm9, %v7109_v15, %v7108_v24  ;;  %v14136_v15 = vld [vmem:[%s21401_s7 + $0x9ec] sm:$0xf] }
 0x6ab   : > { %v19582_v60 = vadd.f32 %v5973_v63, %v5961_v44 }
 0x6ac   : > { %7447 = vmatpush.bf16.msrb.mxu0 %v12245_v31  ;;  %7460 = vmatpush.bf16.msrb.mxu1 %v12373_v26  ;;  %v12217_v31 = vor.u32 %v14083_v48, %v12214_v55  ;;  %v12345_v26 = vor.u32 %v14115_v58, %v12342_v2  ;;  %v12182_v48 = vld [vmem:[%s21401_s7 + $0x810] sm:$0xf0]  ;;  %v12300_v2 = vld [vmem:[%s21401_s7 + $0x8e8] sm:$0xf] }
 0x6ad   : > { %7473 = vmatpush.bf16.msra.mxu2 %v12249_v9  ;;  %7486 = vmatpush.bf16.msra.mxu3 %v12377_v28  ;;  %v12198_v9 = vld [vmem:[%s21401_s7 + $0x830] sm:$0xf0]  ;;  %v14111_v28 = vld [vmem:[%s21401_s7 + $0x924] sm:$0xf]  ;;  %v5962_v63 = vpop.f32.mrf.mxu2  ;;  %v5975_v55 = vpop.f32.mrf.mxu3 }
 0x6ae   : > { %v12329_v5 = vor.u32 %v14111_v28, %v12326_v50  ;;  %v12310_v58 = vld [vmem:[%s21401_s7 + $0x910] sm:$0xf0]  ;;  %v12284_v50 = vld [vmem:[%s21401_s7 + $0x8c8] sm:$0xf]  ;;  %v14130_v55 = vld [vmem:[%s21401_s7 + $0x9b4] sm:$0xf0] }
 0x6af   : > { %v12396_v63 = vld [vmem:[%s21401_s7 + $0x9a8] sm:$0xf] }
 0x6b0   : > { %7448 = vmatpush.bf16.msrb.mxu0 %v12229_v57  ;;  %7461 = vmatpush.bf16.msrb.mxu1 %v12357_v13  ;;  %v12197_v57 = vor.u32 %v14081_v8, %v12196_v54  ;;  %v12325_v13 = vor.u32 %v14113_v61, %v12324_v0  ;;  %v12309_v54 = vor.u32 %v14109_v53, %v12308_v46  ;;  %v12302_v8 = vld [vmem:[%s21401_s7 + $0x8f8] sm:$0xf0] }
 0x6b1   : > { %7474 = vmatpush.bf16.msra.mxu2 %v12233_v52  ;;  %7487 = vmatpush.bf16.msra.mxu3 %v12361_v27  ;;  %v7099_v52 = vsel %vm5068_vm11, %v18070_v34, %v7098_v3  ;;  %v12201_v27 = vor.u32 %v14079_v12, %v12198_v9  ;;  %v12301_v61 = vor.u32 %v14106_v20, %v12300_v2  ;;  %v14102_v3 = vld [vmem:[%s21401_s7 + $0x8d4] sm:$0xf0]  ;;  %v12414_v46 = vld [vmem:[%s21401_s7 + $0x9d8] sm:$0xf0]  ;;  %v14128_v20 = vld [vmem:[%s21401_s7 + $0x9ac] sm:$0xf] }
 0x6b2   : > { %v7101_v44 = vsel %vm5071_vm12, %v7100_v32, %v7099_v52  ;;  %v12181_v32 = vor.u32 %v14077_v1, %v12180_v51  ;;  %v12429_v12 = vor.u32 %v14138_v62, %v12428_v43  ;;  %v12305_v51 = vor.u32 %v14104_v29, %v12302_v8  ;;  %v12286_v1 = vld [vmem:[%s21401_s7 + $0x8d8] sm:$0xf0]  ;;  %v12252_v62 = vld [vmem:[%s21401_s7 + $0x888] sm:$0xf]  ;;  %v14094_v29 = vld [vmem:[%s21401_s7 + $0x894] sm:$0xf0] }
 0x6b3   : > { %v12270_v2 = vld [vmem:[%s21401_s7 + $0x8b8] sm:$0xf0]  ;;  %v12397_v43 = vor.u32 %v14130_v55, %v12396_v63  ;;  %v14092_v8 = vld [vmem:[%s21401_s7 + $0x88c] sm:$0xf] }
 0x6b4   : > { %7449 = vmatpush.bf16.msrb.mxu0 %v12213_v25  ;;  %7462 = vmatpush.bf16.msrb.mxu1 %v12341_v59  ;;  %v7103_v25 = vsel %vm5074_vm13, %v7102_v41, %v7101_v44  ;;  %v7112_v59 = vsel %vm5065_vm10, %v7111_v47, %v7110_v6  ;;  %v12185_v47 = vor.u32 %v14075_v33, %v12182_v48  ;;  %v12268_v33 = vld [vmem:[%s21401_s7 + $0x8a8] sm:$0xf]  ;;  %v14098_v48 = vld [vmem:[%s21401_s7 + $0x8b4] sm:$0xf0]  ;;  %v12398_v44 = vld [vmem:[%s21401_s7 + $0x9b8] sm:$0xf0] }
 0x6b5   : > { %7475 = vmatpush.bf16.msra.mxu2 %v12217_v31  ;;  %7488 = vmatpush.bf16.msra.mxu3 %v12345_v26  ;;  %v12430_v31 = vld [vmem:[%s21401_s7 + $0x9f8] sm:$0xf0]  ;;  %v7113_v41 = vsel %vm5068_vm11, %v18072_v17, %v7112_v59  ;;  %v12313_v26 = vor.u32 %v14107_v22, %v12310_v58  ;;  %v7105_v9 = vsel %vm5077_vm14, %v7104_v49, %v7103_v25  ;;  %v14134_v49 = vld [vmem:[%s21401_s7 + $0x9d4] sm:$0xf0]  ;;  %v14096_v58 = vld [vmem:[%s21401_s7 + $0x8ac] sm:$0xf] }
 0x6b6   : > { %v7115_v0 = vsel %vm5071_vm12, %v7114_v18, %v7113_v41  ;;  %v12412_v18 = vld [vmem:[%s21401_s7 + $0x9c8] sm:$0xf]  ;;  %v19694_v53 = vpack.c.b16 %v7105_v9, %v7105_v9  ;;  %v12269_v6 = vor.u32 %v14098_v48, %v12268_v33  ;;  %v12273_v25 = vor.u32 %v14096_v58, %v12270_v2  ;;  %v12382_v41 = vld [vmem:[%s21401_s7 + $0x998] sm:$0xf0]  ;;  %v14116_v2 = vld [vmem:[%s21401_s7 + $0x94c] sm:$0xf] }
 0x6b7   : > { %v7117_v28 = vsel %vm5074_vm13, %v7116_v23, %v7115_v0  ;;  %v14100_v23 = vld [vmem:[%s21401_s7 + $0x8cc] sm:$0xf]  ;;  %v12401_v59 = vor.u32 %v14128_v20, %v12398_v44  ;;  %v12236_v9 = vld [vmem:[%s21401_s7 + $0x868] sm:$0xf]  ;;  %v12222_v58 = vld [vmem:[%s21401_s7 + $0x858] sm:$0xf0] }
 0x6b8   : > { %7450 = vmatpush.bf16.msrb.mxu0 %v12197_v57  ;;  %7463 = vmatpush.bf16.msrb.mxu1 %v12325_v13  ;;  %v12433_v57 = vor.u32 %v14136_v15, %v12430_v31  ;;  %v7119_v13 = vsel %vm5077_vm14, %v7118_v19, %v7117_v28  ;;  %v14132_v19 = vld [vmem:[%s21401_s7 + $0x9cc] sm:$0xf]  ;;  %v12289_v22 = vor.u32 %v14100_v23, %v12286_v1  ;;  %v12254_v15 = vld [vmem:[%s21401_s7 + $0x898] sm:$0xf0]  ;;  %v14090_v28 = vld [vmem:[%s21401_s7 + $0x874] sm:$0xf0] }
 0x6b9   : > { %7476 = vmatpush.bf16.msra.mxu2 %v12201_v27  ;;  %7489 = vmatpush.bf16.msra.mxu3 %v12329_v5  ;;  %v19696_v52 = vpack.c.b16 %v7119_v13, %v7119_v13  ;;  %v12285_v27 = vor.u32 %v14102_v3, %v12284_v50  ;;  %v12413_v5 = vor.u32 %v14134_v49, %v12412_v18  ;;  %v14124_v31 = vld [vmem:[%s21401_s7 + $0x98c] sm:$0xf]  ;;  %v12238_v49 = vld [vmem:[%s21401_s7 + $0x878] sm:$0xf0]  ;;  %v12348_v48 = vld [vmem:[%s21401_s7 + $0x948] sm:$0xf] }
 0x6ba   : > { %v12417_v24 = vor.u32 %v14132_v19, %v12414_v46  ;;  %v12257_v50 = vor.u32 %v14092_v8, %v12254_v15  ;;  %v12385_v3 = vor.u32 %v14124_v31, %v12382_v41  ;;  %v14088_v13 = vld [vmem:[%s21401_s7 + $0x86c] sm:$0xf]  ;;  %v12366_v1 = vld [vmem:[%s21401_s7 + $0x978] sm:$0xf0]  ;;  %v12237_v19 = vor.u32 %v14090_v28, %v12236_v9  ;;  %v12332_v15 = vld [vmem:[%s21401_s7 + $0x928] sm:$0xf] }
 0x6bb   : > { %v14120_v23 = vld [vmem:[%s21401_s7 + $0x96c] sm:$0xf]  ;;  %v12350_v20 = vld [vmem:[%s21401_s7 + $0x958] sm:$0xf0]  ;;  %v14114_v31 = vld [vmem:[%s21401_s7 + $0x934] sm:$0xf0] }
 0x6bc   : > { %7451 = vmatpush.bf16.msrb.mxu0 %v12181_v32  ;;  %7464 = vmatpush.bf16.msrb.mxu1 %v12309_v54  ;;  %v12380_v32 = vld [vmem:[%s21401_s7 + $0x988] sm:$0xf]  ;;  %v14126_v54 = vld [vmem:[%s21401_s7 + $0x994] sm:$0xf0]  ;;  %v12369_v33 = vor.u32 %v14120_v23, %v12366_v1  ;;  %v12353_v8 = vor.u32 %v14116_v2, %v12350_v20  ;;  %v14080_v41 = vld [vmem:[%s21401_s7 + $0x82c] sm:$0xf] }
 0x6bd   : > { %7477 = vmatpush.bf16.msra.mxu2 %v12185_v47  ;;  %7490 = vmatpush.bf16.msra.mxu3 %v12313_v26  ;;  %v6403_v47 = vpop.f32.mrf.mxu0  ;;  %v6416_v26 = vpop.f32.mrf.mxu1  ;;  %v14078_v9 = vld [vmem:[%s21401_s7 + $0x814] sm:$0xf0]  ;;  %v12316_v28 = vld [vmem:[%s21401_s7 + $0x908] sm:$0xf] }
 0x6be   : > { %v6417_v0 = vadd.f32 %v6416_v26, %v6403_v47  ;;  %v12206_v47 = vld [vmem:[%s21401_s7 + $0x838] sm:$0xf0] }
 0x6bf   : > { %7452 = vmatmul.bf16.vlgmr.msrb.gmra.mxu0 %v19694_v53  ;;  %7465 = vmatmul.bf16.vlgmr.msrb.gmra.mxu1 %v19696_v52  ;;  %v12334_v26 = vld [vmem:[%s21401_s7 + $0x938] sm:$0xf0] }
 0x6c0   : > { %7496 = vmatpush.bf16.msra.mxu0 %v12301_v61  ;;  %7509 = vmatpush.bf16.msra.mxu1 %v12429_v12  ;;  %v12253_v61 = vor.u32 %v14094_v29, %v12252_v62  ;;  %v12381_v12 = vor.u32 %v14126_v54, %v12380_v32  ;;  %v19766_v18 = vadd.f32 %v6417_v0, %v19326_v37  ;;  %v12220_v37 = vld [vmem:[%s21401_s7 + $0x848] sm:$0xf] }
 0x6c1   : > { %7522 = vmatpush.bf16.msrb.mxu2 %v12305_v51  ;;  %7535 = vmatpush.bf16.msrb.mxu3 %v12433_v57  ;;  %v12364_v51 = vld [vmem:[%s21401_s7 + $0x968] sm:$0xf]  ;;  %v14122_v57 = vld [vmem:[%s21401_s7 + $0x974] sm:$0xf0] }
 0x6c2   : > { %7478 = vmatmul.bf16.vlgmr.msra.gmra.mxu2 %v19694_v53  ;;  %7491 = vmatmul.bf16.vlgmr.msra.gmra.mxu3 %v19696_v52  ;;  %v12365_v46 = vor.u32 %v14122_v57, %v12364_v51  ;;  %v12188_v0 = vld [vmem:[%s21401_s7 + $0x808] sm:$0xf]  ;;  %v14076_v57 = vld [vmem:[%s21401_s7 + $0x80c] sm:$0xf] }
 0x6c4   : > { %7497 = vmatpush.bf16.msra.mxu0 %v12285_v27  ;;  %7510 = vmatpush.bf16.msra.mxu1 %v12413_v5  ;;  %v14086_v27 = vld [vmem:[%s21401_s7 + $0x854] sm:$0xf0]  ;;  %v12241_v5 = vor.u32 %v14088_v13, %v12238_v49  ;;  %v12190_v13 = vld [vmem:[%s21401_s7 + $0x818] sm:$0xf0]  ;;  %v14108_v49 = vld [vmem:[%s21401_s7 + $0x90c] sm:$0xf] }
 0x6c5   : > { %7523 = vmatpush.bf16.msrb.mxu2 %v12289_v22  ;;  %7536 = vmatpush.bf16.msrb.mxu3 %v12417_v24  ;;  %v14118_v22 = vld [vmem:[%s21401_s7 + $0x954] sm:$0xf0]  ;;  %v14084_v24 = vld [vmem:[%s21401_s7 + $0x84c] sm:$0xf]  ;;  %v6429_v63 = vpop.f32.mrf.mxu2  ;;  %v6442_v55 = vpop.f32.mrf.mxu3  ;;  %v12221_v62 = vor.u32 %v14086_v27, %v12220_v37  ;;  %v14169_v37 = vld [vmem:[%s21401_s7 + $0xaec] sm:$0xf0] }
 0x6c6   : > { %v6443_v44 = vadd.f32 %v6442_v55, %v6429_v63  ;;  %v12349_v29 = vor.u32 %v14118_v22, %v12348_v48  ;;  %v12225_v54 = vor.u32 %v14084_v24, %v12222_v58  ;;  %v12740_v27 = vld [vmem:[%s21401_s7 + $0xbe0] sm:$0xf]  ;;  %v12189_v48 = vor.u32 %v14078_v9, %v12188_v0  ;;  %v12614_v24 = vld [vmem:[%s21401_s7 + $0xaf0] sm:$0xf0]  ;;  %v14199_v63 = vld [vmem:[%s21401_s7 + $0xbe4] sm:$0xf] }
 0x6c7   : > { %v12742_v55 = vld [vmem:[%s21401_s7 + $0xbf0] sm:$0xf0]  ;;  %v12193_v58 = vor.u32 %v14076_v57, %v12190_v13  ;;  %v14193_v9 = vld [vmem:[%s21401_s7 + $0xbac] sm:$0xf0] }
 0x6c8   : > { %7498 = vmatpush.bf16.msra.mxu0 %v12269_v6  ;;  %7511 = vmatpush.bf16.msra.mxu1 %v12397_v43  ;;  %v6405_v6 = vpop.f32.mrf.mxu0  ;;  %v6418_v43 = vpop.f32.mrf.mxu1  ;;  %v19808_v32 = vadd.f32 %v6443_v44, %v19368_v11  ;;  %v14112_v11 = vld [vmem:[%s21401_s7 + $0x92c] sm:$0xf] }
 0x6c9   : > { %7524 = vmatpush.bf16.msrb.mxu2 %v12273_v25  ;;  %7537 = vmatpush.bf16.msrb.mxu3 %v12401_v59  ;;  %v12204_v25 = vld [vmem:[%s21401_s7 + $0x828] sm:$0xf]  ;;  %v14082_v59 = vld [vmem:[%s21401_s7 + $0x834] sm:$0xf0]  ;;  %v12337_v51 = vor.u32 %v14112_v11, %v12334_v26  ;;  %v12596_v6 = vld [vmem:[%s21401_s7 + $0xac0] sm:$0xf] }
 0x6ca   : > { %v14165_v43 = vld [vmem:[%s21401_s7 + $0xacc] sm:$0xf0]  ;;  %v12580_v11 = vld [vmem:[%s21401_s7 + $0xaa0] sm:$0xf] }
 0x6cb   : > { %v14161_v26 = vld [vmem:[%s21401_s7 + $0xaac] sm:$0xf0] }
 0x6cc   : > { %7499 = vmatpush.bf16.msra.mxu0 %v12253_v61  ;;  %7512 = vmatpush.bf16.msra.mxu1 %v12381_v12  ;;  %v12205_v61 = vor.u32 %v14082_v59, %v12204_v25  ;;  %v12333_v12 = vor.u32 %v14114_v31, %v12332_v15  ;;  %v12724_v25 = vld [vmem:[%s21401_s7 + $0xbc0] sm:$0xf]  ;;  %v14197_v59 = vld [vmem:[%s21401_s7 + $0xbcc] sm:$0xf0]  ;;  %v14195_v15 = vld [vmem:[%s21401_s7 + $0xbc4] sm:$0xf]  ;;  %v12581_v57 = vor.u32 %v14161_v26, %v12580_v11 }
 0x6cd   : > { %7525 = vmatpush.bf16.msrb.mxu2 %v12257_v50  ;;  %7538 = vmatpush.bf16.msrb.mxu3 %v12385_v3  ;;  %v14110_v50 = vld [vmem:[%s21401_s7 + $0x914] sm:$0xf0]  ;;  %v12209_v3 = vor.u32 %v14080_v41, %v12206_v47  ;;  %v6431_v23 = vpop.f32.mrf.mxu2  ;;  %v6444_v1 = vpop.f32.mrf.mxu3  ;;  %v12726_v31 = vld [vmem:[%s21401_s7 + $0xbd0] sm:$0xf0]  ;;  %v12597_v41 = vor.u32 %v14165_v43, %v12596_v6  ;;  %v12725_v47 = vor.u32 %v14197_v59, %v12724_v25  ;;  %v12676_v43 = vld [vmem:[%s21401_s7 + $0xb60] sm:$0xf] }
 0x6ce   : > { %v12317_v22 = vor.u32 %v14110_v50, %v12316_v28  ;;  %v14159_v28 = vld [vmem:[%s21401_s7 + $0xaa4] sm:$0xf]  ;;  %v12582_v50 = vld [vmem:[%s21401_s7 + $0xab0] sm:$0xf0]  ;;  %v14157_v23 = vld [vmem:[%s21401_s7 + $0xa8c] sm:$0xf0] }
 0x6cf   : > { %v12585_v1 = vor.u32 %v14159_v28, %v12582_v50  ;;  %v12550_v59 = vld [vmem:[%s21401_s7 + $0xa70] sm:$0xf0]  ;;  %v7622_v11 = vrot.slane %v18060_v42, 2  ;;  %v7624_v26 = vrot.slane %v18070_v34, 1  ;;  %v14147_v28 = vld [vmem:[%s21401_s7 + $0xa44] sm:$0xf] }
 0x6d0   : > { %7500 = vmatpush.bf16.msra.mxu0 %v12237_v19  ;;  %7513 = vmatpush.bf16.msra.mxu1 %v12365_v46  ;;  %v12318_v19 = vld [vmem:[%s21401_s7 + $0x918] sm:$0xf0]  ;;  %v12612_v46 = vld [vmem:[%s21401_s7 + $0xae0] sm:$0xf] }
 0x6d1   : > { %7526 = vmatpush.bf16.msrb.mxu2 %v12241_v5  ;;  %7539 = vmatpush.bf16.msrb.mxu3 %v12369_v33  ;;  %v14201_v5 = vld [vmem:[%s21401_s7 + $0xbec] sm:$0xf0]  ;;  %v14167_v33 = vld [vmem:[%s21401_s7 + $0xae4] sm:$0xf]  ;;  %v12321_v2 = vor.u32 %v14108_v49, %v12318_v19  ;;  %v12613_v20 = vor.u32 %v14169_v37, %v12612_v46  ;;  %v12564_v49 = vld [vmem:[%s21401_s7 + $0xa80] sm:$0xf] }
 0x6d2   : > { %v12741_v44 = vor.u32 %v14201_v5, %v12740_v27  ;;  %v14155_v46 = vld [vmem:[%s21401_s7 + $0xa84] sm:$0xf]  ;;  %v12566_v37 = vld [vmem:[%s21401_s7 + $0xa90] sm:$0xf0] }
 0x6d3   : > { %v14187_v27 = vld [vmem:[%s21401_s7 + $0xb84] sm:$0xf]  ;;  %v12694_v5 = vld [vmem:[%s21401_s7 + $0xb90] sm:$0xf0] }
 0x6d4   : > { %7501 = vmatpush.bf16.msra.mxu0 %v12221_v62  ;;  %7514 = vmatpush.bf16.msra.mxu1 %v12349_v29  ;;  %v12617_v62 = vor.u32 %v14167_v33, %v12614_v24  ;;  %v12745_v29 = vor.u32 %v14199_v63, %v12742_v55  ;;  %v12565_v63 = vor.u32 %v14157_v23, %v12564_v49  ;;  %v12662_v49 = vld [vmem:[%s21401_s7 + $0xb50] sm:$0xf0] }
 0x6d5   : > { %7527 = vmatpush.bf16.msrb.mxu2 %v12225_v54  ;;  %7540 = vmatpush.bf16.msrb.mxu3 %v12353_v8  ;;  %v14163_v54 = vld [vmem:[%s21401_s7 + $0xac4] sm:$0xf]  ;;  %v12598_v8 = vld [vmem:[%s21401_s7 + $0xad0] sm:$0xf0]  ;;  %v12697_v6 = vor.u32 %v14187_v27, %v12694_v5 }
 0x6d6   : > { %v12601_v0 = vor.u32 %v14163_v54, %v12598_v8  ;;  %v14183_v54 = vld [vmem:[%s21401_s7 + $0xb64] sm:$0xf]  ;;  %v12678_v8 = vld [vmem:[%s21401_s7 + $0xb70] sm:$0xf0] }
 0x6d8   : > { %7502 = vmatpush.bf16.msra.mxu0 %v12205_v61  ;;  %7515 = vmatpush.bf16.msra.mxu1 %v12333_v12  ;;  %v12729_v61 = vor.u32 %v14195_v15, %v12726_v31  ;;  %v12708_v12 = vld [vmem:[%s21401_s7 + $0xba0] sm:$0xf]  ;;  %v7617_v15 = vrot.slane %v18039_v21, 5 }
 0x6d9   : > { %7528 = vmatpush.bf16.msrb.mxu2 %v12209_v3  ;;  %7541 = vmatpush.bf16.msrb.mxu3 %v12337_v51  ;;  %v14191_v3 = vld [vmem:[%s21401_s7 + $0xba4] sm:$0xf]  ;;  %v12710_v51 = vld [vmem:[%s21401_s7 + $0xbb0] sm:$0xf0]  ;;  %v12709_v13 = vor.u32 %v14193_v9, %v12708_v12  ;;  %v12660_v12 = vld [vmem:[%s21401_s7 + $0xb40] sm:$0xf] }
 0x6da   : > { %v12713_v19 = vor.u32 %v14191_v3, %v12710_v51  ;;  %v14181_v9 = vld [vmem:[%s21401_s7 + $0xb4c] sm:$0xf0] }
 0x6db   : > { %v12661_v5 = vor.u32 %v14181_v9, %v12660_v12  ;;  %v14139_v9 = vld [vmem:[%s21401_s7 + $0xa04] sm:$0xf] }
 0x6dc   : > { %7503 = vmatpush.bf16.msra.mxu0 %v12189_v48  ;;  %7516 = vmatpush.bf16.msra.mxu1 %v12317_v22  ;;  %v6455_v33 = vpop.f32.mrf.mxu0  ;;  %v6468_v48 = vpop.f32.mrf.mxu1  ;;  %v7618_v22 = vrot.slane %v18051_v10, 4 }
 0x6dd   : > { %7529 = vmatpush.bf16.msrb.mxu2 %v12193_v58  ;;  %7542 = vmatpush.bf16.msrb.mxu3 %v12321_v2  ;;  %v6469_v24 = vadd.f32 %v6468_v48, %v6455_v33  ;;  %v12548_v58 = vld [vmem:[%s21401_s7 + $0xa60] sm:$0xf]  ;;  %v14153_v2 = vld [vmem:[%s21401_s7 + $0xa6c] sm:$0xf0] }
 0x6de   : > { %v12549_v31 = vor.u32 %v14153_v2, %v12548_v58  ;;  %v7619_v50 = vsel %vm5059_vm8, %v7618_v22, %v7617_v15  ;;  %v12516_v33 = vld [vmem:[%s21401_s7 + $0xa20] sm:$0xf]  ;;  %v14145_v48 = vld [vmem:[%s21401_s7 + $0xa2c] sm:$0xf0]  ;;  %v7636_v22 = vrot.slane %v18065_v38, 2  ;;  %v7643_v15 = vrot.slane %v18099_v45, 6 }
 0x6df   : > { %7504 = vmatmul.bf16.vlgmr.msra.gmra.mxu0 %v19694_v53  ;;  %7517 = vmatmul.bf16.vlgmr.msra.gmra.mxu1 %v19696_v52  ;;  %v19970_v25 = vadd.f32 %v6469_v24, %v19530_v14  ;;  %v12532_v14 = vld [vmem:[%s21401_s7 + $0xa40] sm:$0xf]  ;;  %v7638_v24 = vrot.slane %v18072_v17, 1 }
 0x6e0   : > { %7969 = vmatpush.bf16.msrb.mxu0 %v12613_v20  ;;  %7982 = vmatpush.bf16.msrb.mxu1 %v12741_v44  ;;  %v7620_v20 = vrot.slane %v18053_v30, 3  ;;  %v12569_v44 = vor.u32 %v14155_v46, %v12566_v37  ;;  %v7632_v46 = vrot.slane %v18063_v40, 4  ;;  %v7634_v37 = vrot.slane %v18055_v16, 3  ;;  %v12644_v2 = vld [vmem:[%s21401_s7 + $0xb20] sm:$0xf] }
 0x6e1   : > { %7995 = vmatpush.bf16.msra.mxu2 %v12617_v62  ;;  %8008 = vmatpush.bf16.msra.mxu3 %v12745_v29  ;;  %v14185_v62 = vld [vmem:[%s21401_s7 + $0xb6c] sm:$0xf0]  ;;  %v14151_v29 = vld [vmem:[%s21401_s7 + $0xa64] sm:$0xf] }
 0x6e2   : > { %7530 = vmatmul.bf16.vlgmr.msrb.gmra.mxu2 %v19694_v53  ;;  %7543 = vmatmul.bf16.vlgmr.msrb.gmra.mxu3 %v19696_v52  ;;  %v12692_v53 = vld [vmem:[%s21401_s7 + $0xb80] sm:$0xf]  ;;  %v14189_v52 = vld [vmem:[%s21401_s7 + $0xb8c] sm:$0xf0]  ;;  %v7621_v23 = vsel %vm5062_vm9, %v7620_v20, %v7619_v50  ;;  %v14171_v50 = vld [vmem:[%s21401_s7 + $0xb04] sm:$0xf] }
 0x6e3   : > { %v12693_v55 = vor.u32 %v14189_v52, %v12692_v53  ;;  %v7631_v52 = vrot.slane %v18047_v7, 5  ;;  %v14177_v20 = vld [vmem:[%s21401_s7 + $0xb2c] sm:$0xf0] }
 0x6e4   : > { %7970 = vmatpush.bf16.msrb.mxu0 %v12597_v41  ;;  %7983 = vmatpush.bf16.msrb.mxu1 %v12725_v47  ;;  %v12677_v41 = vor.u32 %v14185_v62, %v12676_v43  ;;  %v14149_v47 = vld [vmem:[%s21401_s7 + $0xa4c] sm:$0xf0]  ;;  %v6470_v53 = vpop.f32.mrf.mxu1  ;;  %v12646_v43 = vld [vmem:[%s21401_s7 + $0xb30] sm:$0xf0]  ;;  %v7623_v62 = vsel %vm5065_vm10, %v7622_v11, %v7621_v23  ;;  %v14170_v23 = vld [vmem:[%s21401_s7 + $0xaf4] sm:$0xf0] }
 0x6e5   : > { %7996 = vmatpush.bf16.msra.mxu2 %v12601_v0  ;;  %8009 = vmatpush.bf16.msra.mxu3 %v12729_v61  ;;  %v12553_v0 = vor.u32 %v14151_v29, %v12550_v59  ;;  %v12681_v61 = vor.u32 %v14183_v54, %v12678_v8  ;;  %v6481_v3 = vpop.f32.mrf.mxu2  ;;  %v6494_v51 = vpop.f32.mrf.mxu3  ;;  %v12533_v27 = vor.u32 %v14149_v47, %v12532_v14  ;;  %v12500_v29 = vld [vmem:[%s21401_s7 + $0xa00] sm:$0xf]  ;;  %v7627_v59 = vrot.slane %v18080_v35, 7  ;;  %v14141_v14 = vld [vmem:[%s21401_s7 + $0xa0c] sm:$0xf0] }
 0x6e6   : > { %v7629_v54 = vrot.slane %v18097_v39, 6  ;;  %v7641_v8 = vrot.slane %v18082_v36, 7  ;;  %v12628_v47 = vld [vmem:[%s21401_s7 + $0xb00] sm:$0xf]  ;;  %v14173_v11 = vld [vmem:[%s21401_s7 + $0xb0c] sm:$0xf0] }
 0x6e7   : > { %v12748_v53 = vld [vmem:[%s21401_s7 + $0xbe8] sm:$0xf] }
 0x6e8   : > { %7971 = vmatpush.bf16.msrb.mxu0 %v12581_v57  ;;  %7984 = vmatpush.bf16.msrb.mxu1 %v12709_v13  ;;  %v12534_v57 = vld [vmem:[%s21401_s7 + $0xa50] sm:$0xf0]  ;;  %v14179_v13 = vld [vmem:[%s21401_s7 + $0xb44] sm:$0xf] }
 0x6e9   : > { %7997 = vmatpush.bf16.msra.mxu2 %v12585_v1  ;;  %8010 = vmatpush.bf16.msra.mxu3 %v12713_v19  ;;  %v6495_v1 = vadd.f32 %v6494_v51, %v6481_v3  ;;  %v6457_v19 = vpop.f32.mrf.mxu0  ;;  %v12665_v58 = vor.u32 %v14179_v13, %v12662_v49  ;;  %v12630_v13 = vld [vmem:[%s21401_s7 + $0xb10] sm:$0xf0]  ;;  %v12620_v49 = vld [vmem:[%s21401_s7 + $0xae8] sm:$0xf] }
 0x6ec   : > { %7972 = vmatpush.bf16.msrb.mxu0 %v12565_v63  ;;  %7985 = vmatpush.bf16.msrb.mxu1 %v12693_v55  ;;  %v20022_v63 = vadd.f32 %v6495_v1, %v19582_v60  ;;  %v12537_v55 = vor.u32 %v14147_v28, %v12534_v57  ;;  %v14175_v60 = vld [vmem:[%s21401_s7 + $0xb24] sm:$0xf]  ;;  %v12502_v28 = vld [vmem:[%s21401_s7 + $0xa10] sm:$0xf0]  ;;  %v7625_v1 = vsel %vm5068_vm11, %v7624_v26, %v7623_v62  ;;  %v14166_v62 = vld [vmem:[%s21401_s7 + $0xad4] sm:$0xf0] }
 0x6ed   : > { %7998 = vmatpush.bf16.msra.mxu2 %v12569_v44  ;;  %8011 = vmatpush.bf16.msra.mxu3 %v12697_v6  ;;  %v14143_v44 = vld [vmem:[%s21401_s7 + $0xa24] sm:$0xf]  ;;  %v12518_v6 = vld [vmem:[%s21401_s7 + $0xa30] sm:$0xf0]  ;;  %v12649_v12 = vor.u32 %v14175_v60, %v12646_v43  ;;  %v6483_v51 = vpop.f32.mrf.mxu2  ;;  %v6496_v57 = vpop.f32.mrf.mxu3  ;;  %v12501_v26 = vor.u32 %v14141_v14, %v12500_v29  ;;  %v12604_v43 = vld [vmem:[%s21401_s7 + $0xac8] sm:$0xf] }
 0x6ee   : > { %v12606_v14 = vld [vmem:[%s21401_s7 + $0xad8] sm:$0xf0]  ;;  %v12716_v51 = vld [vmem:[%s21401_s7 + $0xba8] sm:$0xf]  ;;  %v14194_v57 = vld [vmem:[%s21401_s7 + $0xbb4] sm:$0xf0] }
 0x6f0   : > { %7973 = vmatpush.bf16.msrb.mxu0 %v12549_v31  ;;  %7986 = vmatpush.bf16.msrb.mxu1 %v12677_v41  ;;  %v12517_v31 = vor.u32 %v14145_v48, %v12516_v33  ;;  %v12645_v41 = vor.u32 %v14177_v20, %v12644_v2  ;;  %v12622_v33 = vld [vmem:[%s21401_s7 + $0xaf8] sm:$0xf0]  ;;  %v14200_v48 = vld [vmem:[%s21401_s7 + $0xbec] sm:$0xf]  ;;  %v12621_v20 = vor.u32 %v14170_v23, %v12620_v49 }
 0x6f1   : > { %7999 = vmatpush.bf16.msra.mxu2 %v12553_v0  ;;  %8012 = vmatpush.bf16.msra.mxu3 %v12681_v61  ;;  %v7633_v0 = vsel %vm5059_vm8, %v7632_v46, %v7631_v52  ;;  %v12521_v61 = vor.u32 %v14143_v44, %v12518_v6  ;;  %v14202_v52 = vld [vmem:[%s21401_s7 + $0xbf4] sm:$0xf0]  ;;  %v14168_v46 = vld [vmem:[%s21401_s7 + $0xaec] sm:$0xf]  ;;  %v12590_v49 = vld [vmem:[%s21401_s7 + $0xab8] sm:$0xf0] }
 0x6f2   : > { %v7635_v3 = vsel %vm5062_vm9, %v7634_v37, %v7633_v0  ;;  %v7626_v37 = vsel %vm5071_vm12, %v18076_v4, %v7625_v1  ;;  %v12749_v44 = vor.u32 %v14202_v52, %v12748_v53  ;;  %v12625_v29 = vor.u32 %v14168_v46, %v12622_v33  ;;  %v14192_v23 = vld [vmem:[%s21401_s7 + $0xbac] sm:$0xf]  ;;  %v12718_v1 = vld [vmem:[%s21401_s7 + $0xbb8] sm:$0xf0]  ;;  %v12572_v52 = vld [vmem:[%s21401_s7 + $0xa88] sm:$0xf] }
 0x6f3   : > { %v7637_v19 = vsel %vm5065_vm10, %v7636_v22, %v7635_v3  ;;  %v12750_v22 = vld [vmem:[%s21401_s7 + $0xbf8] sm:$0xf0]  ;;  %v7628_v2 = vsel %vm5074_vm13, %v7627_v59, %v7626_v37  ;;  %v12732_v59 = vld [vmem:[%s21401_s7 + $0xbc8] sm:$0xf]  ;;  %v12717_v53 = vor.u32 %v14194_v57, %v12716_v51  ;;  %v14158_v46 = vld [vmem:[%s21401_s7 + $0xa94] sm:$0xf0] }
 0x6f4   : > { %7974 = vmatpush.bf16.msrb.mxu0 %v12533_v27  ;;  %7987 = vmatpush.bf16.msrb.mxu1 %v12661_v5  ;;  %v7639_v27 = vsel %vm5068_vm11, %v7638_v24, %v7637_v19  ;;  %v12629_v5 = vor.u32 %v14173_v11, %v12628_v47  ;;  %v12505_v24 = vor.u32 %v14139_v9, %v12502_v28  ;;  %v12734_v47 = vld [vmem:[%s21401_s7 + $0xbd8] sm:$0xf0]  ;;  %v12588_v9 = vld [vmem:[%s21401_s7 + $0xaa8] sm:$0xf]  ;;  %v14162_v28 = vld [vmem:[%s21401_s7 + $0xab4] sm:$0xf0] }
 0x6f5   : > { %8000 = vmatpush.bf16.msra.mxu2 %v12537_v55  ;;  %8013 = vmatpush.bf16.msra.mxu3 %v12665_v58  ;;  %v7640_v55 = vsel %vm5071_vm12, %v18078_v56, %v7639_v27  ;;  %v12633_v58 = vor.u32 %v14171_v50, %v12630_v13  ;;  %v7630_v6 = vsel %vm5077_vm14, %v7629_v54, %v7628_v2  ;;  %v14198_v54 = vld [vmem:[%s21401_s7 + $0xbd4] sm:$0xf0]  ;;  %v14160_v13 = vld [vmem:[%s21401_s7 + $0xaac] sm:$0xf] }
 0x6f6   : > { %v7642_v60 = vsel %vm5074_vm13, %v7641_v8, %v7640_v55  ;;  %v14164_v8 = vld [vmem:[%s21401_s7 + $0xacc] sm:$0xf]  ;;  %v20134_v11 = vpack.c.b16 %v7630_v6, %v7630_v6  ;;  %v12589_v19 = vor.u32 %v14162_v28, %v12588_v9  ;;  %v12593_v37 = vor.u32 %v14160_v13, %v12590_v49  ;;  %v12702_v55 = vld [vmem:[%s21401_s7 + $0xb98] sm:$0xf0]  ;;  %v12556_v6 = vld [vmem:[%s21401_s7 + $0xa68] sm:$0xf] }
 0x6f7   : > { %v12609_v50 = vor.u32 %v14164_v8, %v12606_v14  ;;  %v12721_v27 = vor.u32 %v14192_v23, %v12718_v1  ;;  %v14156_v33 = vld [vmem:[%s21401_s7 + $0xa8c] sm:$0xf]  ;;  %v12686_v14 = vld [vmem:[%s21401_s7 + $0xb78] sm:$0xf0]  ;;  %v12668_v28 = vld [vmem:[%s21401_s7 + $0xb48] sm:$0xf] }
 0x6f8   : > { %7975 = vmatpush.bf16.msrb.mxu0 %v12517_v31  ;;  %7988 = vmatpush.bf16.msrb.mxu1 %v12645_v41  ;;  %v12753_v31 = vor.u32 %v14200_v48, %v12750_v22  ;;  %v7644_v41 = vsel %vm5077_vm14, %v7643_v15, %v7642_v60  ;;  %v14196_v15 = vld [vmem:[%s21401_s7 + $0xbcc] sm:$0xf]  ;;  %v12574_v48 = vld [vmem:[%s21401_s7 + $0xa98] sm:$0xf0]  ;;  %v14154_v60 = vld [vmem:[%s21401_s7 + $0xa74] sm:$0xf0] }
 0x6f9   : > { %8001 = vmatpush.bf16.msra.mxu2 %v12521_v61  ;;  %8014 = vmatpush.bf16.msra.mxu3 %v12649_v12  ;;  %v20136_v0 = vpack.c.b16 %v7644_v41, %v7644_v41  ;;  %v12605_v61 = vor.u32 %v14166_v62, %v12604_v43  ;;  %v12733_v12 = vor.u32 %v14198_v54, %v12732_v59  ;;  %v14188_v22 = vld [vmem:[%s21401_s7 + $0xb8c] sm:$0xf]  ;;  %v12558_v54 = vld [vmem:[%s21401_s7 + $0xa78] sm:$0xf0] }
 0x6fa   : > { %v12737_v3 = vor.u32 %v14196_v15, %v12734_v47  ;;  %v12577_v43 = vor.u32 %v14156_v33, %v12574_v48  ;;  %v12705_v62 = vor.u32 %v14188_v22, %v12702_v55  ;;  %v14152_v41 = vld [vmem:[%s21401_s7 + $0xa6c] sm:$0xf]  ;;  %v12557_v15 = vor.u32 %v14154_v60, %v12556_v6  ;;  %v12542_v13 = vld [vmem:[%s21401_s7 + $0xa58] sm:$0xf0]  ;;  %v12652_v48 = vld [vmem:[%s21401_s7 + $0xb28] sm:$0xf] }
 0x6fb   : > { %v14184_v8 = vld [vmem:[%s21401_s7 + $0xb6c] sm:$0xf]  ;;  %v12670_v23 = vld [vmem:[%s21401_s7 + $0xb58] sm:$0xf0]  ;;  %v14178_v22 = vld [vmem:[%s21401_s7 + $0xb34] sm:$0xf0] }
 0x6fc   : > { %7976 = vmatpush.bf16.msrb.mxu0 %v12501_v26  ;;  %7989 = vmatpush.bf16.msrb.mxu1 %v12629_v5  ;;  %v12700_v26 = vld [vmem:[%s21401_s7 + $0xb88] sm:$0xf]  ;;  %v14190_v5 = vld [vmem:[%s21401_s7 + $0xb94] sm:$0xf0]  ;;  %v12689_v9 = vor.u32 %v14184_v8, %v12686_v14  ;;  %v14180_v49 = vld [vmem:[%s21401_s7 + $0xb4c] sm:$0xf] }
 0x6fd   : > { %8002 = vmatpush.bf16.msra.mxu2 %v12505_v24  ;;  %8015 = vmatpush.bf16.msra.mxu3 %v12633_v58  ;;  %v6928_v24 = vpop.f32.mrf.mxu0  ;;  %v6941_v58 = vpop.f32.mrf.mxu1  ;;  %v12673_v33 = vor.u32 %v14180_v49, %v12670_v23  ;;  %v14144_v55 = vld [vmem:[%s21401_s7 + $0xa2c] sm:$0xf]  ;;  %v14142_v6 = vld [vmem:[%s21401_s7 + $0xa14] sm:$0xf0]  ;;  %v12636_v60 = vld [vmem:[%s21401_s7 + $0xb08] sm:$0xf] }
 0x6fe   : > { %v6942_v2 = vadd.f32 %v6941_v58, %v6928_v24  ;;  %v12526_v24 = vld [vmem:[%s21401_s7 + $0xa38] sm:$0xf0] }
 0x6ff   : > { %7977 = vmatmul.bf16.vlgmr.msrb.gmra.mxu0 %v20134_v11  ;;  %7990 = vmatmul.bf16.vlgmr.msrb.gmra.mxu1 %v20136_v0  ;;  %v12654_v58 = vld [vmem:[%s21401_s7 + $0xb38] sm:$0xf0] }
 0x700   : > { %8021 = vmatpush.bf16.msra.mxu0 %v12621_v20  ;;  %8034 = vmatpush.bf16.msra.mxu1 %v12749_v44  ;;  %v12573_v20 = vor.u32 %v14158_v46, %v12572_v52  ;;  %v12701_v44 = vor.u32 %v14190_v5, %v12700_v26  ;;  %v20206_v59 = vadd.f32 %v6942_v2, %v19766_v18  ;;  %v12540_v18 = vld [vmem:[%s21401_s7 + $0xa48] sm:$0xf] }
 0x701   : > { %8047 = vmatpush.bf16.msrb.mxu2 %v12625_v29  ;;  %8060 = vmatpush.bf16.msrb.mxu3 %v12753_v31  ;;  %v12684_v29 = vld [vmem:[%s21401_s7 + $0xb68] sm:$0xf]  ;;  %v14186_v31 = vld [vmem:[%s21401_s7 + $0xb74] sm:$0xf0] }
 0x702   : > { %8003 = vmatmul.bf16.vlgmr.msra.gmra.mxu2 %v20134_v11  ;;  %8016 = vmatmul.bf16.vlgmr.msra.gmra.mxu3 %v20136_v0  ;;  %v12685_v47 = vor.u32 %v14186_v31, %v12684_v29  ;;  %v12508_v2 = vld [vmem:[%s21401_s7 + $0xa08] sm:$0xf]  ;;  %v14140_v31 = vld [vmem:[%s21401_s7 + $0xa0c] sm:$0xf] }
 0x704   : > { %8022 = vmatpush.bf16.msra.mxu0 %v12605_v61  ;;  %8035 = vmatpush.bf16.msra.mxu1 %v12733_v12  ;;  %v14150_v61 = vld [vmem:[%s21401_s7 + $0xa54] sm:$0xf0]  ;;  %v12561_v12 = vor.u32 %v14152_v41, %v12558_v54  ;;  %v12510_v41 = vld [vmem:[%s21401_s7 + $0xa18] sm:$0xf0]  ;;  %v14172_v54 = vld [vmem:[%s21401_s7 + $0xb0c] sm:$0xf] }
 0x705   : > { %8048 = vmatpush.bf16.msrb.mxu2 %v12609_v50  ;;  %8061 = vmatpush.bf16.msrb.mxu3 %v12737_v3  ;;  %v14182_v50 = vld [vmem:[%s21401_s7 + $0xb54] sm:$0xf0]  ;;  %v14148_v3 = vld [vmem:[%s21401_s7 + $0xa4c] sm:$0xf]  ;;  %v6954_v51 = vpop.f32.mrf.mxu2  ;;  %v6967_v57 = vpop.f32.mrf.mxu3  ;;  %v12541_v52 = vor.u32 %v14150_v61, %v12540_v18  ;;  %v14233_v18 = vld [vmem:[%s21401_s7 + $0xcec] sm:$0xf0] }
 0x706   : > { %v6968_v1 = vadd.f32 %v6967_v57, %v6954_v51  ;;  %v12669_v46 = vor.u32 %v14182_v50, %v12668_v28  ;;  %v12545_v5 = vor.u32 %v14148_v3, %v12542_v13  ;;  %v13060_v61 = vld [vmem:[%s21401_s7 + $0xde0] sm:$0xf]  ;;  %v12509_v28 = vor.u32 %v14142_v6, %v12508_v2  ;;  %v12934_v3 = vld [vmem:[%s21401_s7 + $0xcf0] sm:$0xf0]  ;;  %v14263_v51 = vld [vmem:[%s21401_s7 + $0xde4] sm:$0xf] }
 0x707   : > { %v13062_v57 = vld [vmem:[%s21401_s7 + $0xdf0] sm:$0xf0]  ;;  %v12513_v13 = vor.u32 %v14140_v31, %v12510_v41  ;;  %v14257_v6 = vld [vmem:[%s21401_s7 + $0xdac] sm:$0xf0] }
 0x708   : > { %8023 = vmatpush.bf16.msra.mxu0 %v12589_v19  ;;  %8036 = vmatpush.bf16.msra.mxu1 %v12717_v53  ;;  %v6930_v19 = vpop.f32.mrf.mxu0  ;;  %v6943_v53 = vpop.f32.mrf.mxu1  ;;  %v20248_v26 = vadd.f32 %v6968_v1, %v19808_v32  ;;  %v14176_v32 = vld [vmem:[%s21401_s7 + $0xb2c] sm:$0xf] }
 0x709   : > { %8049 = vmatpush.bf16.msrb.mxu2 %v12593_v37  ;;  %8062 = vmatpush.bf16.msrb.mxu3 %v12721_v27  ;;  %v12524_v37 = vld [vmem:[%s21401_s7 + $0xa28] sm:$0xf]  ;;  %v14146_v27 = vld [vmem:[%s21401_s7 + $0xa34] sm:$0xf0]  ;;  %v12657_v29 = vor.u32 %v14176_v32, %v12654_v58  ;;  %v12916_v19 = vld [vmem:[%s21401_s7 + $0xcc0] sm:$0xf] }
 0x70a   : > { %v14229_v53 = vld [vmem:[%s21401_s7 + $0xccc] sm:$0xf0]  ;;  %v12900_v32 = vld [vmem:[%s21401_s7 + $0xca0] sm:$0xf] }
 0x70b   : > { %v14225_v58 = vld [vmem:[%s21401_s7 + $0xcac] sm:$0xf0] }
 0x70c   : > { %8024 = vmatpush.bf16.msra.mxu0 %v12573_v20  ;;  %8037 = vmatpush.bf16.msra.mxu1 %v12701_v44  ;;  %v12525_v20 = vor.u32 %v14146_v27, %v12524_v37  ;;  %v12653_v44 = vor.u32 %v14178_v22, %v12652_v48  ;;  %v13044_v37 = vld [vmem:[%s21401_s7 + $0xdc0] sm:$0xf]  ;;  %v14261_v27 = vld [vmem:[%s21401_s7 + $0xdcc] sm:$0xf0]  ;;  %v14259_v48 = vld [vmem:[%s21401_s7 + $0xdc4] sm:$0xf]  ;;  %v12901_v31 = vor.u32 %v14225_v58, %v12900_v32 }
 0x70d   : > { %8050 = vmatpush.bf16.msrb.mxu2 %v12577_v43  ;;  %8063 = vmatpush.bf16.msrb.mxu3 %v12705_v62  ;;  %v14174_v43 = vld [vmem:[%s21401_s7 + $0xb14] sm:$0xf0]  ;;  %v12529_v62 = vor.u32 %v14144_v55, %v12526_v24  ;;  %v6956_v8 = vpop.f32.mrf.mxu2  ;;  %v6969_v14 = vpop.f32.mrf.mxu3  ;;  %v13046_v22 = vld [vmem:[%s21401_s7 + $0xdd0] sm:$0xf0]  ;;  %v12917_v55 = vor.u32 %v14229_v53, %v12916_v19  ;;  %v13045_v24 = vor.u32 %v14261_v27, %v13044_v37  ;;  %v12996_v53 = vld [vmem:[%s21401_s7 + $0xd60] sm:$0xf] }
 0x70e   : > { %v12637_v50 = vor.u32 %v14174_v43, %v12636_v60  ;;  %v14223_v60 = vld [vmem:[%s21401_s7 + $0xca4] sm:$0xf]  ;;  %v12902_v43 = vld [vmem:[%s21401_s7 + $0xcb0] sm:$0xf0]  ;;  %v14221_v8 = vld [vmem:[%s21401_s7 + $0xc8c] sm:$0xf0] }
 0x70f   : > { %v12905_v14 = vor.u32 %v14223_v60, %v12902_v43  ;;  %v12870_v27 = vld [vmem:[%s21401_s7 + $0xc70] sm:$0xf0]  ;;  %v8147_v32 = vrot.slane %v18060_v42, 3  ;;  %v8149_v58 = vrot.slane %v18070_v34, 2  ;;  %v14211_v60 = vld [vmem:[%s21401_s7 + $0xc44] sm:$0xf] }
 0x710   : > { %8025 = vmatpush.bf16.msra.mxu0 %v12557_v15  ;;  %8038 = vmatpush.bf16.msra.mxu1 %v12685_v47  ;;  %v12638_v15 = vld [vmem:[%s21401_s7 + $0xb18] sm:$0xf0]  ;;  %v12932_v47 = vld [vmem:[%s21401_s7 + $0xce0] sm:$0xf] }
 0x711   : > { %8051 = vmatpush.bf16.msrb.mxu2 %v12561_v12  ;;  %8064 = vmatpush.bf16.msrb.mxu3 %v12689_v9  ;;  %v14265_v12 = vld [vmem:[%s21401_s7 + $0xdec] sm:$0xf0]  ;;  %v14231_v9 = vld [vmem:[%s21401_s7 + $0xce4] sm:$0xf]  ;;  %v12641_v49 = vor.u32 %v14172_v54, %v12638_v15  ;;  %v12933_v23 = vor.u32 %v14233_v18, %v12932_v47  ;;  %v12884_v54 = vld [vmem:[%s21401_s7 + $0xc80] sm:$0xf] }
 0x712   : > { %v13061_v1 = vor.u32 %v14265_v12, %v13060_v61  ;;  %v14219_v47 = vld [vmem:[%s21401_s7 + $0xc84] sm:$0xf]  ;;  %v12886_v18 = vld [vmem:[%s21401_s7 + $0xc90] sm:$0xf0] }
 0x713   : > { %v14251_v61 = vld [vmem:[%s21401_s7 + $0xd84] sm:$0xf]  ;;  %v13014_v12 = vld [vmem:[%s21401_s7 + $0xd90] sm:$0xf0] }
 0x714   : > { %8026 = vmatpush.bf16.msra.mxu0 %v12541_v52  ;;  %8039 = vmatpush.bf16.msra.mxu1 %v12669_v46  ;;  %v12937_v52 = vor.u32 %v14231_v9, %v12934_v3  ;;  %v13065_v46 = vor.u32 %v14263_v51, %v13062_v57  ;;  %v12885_v51 = vor.u32 %v14221_v8, %v12884_v54  ;;  %v12982_v54 = vld [vmem:[%s21401_s7 + $0xd50] sm:$0xf0] }
 0x715   : > { %8052 = vmatpush.bf16.msrb.mxu2 %v12545_v5  ;;  %8065 = vmatpush.bf16.msrb.mxu3 %v12673_v33  ;;  %v14227_v5 = vld [vmem:[%s21401_s7 + $0xcc4] sm:$0xf]  ;;  %v12918_v33 = vld [vmem:[%s21401_s7 + $0xcd0] sm:$0xf0]  ;;  %v13017_v19 = vor.u32 %v14251_v61, %v13014_v12 }
 0x716   : > { %v12921_v2 = vor.u32 %v14227_v5, %v12918_v33  ;;  %v14247_v5 = vld [vmem:[%s21401_s7 + $0xd64] sm:$0xf]  ;;  %v12998_v33 = vld [vmem:[%s21401_s7 + $0xd70] sm:$0xf0] }
 0x718   : > { %8027 = vmatpush.bf16.msra.mxu0 %v12525_v20  ;;  %8040 = vmatpush.bf16.msra.mxu1 %v12653_v44  ;;  %v13049_v20 = vor.u32 %v14259_v48, %v13046_v22  ;;  %v13028_v44 = vld [vmem:[%s21401_s7 + $0xda0] sm:$0xf]  ;;  %v8142_v48 = vrot.slane %v18039_v21, 6 }
 0x719   : > { %8053 = vmatpush.bf16.msrb.mxu2 %v12529_v62  ;;  %8066 = vmatpush.bf16.msrb.mxu3 %v12657_v29  ;;  %v14255_v62 = vld [vmem:[%s21401_s7 + $0xda4] sm:$0xf]  ;;  %v13030_v29 = vld [vmem:[%s21401_s7 + $0xdb0] sm:$0xf0]  ;;  %v13029_v41 = vor.u32 %v14257_v6, %v13028_v44  ;;  %v12980_v44 = vld [vmem:[%s21401_s7 + $0xd40] sm:$0xf] }
 0x71a   : > { %v13033_v15 = vor.u32 %v14255_v62, %v13030_v29  ;;  %v14245_v6 = vld [vmem:[%s21401_s7 + $0xd4c] sm:$0xf0] }
 0x71b   : > { %v12981_v12 = vor.u32 %v14245_v6, %v12980_v44  ;;  %v14203_v6 = vld [vmem:[%s21401_s7 + $0xc04] sm:$0xf] }
 0x71c   : > { %8028 = vmatpush.bf16.msra.mxu0 %v12509_v28  ;;  %8041 = vmatpush.bf16.msra.mxu1 %v12637_v50  ;;  %v6980_v9 = vpop.f32.mrf.mxu0  ;;  %v6993_v28 = vpop.f32.mrf.mxu1  ;;  %v8143_v50 = vrot.slane %v18051_v10, 5 }
 0x71d   : > { %8054 = vmatpush.bf16.msrb.mxu2 %v12513_v13  ;;  %8067 = vmatpush.bf16.msrb.mxu3 %v12641_v49  ;;  %v6994_v3 = vadd.f32 %v6993_v28, %v6980_v9  ;;  %v12868_v13 = vld [vmem:[%s21401_s7 + $0xc60] sm:$0xf]  ;;  %v14217_v49 = vld [vmem:[%s21401_s7 + $0xc6c] sm:$0xf0] }
 0x71e   : > { %v12869_v22 = vor.u32 %v14217_v49, %v12868_v13  ;;  %v8144_v43 = vsel %vm5059_vm8, %v8143_v50, %v8142_v48  ;;  %v12836_v9 = vld [vmem:[%s21401_s7 + $0xc20] sm:$0xf]  ;;  %v14209_v28 = vld [vmem:[%s21401_s7 + $0xc2c] sm:$0xf0]  ;;  %v8159_v50 = vrot.slane %v18055_v16, 4  ;;  %v8168_v48 = vrot.slane %v18099_v45, 7 }
 0x71f   : > { %8029 = vmatmul.bf16.vlgmr.msra.gmra.mxu0 %v20134_v11  ;;  %8042 = vmatmul.bf16.vlgmr.msra.gmra.mxu1 %v20136_v0  ;;  %v20410_v37 = vadd.f32 %v6994_v3, %v19970_v25  ;;  %v12852_v25 = vld [vmem:[%s21401_s7 + $0xc40] sm:$0xf]  ;;  %v8161_v3 = vrot.slane %v18065_v38, 3 }
 0x720   : > { %8494 = vmatpush.bf16.msrb.mxu0 %v12933_v23  ;;  %8507 = vmatpush.bf16.msrb.mxu1 %v13061_v1  ;;  %v8145_v23 = vrot.slane %v18053_v30, 4  ;;  %v12889_v1 = vor.u32 %v14219_v47, %v12886_v18  ;;  %v8156_v47 = vrot.slane %v18047_v7, 6  ;;  %v8157_v18 = vrot.slane %v18063_v40, 5  ;;  %v12964_v49 = vld [vmem:[%s21401_s7 + $0xd20] sm:$0xf] }
 0x721   : > { %8520 = vmatpush.bf16.msra.mxu2 %v12937_v52  ;;  %8533 = vmatpush.bf16.msra.mxu3 %v13065_v46  ;;  %v14249_v52 = vld [vmem:[%s21401_s7 + $0xd6c] sm:$0xf0]  ;;  %v14215_v46 = vld [vmem:[%s21401_s7 + $0xc64] sm:$0xf] }
 0x722   : > { %8055 = vmatmul.bf16.vlgmr.msrb.gmra.mxu2 %v20134_v11  ;;  %8068 = vmatmul.bf16.vlgmr.msrb.gmra.mxu3 %v20136_v0  ;;  %v13012_v11 = vld [vmem:[%s21401_s7 + $0xd80] sm:$0xf]  ;;  %v14253_v0 = vld [vmem:[%s21401_s7 + $0xd8c] sm:$0xf0]  ;;  %v8146_v8 = vsel %vm5062_vm9, %v8145_v23, %v8144_v43  ;;  %v14235_v43 = vld [vmem:[%s21401_s7 + $0xd04] sm:$0xf] }
 0x723   : > { %v13013_v57 = vor.u32 %v14253_v0, %v13012_v11  ;;  %v8151_v0 = vrot.slane %v18076_v4, 1  ;;  %v14241_v23 = vld [vmem:[%s21401_s7 + $0xd2c] sm:$0xf0] }
 0x724   : > { %8495 = vmatpush.bf16.msrb.mxu0 %v12917_v55  ;;  %8508 = vmatpush.bf16.msrb.mxu1 %v13045_v24  ;;  %v12997_v55 = vor.u32 %v14249_v52, %v12996_v53  ;;  %v14213_v24 = vld [vmem:[%s21401_s7 + $0xc4c] sm:$0xf0]  ;;  %v6995_v11 = vpop.f32.mrf.mxu1  ;;  %v12966_v53 = vld [vmem:[%s21401_s7 + $0xd30] sm:$0xf0]  ;;  %v8148_v52 = vsel %vm5065_vm10, %v8147_v32, %v8146_v8 }
 0x725   : > { %8521 = vmatpush.bf16.msra.mxu2 %v12921_v2  ;;  %8534 = vmatpush.bf16.msra.mxu3 %v13049_v20  ;;  %v12873_v2 = vor.u32 %v14215_v46, %v12870_v27  ;;  %v13001_v20 = vor.u32 %v14247_v5, %v12998_v33  ;;  %v7006_v62 = vpop.f32.mrf.mxu2  ;;  %v7019_v29 = vpop.f32.mrf.mxu3  ;;  %v12853_v61 = vor.u32 %v14213_v24, %v12852_v25  ;;  %v12820_v46 = vld [vmem:[%s21401_s7 + $0xc00] sm:$0xf]  ;;  %v8154_v27 = vrot.slane %v18097_v39, 7  ;;  %v14205_v25 = vld [vmem:[%s21401_s7 + $0xc0c] sm:$0xf0] }
 0x726   : > { %v8163_v5 = vrot.slane %v18072_v17, 2  ;;  %v8165_v33 = vrot.slane %v18078_v56, 1  ;;  %v12948_v24 = vld [vmem:[%s21401_s7 + $0xd00] sm:$0xf]  ;;  %v14237_v32 = vld [vmem:[%s21401_s7 + $0xd0c] sm:$0xf0] }
 0x727   : > { %v14266_v11 = vld [vmem:[%s21401_s7 + $0xdf4] sm:$0xf0] }
 0x728   : > { %8496 = vmatpush.bf16.msrb.mxu0 %v12901_v31  ;;  %8509 = vmatpush.bf16.msrb.mxu1 %v13029_v41  ;;  %v12854_v31 = vld [vmem:[%s21401_s7 + $0xc50] sm:$0xf0]  ;;  %v14243_v41 = vld [vmem:[%s21401_s7 + $0xd44] sm:$0xf] }
 0x729   : > { %8522 = vmatpush.bf16.msra.mxu2 %v12905_v14  ;;  %8535 = vmatpush.bf16.msra.mxu3 %v13033_v15  ;;  %v7020_v14 = vadd.f32 %v7019_v29, %v7006_v62  ;;  %v6982_v15 = vpop.f32.mrf.mxu0  ;;  %v12985_v13 = vor.u32 %v14243_v41, %v12982_v54  ;;  %v8158_v62 = vsel %vm5059_vm8, %v8157_v18, %v8156_v47  ;;  %v12940_v41 = vld [vmem:[%s21401_s7 + $0xce8] sm:$0xf]  ;;  %v14234_v54 = vld [vmem:[%s21401_s7 + $0xcf4] sm:$0xf0]  ;;  %v14232_v47 = vld [vmem:[%s21401_s7 + $0xcec] sm:$0xf] }
 0x72a   : > { %v13068_v15 = vld [vmem:[%s21401_s7 + $0xde8] sm:$0xf] }
 0x72c   : > { %8497 = vmatpush.bf16.msrb.mxu0 %v12885_v51  ;;  %8510 = vmatpush.bf16.msrb.mxu1 %v13013_v57  ;;  %v20462_v51 = vadd.f32 %v7020_v14, %v20022_v63  ;;  %v12857_v57 = vor.u32 %v14211_v60, %v12854_v31  ;;  %v14239_v63 = vld [vmem:[%s21401_s7 + $0xd24] sm:$0xf]  ;;  %v12822_v60 = vld [vmem:[%s21401_s7 + $0xc10] sm:$0xf0]  ;;  %v8160_v14 = vsel %vm5062_vm9, %v8159_v50, %v8158_v62  ;;  %v13070_v50 = vld [vmem:[%s21401_s7 + $0xdf8] sm:$0xf0] }
 0x72d   : > { %8523 = vmatpush.bf16.msra.mxu2 %v12889_v1  ;;  %8536 = vmatpush.bf16.msra.mxu3 %v13017_v19  ;;  %v14207_v1 = vld [vmem:[%s21401_s7 + $0xc24] sm:$0xf]  ;;  %v12838_v19 = vld [vmem:[%s21401_s7 + $0xc30] sm:$0xf0]  ;;  %v12969_v44 = vor.u32 %v14239_v63, %v12966_v53  ;;  %v7008_v29 = vpop.f32.mrf.mxu2  ;;  %v12924_v53 = vld [vmem:[%s21401_s7 + $0xcc8] sm:$0xf] }
 0x72e   : > { %v12950_v31 = vld [vmem:[%s21401_s7 + $0xd10] sm:$0xf0]  ;;  %v13036_v29 = vld [vmem:[%s21401_s7 + $0xda8] sm:$0xf] }
 0x730   : > { %8498 = vmatpush.bf16.msrb.mxu0 %v12869_v22  ;;  %8511 = vmatpush.bf16.msrb.mxu1 %v12997_v55  ;;  %v12837_v22 = vor.u32 %v14209_v28, %v12836_v9  ;;  %v12965_v55 = vor.u32 %v14241_v23, %v12964_v49  ;;  %v12942_v9 = vld [vmem:[%s21401_s7 + $0xcf8] sm:$0xf0]  ;;  %v14264_v28 = vld [vmem:[%s21401_s7 + $0xdec] sm:$0xf]  ;;  %v12941_v23 = vor.u32 %v14234_v54, %v12940_v41 }
 0x731   : > { %8524 = vmatpush.bf16.msra.mxu2 %v12873_v2  ;;  %8537 = vmatpush.bf16.msra.mxu3 %v13001_v20  ;;  %v8150_v2 = vsel %vm5068_vm11, %v8149_v58, %v8148_v52  ;;  %v12841_v20 = vor.u32 %v14207_v1, %v12838_v19  ;;  %v7021_v58 = vpop.f32.mrf.mxu3  ;;  %v13069_v1 = vor.u32 %v14266_v11, %v13068_v15  ;;  %v14230_v52 = vld [vmem:[%s21401_s7 + $0xcd4] sm:$0xf0]  ;;  %v12910_v41 = vld [vmem:[%s21401_s7 + $0xcb8] sm:$0xf0]  ;;  %v14256_v54 = vld [vmem:[%s21401_s7 + $0xdac] sm:$0xf] }
 0x732   : > { %v8152_v8 = vsel %vm5071_vm12, %v8151_v0, %v8150_v2  ;;  %v12821_v0 = vor.u32 %v14205_v25, %v12820_v46  ;;  %v12945_v46 = vor.u32 %v14232_v47, %v12942_v9  ;;  %v12926_v25 = vld [vmem:[%s21401_s7 + $0xcd8] sm:$0xf0]  ;;  %v14258_v58 = vld [vmem:[%s21401_s7 + $0xdb4] sm:$0xf0]  ;;  %v12892_v11 = vld [vmem:[%s21401_s7 + $0xc88] sm:$0xf] }
 0x733   : > { %v8153_v18 = vsel %vm5074_vm13, %v18080_v35, %v8152_v8  ;;  %v13038_v8 = vld [vmem:[%s21401_s7 + $0xdb8] sm:$0xf0]  ;;  %v13037_v15 = vor.u32 %v14258_v58, %v13036_v29  ;;  %v14222_v47 = vld [vmem:[%s21401_s7 + $0xc94] sm:$0xf0]  ;;  %v14220_v9 = vld [vmem:[%s21401_s7 + $0xc8c] sm:$0xf] }
 0x734   : > { %8499 = vmatpush.bf16.msrb.mxu0 %v12853_v61  ;;  %8512 = vmatpush.bf16.msrb.mxu1 %v12981_v12  ;;  %v8162_v61 = vsel %vm5065_vm10, %v8161_v3, %v8160_v14  ;;  %v12949_v12 = vor.u32 %v14237_v32, %v12948_v24  ;;  %v12825_v3 = vor.u32 %v14203_v6, %v12822_v60  ;;  %v13054_v24 = vld [vmem:[%s21401_s7 + $0xdd8] sm:$0xf0]  ;;  %v12908_v6 = vld [vmem:[%s21401_s7 + $0xca8] sm:$0xf]  ;;  %v14226_v60 = vld [vmem:[%s21401_s7 + $0xcb4] sm:$0xf0] }
 0x735   : > { %8525 = vmatpush.bf16.msra.mxu2 %v12857_v57  ;;  %8538 = vmatpush.bf16.msra.mxu3 %v12985_v13  ;;  %v8164_v57 = vsel %vm5068_vm11, %v8163_v5, %v8162_v61  ;;  %v12953_v13 = vor.u32 %v14235_v43, %v12950_v31  ;;  %v8155_v19 = vsel %vm5077_vm14, %v8154_v27, %v8153_v18  ;;  %v14262_v27 = vld [vmem:[%s21401_s7 + $0xdd4] sm:$0xf0]  ;;  %v14224_v31 = vld [vmem:[%s21401_s7 + $0xcac] sm:$0xf] }
 0x736   : > { %v8166_v49 = vsel %vm5071_vm12, %v8165_v33, %v8164_v57  ;;  %v13073_v5 = vor.u32 %v14264_v28, %v13070_v50  ;;  %v13052_v33 = vld [vmem:[%s21401_s7 + $0xdc8] sm:$0xf]  ;;  %v20572_v32 = vpack.c.b16 %v8155_v19, %v8155_v19  ;;  %v12909_v14 = vor.u32 %v14226_v60, %v12908_v6  ;;  %v12894_v28 = vld [vmem:[%s21401_s7 + $0xc98] sm:$0xf0]  ;;  %v14252_v50 = vld [vmem:[%s21401_s7 + $0xd8c] sm:$0xf] }
 0x737   : > { %v8167_v63 = vsel %vm5074_vm13, %v18082_v36, %v8166_v49  ;;  %v12913_v18 = vor.u32 %v14224_v31, %v12910_v41  ;;  %v13041_v61 = vor.u32 %v14256_v54, %v13038_v8  ;;  %v13022_v57 = vld [vmem:[%s21401_s7 + $0xd98] sm:$0xf0]  ;;  %v12876_v19 = vld [vmem:[%s21401_s7 + $0xc68] sm:$0xf]  ;;  %v14244_v41 = vld [vmem:[%s21401_s7 + $0xd4c] sm:$0xf] }
 0x738   : > { %8500 = vmatpush.bf16.msrb.mxu0 %v12837_v22  ;;  %8513 = vmatpush.bf16.msrb.mxu1 %v12965_v55  ;;  %v8169_v22 = vsel %vm5077_vm14, %v8168_v48, %v8167_v63  ;;  %v14228_v55 = vld [vmem:[%s21401_s7 + $0xccc] sm:$0xf]  ;;  %v14218_v63 = vld [vmem:[%s21401_s7 + $0xc74] sm:$0xf0]  ;;  %v12988_v60 = vld [vmem:[%s21401_s7 + $0xd48] sm:$0xf] }
 0x739   : > { %8526 = vmatpush.bf16.msra.mxu2 %v12841_v20  ;;  %8539 = vmatpush.bf16.msra.mxu3 %v12969_v44  ;;  %v14260_v48 = vld [vmem:[%s21401_s7 + $0xdcc] sm:$0xf]  ;;  %v20574_v2 = vpack.c.b16 %v8169_v22, %v8169_v22  ;;  %v12925_v20 = vor.u32 %v14230_v52, %v12924_v53  ;;  %v13053_v44 = vor.u32 %v14262_v27, %v13052_v33  ;;  %v12878_v27 = vld [vmem:[%s21401_s7 + $0xc78] sm:$0xf0] }
 0x73a   : > { %v12929_v43 = vor.u32 %v14228_v55, %v12926_v25  ;;  %v13057_v62 = vor.u32 %v14260_v48, %v13054_v24  ;;  %v12897_v53 = vor.u32 %v14220_v9, %v12894_v28  ;;  %v13025_v52 = vor.u32 %v14252_v50, %v13022_v57  ;;  %v14216_v22 = vld [vmem:[%s21401_s7 + $0xc6c] sm:$0xf]  ;;  %v13006_v25 = vld [vmem:[%s21401_s7 + $0xd78] sm:$0xf0]  ;;  %v12972_v28 = vld [vmem:[%s21401_s7 + $0xd28] sm:$0xf] }
 0x73b   : > { %v14248_v55 = vld [vmem:[%s21401_s7 + $0xd6c] sm:$0xf]  ;;  %v12877_v48 = vor.u32 %v14218_v63, %v12876_v19  ;;  %v12862_v31 = vld [vmem:[%s21401_s7 + $0xc58] sm:$0xf0]  ;;  %v14242_v50 = vld [vmem:[%s21401_s7 + $0xd34] sm:$0xf0] }
 0x73c   : > { %8501 = vmatpush.bf16.msrb.mxu0 %v12821_v0  ;;  %8514 = vmatpush.bf16.msrb.mxu1 %v12949_v12  ;;  %v13020_v0 = vld [vmem:[%s21401_s7 + $0xd88] sm:$0xf]  ;;  %v14254_v12 = vld [vmem:[%s21401_s7 + $0xd94] sm:$0xf0]  ;;  %v13009_v6 = vor.u32 %v14248_v55, %v13006_v25  ;;  %v12990_v54 = vld [vmem:[%s21401_s7 + $0xd58] sm:$0xf0] }
 0x73d   : > { %8527 = vmatpush.bf16.msra.mxu2 %v12825_v3  ;;  %8540 = vmatpush.bf16.msra.mxu3 %v12953_v13  ;;  %v7453_v3 = vpop.f32.mrf.mxu0  ;;  %v7466_v13 = vpop.f32.mrf.mxu1  ;;  %v12993_v9 = vor.u32 %v14244_v41, %v12990_v54  ;;  %v14208_v57 = vld [vmem:[%s21401_s7 + $0xc2c] sm:$0xf]  ;;  %v14206_v19 = vld [vmem:[%s21401_s7 + $0xc14] sm:$0xf0]  ;;  %v12956_v63 = vld [vmem:[%s21401_s7 + $0xd08] sm:$0xf] }
 0x73e   : > { %v7467_v49 = vadd.f32 %v7466_v13, %v7453_v3  ;;  %v12846_v3 = vld [vmem:[%s21401_s7 + $0xc38] sm:$0xf0] }
 0x73f   : > { %8502 = vmatmul.bf16.vlgmr.msrb.gmra.mxu0 %v20572_v32  ;;  %8515 = vmatmul.bf16.vlgmr.msrb.gmra.mxu1 %v20574_v2  ;;  %v12974_v13 = vld [vmem:[%s21401_s7 + $0xd38] sm:$0xf0] }
 0x740   : > { %8546 = vmatpush.bf16.msra.mxu0 %v12941_v23  ;;  %8559 = vmatpush.bf16.msra.mxu1 %v13069_v1  ;;  %v12893_v23 = vor.u32 %v14222_v47, %v12892_v11  ;;  %v13021_v1 = vor.u32 %v14254_v12, %v13020_v0  ;;  %v20644_v33 = vadd.f32 %v7467_v49, %v20206_v59  ;;  %v12860_v59 = vld [vmem:[%s21401_s7 + $0xc48] sm:$0xf] }
 0x741   : > { %8572 = vmatpush.bf16.msrb.mxu2 %v12945_v46  ;;  %8585 = vmatpush.bf16.msrb.mxu3 %v13073_v5  ;;  %v13004_v46 = vld [vmem:[%s21401_s7 + $0xd68] sm:$0xf]  ;;  %v14250_v5 = vld [vmem:[%s21401_s7 + $0xd74] sm:$0xf0] }
 0x742   : > { %8528 = vmatmul.bf16.vlgmr.msra.gmra.mxu2 %v20572_v32  ;;  %8541 = vmatmul.bf16.vlgmr.msra.gmra.mxu3 %v20574_v2  ;;  %v13005_v24 = vor.u32 %v14250_v5, %v13004_v46  ;;  %v12828_v49 = vld [vmem:[%s21401_s7 + $0xc08] sm:$0xf]  ;;  %v14204_v5 = vld [vmem:[%s21401_s7 + $0xc0c] sm:$0xf] }
 0x744   : > { %8547 = vmatpush.bf16.msra.mxu0 %v12925_v20  ;;  %8560 = vmatpush.bf16.msra.mxu1 %v13053_v44  ;;  %v14214_v20 = vld [vmem:[%s21401_s7 + $0xc54] sm:$0xf0]  ;;  %v12881_v44 = vor.u32 %v14216_v22, %v12878_v27  ;;  %v12830_v22 = vld [vmem:[%s21401_s7 + $0xc18] sm:$0xf0]  ;;  %v14236_v27 = vld [vmem:[%s21401_s7 + $0xd0c] sm:$0xf] }
 0x745   : > { %8573 = vmatpush.bf16.msrb.mxu2 %v12929_v43  ;;  %8586 = vmatpush.bf16.msrb.mxu3 %v13057_v62  ;;  %v14246_v43 = vld [vmem:[%s21401_s7 + $0xd54] sm:$0xf0]  ;;  %v14212_v62 = vld [vmem:[%s21401_s7 + $0xc4c] sm:$0xf]  ;;  %v7479_v29 = vpop.f32.mrf.mxu2  ;;  %v7492_v58 = vpop.f32.mrf.mxu3  ;;  %v12861_v11 = vor.u32 %v14214_v20, %v12860_v59  ;;  %v14297_v59 = vld [vmem:[%s21401_s7 + $0xeec] sm:$0xf0] }
 0x746   : > { %v7493_v8 = vadd.f32 %v7492_v58, %v7479_v29  ;;  %v12989_v47 = vor.u32 %v14246_v43, %v12988_v60  ;;  %v12865_v12 = vor.u32 %v14212_v62, %v12862_v31  ;;  %v13380_v20 = vld [vmem:[%s21401_s7 + $0xfe0] sm:$0xf]  ;;  %v12829_v60 = vor.u32 %v14206_v19, %v12828_v49  ;;  %v13254_v62 = vld [vmem:[%s21401_s7 + $0xef0] sm:$0xf0]  ;;  %v14327_v29 = vld [vmem:[%s21401_s7 + $0xfe4] sm:$0xf] }
 0x747   : > { %v13382_v58 = vld [vmem:[%s21401_s7 + $0xff0] sm:$0xf0]  ;;  %v12833_v31 = vor.u32 %v14204_v5, %v12830_v22  ;;  %v14321_v19 = vld [vmem:[%s21401_s7 + $0xfac] sm:$0xf0] }
 0x748   : > { %8548 = vmatpush.bf16.msra.mxu0 %v12909_v14  ;;  %8561 = vmatpush.bf16.msra.mxu1 %v13037_v15  ;;  %v7455_v14 = vpop.f32.mrf.mxu0  ;;  %v7468_v15 = vpop.f32.mrf.mxu1  ;;  %v20686_v0 = vadd.f32 %v7493_v8, %v20248_v26  ;;  %v14240_v26 = vld [vmem:[%s21401_s7 + $0xd2c] sm:$0xf] }
 0x749   : > { %8574 = vmatpush.bf16.msrb.mxu2 %v12913_v18  ;;  %8587 = vmatpush.bf16.msrb.mxu3 %v13041_v61  ;;  %v12844_v18 = vld [vmem:[%s21401_s7 + $0xc28] sm:$0xf]  ;;  %v14210_v61 = vld [vmem:[%s21401_s7 + $0xc34] sm:$0xf0]  ;;  %v12977_v46 = vor.u32 %v14240_v26, %v12974_v13  ;;  %v13236_v14 = vld [vmem:[%s21401_s7 + $0xec0] sm:$0xf] }
 0x74a   : > { %v14293_v15 = vld [vmem:[%s21401_s7 + $0xecc] sm:$0xf0]  ;;  %v13220_v26 = vld [vmem:[%s21401_s7 + $0xea0] sm:$0xf] }
 0x74b   : > { %v14289_v13 = vld [vmem:[%s21401_s7 + $0xeac] sm:$0xf0] }
 0x74c   : > { %8549 = vmatpush.bf16.msra.mxu0 %v12893_v23  ;;  %8562 = vmatpush.bf16.msra.mxu1 %v13021_v1  ;;  %v12845_v23 = vor.u32 %v14210_v61, %v12844_v18  ;;  %v12973_v1 = vor.u32 %v14242_v50, %v12972_v28  ;;  %v13364_v18 = vld [vmem:[%s21401_s7 + $0xfc0] sm:$0xf]  ;;  %v14325_v61 = vld [vmem:[%s21401_s7 + $0xfcc] sm:$0xf0]  ;;  %v14323_v28 = vld [vmem:[%s21401_s7 + $0xfc4] sm:$0xf]  ;;  %v13221_v5 = vor.u32 %v14289_v13, %v13220_v26 }
 0x74d   : > { %8575 = vmatpush.bf16.msrb.mxu2 %v12897_v53  ;;  %8588 = vmatpush.bf16.msrb.mxu3 %v13025_v52  ;;  %v14238_v53 = vld [vmem:[%s21401_s7 + $0xd14] sm:$0xf0]  ;;  %v12849_v52 = vor.u32 %v14208_v57, %v12846_v3  ;;  %v7481_v55 = vpop.f32.mrf.mxu2  ;;  %v7494_v25 = vpop.f32.mrf.mxu3  ;;  %v13366_v50 = vld [vmem:[%s21401_s7 + $0xfd0] sm:$0xf0]  ;;  %v13237_v57 = vor.u32 %v14293_v15, %v13236_v14  ;;  %v13365_v3 = vor.u32 %v14325_v61, %v13364_v18  ;;  %v14313_v15 = vld [vmem:[%s21401_s7 + $0xf6c] sm:$0xf0] }
 0x74e   : > { %v12957_v43 = vor.u32 %v14238_v53, %v12956_v63  ;;  %v14287_v63 = vld [vmem:[%s21401_s7 + $0xea4] sm:$0xf]  ;;  %v13222_v53 = vld [vmem:[%s21401_s7 + $0xeb0] sm:$0xf0]  ;;  %v14285_v55 = vld [vmem:[%s21401_s7 + $0xe8c] sm:$0xf0] }
 0x74f   : > { %v13225_v25 = vor.u32 %v14287_v63, %v13222_v53  ;;  %v14311_v18 = vld [vmem:[%s21401_s7 + $0xf64] sm:$0xf]  ;;  %v13318_v61 = vld [vmem:[%s21401_s7 + $0xf70] sm:$0xf0]  ;;  %v13300_v13 = vld [vmem:[%s21401_s7 + $0xf40] sm:$0xf] }
 0x750   : > { %8550 = vmatpush.bf16.msra.mxu0 %v12877_v48  ;;  %8563 = vmatpush.bf16.msra.mxu1 %v13005_v24  ;;  %v12958_v48 = vld [vmem:[%s21401_s7 + $0xd18] sm:$0xf0]  ;;  %v13252_v24 = vld [vmem:[%s21401_s7 + $0xee0] sm:$0xf]  ;;  %v14307_v63 = vld [vmem:[%s21401_s7 + $0xf44] sm:$0xf] }
 0x751   : > { %8576 = vmatpush.bf16.msrb.mxu2 %v12881_v44  ;;  %8589 = vmatpush.bf16.msrb.mxu3 %v13009_v6  ;;  %v14329_v44 = vld [vmem:[%s21401_s7 + $0xfec] sm:$0xf0]  ;;  %v14295_v6 = vld [vmem:[%s21401_s7 + $0xee4] sm:$0xf]  ;;  %v12961_v41 = vor.u32 %v14236_v27, %v12958_v48  ;;  %v13253_v54 = vor.u32 %v14297_v59, %v13252_v24  ;;  %v13204_v27 = vld [vmem:[%s21401_s7 + $0xe80] sm:$0xf] }
 0x752   : > { %v13381_v8 = vor.u32 %v14329_v44, %v13380_v20  ;;  %v14283_v24 = vld [vmem:[%s21401_s7 + $0xe84] sm:$0xf]  ;;  %v13206_v59 = vld [vmem:[%s21401_s7 + $0xe90] sm:$0xf0] }
 0x753   : > { %v14315_v20 = vld [vmem:[%s21401_s7 + $0xf84] sm:$0xf]  ;;  %v13334_v44 = vld [vmem:[%s21401_s7 + $0xf90] sm:$0xf0] }
 0x754   : > { %8551 = vmatpush.bf16.msra.mxu0 %v12861_v11  ;;  %8564 = vmatpush.bf16.msra.mxu1 %v12989_v47  ;;  %v13257_v11 = vor.u32 %v14295_v6, %v13254_v62  ;;  %v13385_v47 = vor.u32 %v14327_v29, %v13382_v58  ;;  %v13205_v29 = vor.u32 %v14285_v55, %v13204_v27  ;;  %v13302_v53 = vld [vmem:[%s21401_s7 + $0xf50] sm:$0xf0]  ;;  %v8676_v27 = vrot.slane %v18076_v4, 2 }
 0x755   : > { %8577 = vmatpush.bf16.msrb.mxu2 %v12865_v12  ;;  %8590 = vmatpush.bf16.msrb.mxu3 %v12993_v9  ;;  %v14291_v12 = vld [vmem:[%s21401_s7 + $0xec4] sm:$0xf]  ;;  %v13238_v9 = vld [vmem:[%s21401_s7 + $0xed0] sm:$0xf0]  ;;  %v13337_v14 = vor.u32 %v14315_v20, %v13334_v44  ;;  %v8681_v55 = vrot.slane %v18047_v7, 7  ;;  %v8684_v4 = vrot.slane %v18055_v16, 5  ;;  %v13305_v20 = vor.u32 %v14307_v63, %v13302_v53 }
 0x756   : > { %v13241_v49 = vor.u32 %v14291_v12, %v13238_v9  ;;  %v8667_v12 = vrot.slane %v18039_v21, 7  ;;  %v13321_v21 = vor.u32 %v14311_v18, %v13318_v61  ;;  %v13284_v44 = vld [vmem:[%s21401_s7 + $0xf20] sm:$0xf]  ;;  %v13158_v16 = vld [vmem:[%s21401_s7 + $0xe30] sm:$0xf0] }
 0x758   : > { %8552 = vmatpush.bf16.msra.mxu0 %v12845_v23  ;;  %8565 = vmatpush.bf16.msra.mxu1 %v12973_v1  ;;  %v13369_v23 = vor.u32 %v14323_v28, %v13366_v50  ;;  %v13348_v1 = vld [vmem:[%s21401_s7 + $0xfa0] sm:$0xf]  ;;  %v14277_v50 = vld [vmem:[%s21401_s7 + $0xe4c] sm:$0xf0] }
 0x759   : > { %8578 = vmatpush.bf16.msrb.mxu2 %v12849_v52  ;;  %8591 = vmatpush.bf16.msrb.mxu3 %v12977_v46  ;;  %v14319_v52 = vld [vmem:[%s21401_s7 + $0xfa4] sm:$0xf]  ;;  %v13350_v46 = vld [vmem:[%s21401_s7 + $0xfb0] sm:$0xf0]  ;;  %v13349_v22 = vor.u32 %v14321_v19, %v13348_v1 }
 0x75a   : > { %v13353_v48 = vor.u32 %v14319_v52, %v13350_v46  ;;  %v13174_v19 = vld [vmem:[%s21401_s7 + $0xe50] sm:$0xf0] }
 0x75c   : > { %8553 = vmatpush.bf16.msra.mxu0 %v12829_v60  ;;  %8566 = vmatpush.bf16.msra.mxu1 %v12957_v43  ;;  %v7505_v6 = vpop.f32.mrf.mxu0  ;;  %v7518_v60 = vpop.f32.mrf.mxu1  ;;  %v8668_v43 = vrot.slane %v18051_v10, 6  ;;  %v13316_v10 = vld [vmem:[%s21401_s7 + $0xf60] sm:$0xf] }
 0x75d   : > { %8579 = vmatpush.bf16.msrb.mxu2 %v12833_v31  ;;  %8592 = vmatpush.bf16.msrb.mxu3 %v12961_v41  ;;  %v7519_v62 = vadd.f32 %v7518_v60, %v7505_v6  ;;  %v13188_v31 = vld [vmem:[%s21401_s7 + $0xe60] sm:$0xf]  ;;  %v14281_v41 = vld [vmem:[%s21401_s7 + $0xe6c] sm:$0xf0]  ;;  %v13317_v28 = vor.u32 %v14313_v15, %v13316_v10  ;;  %v13286_v60 = vld [vmem:[%s21401_s7 + $0xf30] sm:$0xf0] }
 0x75e   : > { %v13189_v9 = vor.u32 %v14281_v41, %v13188_v31  ;;  %v14305_v6 = vld [vmem:[%s21401_s7 + $0xf2c] sm:$0xf0]  ;;  %v8690_v31 = vrot.slane %v18078_v56, 2  ;;  %v8692_v41 = vrot.slane %v18082_v36, 1  ;;  %v13268_v10 = vld [vmem:[%s21401_s7 + $0xf00] sm:$0xf] }
 0x75f   : > { %8554 = vmatmul.bf16.vlgmr.msra.gmra.mxu0 %v20572_v32  ;;  %8567 = vmatmul.bf16.vlgmr.msra.gmra.mxu1 %v20574_v2  ;;  %v14267_v15 = vld [vmem:[%s21401_s7 + $0xe04] sm:$0xf] }
 0x760   : > { %9019 = vmatpush.bf16.msrb.mxu0 %v13253_v54  ;;  %9032 = vmatpush.bf16.msrb.mxu1 %v13381_v8  ;;  %v8670_v54 = vrot.slane %v18053_v30, 5  ;;  %v13209_v8 = vor.u32 %v14283_v24, %v13206_v59  ;;  %v13190_v30 = vld [vmem:[%s21401_s7 + $0xe70] sm:$0xf0]  ;;  %v14273_v24 = vld [vmem:[%s21401_s7 + $0xe2c] sm:$0xf0]  ;;  %v8678_v59 = vrot.slane %v18080_v35, 1 }
 0x761   : > { %9045 = vmatpush.bf16.msra.mxu2 %v13257_v11  ;;  %9058 = vmatpush.bf16.msra.mxu3 %v13385_v47  ;;  %v14279_v11 = vld [vmem:[%s21401_s7 + $0xe64] sm:$0xf]  ;;  %v20848_v47 = vadd.f32 %v7519_v62, %v20410_v37  ;;  %v13172_v37 = vld [vmem:[%s21401_s7 + $0xe40] sm:$0xf] }
 0x762   : > { %8580 = vmatmul.bf16.vlgmr.msrb.gmra.mxu2 %v20572_v32  ;;  %8593 = vmatmul.bf16.vlgmr.msrb.gmra.mxu3 %v20574_v2  ;;  %v13332_v32 = vld [vmem:[%s21401_s7 + $0xf80] sm:$0xf]  ;;  %v14317_v2 = vld [vmem:[%s21401_s7 + $0xf8c] sm:$0xf0]  ;;  %v13193_v26 = vor.u32 %v14279_v11, %v13190_v30  ;;  %v14271_v35 = vld [vmem:[%s21401_s7 + $0xe24] sm:$0xf] }
 0x763   : > { %v13333_v58 = vor.u32 %v14317_v2, %v13332_v32  ;;  %v13156_v2 = vld [vmem:[%s21401_s7 + $0xe20] sm:$0xf]  ;;  %v13161_v56 = vor.u32 %v14271_v35, %v13158_v16  ;;  %v13142_v11 = vld [vmem:[%s21401_s7 + $0xe10] sm:$0xf0]  ;;  %v14299_v30 = vld [vmem:[%s21401_s7 + $0xf04] sm:$0xf] }
 0x764   : > { %9020 = vmatpush.bf16.msrb.mxu0 %v13237_v57  ;;  %9033 = vmatpush.bf16.msrb.mxu1 %v13365_v3  ;;  %v8672_v57 = vrot.slane %v18060_v42, 4  ;;  %v8674_v3 = vrot.slane %v18070_v34, 3  ;;  %v8669_v42 = vsel %vm5059_vm8, %v8668_v43, %v8667_v12  ;;  %v13140_v62 = vld [vmem:[%s21401_s7 + $0xe00] sm:$0xf]  ;;  %v13145_v53 = vor.u32 %v14267_v15, %v13142_v11  ;;  %v13340_v15 = vld [vmem:[%s21401_s7 + $0xf88] sm:$0xf] }
 0x765   : > { %9046 = vmatpush.bf16.msra.mxu2 %v13241_v49  ;;  %9059 = vmatpush.bf16.msra.mxu3 %v13369_v23  ;;  %v14309_v49 = vld [vmem:[%s21401_s7 + $0xf4c] sm:$0xf0]  ;;  %v14275_v23 = vld [vmem:[%s21401_s7 + $0xe44] sm:$0xf]  ;;  %v7531_v1 = vpop.f32.mrf.mxu2  ;;  %v7544_v34 = vpop.f32.mrf.mxu3  ;;  %v8671_v52 = vsel %vm5062_vm9, %v8670_v54, %v8669_v42  ;;  %v13157_v54 = vor.u32 %v14273_v24, %v13156_v2  ;;  %v14318_v11 = vld [vmem:[%s21401_s7 + $0xf94] sm:$0xf0] }
 0x766   : > { %v7545_v46 = vadd.f32 %v7544_v34, %v7531_v1  ;;  %v13301_v32 = vor.u32 %v14309_v49, %v13300_v13  ;;  %v8673_v43 = vsel %vm5065_vm10, %v8672_v57, %v8671_v52  ;;  %v13262_v1 = vld [vmem:[%s21401_s7 + $0xef8] sm:$0xf0]  ;;  %v14328_v34 = vld [vmem:[%s21401_s7 + $0xfec] sm:$0xf] }
 0x768   : > { %9021 = vmatpush.bf16.msrb.mxu0 %v13221_v5  ;;  %9034 = vmatpush.bf16.msrb.mxu1 %v13349_v22  ;;  %v7507_v5 = vpop.f32.mrf.mxu0  ;;  %v7520_v22 = vpop.f32.mrf.mxu1  ;;  %v20900_v7 = vadd.f32 %v7545_v46, %v20462_v51  ;;  %v14303_v51 = vld [vmem:[%s21401_s7 + $0xf24] sm:$0xf] }
 0x769   : > { %9047 = vmatpush.bf16.msra.mxu2 %v13225_v25  ;;  %9060 = vmatpush.bf16.msra.mxu3 %v13353_v48  ;;  %v8682_v25 = vrot.slane %v18063_v40, 6  ;;  %v13173_v48 = vor.u32 %v14277_v50, %v13172_v37  ;;  %v13177_v40 = vor.u32 %v14275_v23, %v13174_v19  ;;  %v13289_v36 = vor.u32 %v14303_v51, %v13286_v60  ;;  %v14298_v37 = vld [vmem:[%s21401_s7 + $0xef4] sm:$0xf0]  ;;  %v13390_v19 = vld [vmem:[%s21401_s7 + $0xff8] sm:$0xf0] }
 0x76a   : > { %v13393_v2 = vor.u32 %v14328_v34, %v13390_v19  ;;  %v13228_v51 = vld [vmem:[%s21401_s7 + $0xea8] sm:$0xf]  ;;  %v14290_v60 = vld [vmem:[%s21401_s7 + $0xeb4] sm:$0xf0]  ;;  %v13198_v34 = vld [vmem:[%s21401_s7 + $0xe78] sm:$0xf0] }
 0x76b   : > { %v8683_v18 = vsel %vm5059_vm8, %v8682_v25, %v8681_v55  ;;  %v13244_v25 = vld [vmem:[%s21401_s7 + $0xec8] sm:$0xf]  ;;  %v14312_v19 = vld [vmem:[%s21401_s7 + $0xf6c] sm:$0xf] }
 0x76c   : > { %9022 = vmatpush.bf16.msrb.mxu0 %v13205_v29  ;;  %9035 = vmatpush.bf16.msrb.mxu1 %v13333_v58  ;;  %v8686_v29 = vrot.slane %v18065_v38, 4  ;;  %v8688_v58 = vrot.slane %v18072_v17, 3  ;;  %v14301_v38 = vld [vmem:[%s21401_s7 + $0xf0c] sm:$0xf0]  ;;  %v8675_v17 = vsel %vm5068_vm11, %v8674_v3, %v8673_v43  ;;  %v8685_v57 = vsel %vm5062_vm9, %v8684_v4, %v8683_v18  ;;  %v13388_v3 = vld [vmem:[%s21401_s7 + $0xfe8] sm:$0xf] }
 0x76d   : > { %9048 = vmatpush.bf16.msra.mxu2 %v13209_v8  ;;  %9061 = vmatpush.bf16.msra.mxu3 %v13337_v14  ;;  %v13285_v8 = vor.u32 %v14305_v6, %v13284_v44  ;;  %v14269_v14 = vld [vmem:[%s21401_s7 + $0xe0c] sm:$0xf0]  ;;  %v7533_v61 = vpop.f32.mrf.mxu2  ;;  %v7546_v12 = vpop.f32.mrf.mxu3  ;;  %v8677_v50 = vsel %vm5071_vm12, %v8676_v27, %v8675_v17  ;;  %v13269_v42 = vor.u32 %v14301_v38, %v13268_v10  ;;  %v14292_v4 = vld [vmem:[%s21401_s7 + $0xecc] sm:$0xf]  ;;  %v13212_v38 = vld [vmem:[%s21401_s7 + $0xe88] sm:$0xf] }
 0x76e   : > { %v8679_v13 = vsel %vm5074_vm13, %v8678_v59, %v8677_v50  ;;  %v8687_v49 = vsel %vm5065_vm10, %v8686_v29, %v8685_v57  ;;  %v13141_v23 = vor.u32 %v14269_v14, %v13140_v62  ;;  %v13372_v59 = vld [vmem:[%s21401_s7 + $0xfc8] sm:$0xf]  ;;  %v13229_v14 = vor.u32 %v14290_v60, %v13228_v51  ;;  %v14286_v17 = vld [vmem:[%s21401_s7 + $0xe94] sm:$0xf0]  ;;  %v13214_v18 = vld [vmem:[%s21401_s7 + $0xe98] sm:$0xf0] }
 0x76f   : > { %v8689_v63 = vsel %vm5068_vm11, %v8688_v58, %v8687_v49  ;;  %v8680_v27 = vsel %vm5077_vm14, %v18097_v39, %v8679_v13  ;;  %v14326_v39 = vld [vmem:[%s21401_s7 + $0xfd4] sm:$0xf0]  ;;  %v13356_v29 = vld [vmem:[%s21401_s7 + $0xfa8] sm:$0xf]  ;;  %v14316_v61 = vld [vmem:[%s21401_s7 + $0xf8c] sm:$0xf]  ;;  %v13213_v50 = vor.u32 %v14286_v17, %v13212_v38  ;;  %v13341_v57 = vor.u32 %v14318_v11, %v13340_v15 }
 0x770   : > { %9023 = vmatpush.bf16.msrb.mxu0 %v13189_v9  ;;  %9036 = vmatpush.bf16.msrb.mxu1 %v13317_v28  ;;  %v13270_v9 = vld [vmem:[%s21401_s7 + $0xf10] sm:$0xf0]  ;;  %v13260_v28 = vld [vmem:[%s21401_s7 + $0xee8] sm:$0xf]  ;;  %v8691_v46 = vsel %vm5071_vm12, %v8690_v31, %v8689_v63  ;;  %v21010_v44 = vpack.c.b16 %v8680_v27, %v8680_v27  ;;  %v13373_v16 = vor.u32 %v14326_v39, %v13372_v59  ;;  %v14322_v58 = vld [vmem:[%s21401_s7 + $0xfb4] sm:$0xf0] }
 0x771   : > { %9049 = vmatpush.bf16.msra.mxu2 %v13193_v26  ;;  %9062 = vmatpush.bf16.msra.mxu3 %v13321_v21  ;;  %v14330_v26 = vld [vmem:[%s21401_s7 + $0xff4] sm:$0xf0]  ;;  %v14296_v21 = vld [vmem:[%s21401_s7 + $0xeec] sm:$0xf]  ;;  %v13273_v52 = vor.u32 %v14299_v30, %v13270_v9  ;;  %v13261_v5 = vor.u32 %v14298_v37, %v13260_v28  ;;  %v8693_v55 = vsel %vm5074_vm13, %v8692_v41, %v8691_v46  ;;  %v13230_v41 = vld [vmem:[%s21401_s7 + $0xeb8] sm:$0xf0] }
 0x772   : > { %v13389_v22 = vor.u32 %v14330_v26, %v13388_v3  ;;  %v8694_v24 = vsel %vm5077_vm14, %v18099_v45, %v8693_v55  ;;  %v14324_v45 = vld [vmem:[%s21401_s7 + $0xfcc] sm:$0xf]  ;;  %v13357_v10 = vor.u32 %v14322_v58, %v13356_v29  ;;  %v13342_v12 = vld [vmem:[%s21401_s7 + $0xf98] sm:$0xf0]  ;;  %v13196_v3 = vld [vmem:[%s21401_s7 + $0xe68] sm:$0xf] }
 0x773   : > { %v21012_v6 = vpack.c.b16 %v8694_v24, %v8694_v24  ;;  %v14288_v31 = vld [vmem:[%s21401_s7 + $0xeac] sm:$0xf]  ;;  %v14282_v26 = vld [vmem:[%s21401_s7 + $0xe74] sm:$0xf0]  ;;  %v13345_v13 = vor.u32 %v14316_v61, %v13342_v12  ;;  %v13324_v49 = vld [vmem:[%s21401_s7 + $0xf68] sm:$0xf] }
 0x774   : > { %9024 = vmatpush.bf16.msrb.mxu0 %v13173_v48  ;;  %9037 = vmatpush.bf16.msrb.mxu1 %v13301_v32  ;;  %v14294_v48 = vld [vmem:[%s21401_s7 + $0xed4] sm:$0xf0]  ;;  %v13265_v32 = vor.u32 %v14296_v21, %v13262_v1  ;;  %v14284_v30 = vld [vmem:[%s21401_s7 + $0xe8c] sm:$0xf]  ;;  %v13326_v63 = vld [vmem:[%s21401_s7 + $0xf78] sm:$0xf0] }
 0x775   : > { %9050 = vmatpush.bf16.msra.mxu2 %v13177_v40  ;;  %9063 = vmatpush.bf16.msra.mxu3 %v13305_v20  ;;  %v13246_v40 = vld [vmem:[%s21401_s7 + $0xed8] sm:$0xf0]  ;;  %v13245_v35 = vor.u32 %v14294_v48, %v13244_v25  ;;  %v13217_v21 = vor.u32 %v14284_v30, %v13214_v18  ;;  %v14278_v46 = vld [vmem:[%s21401_s7 + $0xe54] sm:$0xf0]  ;;  %v13308_v27 = vld [vmem:[%s21401_s7 + $0xf48] sm:$0xf] }
 0x776   : > { %v13374_v20 = vld [vmem:[%s21401_s7 + $0xfd8] sm:$0xf0]  ;;  %v13249_v43 = vor.u32 %v14292_v4, %v13246_v40  ;;  %v14310_v55 = vld [vmem:[%s21401_s7 + $0xf54] sm:$0xf0]  ;;  %v14276_v25 = vld [vmem:[%s21401_s7 + $0xe4c] sm:$0xf] }
 0x777   : > { %v13377_v62 = vor.u32 %v14324_v45, %v13374_v20  ;;  %v14308_v24 = vld [vmem:[%s21401_s7 + $0xf4c] sm:$0xf]  ;;  %v13310_v59 = vld [vmem:[%s21401_s7 + $0xf58] sm:$0xf0]  ;;  %v13309_v20 = vor.u32 %v14310_v55, %v13308_v27  ;;  %v14306_v29 = vld [vmem:[%s21401_s7 + $0xf34] sm:$0xf0] }
 0x778   : > { %9025 = vmatpush.bf16.msrb.mxu0 %v13157_v54  ;;  %9038 = vmatpush.bf16.msrb.mxu1 %v13285_v8  ;;  %v14320_v54 = vld [vmem:[%s21401_s7 + $0xfac] sm:$0xf]  ;;  %v13358_v8 = vld [vmem:[%s21401_s7 + $0xfb8] sm:$0xf0]  ;;  %v14345_v27 = vld [vmem:[%s21403_s9 + $0x70] sm:$0xff] }
 0x779   : > { %9051 = vmatpush.bf16.msra.mxu2 %v13161_v56  ;;  %9064 = vmatpush.bf16.msra.mxu3 %v13289_v36  ;;  %v13233_v56 = vor.u32 %v14288_v31, %v13230_v41  ;;  %v13361_v36 = vor.u32 %v14320_v54, %v13358_v8  ;;  %v14272_v58 = vld [vmem:[%s21401_s7 + $0xe2c] sm:$0xf]  ;;  %v13166_v31 = vld [vmem:[%s21401_s7 + $0xe38] sm:$0xf0] }
 0x77a   : > { %v13294_v41 = vld [vmem:[%s21401_s7 + $0xf38] sm:$0xf0]  ;;  %v13169_v38 = vor.u32 %v14272_v58, %v13166_v31  ;;  %v14268_v15 = vld [vmem:[%s21401_s7 + $0xe0c] sm:$0xf] }
 0x77b   : > { %v13150_v18 = vld [vmem:[%s21401_s7 + $0xe18] sm:$0xf0]  ;;  %v14300_v61 = vld [vmem:[%s21401_s7 + $0xf0c] sm:$0xf] }
 0x77c   : > { %9026 = vmatpush.bf16.msrb.mxu0 %v13141_v23  ;;  %9039 = vmatpush.bf16.msrb.mxu1 %v13269_v42  ;;  %v7978_v9 = vpop.f32.mrf.mxu0  ;;  %v7991_v28 = vpop.f32.mrf.mxu1  ;;  %v14314_v23 = vld [vmem:[%s21401_s7 + $0xf74] sm:$0xf0]  ;;  %v14280_v42 = vld [vmem:[%s21401_s7 + $0xe6c] sm:$0xf]  ;;  %v13278_v12 = vld [vmem:[%s21401_s7 + $0xf18] sm:$0xf0] }
 0x77d   : > { %9052 = vmatpush.bf16.msra.mxu2 %v13145_v53  ;;  %9065 = vmatpush.bf16.msra.mxu3 %v13273_v52  ;;  %v7992_v37 = vadd.f32 %v7991_v28, %v7978_v9  ;;  %v13197_v53 = vor.u32 %v14282_v26, %v13196_v3  ;;  %v13325_v52 = vor.u32 %v14314_v23, %v13324_v49  ;;  %v14336_v55 = vld [vmem:[%s21403_s9 + $0x28] sm:$0xff]  ;;  %v14354_v58 = vld [vmem:[%s21403_s9 + $0xb8] sm:$0xff] }
 0x77e   : > { %v14340_v31 = vld [vmem:[%s21403_s9 + $0x48] sm:$0xff] }
 0x77f   : > { %9027 = vmatmul.bf16.vlgmr.msrb.gmra.mxu0 %v21010_v44  ;;  %9040 = vmatmul.bf16.vlgmr.msrb.gmra.mxu1 %v21012_v6  ;;  %v21082_v1 = vadd.f32 %v7992_v37, %v20644_v33  ;;  %v13180_v33 = vld [vmem:[%s21401_s7 + $0xe48] sm:$0xf]  ;;  %v13153_v37 = vor.u32 %v14268_v15, %v13150_v18  ;;  %v14350_v15 = vld [vmem:[%s21403_s9 + $0x98] sm:$0xff] }
 0x780   : > { %9071 = vmatpush.bf16.msra.mxu0 %v13261_v5  ;;  %9084 = vmatpush.bf16.msra.mxu1 %v13389_v22  ;;  %v13201_v5 = vor.u32 %v14280_v42, %v13198_v34  ;;  %v13329_v22 = vor.u32 %v14312_v19, %v13326_v63  ;;  %v13181_v45 = vor.u32 %v14278_v46, %v13180_v33 }
 0x781   : > { %9097 = vmatpush.bf16.msrb.mxu2 %v13265_v32  ;;  %9110 = vmatpush.bf16.msrb.mxu3 %v13393_v2  ;;  %v13182_v2 = vld [vmem:[%s21401_s7 + $0xe58] sm:$0xf0] }
 0x782   : > { %9053 = vmatmul.bf16.vlgmr.msra.gmra.mxu2 %v21010_v44  ;;  %9066 = vmatmul.bf16.vlgmr.msra.gmra.mxu3 %v21012_v6  ;;  %v13185_v60 = vor.u32 %v14276_v25, %v13182_v2  ;;  %v14335_v2 = vld [vmem:[%s21403_s9 + $0x20] sm:$0xff] }
 0x784   : > { %9072 = vmatpush.bf16.msra.mxu0 %v13245_v35  ;;  %9085 = vmatpush.bf16.msra.mxu1 %v13373_v16  ;;  %v7980_v4 = vpop.f32.mrf.mxu0  ;;  %v7993_v40 = vpop.f32.mrf.mxu1  ;;  %v13164_v35 = vld [vmem:[%s21401_s7 + $0xe28] sm:$0xf]  ;;  %v14274_v16 = vld [vmem:[%s21401_s7 + $0xe34] sm:$0xf0] }
 0x785   : > { %9098 = vmatpush.bf16.msrb.mxu2 %v13249_v43  ;;  %9111 = vmatpush.bf16.msrb.mxu3 %v13377_v62  ;;  %v8004_v48 = vpop.f32.mrf.mxu2  ;;  %v8017_v32 = vpop.f32.mrf.mxu3  ;;  %v13313_v43 = vor.u32 %v14308_v24, %v13310_v59  ;;  %v13292_v62 = vld [vmem:[%s21401_s7 + $0xf28] sm:$0xf]  ;;  %v13165_v54 = vor.u32 %v14274_v16, %v13164_v35  ;;  %v14343_v24 = vld [vmem:[%s21403_s9 + $0x60] sm:$0xff]  ;;  %v14334_v59 = vld [vmem:[%s21403_s9 + $0x18] sm:$0xff] }
 0x786   : > { %v8018_v39 = vadd.f32 %v8017_v32, %v8004_v48  ;;  %v13293_v8 = vor.u32 %v14306_v29, %v13292_v62  ;;  %v14344_v32 = vld [vmem:[%s21403_s9 + $0x68] sm:$0xff]  ;;  %v14331_v29 = vld [vmem:[%s21403_s9] sm:$0xff] }
 0x788   : > { %9073 = vmatpush.bf16.msra.mxu0 %v13229_v14  ;;  %9086 = vmatpush.bf16.msra.mxu1 %v13357_v10  ;;  %v21124_v51 = vadd.f32 %v8018_v39, %v20686_v0  ;;  %v14304_v0 = vld [vmem:[%s21401_s7 + $0xf2c] sm:$0xf]  ;;  %v13148_v14 = vld [vmem:[%s21401_s7 + $0xe08] sm:$0xf]  ;;  %v14270_v10 = vld [vmem:[%s21401_s7 + $0xe14] sm:$0xf0] }
 0x789   : > { %9099 = vmatpush.bf16.msrb.mxu2 %v13233_v56  ;;  %9112 = vmatpush.bf16.msrb.mxu3 %v13361_v36  ;;  %v13297_v17 = vor.u32 %v14304_v0, %v13294_v41  ;;  %v13276_v56 = vld [vmem:[%s21401_s7 + $0xf08] sm:$0xf]  ;;  %v14302_v36 = vld [vmem:[%s21401_s7 + $0xf14] sm:$0xf0]  ;;  %v13149_v9 = vor.u32 %v14270_v10, %v13148_v14  ;;  %v14333_v39 = vld [vmem:[%s21403_s9 + $0x10] sm:$0xff] }
 0x78a   : > { %v13277_v28 = vor.u32 %v14302_v36, %v13276_v56  ;;  %v14362_v0 = vld [vmem:[%s21403_s9 + $0xf8] sm:$0xff]  ;;  %v14353_v41 = vld [vmem:[%s21403_s9 + $0xb0] sm:$0xff]  ;;  %v14339_v14 = vld [vmem:[%s21403_s9 + $0x40] sm:$0xff] }
 0x78b   : > { %v14361_v10 = vld [vmem:[%s21403_s9 + $0xf0] sm:$0xff]  ;;  %v14351_v56 = vld [vmem:[%s21403_s9 + $0xa0] sm:$0xff] }
 0x78c   : > { %9074 = vmatpush.bf16.msra.mxu0 %v13213_v50  ;;  %9087 = vmatpush.bf16.msra.mxu1 %v13341_v57  ;;  %v13281_v50 = vor.u32 %v14300_v61, %v13278_v12  ;;  %v14359_v36 = vld [vmem:[%s21403_s9 + $0xe0] sm:$0xff]  ;;  %v14349_v12 = vld [vmem:[%s21403_s9 + $0x90] sm:$0xff] }
 0x78d   : > { %9100 = vmatpush.bf16.msrb.mxu2 %v13217_v21  ;;  %9113 = vmatpush.bf16.msrb.mxu3 %v13345_v13  ;;  %v8006_v11 = vpop.f32.mrf.mxu2  ;;  %v8019_v30 = vpop.f32.mrf.mxu3 }
 0x78e   : > { %v9127_v30 = vld [vmem:[%s21402_s8] sm:$0xf] }
 0x790   : > { %9075 = vmatpush.bf16.msra.mxu0 %v13197_v53  ;;  %9088 = vmatpush.bf16.msra.mxu1 %v13325_v52 }
 0x791   : > { %9101 = vmatpush.bf16.msrb.mxu2 %v13201_v5  ;;  %9114 = vmatpush.bf16.msrb.mxu3 %v13329_v22  ;;  %v14338_v5 = vld [vmem:[%s21403_s9 + $0x38] sm:$0xff]  ;;  %v14337_v22 = vld [vmem:[%s21403_s9 + $0x30] sm:$0xff] }
 0x794   : > { %9076 = vmatpush.bf16.msra.mxu0 %v13181_v45  ;;  %9089 = vmatpush.bf16.msra.mxu1 %v13309_v20  ;;  %v14342_v45 = vld [vmem:[%s21403_s9 + $0x58] sm:$0xff]  ;;  %v14332_v20 = vld [vmem:[%s21403_s9 + $0x8] sm:$0xff] }
 0x795   : > { %9102 = vmatpush.bf16.msrb.mxu2 %v13185_v60  ;;  %9115 = vmatpush.bf16.msrb.mxu3 %v13313_v43  ;;  %v14341_v60 = vld [vmem:[%s21403_s9 + $0x50] sm:$0xff] }
 0x798   : > { %9077 = vmatpush.bf16.msra.mxu0 %v13165_v54  ;;  %9090 = vmatpush.bf16.msra.mxu1 %v13293_v8 }
 0x799   : > { %9103 = vmatpush.bf16.msrb.mxu2 %v13169_v38  ;;  %9116 = vmatpush.bf16.msrb.mxu3 %v13297_v17  ;;  %v14352_v38 = vld [vmem:[%s21403_s9 + $0xa8] sm:$0xff] }
 0x79a   : > { %v14360_v17 = vld [vmem:[%s21403_s9 + $0xe8] sm:$0xff] }
 0x79c   : > { %9078 = vmatpush.bf16.msra.mxu0 %v13149_v9  ;;  %9091 = vmatpush.bf16.msra.mxu1 %v13277_v28  ;;  %v8030_v57 = vpop.f32.mrf.mxu0  ;;  %v8043_v3 = vpop.f32.mrf.mxu1 }
 0x79d   : > { %9104 = vmatpush.bf16.msrb.mxu2 %v13153_v37  ;;  %9117 = vmatpush.bf16.msrb.mxu3 %v13281_v50  ;;  %v8044_v26 = vadd.f32 %v8043_v3, %v8030_v57  ;;  %v9129_v37 = vperm.slane %v9127_v30, 0  ;;  %v14358_v3 = vld [vmem:[%s21403_s9 + $0xd8] sm:$0xff] }
 0x79f   : > { %9079 = vmatmul.bf16.vlgmr.msra.gmra.mxu0 %v21010_v44  ;;  %9092 = vmatmul.bf16.vlgmr.msra.gmra.mxu1 %v21012_v6  ;;  %v21173_v21 = vadd.f32 %v8044_v26, %v20848_v47  ;;  %v14348_v26 = vld [vmem:[%s21403_s9 + $0x88] sm:$0xff] }
 0x7a0   : > { %9105 = vmatmul.bf16.vlgmr.msrb.gmra.mxu2 %v21010_v44  ;;  %9118 = vmatmul.bf16.vlgmr.msrb.gmra.mxu3 %v21012_v6 }
 0x7a1   : > { %9405 = vmatpush.bf16.msrb.mxu0 %v14338_v5  ;;  %9431 = vmatpush.bf16.msra.mxu2 %v14354_v58 }
 0x7a2   : > { %9444 = vmatpush.bf16.msra.mxu3 %v14362_v0 }
 0x7a4   : > { %v8032_v42 = vpop.f32.mrf.mxu0  ;;  %v8045_v34 = vpop.f32.mrf.mxu1 }
 0x7a5   : > { %v8056_v13 = vpop.f32.mrf.mxu2  ;;  %v8069_v49 = vpop.f32.mrf.mxu3  ;;  %9406 = vmatpush.bf16.msrb.mxu0 %v14337_v22  ;;  %9432 = vmatpush.bf16.msra.mxu2 %v14353_v41 }
 0x7a6   : > { %v8070_v23 = vadd.f32 %v8069_v49, %v8056_v13  ;;  %9445 = vmatpush.bf16.msra.mxu3 %v14361_v10  ;;  %v14365_v10 = vld [vmem:[%s21405_s11 + $0x10] sm:$0xff] }
 0x7a8   : > { %v21176_v19 = vadd.f32 %v8070_v23, %v20900_v7  ;;  %v14346_v7 = vld [vmem:[%s21403_s9 + $0x78] sm:$0xff] }
 0x7a9   : > { %9418 = vmatpush.bf16.msrb.mxu1 %v14346_v7  ;;  %9407 = vmatpush.bf16.msrb.mxu0 %v14336_v55 }
 0x7aa   : > { %9433 = vmatpush.bf16.msra.mxu2 %v14352_v38  ;;  %9446 = vmatpush.bf16.msra.mxu3 %v14360_v17 }
 0x7ad   : > { %v8058_v63 = vpop.f32.mrf.mxu2  ;;  %v8071_v53 = vpop.f32.mrf.mxu3  ;;  %9419 = vmatpush.bf16.msrb.mxu1 %v14345_v27  ;;  %9408 = vmatpush.bf16.msrb.mxu0 %v14335_v2  ;;  %v9131_v2 = vperm.slane %v9127_v30, 2 }
 0x7ae   : > { %9434 = vmatpush.bf16.msra.mxu2 %v14351_v56  ;;  %9447 = vmatpush.bf16.msra.mxu3 %v14359_v36  ;;  %v9130_v53 = vperm.slane %v9127_v30, 1  ;;  %v14364_v36 = vld [vmem:[%s21405_s11 + $0x8] sm:$0xff] }
 0x7b1   : > { %9420 = vmatpush.bf16.msrb.mxu1 %v14344_v32  ;;  %9409 = vmatpush.bf16.msrb.mxu0 %v14334_v59 }
 0x7b2   : > { %9435 = vmatpush.bf16.msra.mxu2 %v14350_v15  ;;  %9448 = vmatpush.bf16.msra.mxu3 %v14358_v3  ;;  %v14363_v15 = vld [vmem:[%s21405_s11] sm:$0xff] }
 0x7b5   : > { %9421 = vmatpush.bf16.msrb.mxu1 %v14343_v24  ;;  %9410 = vmatpush.bf16.msrb.mxu0 %v14333_v39 }
 0x7b6   : > { %9436 = vmatpush.bf16.msra.mxu2 %v14349_v12  ;;  %v14374_v12 = vld [vmem:[%s21407_s13 + $0x18] sm:$0xff] }
 0x7b9   : > { %9422 = vmatpush.bf16.msrb.mxu1 %v14342_v45  ;;  %9411 = vmatpush.bf16.msrb.mxu0 %v14332_v20 }
 0x7ba   : > { %9437 = vmatpush.bf16.msra.mxu2 %v14348_v26 }
 0x7bc   : > { %v21178_v52 = vpop.f32.mrf.mxu0  ;;  %v21180_v44 = vpop.f32.mrf.mxu1 }
 0x7bd   : > { %9423 = vmatpush.bf16.msrb.mxu1 %v14341_v60  ;;  %9412 = vmatpush.bf16.msrb.mxu0 %v14331_v29  ;;  %v8517_v11 = vadd.f32 %v21180_v44, %v21178_v52  ;;  %v9132_v29 = vperm.slane %v9127_v30, 3  ;;  %v14377_v30 = vld [vmem:[%s21407_s13 + $0x30] sm:$0xff] }
 0x7bf   : > { %v8598_v9 = vadd.f32 %v8517_v11, %v21082_v1  ;;  %v14357_v1 = vld [vmem:[%s21403_s9 + $0xd0] sm:$0xff]  ;;  %v14378_v11 = vld [vmem:[%s21407_s13 + $0x38] sm:$0xff] }
 0x7c0   : > { %9449 = vmatpush.bf16.msra.mxu3 %v14357_v1 }
 0x7c1   : > { %9424 = vmatpush.bf16.msrb.mxu1 %v14340_v31 }
 0x7c4   : > { %v8505_v47 = vpop.f32.mrf.mxu0  ;;  %v8518_v46 = vpop.f32.mrf.mxu1 }
 0x7c5   : > { %v21182_v6 = vpop.f32.mrf.mxu2  ;;  %v21184_v33 = vpop.f32.mrf.mxu3  ;;  %9425 = vmatpush.bf16.msrb.mxu1 %v14339_v14  ;;  %v14356_v47 = vld [vmem:[%s21403_s9 + $0xc8] sm:$0xff] }
 0x7c6   : > { %v8543_v57 = vadd.f32 %v21184_v33, %v21182_v6  ;;  %v14347_v33 = vld [vmem:[%s21403_s9 + $0x80] sm:$0xff]  ;;  %9450 = vmatpush.bf16.msra.mxu3 %v14356_v47 }
 0x7c7   : > { %9438 = vmatpush.bf16.msra.mxu2 %v14347_v33 }
 0x7c8   : > { %v8599_v34 = vadd.f32 %v8543_v57, %v21124_v51  ;;  %v14355_v51 = vld [vmem:[%s21403_s9 + $0xc0] sm:$0xff] }
 0x7c9   : > { %9610 = vmatpush.bf16.msra.mxu1 %v14378_v11 }
 0x7ca   : > { %9451 = vmatpush.bf16.msra.mxu3 %v14355_v51 }
 0x7cd   : > { %v8531_v25 = vpop.f32.mrf.mxu2  ;;  %v8544_v48 = vpop.f32.mrf.mxu3  ;;  %9611 = vmatpush.bf16.msra.mxu1 %v14377_v30 }
 0x7dc   : > { %v21216_v4 = vpop.f32.mrf.mxu0  ;;  %v21218_v40 = vpop.f32.mrf.mxu1 }
 0x7dd   : > { %v8569_v27 = vadd.f32 %v21218_v40, %v21216_v4 }
 0x7df   : > { %v8600_v48 = vadd.f32 %v8569_v27, %v21173_v21 }
 0x7e4   : > { %v8557_v43 = vpop.f32.mrf.mxu0  ;;  %v8570_v62 = vpop.f32.mrf.mxu1 }
 0x7e5   : > { %v21226_v35 = vpop.f32.mrf.mxu2  ;;  %v21228_v16 = vpop.f32.mrf.mxu3 }
 0x7e6   : > { %v8595_v59 = vadd.f32 %v21228_v16, %v21226_v35  ;;  %v14370_v35 = vld [vmem:[%s21405_s11 + $0x38] sm:$0xff]  ;;  %v14368_v16 = vld [vmem:[%s21405_s11 + $0x28] sm:$0xff] }
 0x7e7   : > { %9527 = vmatpush.bf16.msra.mxu0 %v14370_v35 }
 0x7e8   : > { %v8601_v43 = vadd.f32 %v8595_v59, %v21176_v19  ;;  %v14369_v19 = vld [vmem:[%s21405_s11 + $0x30] sm:$0xff] }
 0x7eb   : > { %9528 = vmatpush.bf16.msra.mxu0 %v14369_v19 }
 0x7ed   : > { %v8583_v54 = vpop.f32.mrf.mxu2  ;;  %v8596_v8 = vpop.f32.mrf.mxu3 }
 0x7ee   : > { %v14367_v54 = vld [vmem:[%s21405_s11 + $0x20] sm:$0xff]  ;;  %v14366_v8 = vld [vmem:[%s21405_s11 + $0x18] sm:$0xff] }
 0x7ef   : > { %9529 = vmatpush.bf16.msra.mxu0 %v14368_v16 }
 0x7f3   : > { %9530 = vmatpush.bf16.msra.mxu0 %v14367_v54 }
 0x7f7   : > { %9531 = vmatpush.bf16.msra.mxu0 %v14366_v8 }
 0x7fb   : > { %9532 = vmatpush.bf16.msra.mxu0 %v14365_v10 }
 0x7fc   : > { %v9028_v18 = vpop.f32.mrf.mxu0  ;;  %v9041_v61 = vpop.f32.mrf.mxu1 }
 0x7fd   : > { %v9042_v28 = vadd.f32 %v9041_v61, %v9028_v18  ;;  %v14376_v18 = vld [vmem:[%s21407_s13 + $0x28] sm:$0xff]  ;;  %v14375_v61 = vld [vmem:[%s21407_s13 + $0x20] sm:$0xff] }
 0x7fe   : > { %9612 = vmatpush.bf16.msra.mxu1 %v14376_v18 }
 0x7ff   : > { %v9123_v50 = vadd.f32 %v9042_v28, %v8598_v9  ;;  %9533 = vmatpush.bf16.msra.mxu0 %v14364_v36  ;;  %v14458_v9 = vld [vmem:[%s21404_s10] ss:$0 sm:$0xff] }
 0x801   : > { %v9137_v13 = vadd.f32 %v9129_v37, %v9123_v50  ;;  %v14373_v37 = vld [vmem:[%s21407_s13 + $0x10] sm:$0xff] }
 0x802   : > { %9613 = vmatpush.bf16.msra.mxu1 %v14375_v61 }
 0x803   : > { %v9141_v49 = vpack.c.bf16 %v9137_v13, %v9137_v13  ;;  %9534 = vmatpush.bf16.msra.mxu0 %v14363_v15 }
 0x804   : > { %v9030_v52 = vpop.f32.mrf.mxu0  ;;  %v9043_v44 = vpop.f32.mrf.mxu1 }
 0x805   : > { %v9054_v23 = vpop.f32.mrf.mxu2  ;;  %v9067_v42 = vpop.f32.mrf.mxu3  ;;  %9413 = vmatmul.bf16.vlgmr.msrb.gmra.mxu0 %v9141_v49 }
 0x806   : > { %v9068_v63 = vadd.f32 %v9067_v42, %v9054_v23  ;;  %9614 = vmatpush.bf16.msra.mxu1 %v14374_v12 }
 0x808   : > { %v9124_v6 = vadd.f32 %v9068_v63, %v8599_v34  ;;  %v14372_v34 = vld [vmem:[%s21407_s13 + $0x8] sm:$0xff]  ;;  %v14371_v63 = vld [vmem:[%s21407_s13] sm:$0xff] }
 0x80a   : > { %v9138_v46 = vadd.f32 %v9130_v53, %v9124_v6  ;;  %9615 = vmatpush.bf16.msra.mxu1 %v14373_v37  ;;  %v14459_v53 = vld [vmem:[%s21406_s12] ss:$0 sm:$0xff] }
 0x80c   : > { %v9142_v5 = vpack.c.bf16 %v9138_v46, %v9138_v46  ;;  %v9624_v46 = vlaneseq }
 0x80d   : > { %v9056_v7 = vpop.f32.mrf.mxu2  ;;  %v9069_v22 = vpop.f32.mrf.mxu3 }
 0x80e   : > { %9426 = vmatmul.bf16.vlgmr.msrb.gmra.mxu1 %v9142_v5  ;;  %v14460_v5 = vld [vmem:[%s21408_s14] ss:$0 sm:$0xff]  ;;  %v9625_v51 = vand.u32 127, %v9624_v46 }
 0x80f   : > { %9616 = vmatpush.bf16.msra.mxu1 %v14372_v34 }
 0x810   : > { %vm9626_vm15 = vcmp.lt.s32.totalorder %v9625_v51, 50 }
 0x813   : > { %9617 = vmatpush.bf16.msra.mxu1 %v14371_v63 }
 0x81c   : > { %v9080_v55 = vpop.f32.mrf.mxu0  ;;  %v9093_v25 = vpop.f32.mrf.mxu1 }
 0x81d   : > { %v9094_v32 = vadd.f32 %v9093_v25, %v9080_v55 }
 0x81f   : > { %v9125_v24 = vadd.f32 %v9094_v32, %v8600_v48 }
 0x821   : > { %v9139_v39 = vadd.f32 %v9131_v2, %v9125_v24 }
 0x823   : > { %v9143_v45 = vpack.c.bf16 %v9139_v39, %v9139_v39  ;;  %v9106_v20 = vpop.f32.mrf.mxu2  ;;  %v9119_v60 = vpop.f32.mrf.mxu3 }
 0x824   : > { %v9120_v62 = vadd.f32 %v9119_v60, %v9106_v20  ;;  %v9082_v58 = vpop.f32.mrf.mxu0  ;;  %v9095_v4 = vpop.f32.mrf.mxu1 }
 0x825   : > { %9439 = vmatmul.bf16.vlgmr.msra.gmra.mxu2 %v9143_v45 }
 0x826   : > { %v9126_v40 = vadd.f32 %v9120_v62, %v8601_v43 }
 0x828   : > { %v9140_v31 = vadd.f32 %v9132_v29, %v9126_v40 }
 0x82a   : > { %v9144_v21 = vpack.c.bf16 %v9140_v31, %v9140_v31 }
 0x82b   : > { %v9108_v0 = vpop.f32.mrf.mxu2  ;;  %v9121_v41 = vpop.f32.mrf.mxu3 }
 0x82c   : > { %9452 = vmatmul.bf16.vlgmr.msra.gmra.mxu3 %v9144_v21 }
 0x882   : > { %v9414_v14 = vpop.f32.mrf.mxu0 }
 0x883   : > { %v9415_v50 = vadd.f32 %v14458_v9, %v9414_v14 }
 0x88a   : > { %v9416_v17 = vpop.f32.mrf.mxu0 }
 0x88b   : > { %v9427_v38 = vpop.f32.mrf.mxu1 }
 0x88c   : > { %v9428_v57 = vadd.f32 %v9427_v38, %v9415_v50 }
 0x893   : > { %v9429_v56 = vpop.f32.mrf.mxu1 }
 0x8a8   : > { %v9440_v28 = vpop.f32.mrf.mxu2 }
 0x8a9   : > { %v9441_v3 = vadd.f32 %v9440_v28, %v9428_v57 }
 0x8af   : > { %v9453_v26 = vpop.f32.mrf.mxu3 }
 0x8b0   : > { %v9454_v13 = vadd.f32 %v9453_v26, %v9441_v3  ;;  %v9442_v1 = vpop.f32.mrf.mxu2 }
 0x8b2   : > { %v9457_v49 = vmax.f32 %v9454_v13, 0.0 }
 0x8b4   : > { %v9458_v23 = vpack.c.bf16 %v9457_v49, %v9457_v49 }
 0x8b6   : > { %9535 = vmatmul.bf16.vlgmr.msra.gmra.mxu0 %v9458_v23 }
 0x8b7   : > { %v9455_v42 = vpop.f32.mrf.mxu3 }
 0x933   : > { %v9536_v52 = vpop.f32.mrf.mxu0 }
 0x934   : > { %v9537_v44 = vadd.f32 %v14459_v53, %v9536_v52 }
 0x936   : > { %v9540_v6 = vmax.f32 %v9537_v44, 0.0 }
 0x938   : > { %v9541_v33 = vpack.c.bf16 %v9540_v6, %v9540_v6 }
 0x93a   : > { %9618 = vmatmul.bf16.vlgmr.msra.gmra.mxu1 %v9541_v33 }
 0x93b   : > { %v9538_v47 = vpop.f32.mrf.mxu0 }
 0x9b7   : > { %v9619_v7 = vpop.f32.mrf.mxu1 }
 0x9b8   : > { %v9620_v22 = vadd.f32 %v14460_v5, %v9619_v7 }
 0x9ba   : > { %v9623_v27 = vmax.f32 %v9620_v22, 0.0 }
 0x9bc   : > { %v9627_v55 = vsel %vm9626_vm15, %v9623_v27, -1e+30 }
 0x9bd   : > { %9628 = vmax.xlane.f32.xlu0 %v9627_v55 }
 0x9bf   : > { %v9621_v25 = vpop.f32.mrf.mxu1 }
 0xa30   : > { %v9629_v48 = vpop.xlane.xlu0 %9628 }
 0xa31   : > { %v9630_v32 = vsub.f32 %v9627_v55, %v9629_v48 }
 0xa33   : > { %v9631_v2 = vmul.f32 1.442695, %v9630_v32 }
 0xa35   : > { %14461 = vpow2.f32 %v9631_v2 }
 0xa3b   : > { %v14462_v24 = vpop.eup %14461 }
 0xa3c   : > { %9633 = vadd.xlane.f32.xlu0 %v14462_v24 }
 0xaaf   : > { %v9634_v59 = vpop.xlane.xlu0 %9633 }
 0xab0   : > { %14463 = vlog2.f32 %v9634_v59 }
 0xab6   : > { %v14464_v39 = vpop.eup %14463 }
 0xab7   : > { %v9636_v45 = vmul.f32 0.6931472, %v14464_v39 }
 0xab9   : > { %v9637_v20 = vsub.f32 %v9630_v32, %v9636_v45 }
 0xabb   : > { %9638 = vst [vmem:[%s490_s27] sm:$0xff] %v9637_v20 }
 0xabc   : > { %14494 = shalt.err (!%p14491_p3)
}
 0xabd   : > { %14419 = dma.vmem_to_hbm [thread:$0]  (%p14648_p5), %s9653_s1, 128, %s9655_s20, %s9640_s24  }
 0xabe PF: > { %p14425_p4 = scmp.ge.s32.totalorder %s14529_s21, 2  ;;  %s9666_s0 = sand.u32 1, %s14517_s18  }
 0xabf   : > { %s9667_s27 = scalar_lea.sflag [#allocation3], %s9666_s0 }
 0xac0   : > { %p14422_p7 = pnand %p14425_p4, %p14652_p6 }
 0xac2   : > { %p14423_p8 = pneg %p14422_p7 }
 0xac4   : > { %14512 = dma.done.wait (%p14423_p8), %s9667_s27, 128  }
 0xac5   : > { %14514 = vsyncadd (%p14423_p8), %s9667_s27, 4294967168  ;;  %s21631_s21 = sld [smem:[#allocation6_spill]]  ;;  %s21634_s18 = smov %s14521_s19 }
 0xac6   : > { %s21632_s29 = sld [smem:[#allocation5_spill]] }
 0xac7   : > { %s21633_s20 = sld [smem:[#allocation7_spill]] }
 0xacb   : > { %p25_p9 = scmp.ge.s32.totalorder %s21631_s21, 4  }
 0xacc   : > { %s21635_s19 = smov %s21632_s29 }
 0xacd   :  { %27 = sbr.rel (!%p25_p9) target bundleno = 6 (0x6), region = 128 }
 0xad2   :  { %9673 = vsyncpa [#allocation3], 1 }
 0xad3   :  { %9675 = vsyncpa [#allocation3 + $0x1], 1 }

</bundles_post_ra>
